<compile_context>
chip_gen: v6e
topology: v6e:2x2x1
jax: 0.10.0
libtpu: 0.0.40
codegen_flags: <defaults>
</compile_context>

<pallas_src>
import functools

import jax
import jax.numpy as jnp
from jax.experimental import pallas as pl
from jax.experimental.pallas import tpu as pltpu


# ----------------------------- Pallas kernels ------------------------------ #

def _conv_gn_relu_kernel(x_ref, w_ref, b_ref, g_ref, beta_ref, m_ref, mt_ref,
                         mask_ref, o_ref, *, tap_offsets, t_out, nv, npg, eps):
    """Fused conv (phase-decomposed) + bias + GroupNorm + ReLU, one batch item.

    x_ref    : [1, Tin, C4]    bf16  flattened phase-decomposed padded input
    w_ref    : [ntaps, C4, C]  bf16  per-tap weight slices
    b_ref    : [1, C]  f32           conv bias
    g_ref    : [1, C]  f32           GroupNorm gamma
    beta_ref : [1, C]  f32           GroupNorm beta
    m_ref    : [C, G]  f32           one-hot channel -> group map
    mt_ref   : [G, C]  f32           its transpose
    mask_ref : [Tout, 1] f32         1.0 on valid flattened output positions
    o_ref    : [1, Tout, C]    bf16
    """
    # Conv accumulation: bf16 tap slices straight from the ref -> MXU, f32 acc.
    acc = None
    for t, off in enumerate(tap_offsets):
        xs = x_ref[0, pl.ds(off, t_out), :]                  # bf16 [Tout, C4]
        part = jnp.dot(xs, w_ref[t], preferred_element_type=jnp.float32)
        acc = part if acc is None else acc + part            # [Tout, C] f32

    # GroupNorm statistics on the bias-free matmul output (f32); junk
    # (wrapped) positions masked out.  The conv bias is folded analytically,
    # per channel, before a single batched group-reduce matmul.
    mask = mask_ref[...]                                     # [Tout, 1]
    bias = b_ref[...]                                        # [1, C]
    ym = acc * mask                                          # reused below
    s1 = jnp.sum(ym, axis=0, keepdims=True)                  # [1, C]  sum y
    s2 = jnp.sum(ym * acc, axis=0, keepdims=True)            # [1, C]  sum y^2

    q1 = s1 + nv * bias                                      # sum (y + b)
    q2 = s2 + 2.0 * bias * s1 + nv * bias * bias             # sum (y + b)^2
    q = jnp.concatenate([q1, q2], axis=0)                    # [2, C]

    qg = jnp.dot(q, m_ref[...],
                 preferred_element_type=jnp.float32) / npg   # [2, G]
    mean_g = qg[0:1, :]                                      # E[x]   per group
    inv_g = jax.lax.rsqrt(qg[1:2, :] - mean_g * mean_g + eps)

    gi = jnp.concatenate([mean_g, inv_g], axis=0)            # [2, G]
    back = jnp.dot(gi, mt_ref[...],
                   preferred_element_type=jnp.float32)       # [2, C]
    a = back[1:2, :] * g_ref[...]                            # inv_std * gamma
    c = (bias - back[0:1, :]) * a + beta_ref[...]

    o_ref[0] = jnp.maximum(acc * a + c, 0.0).astype(o_ref.dtype)


def _matmul_bias_kernel(p_ref, w_ref, b_ref, o_ref):
    """Patchify conv as a single matmul (bf16 x bf16 -> f32) + bias."""
    o_ref[...] = jnp.dot(p_ref[...], w_ref[...],
                         preferred_element_type=jnp.float32) + b_ref[...]


# ------------------------------ Pallas wrappers ----------------------------- #

def _phase_decompose(x_nhwc, pad):
    """[B,H,W,C] -> ([B,Hq,Wq,4C] bf16, Hq, Wq): zero-pad then space-to-depth
    by 2, phases merged into the channel dim in (pr, pc, c) order."""
    B, H, W, C = x_nhwc.shape
    xp = jnp.pad(x_nhwc, ((0, 0), (pad, pad), (pad, pad), (0, 0)))
    Hp, Wp = H + 2 * pad, W + 2 * pad
    eh, ew = Hp % 2, Wp % 2                       # round padded dims up to even
    if eh or ew:
        xp = jnp.pad(xp, ((0, 0), (0, eh), (0, ew), (0, 0)))
    Hq, Wq = (Hp + eh) // 2, (Wp + ew) // 2
    xq = xp.reshape(B, Hq, 2, Wq, 2, C).transpose(0, 1, 3, 2, 4, 5)
    return xq.reshape(B, Hq, Wq, 4 * C).astype(jnp.bfloat16), Hq, Wq


def conv_gn_relu(x_nhwc, w_taps, b, gamma, beta, groups, *, k, stride, pad,
                 eps=1e-5):
    """Conv(k, stride=2, pad) + GroupNorm + ReLU -> [B, Ho, Wo, Cout] bf16."""
    assert stride == 2, "phase-decomposed conv path assumes stride == 2"
    B, H, W, Cin = x_nhwc.shape
    ntaps, C4, Cout = w_taps.shape
    ndh = (k - 1) // 2 + 1
    assert ntaps == ndh * ndh and C4 == 4 * Cin

    Ho = (H + 2 * pad - k) // stride + 1
    Wo = (W + 2 * pad - k) // stride + 1

    xq, Hq, Wq = _phase_decompose(x_nhwc, pad)
    assert Hq >= Ho + ndh - 1 and Wq >= Wo + ndh - 1
    # a few extra zero rows so every in-kernel tap slice stays in bounds
    xq = jnp.pad(xq, ((0, 0), (0, ndh), (0, 0), (0, 0)))
    Tin = (Hq + ndh) * Wq
    xf = xq.reshape(B, Tin, C4)

    T = Ho * Wq                               # flattened output rows incl. junk
    tap_offsets = tuple(dh * Wq + dw for dh in range(ndh) for dw in range(ndh))
    mask = (jnp.arange(T) % Wq < Wo).astype(jnp.float32).reshape(T, 1)

    cg = Cout // groups
    m = (jnp.arange(Cout)[:, None] // cg
         == jnp.arange(groups)[None, :]).astype(jnp.float32)            # [C, G]
    mt = m.T

    kernel = functools.partial(
        _conv_gn_relu_kernel, tap_offsets=tap_offsets, t_out=T,
        nv=float(Ho * Wo), npg=float(Ho * Wo * cg), eps=eps)

    flops = 2 * B * T * ntaps * C4 * Cout
    bytes_accessed = (B * Tin * C4 + w_taps.size + B * T * Cout) * 2

    out = pl.pallas_call(
        kernel,
        out_shape=jax.ShapeDtypeStruct((B, T, Cout), jnp.bfloat16),
        grid=(B,),
        in_specs=[
            pl.BlockSpec((1, Tin, C4), lambda i: (i, 0, 0)),
            pl.BlockSpec((ntaps, C4, Cout), lambda i: (0, 0, 0)),
            pl.BlockSpec((1, Cout), lambda i: (0, 0)),
            pl.BlockSpec((1, Cout), lambda i: (0, 0)),
            pl.BlockSpec((1, Cout), lambda i: (0, 0)),
            pl.BlockSpec((Cout, groups), lambda i: (0, 0)),
            pl.BlockSpec((groups, Cout), lambda i: (0, 0)),
            pl.BlockSpec((T, 1), lambda i: (0, 0)),
        ],
        out_specs=pl.BlockSpec((1, T, Cout), lambda i: (i, 0, 0)),
        compiler_params=pltpu.CompilerParams(
            dimension_semantics=("parallel",),
            vmem_limit_bytes=64 * 1024 * 1024),
        cost_estimate=pl.CostEstimate(flops=int(flops), transcendentals=0,
                                      bytes_accessed=int(bytes_accessed)),
    )(xf, w_taps, b.reshape(1, Cout), gamma.reshape(1, Cout),
      beta.reshape(1, Cout), m, mt, mask)

    # strip junk columns and go back to NHWC for the next layer
    # TODO(synk): fuse this strip + next layer's pad/space-to-depth into the
    # kernel epilogue (lane-dense phase-layout store) to kill the extra HBM
    # round trip and masked vst for Cout=32/64.
    return out.reshape(B, Ho, Wq, Cout)[:, :, :Wo, :]


def matmul_bias(patches2d, w, b):
    """Single-block [M,K]x[K,F] matmul + bias (M = B * tokens)."""
    M, K = patches2d.shape
    F = w.shape[1]
    flops = 2 * M * K * F
    bytes_accessed = (M * K + w.size) * 2 + M * F * 4
    return pl.pallas_call(
        _matmul_bias_kernel,
        out_shape=jax.ShapeDtypeStruct((M, F), jnp.float32),
        grid=(1,),
        in_specs=[
            pl.BlockSpec((M, K), lambda i: (0, 0)),
            pl.BlockSpec((K, F), lambda i: (0, 0)),
            pl.BlockSpec((1, F), lambda i: (0, 0)),
        ],
        out_specs=pl.BlockSpec((M, F), lambda i: (0, 0)),
        compiler_params=pltpu.CompilerParams(
            dimension_semantics=("arbitrary",)),
        cost_estimate=pl.CostEstimate(flops=int(flops), transcendentals=0,
                                      bytes_accessed=int(bytes_accessed)),
    )(patches2d, w, b.reshape(1, F))


# --------------------------------- weights ---------------------------------- #

def _make_phase_weights(w_oihw, k):
    """PyTorch [Cout, Cin, k, k] stride-2 conv weight ->
       [ndh*ndh, 4*Cin, Cout] per-tap weights of the equivalent stride-1 conv
       over the phase-decomposed input (phase order (pr, pc, c))."""
    cout, cin = w_oihw.shape[0], w_oihw.shape[1]
    w_hwio = jnp.transpose(w_oihw, (2, 3, 1, 0))          # [kh, kw, cin, cout]
    ndh = (k - 1) // 2 + 1
    zeros = jnp.zeros((cin, cout), w_hwio.dtype)
    taps = []
    for dh in range(ndh):
        for dw in range(ndh):
            blocks = []
            for pr in range(2):
                for pc in range(2):
                    kh, kw = 2 * dh + pr, 2 * dw + pc
                    blocks.append(w_hwio[kh, kw] if (kh < k and kw < k)
                                  else zeros)
            taps.append(jnp.concatenate(blocks, axis=0))  # [4*cin, cout]
    return jnp.stack(taps, axis=0)                        # [ndh*ndh, 4*cin, cout]


def init_small_stem_params(key, *, patch_size=16, in_channels=3,
                           channels_per_group=16,
                           kernel_sizes=(3, 3, 3, 3), strides=(2, 2, 2, 2),
                           features=(32, 64, 128, 256), padding=(1, 1, 1, 1),
                           num_features=256):
    params = {"cnn": []}
    cin = in_channels
    for k, s, f, p in zip(kernel_sizes, strides, features, padding):
        key, kw_, kb_ = jax.random.split(key, 3)
        w = jax.random.normal(kw_, (f, cin, k, k), jnp.float32) * 0.05
        params["cnn"].append({
            "k": k, "s": s, "p": p,
            "w_taps": _make_phase_weights(w, k).astype(jnp.bfloat16),
            "b": jax.random.normal(kb_, (f,), jnp.float32) * 0.01,
            "gamma": jnp.ones((f,), jnp.float32),
            "beta": jnp.zeros((f,), jnp.float32),
            "groups": f // channels_per_group,
        })
        cin = f
    pk = patch_size // 16
    key, kw_, kb_ = jax.random.split(key, 3)
    wp = jax.random.normal(kw_, (num_features, cin, pk, pk), jnp.float32) * 0.05
    params["patchify"] = {
        "k": pk,
        "w": jnp.transpose(wp, (2, 3, 1, 0)).reshape(pk * pk * cin,
                                                     num_features
                                                     ).astype(jnp.bfloat16),
        "b": jax.random.normal(kb_, (num_features,), jnp.float32) * 0.01,
    }
    return params


# ---------------------------------- forward --------------------------------- #

def small_stem_forward(x_nchw, params):
    """x_nchw: [B, Cin, H, W] -> [B, tokens, num_features] ('b (h w) c')."""
    x = jnp.transpose(x_nchw, (0, 2, 3, 1)).astype(jnp.bfloat16)   # NHWC bf16
    for layer in params["cnn"]:
        x = conv_gn_relu(x, layer["w_taps"], layer["b"], layer["gamma"],
                         layer["beta"], layer["groups"],
                         k=layer["k"], stride=layer["s"], pad=layer["p"])
    pf = params["patchify"]
    pk = pf["k"]
    B, H, W, C = x.shape
    if pk == 1:
        tokens = H * W                            # 1x1 conv: no im2col at all
        patches = x.reshape(B * tokens, C)
    else:
        ho, wo = H // pk, W // pk                 # kernel == stride: reshape only
        tokens = ho * wo
        patches = (x.reshape(B, ho, pk, wo, pk, C)
                   .transpose(0, 1, 3, 2, 4, 5)
                   .reshape(B * tokens, pk * pk * C))
    out = matmul_bias(patches, pf["w"], pf["b"])
    return out.reshape(B, tokens, -1)


# ----------------------------------- main ----------------------------------- #

if __name__ == "__main__":
    key = jax.random.PRNGKey(0)
    key, kx = jax.random.split(key)

    B, Cin, H, W = 2, 3, 32, 32
    x = jax.random.normal(kx, (B, Cin, H, W), jnp.float32)

    params = init_small_stem_params(key)
    fwd = jax.jit(lambda inp: small_stem_forward(inp, params))
    out = jax.block_until_ready(fwd(x))

    # 32 -> 16 -> 8 -> 4 -> 2 spatially; 1x1 patchify keeps 2x2 = 4 tokens.
    assert out.shape == (B, 4, 256), out.shape
    assert bool(jnp.all(jnp.isfinite(out)))
    print("KERNEL_OK")
</pallas_src>

<mosaic_0001>
module attributes {stable_mosaic.version = 11 : i64} {
  func.func @_conv_gn_relu_kernel(%arg0: i32, %arg1: memref<1x323x12xbf16, #tpu.memory_space<vmem>>, %arg2: memref<4x12x32xbf16, #tpu.memory_space<vmem>>, %arg3: memref<1x32xf32, #tpu.memory_space<vmem>>, %arg4: memref<1x32xf32, #tpu.memory_space<vmem>>, %arg5: memref<1x32xf32, #tpu.memory_space<vmem>>, %arg6: memref<32x2xf32, #tpu.memory_space<vmem>>, %arg7: memref<2x32xf32, #tpu.memory_space<vmem>>, %arg8: memref<272x1xf32, #tpu.memory_space<vmem>>, %arg9: memref<1x272x32xbf16, #tpu.memory_space<vmem>>) attributes {dimension_semantics = [#tpu.dimension_semantics<parallel>], iteration_bounds = array<i64: 2>, scalar_prefetch = 0 : i64, scratch_operands = 0 : i64, tpu.core_type = #tpu.core_type<tc>, window_params = [{transform_indices = @transform_0, window_bounds = array<i64: 1, 323, 12>}, {pipeline_mode = #tpu.pipeline_mode<synchronous>, transform_indices = @transform_1, window_bounds = array<i64: 4, 12, 32>}, {pipeline_mode = #tpu.pipeline_mode<synchronous>, transform_indices = @transform_2, window_bounds = array<i64: 1, 32>}, {pipeline_mode = #tpu.pipeline_mode<synchronous>, transform_indices = @transform_3, window_bounds = array<i64: 1, 32>}, {pipeline_mode = #tpu.pipeline_mode<synchronous>, transform_indices = @transform_4, window_bounds = array<i64: 1, 32>}, {pipeline_mode = #tpu.pipeline_mode<synchronous>, transform_indices = @transform_5, window_bounds = array<i64: 32, 2>}, {pipeline_mode = #tpu.pipeline_mode<synchronous>, transform_indices = @transform_6, window_bounds = array<i64: 2, 32>}, {pipeline_mode = #tpu.pipeline_mode<synchronous>, transform_indices = @transform_7, window_bounds = array<i64: 272, 1>}, {transform_indices = @transform_8, window_bounds = array<i64: 1, 272, 32>}]} {
    %c0 = arith.constant 0 : index
    %c0_0 = arith.constant 0 : index
    %c0_1 = arith.constant 0 : index
    %0 = vector.load %arg1[%c0, %c0_0, %c0_1] : memref<1x323x12xbf16, #tpu.memory_space<vmem>>, vector<1x272x12xbf16>
    %1 = vector.shape_cast %0 : vector<1x272x12xbf16> to vector<272x12xbf16>
    %c0_2 = arith.constant 0 : index
    %c0_3 = arith.constant 0 : index
    %c0_4 = arith.constant 0 : index
    %2 = vector.load %arg2[%c0_2, %c0_3, %c0_4] : memref<4x12x32xbf16, #tpu.memory_space<vmem>>, vector<1x12x32xbf16>
    %3 = vector.shape_cast %2 : vector<1x12x32xbf16> to vector<12x32xbf16>
    %cst = arith.constant dense<0.000000e+00> : vector<272x32xf32>
    %4 = tpu.matmul %1, %3, %cst {dimension_numbers = #tpu.dot_dimension_numbers<[1], [0], [0], [1], [0, 0, 1, 1], [], []>} : vector<272x12xbf16>, vector<12x32xbf16>, vector<272x32xf32> -> vector<272x32xf32>
    %c0_5 = arith.constant 0 : index
    %c1 = arith.constant 1 : index
    %c0_6 = arith.constant 0 : index
    %5 = vector.load %arg1[%c0_5, %c1, %c0_6] : memref<1x323x12xbf16, #tpu.memory_space<vmem>>, vector<1x272x12xbf16>
    %6 = vector.shape_cast %5 : vector<1x272x12xbf16> to vector<272x12xbf16>
    %c1_7 = arith.constant 1 : index
    %c0_8 = arith.constant 0 : index
    %c0_9 = arith.constant 0 : index
    %7 = vector.load %arg2[%c1_7, %c0_8, %c0_9] : memref<4x12x32xbf16, #tpu.memory_space<vmem>>, vector<1x12x32xbf16>
    %8 = vector.shape_cast %7 : vector<1x12x32xbf16> to vector<12x32xbf16>
    %cst_10 = arith.constant dense<0.000000e+00> : vector<272x32xf32>
    %9 = tpu.matmul %6, %8, %cst_10 {dimension_numbers = #tpu.dot_dimension_numbers<[1], [0], [0], [1], [0, 0, 1, 1], [], []>} : vector<272x12xbf16>, vector<12x32xbf16>, vector<272x32xf32> -> vector<272x32xf32>
    %10 = arith.addf %4, %9 : vector<272x32xf32>
    %c0_11 = arith.constant 0 : index
    %c17 = arith.constant 17 : index
    %c0_12 = arith.constant 0 : index
    %11 = vector.load %arg1[%c0_11, %c17, %c0_12] : memref<1x323x12xbf16, #tpu.memory_space<vmem>>, vector<1x272x12xbf16>
    %12 = vector.shape_cast %11 : vector<1x272x12xbf16> to vector<272x12xbf16>
    %c2 = arith.constant 2 : index
    %c0_13 = arith.constant 0 : index
    %c0_14 = arith.constant 0 : index
    %13 = vector.load %arg2[%c2, %c0_13, %c0_14] : memref<4x12x32xbf16, #tpu.memory_space<vmem>>, vector<1x12x32xbf16>
    %14 = vector.shape_cast %13 : vector<1x12x32xbf16> to vector<12x32xbf16>
    %cst_15 = arith.constant dense<0.000000e+00> : vector<272x32xf32>
    %15 = tpu.matmul %12, %14, %cst_15 {dimension_numbers = #tpu.dot_dimension_numbers<[1], [0], [0], [1], [0, 0, 1, 1], [], []>} : vector<272x12xbf16>, vector<12x32xbf16>, vector<272x32xf32> -> vector<272x32xf32>
    %16 = arith.addf %10, %15 : vector<272x32xf32>
    %c0_16 = arith.constant 0 : index
    %c18 = arith.constant 18 : index
    %c0_17 = arith.constant 0 : index
    %17 = vector.load %arg1[%c0_16, %c18, %c0_17] : memref<1x323x12xbf16, #tpu.memory_space<vmem>>, vector<1x272x12xbf16>
    %18 = vector.shape_cast %17 : vector<1x272x12xbf16> to vector<272x12xbf16>
    %c3 = arith.constant 3 : index
    %c0_18 = arith.constant 0 : index
    %c0_19 = arith.constant 0 : index
    %19 = vector.load %arg2[%c3, %c0_18, %c0_19] : memref<4x12x32xbf16, #tpu.memory_space<vmem>>, vector<1x12x32xbf16>
    %20 = vector.shape_cast %19 : vector<1x12x32xbf16> to vector<12x32xbf16>
    %cst_20 = arith.constant dense<0.000000e+00> : vector<272x32xf32>
    %21 = tpu.matmul %18, %20, %cst_20 {dimension_numbers = #tpu.dot_dimension_numbers<[1], [0], [0], [1], [0, 0, 1, 1], [], []>} : vector<272x12xbf16>, vector<12x32xbf16>, vector<272x32xf32> -> vector<272x32xf32>
    %22 = arith.addf %16, %21 : vector<272x32xf32>
    %c0_21 = arith.constant 0 : index
    %c0_22 = arith.constant 0 : index
    %23 = vector.load %arg8[%c0_21, %c0_22] : memref<272x1xf32, #tpu.memory_space<vmem>>, vector<272x1xf32>
    %c0_23 = arith.constant 0 : index
    %c0_24 = arith.constant 0 : index
    %24 = vector.load %arg3[%c0_23, %c0_24] : memref<1x32xf32, #tpu.memory_space<vmem>>, vector<1x32xf32>
    %25 = vector.broadcast %23 : vector<272x1xf32> to vector<272x32xf32>
    %26 = arith.mulf %22, %25 : vector<272x32xf32>
    %cst_25 = arith.constant dense<0.000000e+00> : vector<32xf32>
    %27 = vector.multi_reduction <add>, %26, %cst_25 [0] : vector<272x32xf32> to vector<32xf32>
    %28 = vector.shape_cast %27 : vector<32xf32> to vector<1x32xf32>
    %29 = arith.mulf %26, %22 : vector<272x32xf32>
    %cst_26 = arith.constant dense<0.000000e+00> : vector<32xf32>
    %30 = vector.multi_reduction <add>, %29, %cst_26 [0] : vector<272x32xf32> to vector<32xf32>
    %31 = vector.shape_cast %30 : vector<32xf32> to vector<1x32xf32>
    %cst_27 = arith.constant 2.560000e+02 : f32
    %32 = vector.broadcast %cst_27 : f32 to vector<1x32xf32>
    %33 = arith.mulf %32, %24 : vector<1x32xf32>
    %34 = arith.addf %28, %33 : vector<1x32xf32>
    %cst_28 = arith.constant 2.000000e+00 : f32
    %35 = vector.broadcast %cst_28 : f32 to vector<1x32xf32>
    %36 = arith.mulf %35, %24 : vector<1x32xf32>
    %37 = arith.mulf %36, %28 : vector<1x32xf32>
    %38 = arith.addf %31, %37 : vector<1x32xf32>
    %cst_29 = arith.constant 2.560000e+02 : f32
    %39 = vector.broadcast %cst_29 : f32 to vector<1x32xf32>
    %40 = arith.mulf %39, %24 : vector<1x32xf32>
    %41 = arith.mulf %40, %24 : vector<1x32xf32>
    %42 = arith.addf %38, %41 : vector<1x32xf32>
    %43 = tpu.concatenate %34, %42 in 0 : vector<1x32xf32>, vector<1x32xf32> -> vector<2x32xf32>
    %c0_30 = arith.constant 0 : index
    %c0_31 = arith.constant 0 : index
    %44 = vector.load %arg6[%c0_30, %c0_31] : memref<32x2xf32, #tpu.memory_space<vmem>>, vector<32x2xf32>
    %cst_32 = arith.constant dense<0.000000e+00> : vector<2x2xf32>
    %45 = tpu.matmul %43, %44, %cst_32 {dimension_numbers = #tpu.dot_dimension_numbers<[1], [0], [0], [1], [0, 0, 1, 1], [], []>} : vector<2x32xf32>, vector<32x2xf32>, vector<2x2xf32> -> vector<2x2xf32>
    %cst_33 = arith.constant 4.096000e+03 : f32
    %46 = vector.broadcast %cst_33 : f32 to vector<2x2xf32>
    %47 = arith.divf %45, %46 : vector<2x2xf32>
    %48 = vector.extract_strided_slice %47 {offsets = [0, 0], sizes = [1, 2], strides = [1, 1]} : vector<2x2xf32> to vector<1x2xf32>
    %49 = vector.extract_strided_slice %47 {offsets = [1, 0], sizes = [1, 2], strides = [1, 1]} : vector<2x2xf32> to vector<1x2xf32>
    %50 = arith.mulf %48, %48 : vector<1x2xf32>
    %51 = arith.subf %49, %50 : vector<1x2xf32>
    %cst_34 = arith.constant 9.99999974E-6 : f32
    %52 = vector.broadcast %cst_34 : f32 to vector<1x2xf32>
    %53 = arith.addf %51, %52 : vector<1x2xf32>
    %54 = math.rsqrt %53 : vector<1x2xf32>
    %55 = tpu.concatenate %48, %54 in 0 : vector<1x2xf32>, vector<1x2xf32> -> vector<2x2xf32>
    %c0_35 = arith.constant 0 : index
    %c0_36 = arith.constant 0 : index
    %56 = vector.load %arg7[%c0_35, %c0_36] : memref<2x32xf32, #tpu.memory_space<vmem>>, vector<2x32xf32>
    %cst_37 = arith.constant dense<0.000000e+00> : vector<2x32xf32>
    %57 = tpu.matmul %55, %56, %cst_37 {dimension_numbers = #tpu.dot_dimension_numbers<[1], [0], [0], [1], [0, 0, 1, 1], [], []>} : vector<2x2xf32>, vector<2x32xf32>, vector<2x32xf32> -> vector<2x32xf32>
    %58 = vector.extract_strided_slice %57 {offsets = [1, 0], sizes = [1, 32], strides = [1, 1]} : vector<2x32xf32> to vector<1x32xf32>
    %c0_38 = arith.constant 0 : index
    %c0_39 = arith.constant 0 : index
    %59 = vector.load %arg4[%c0_38, %c0_39] : memref<1x32xf32, #tpu.memory_space<vmem>>, vector<1x32xf32>
    %60 = arith.mulf %58, %59 : vector<1x32xf32>
    %61 = vector.extract_strided_slice %57 {offsets = [0, 0], sizes = [1, 32], strides = [1, 1]} : vector<2x32xf32> to vector<1x32xf32>
    %62 = arith.subf %24, %61 : vector<1x32xf32>
    %63 = arith.mulf %62, %60 : vector<1x32xf32>
    %c0_40 = arith.constant 0 : index
    %c0_41 = arith.constant 0 : index
    %64 = vector.load %arg5[%c0_40, %c0_41] : memref<1x32xf32, #tpu.memory_space<vmem>>, vector<1x32xf32>
    %65 = arith.addf %63, %64 : vector<1x32xf32>
    %66 = vector.broadcast %60 : vector<1x32xf32> to vector<272x32xf32>
    %67 = arith.mulf %22, %66 : vector<272x32xf32>
    %68 = vector.broadcast %65 : vector<1x32xf32> to vector<272x32xf32>
    %69 = arith.addf %67, %68 : vector<272x32xf32>
    %cst_42 = arith.constant 0.000000e+00 : f32
    %70 = vector.broadcast %cst_42 : f32 to vector<272x32xf32>
    %71 = arith.maximumf %69, %70 : vector<272x32xf32>
    %72 = arith.truncf %71 : vector<272x32xf32> to vector<272x32xbf16>
    %c0_43 = arith.constant 0 : index
    %c0_44 = arith.constant 0 : index
    %c0_45 = arith.constant 0 : index
    %73 = vector.load %arg9[%c0_43, %c0_44, %c0_45] : memref<1x272x32xbf16, #tpu.memory_space<vmem>>, vector<1x272x32xbf16>
    %74 = vector.shape_cast %73 : vector<1x272x32xbf16> to vector<272x32xbf16>
    %75 = vector.shape_cast %72 : vector<272x32xbf16> to vector<1x272x32xbf16>
    tpu.vector_store %arg9[%c0_43, %c0_44, %c0_45], %75 {strides = array<i32>} : memref<1x272x32xbf16, #tpu.memory_space<vmem>>, vector<1x272x32xbf16>,
    return
  }
  func.func @transform_0(%arg0: i32) -> (i32, i32, i32) {
    %c0_i32 = arith.constant 0 : i32
    %c0_i32_0 = arith.constant 0 : i32
    %c0_i32_1 = arith.constant 0 : i32
    return %arg0, %c0_i32, %c0_i32_0 : i32, i32, i32
  }
  func.func @transform_1(%arg0: i32) -> (i32, i32, i32) {
    %c0_i32 = arith.constant 0 : i32
    %c0_i32_0 = arith.constant 0 : i32
    %c0_i32_1 = arith.constant 0 : i32
    %c0_i32_2 = arith.constant 0 : i32
    return %c0_i32, %c0_i32_0, %c0_i32_1 : i32, i32, i32
  }
  func.func @transform_2(%arg0: i32) -> (i32, i32) {
    %c0_i32 = arith.constant 0 : i32
    %c0_i32_0 = arith.constant 0 : i32
    %c0_i32_1 = arith.constant 0 : i32
    return %c0_i32, %c0_i32_0 : i32, i32
  }
  func.func @transform_3(%arg0: i32) -> (i32, i32) {
    %c0_i32 = arith.constant 0 : i32
    %c0_i32_0 = arith.constant 0 : i32
    %c0_i32_1 = arith.constant 0 : i32
    return %c0_i32, %c0_i32_0 : i32, i32
  }
  func.func @transform_4(%arg0: i32) -> (i32, i32) {
    %c0_i32 = arith.constant 0 : i32
    %c0_i32_0 = arith.constant 0 : i32
    %c0_i32_1 = arith.constant 0 : i32
    return %c0_i32, %c0_i32_0 : i32, i32
  }
  func.func @transform_5(%arg0: i32) -> (i32, i32) {
    %c0_i32 = arith.constant 0 : i32
    %c0_i32_0 = arith.constant 0 : i32
    %c0_i32_1 = arith.constant 0 : i32
    return %c0_i32, %c0_i32_0 : i32, i32
  }
  func.func @transform_6(%arg0: i32) -> (i32, i32) {
    %c0_i32 = arith.constant 0 : i32
    %c0_i32_0 = arith.constant 0 : i32
    %c0_i32_1 = arith.constant 0 : i32
    return %c0_i32, %c0_i32_0 : i32, i32
  }
  func.func @transform_7(%arg0: i32) -> (i32, i32) {
    %c0_i32 = arith.constant 0 : i32
    %c0_i32_0 = arith.constant 0 : i32
    %c0_i32_1 = arith.constant 0 : i32
    return %c0_i32, %c0_i32_0 : i32, i32
  }
  func.func @transform_8(%arg0: i32) -> (i32, i32, i32) {
    %c0_i32 = arith.constant 0 : i32
    %c0_i32_0 = arith.constant 0 : i32
    %c0_i32_1 = arith.constant 0 : i32
    return %arg0, %c0_i32, %c0_i32_0 : i32, i32, i32
  }
}

module attributes {stable_mosaic.version = 11 : i64} {
  func.func @_conv_gn_relu_kernel(%arg0: i32, %arg1: memref<1x99x128xbf16, #tpu.memory_space<vmem>>, %arg2: memref<4x128x64xbf16, #tpu.memory_space<vmem>>, %arg3: memref<1x64xf32, #tpu.memory_space<vmem>>, %arg4: memref<1x64xf32, #tpu.memory_space<vmem>>, %arg5: memref<1x64xf32, #tpu.memory_space<vmem>>, %arg6: memref<64x4xf32, #tpu.memory_space<vmem>>, %arg7: memref<4x64xf32, #tpu.memory_space<vmem>>, %arg8: memref<72x1xf32, #tpu.memory_space<vmem>>, %arg9: memref<1x72x64xbf16, #tpu.memory_space<vmem>>) attributes {dimension_semantics = [#tpu.dimension_semantics<parallel>], iteration_bounds = array<i64: 2>, scalar_prefetch = 0 : i64, scratch_operands = 0 : i64, tpu.core_type = #tpu.core_type<tc>, window_params = [{transform_indices = @transform_0, window_bounds = array<i64: 1, 99, 128>}, {pipeline_mode = #tpu.pipeline_mode<synchronous>, transform_indices = @transform_1, window_bounds = array<i64: 4, 128, 64>}, {pipeline_mode = #tpu.pipeline_mode<synchronous>, transform_indices = @transform_2, window_bounds = array<i64: 1, 64>}, {pipeline_mode = #tpu.pipeline_mode<synchronous>, transform_indices = @transform_3, window_bounds = array<i64: 1, 64>}, {pipeline_mode = #tpu.pipeline_mode<synchronous>, transform_indices = @transform_4, window_bounds = array<i64: 1, 64>}, {pipeline_mode = #tpu.pipeline_mode<synchronous>, transform_indices = @transform_5, window_bounds = array<i64: 64, 4>}, {pipeline_mode = #tpu.pipeline_mode<synchronous>, transform_indices = @transform_6, window_bounds = array<i64: 4, 64>}, {pipeline_mode = #tpu.pipeline_mode<synchronous>, transform_indices = @transform_7, window_bounds = array<i64: 72, 1>}, {transform_indices = @transform_8, window_bounds = array<i64: 1, 72, 64>}]} {
    %c0 = arith.constant 0 : index
    %c0_0 = arith.constant 0 : index
    %c0_1 = arith.constant 0 : index
    %0 = vector.load %arg1[%c0, %c0_0, %c0_1] : memref<1x99x128xbf16, #tpu.memory_space<vmem>>, vector<1x72x128xbf16>
    %1 = vector.shape_cast %0 : vector<1x72x128xbf16> to vector<72x128xbf16>
    %c0_2 = arith.constant 0 : index
    %c0_3 = arith.constant 0 : index
    %c0_4 = arith.constant 0 : index
    %2 = vector.load %arg2[%c0_2, %c0_3, %c0_4] : memref<4x128x64xbf16, #tpu.memory_space<vmem>>, vector<1x128x64xbf16>
    %3 = vector.shape_cast %2 : vector<1x128x64xbf16> to vector<128x64xbf16>
    %cst = arith.constant dense<0.000000e+00> : vector<72x64xf32>
    %4 = tpu.matmul %1, %3, %cst {dimension_numbers = #tpu.dot_dimension_numbers<[1], [0], [0], [1], [0, 0, 1, 1], [], []>} : vector<72x128xbf16>, vector<128x64xbf16>, vector<72x64xf32> -> vector<72x64xf32>
    %c0_5 = arith.constant 0 : index
    %c1 = arith.constant 1 : index
    %c0_6 = arith.constant 0 : index
    %5 = vector.load %arg1[%c0_5, %c1, %c0_6] : memref<1x99x128xbf16, #tpu.memory_space<vmem>>, vector<1x72x128xbf16>
    %6 = vector.shape_cast %5 : vector<1x72x128xbf16> to vector<72x128xbf16>
    %c1_7 = arith.constant 1 : index
    %c0_8 = arith.constant 0 : index
    %c0_9 = arith.constant 0 : index
    %7 = vector.load %arg2[%c1_7, %c0_8, %c0_9] : memref<4x128x64xbf16, #tpu.memory_space<vmem>>, vector<1x128x64xbf16>
    %8 = vector.shape_cast %7 : vector<1x128x64xbf16> to vector<128x64xbf16>
    %cst_10 = arith.constant dense<0.000000e+00> : vector<72x64xf32>
    %9 = tpu.matmul %6, %8, %cst_10 {dimension_numbers = #tpu.dot_dimension_numbers<[1], [0], [0], [1], [0, 0, 1, 1], [], []>} : vector<72x128xbf16>, vector<128x64xbf16>, vector<72x64xf32> -> vector<72x64xf32>
    %10 = arith.addf %4, %9 : vector<72x64xf32>
    %c0_11 = arith.constant 0 : index
    %c9 = arith.constant 9 : index
    %c0_12 = arith.constant 0 : index
    %11 = vector.load %arg1[%c0_11, %c9, %c0_12] : memref<1x99x128xbf16, #tpu.memory_space<vmem>>, vector<1x72x128xbf16>
    %12 = vector.shape_cast %11 : vector<1x72x128xbf16> to vector<72x128xbf16>
    %c2 = arith.constant 2 : index
    %c0_13 = arith.constant 0 : index
    %c0_14 = arith.constant 0 : index
    %13 = vector.load %arg2[%c2, %c0_13, %c0_14] : memref<4x128x64xbf16, #tpu.memory_space<vmem>>, vector<1x128x64xbf16>
    %14 = vector.shape_cast %13 : vector<1x128x64xbf16> to vector<128x64xbf16>
    %cst_15 = arith.constant dense<0.000000e+00> : vector<72x64xf32>
    %15 = tpu.matmul %12, %14, %cst_15 {dimension_numbers = #tpu.dot_dimension_numbers<[1], [0], [0], [1], [0, 0, 1, 1], [], []>} : vector<72x128xbf16>, vector<128x64xbf16>, vector<72x64xf32> -> vector<72x64xf32>
    %16 = arith.addf %10, %15 : vector<72x64xf32>
    %c0_16 = arith.constant 0 : index
    %c10 = arith.constant 10 : index
    %c0_17 = arith.constant 0 : index
    %17 = vector.load %arg1[%c0_16, %c10, %c0_17] : memref<1x99x128xbf16, #tpu.memory_space<vmem>>, vector<1x72x128xbf16>
    %18 = vector.shape_cast %17 : vector<1x72x128xbf16> to vector<72x128xbf16>
    %c3 = arith.constant 3 : index
    %c0_18 = arith.constant 0 : index
    %c0_19 = arith.constant 0 : index
    %19 = vector.load %arg2[%c3, %c0_18, %c0_19] : memref<4x128x64xbf16, #tpu.memory_space<vmem>>, vector<1x128x64xbf16>
    %20 = vector.shape_cast %19 : vector<1x128x64xbf16> to vector<128x64xbf16>
    %cst_20 = arith.constant dense<0.000000e+00> : vector<72x64xf32>
    %21 = tpu.matmul %18, %20, %cst_20 {dimension_numbers = #tpu.dot_dimension_numbers<[1], [0], [0], [1], [0, 0, 1, 1], [], []>} : vector<72x128xbf16>, vector<128x64xbf16>, vector<72x64xf32> -> vector<72x64xf32>
    %22 = arith.addf %16, %21 : vector<72x64xf32>
    %c0_21 = arith.constant 0 : index
    %c0_22 = arith.constant 0 : index
    %23 = vector.load %arg8[%c0_21, %c0_22] : memref<72x1xf32, #tpu.memory_space<vmem>>, vector<72x1xf32>
    %c0_23 = arith.constant 0 : index
    %c0_24 = arith.constant 0 : index
    %24 = vector.load %arg3[%c0_23, %c0_24] : memref<1x64xf32, #tpu.memory_space<vmem>>, vector<1x64xf32>
    %25 = vector.broadcast %23 : vector<72x1xf32> to vector<72x64xf32>
    %26 = arith.mulf %22, %25 : vector<72x64xf32>
    %cst_25 = arith.constant dense<0.000000e+00> : vector<64xf32>
    %27 = vector.multi_reduction <add>, %26, %cst_25 [0] : vector<72x64xf32> to vector<64xf32>
    %28 = vector.shape_cast %27 : vector<64xf32> to vector<1x64xf32>
    %29 = arith.mulf %26, %22 : vector<72x64xf32>
    %cst_26 = arith.constant dense<0.000000e+00> : vector<64xf32>
    %30 = vector.multi_reduction <add>, %29, %cst_26 [0] : vector<72x64xf32> to vector<64xf32>
    %31 = vector.shape_cast %30 : vector<64xf32> to vector<1x64xf32>
    %cst_27 = arith.constant 6.400000e+01 : f32
    %32 = vector.broadcast %cst_27 : f32 to vector<1x64xf32>
    %33 = arith.mulf %32, %24 : vector<1x64xf32>
    %34 = arith.addf %28, %33 : vector<1x64xf32>
    %cst_28 = arith.constant 2.000000e+00 : f32
    %35 = vector.broadcast %cst_28 : f32 to vector<1x64xf32>
    %36 = arith.mulf %35, %24 : vector<1x64xf32>
    %37 = arith.mulf %36, %28 : vector<1x64xf32>
    %38 = arith.addf %31, %37 : vector<1x64xf32>
    %cst_29 = arith.constant 6.400000e+01 : f32
    %39 = vector.broadcast %cst_29 : f32 to vector<1x64xf32>
    %40 = arith.mulf %39, %24 : vector<1x64xf32>
    %41 = arith.mulf %40, %24 : vector<1x64xf32>
    %42 = arith.addf %38, %41 : vector<1x64xf32>
    %43 = tpu.concatenate %34, %42 in 0 : vector<1x64xf32>, vector<1x64xf32> -> vector<2x64xf32>
    %c0_30 = arith.constant 0 : index
    %c0_31 = arith.constant 0 : index
    %44 = vector.load %arg6[%c0_30, %c0_31] : memref<64x4xf32, #tpu.memory_space<vmem>>, vector<64x4xf32>
    %cst_32 = arith.constant dense<0.000000e+00> : vector<2x4xf32>
    %45 = tpu.matmul %43, %44, %cst_32 {dimension_numbers = #tpu.dot_dimension_numbers<[1], [0], [0], [1], [0, 0, 1, 1], [], []>} : vector<2x64xf32>, vector<64x4xf32>, vector<2x4xf32> -> vector<2x4xf32>
    %cst_33 = arith.constant 1.024000e+03 : f32
    %46 = vector.broadcast %cst_33 : f32 to vector<2x4xf32>
    %47 = arith.divf %45, %46 : vector<2x4xf32>
    %48 = vector.extract_strided_slice %47 {offsets = [0, 0], sizes = [1, 4], strides = [1, 1]} : vector<2x4xf32> to vector<1x4xf32>
    %49 = vector.extract_strided_slice %47 {offsets = [1, 0], sizes = [1, 4], strides = [1, 1]} : vector<2x4xf32> to vector<1x4xf32>
    %50 = arith.mulf %48, %48 : vector<1x4xf32>
    %51 = arith.subf %49, %50 : vector<1x4xf32>
    %cst_34 = arith.constant 9.99999974E-6 : f32
    %52 = vector.broadcast %cst_34 : f32 to vector<1x4xf32>
    %53 = arith.addf %51, %52 : vector<1x4xf32>
    %54 = math.rsqrt %53 : vector<1x4xf32>
    %55 = tpu.concatenate %48, %54 in 0 : vector<1x4xf32>, vector<1x4xf32> -> vector<2x4xf32>
    %c0_35 = arith.constant 0 : index
    %c0_36 = arith.constant 0 : index
    %56 = vector.load %arg7[%c0_35, %c0_36] : memref<4x64xf32, #tpu.memory_space<vmem>>, vector<4x64xf32>
    %cst_37 = arith.constant dense<0.000000e+00> : vector<2x64xf32>
    %57 = tpu.matmul %55, %56, %cst_37 {dimension_numbers = #tpu.dot_dimension_numbers<[1], [0], [0], [1], [0, 0, 1, 1], [], []>} : vector<2x4xf32>, vector<4x64xf32>, vector<2x64xf32> -> vector<2x64xf32>
    %58 = vector.extract_strided_slice %57 {offsets = [1, 0], sizes = [1, 64], strides = [1, 1]} : vector<2x64xf32> to vector<1x64xf32>
    %c0_38 = arith.constant 0 : index
    %c0_39 = arith.constant 0 : index
    %59 = vector.load %arg4[%c0_38, %c0_39] : memref<1x64xf32, #tpu.memory_space<vmem>>, vector<1x64xf32>
    %60 = arith.mulf %58, %59 : vector<1x64xf32>
    %61 = vector.extract_strided_slice %57 {offsets = [0, 0], sizes = [1, 64], strides = [1, 1]} : vector<2x64xf32> to vector<1x64xf32>
    %62 = arith.subf %24, %61 : vector<1x64xf32>
    %63 = arith.mulf %62, %60 : vector<1x64xf32>
    %c0_40 = arith.constant 0 : index
    %c0_41 = arith.constant 0 : index
    %64 = vector.load %arg5[%c0_40, %c0_41] : memref<1x64xf32, #tpu.memory_space<vmem>>, vector<1x64xf32>
    %65 = arith.addf %63, %64 : vector<1x64xf32>
    %66 = vector.broadcast %60 : vector<1x64xf32> to vector<72x64xf32>
    %67 = arith.mulf %22, %66 : vector<72x64xf32>
    %68 = vector.broadcast %65 : vector<1x64xf32> to vector<72x64xf32>
    %69 = arith.addf %67, %68 : vector<72x64xf32>
    %cst_42 = arith.constant 0.000000e+00 : f32
    %70 = vector.broadcast %cst_42 : f32 to vector<72x64xf32>
    %71 = arith.maximumf %69, %70 : vector<72x64xf32>
    %72 = arith.truncf %71 : vector<72x64xf32> to vector<72x64xbf16>
    %c0_43 = arith.constant 0 : index
    %c0_44 = arith.constant 0 : index
    %c0_45 = arith.constant 0 : index
    %73 = vector.load %arg9[%c0_43, %c0_44, %c0_45] : memref<1x72x64xbf16, #tpu.memory_space<vmem>>, vector<1x72x64xbf16>
    %74 = vector.shape_cast %73 : vector<1x72x64xbf16> to vector<72x64xbf16>
    %75 = vector.shape_cast %72 : vector<72x64xbf16> to vector<1x72x64xbf16>
    tpu.vector_store %arg9[%c0_43, %c0_44, %c0_45], %75 {strides = array<i32>} : memref<1x72x64xbf16, #tpu.memory_space<vmem>>, vector<1x72x64xbf16>,
    return
  }
  func.func @transform_0(%arg0: i32) -> (i32, i32, i32) {
    %c0_i32 = arith.constant 0 : i32
    %c0_i32_0 = arith.constant 0 : i32
    %c0_i32_1 = arith.constant 0 : i32
    return %arg0, %c0_i32, %c0_i32_0 : i32, i32, i32
  }
  func.func @transform_1(%arg0: i32) -> (i32, i32, i32) {
    %c0_i32 = arith.constant 0 : i32
    %c0_i32_0 = arith.constant 0 : i32
    %c0_i32_1 = arith.constant 0 : i32
    %c0_i32_2 = arith.constant 0 : i32
    return %c0_i32, %c0_i32_0, %c0_i32_1 : i32, i32, i32
  }
  func.func @transform_2(%arg0: i32) -> (i32, i32) {
    %c0_i32 = arith.constant 0 : i32
    %c0_i32_0 = arith.constant 0 : i32
    %c0_i32_1 = arith.constant 0 : i32
    return %c0_i32, %c0_i32_0 : i32, i32
  }
  func.func @transform_3(%arg0: i32) -> (i32, i32) {
    %c0_i32 = arith.constant 0 : i32
    %c0_i32_0 = arith.constant 0 : i32
    %c0_i32_1 = arith.constant 0 : i32
    return %c0_i32, %c0_i32_0 : i32, i32
  }
  func.func @transform_4(%arg0: i32) -> (i32, i32) {
    %c0_i32 = arith.constant 0 : i32
    %c0_i32_0 = arith.constant 0 : i32
    %c0_i32_1 = arith.constant 0 : i32
    return %c0_i32, %c0_i32_0 : i32, i32
  }
  func.func @transform_5(%arg0: i32) -> (i32, i32) {
    %c0_i32 = arith.constant 0 : i32
    %c0_i32_0 = arith.constant 0 : i32
    %c0_i32_1 = arith.constant 0 : i32
    return %c0_i32, %c0_i32_0 : i32, i32
  }
  func.func @transform_6(%arg0: i32) -> (i32, i32) {
    %c0_i32 = arith.constant 0 : i32
    %c0_i32_0 = arith.constant 0 : i32
    %c0_i32_1 = arith.constant 0 : i32
    return %c0_i32, %c0_i32_0 : i32, i32
  }
  func.func @transform_7(%arg0: i32) -> (i32, i32) {
    %c0_i32 = arith.constant 0 : i32
    %c0_i32_0 = arith.constant 0 : i32
    %c0_i32_1 = arith.constant 0 : i32
    return %c0_i32, %c0_i32_0 : i32, i32
  }
  func.func @transform_8(%arg0: i32) -> (i32, i32, i32) {
    %c0_i32 = arith.constant 0 : i32
    %c0_i32_0 = arith.constant 0 : i32
    %c0_i32_1 = arith.constant 0 : i32
    return %arg0, %c0_i32, %c0_i32_0 : i32, i32, i32
  }
}

module attributes {stable_mosaic.version = 11 : i64} {
  func.func @_conv_gn_relu_kernel(%arg0: i32, %arg1: memref<1x35x256xbf16, #tpu.memory_space<vmem>>, %arg2: memref<4x256x128xbf16, #tpu.memory_space<vmem>>, %arg3: memref<1x128xf32, #tpu.memory_space<vmem>>, %arg4: memref<1x128xf32, #tpu.memory_space<vmem>>, %arg5: memref<1x128xf32, #tpu.memory_space<vmem>>, %arg6: memref<128x8xf32, #tpu.memory_space<vmem>>, %arg7: memref<8x128xf32, #tpu.memory_space<vmem>>, %arg8: memref<20x1xf32, #tpu.memory_space<vmem>>, %arg9: memref<1x20x128xbf16, #tpu.memory_space<vmem>>) attributes {dimension_semantics = [#tpu.dimension_semantics<parallel>], iteration_bounds = array<i64: 2>, scalar_prefetch = 0 : i64, scratch_operands = 0 : i64, tpu.core_type = #tpu.core_type<tc>, window_params = [{transform_indices = @transform_0, window_bounds = array<i64: 1, 35, 256>}, {pipeline_mode = #tpu.pipeline_mode<synchronous>, transform_indices = @transform_1, window_bounds = array<i64: 4, 256, 128>}, {pipeline_mode = #tpu.pipeline_mode<synchronous>, transform_indices = @transform_2, window_bounds = array<i64: 1, 128>}, {pipeline_mode = #tpu.pipeline_mode<synchronous>, transform_indices = @transform_3, window_bounds = array<i64: 1, 128>}, {pipeline_mode = #tpu.pipeline_mode<synchronous>, transform_indices = @transform_4, window_bounds = array<i64: 1, 128>}, {pipeline_mode = #tpu.pipeline_mode<synchronous>, transform_indices = @transform_5, window_bounds = array<i64: 128, 8>}, {pipeline_mode = #tpu.pipeline_mode<synchronous>, transform_indices = @transform_6, window_bounds = array<i64: 8, 128>}, {pipeline_mode = #tpu.pipeline_mode<synchronous>, transform_indices = @transform_7, window_bounds = array<i64: 20, 1>}, {transform_indices = @transform_8, window_bounds = array<i64: 1, 20, 128>}]} {
    %c0 = arith.constant 0 : index
    %c0_0 = arith.constant 0 : index
    %c0_1 = arith.constant 0 : index
    %0 = vector.load %arg1[%c0, %c0_0, %c0_1] : memref<1x35x256xbf16, #tpu.memory_space<vmem>>, vector<1x20x256xbf16>
    %1 = vector.shape_cast %0 : vector<1x20x256xbf16> to vector<20x256xbf16>
    %c0_2 = arith.constant 0 : index
    %c0_3 = arith.constant 0 : index
    %c0_4 = arith.constant 0 : index
    %2 = vector.load %arg2[%c0_2, %c0_3, %c0_4] : memref<4x256x128xbf16, #tpu.memory_space<vmem>>, vector<1x256x128xbf16>
    %3 = vector.shape_cast %2 : vector<1x256x128xbf16> to vector<256x128xbf16>
    %cst = arith.constant dense<0.000000e+00> : vector<20x128xf32>
    %4 = tpu.matmul %1, %3, %cst {dimension_numbers = #tpu.dot_dimension_numbers<[1], [0], [0], [1], [0, 0, 1, 1], [], []>} : vector<20x256xbf16>, vector<256x128xbf16>, vector<20x128xf32> -> vector<20x128xf32>
    %c0_5 = arith.constant 0 : index
    %c1 = arith.constant 1 : index
    %c0_6 = arith.constant 0 : index
    %5 = vector.load %arg1[%c0_5, %c1, %c0_6] : memref<1x35x256xbf16, #tpu.memory_space<vmem>>, vector<1x20x256xbf16>
    %6 = vector.shape_cast %5 : vector<1x20x256xbf16> to vector<20x256xbf16>
    %c1_7 = arith.constant 1 : index
    %c0_8 = arith.constant 0 : index
    %c0_9 = arith.constant 0 : index
    %7 = vector.load %arg2[%c1_7, %c0_8, %c0_9] : memref<4x256x128xbf16, #tpu.memory_space<vmem>>, vector<1x256x128xbf16>
    %8 = vector.shape_cast %7 : vector<1x256x128xbf16> to vector<256x128xbf16>
    %cst_10 = arith.constant dense<0.000000e+00> : vector<20x128xf32>
    %9 = tpu.matmul %6, %8, %cst_10 {dimension_numbers = #tpu.dot_dimension_numbers<[1], [0], [0], [1], [0, 0, 1, 1], [], []>} : vector<20x256xbf16>, vector<256x128xbf16>, vector<20x128xf32> -> vector<20x128xf32>
    %10 = arith.addf %4, %9 : vector<20x128xf32>
    %c0_11 = arith.constant 0 : index
    %c5 = arith.constant 5 : index
    %c0_12 = arith.constant 0 : index
    %11 = vector.load %arg1[%c0_11, %c5, %c0_12] : memref<1x35x256xbf16, #tpu.memory_space<vmem>>, vector<1x20x256xbf16>
    %12 = vector.shape_cast %11 : vector<1x20x256xbf16> to vector<20x256xbf16>
    %c2 = arith.constant 2 : index
    %c0_13 = arith.constant 0 : index
    %c0_14 = arith.constant 0 : index
    %13 = vector.load %arg2[%c2, %c0_13, %c0_14] : memref<4x256x128xbf16, #tpu.memory_space<vmem>>, vector<1x256x128xbf16>
    %14 = vector.shape_cast %13 : vector<1x256x128xbf16> to vector<256x128xbf16>
    %cst_15 = arith.constant dense<0.000000e+00> : vector<20x128xf32>
    %15 = tpu.matmul %12, %14, %cst_15 {dimension_numbers = #tpu.dot_dimension_numbers<[1], [0], [0], [1], [0, 0, 1, 1], [], []>} : vector<20x256xbf16>, vector<256x128xbf16>, vector<20x128xf32> -> vector<20x128xf32>
    %16 = arith.addf %10, %15 : vector<20x128xf32>
    %c0_16 = arith.constant 0 : index
    %c6 = arith.constant 6 : index
    %c0_17 = arith.constant 0 : index
    %17 = vector.load %arg1[%c0_16, %c6, %c0_17] : memref<1x35x256xbf16, #tpu.memory_space<vmem>>, vector<1x20x256xbf16>
    %18 = vector.shape_cast %17 : vector<1x20x256xbf16> to vector<20x256xbf16>
    %c3 = arith.constant 3 : index
    %c0_18 = arith.constant 0 : index
    %c0_19 = arith.constant 0 : index
    %19 = vector.load %arg2[%c3, %c0_18, %c0_19] : memref<4x256x128xbf16, #tpu.memory_space<vmem>>, vector<1x256x128xbf16>
    %20 = vector.shape_cast %19 : vector<1x256x128xbf16> to vector<256x128xbf16>
    %cst_20 = arith.constant dense<0.000000e+00> : vector<20x128xf32>
    %21 = tpu.matmul %18, %20, %cst_20 {dimension_numbers = #tpu.dot_dimension_numbers<[1], [0], [0], [1], [0, 0, 1, 1], [], []>} : vector<20x256xbf16>, vector<256x128xbf16>, vector<20x128xf32> -> vector<20x128xf32>
    %22 = arith.addf %16, %21 : vector<20x128xf32>
    %c0_21 = arith.constant 0 : index
    %c0_22 = arith.constant 0 : index
    %23 = vector.load %arg8[%c0_21, %c0_22] : memref<20x1xf32, #tpu.memory_space<vmem>>, vector<20x1xf32>
    %c0_23 = arith.constant 0 : index
    %c0_24 = arith.constant 0 : index
    %24 = vector.load %arg3[%c0_23, %c0_24] : memref<1x128xf32, #tpu.memory_space<vmem>>, vector<1x128xf32>
    %25 = vector.broadcast %23 : vector<20x1xf32> to vector<20x128xf32>
    %26 = arith.mulf %22, %25 : vector<20x128xf32>
    %cst_25 = arith.constant dense<0.000000e+00> : vector<128xf32>
    %27 = vector.multi_reduction <add>, %26, %cst_25 [0] : vector<20x128xf32> to vector<128xf32>
    %28 = vector.shape_cast %27 : vector<128xf32> to vector<1x128xf32>
    %29 = arith.mulf %26, %22 : vector<20x128xf32>
    %cst_26 = arith.constant dense<0.000000e+00> : vector<128xf32>
    %30 = vector.multi_reduction <add>, %29, %cst_26 [0] : vector<20x128xf32> to vector<128xf32>
    %31 = vector.shape_cast %30 : vector<128xf32> to vector<1x128xf32>
    %cst_27 = arith.constant 1.600000e+01 : f32
    %32 = vector.broadcast %cst_27 : f32 to vector<1x128xf32>
    %33 = arith.mulf %32, %24 : vector<1x128xf32>
    %34 = arith.addf %28, %33 : vector<1x128xf32>
    %cst_28 = arith.constant 2.000000e+00 : f32
    %35 = vector.broadcast %cst_28 : f32 to vector<1x128xf32>
    %36 = arith.mulf %35, %24 : vector<1x128xf32>
    %37 = arith.mulf %36, %28 : vector<1x128xf32>
    %38 = arith.addf %31, %37 : vector<1x128xf32>
    %cst_29 = arith.constant 1.600000e+01 : f32
    %39 = vector.broadcast %cst_29 : f32 to vector<1x128xf32>
    %40 = arith.mulf %39, %24 : vector<1x128xf32>
    %41 = arith.mulf %40, %24 : vector<1x128xf32>
    %42 = arith.addf %38, %41 : vector<1x128xf32>
    %43 = tpu.concatenate %34, %42 in 0 : vector<1x128xf32>, vector<1x128xf32> -> vector<2x128xf32>
    %c0_30 = arith.constant 0 : index
    %c0_31 = arith.constant 0 : index
    %44 = vector.load %arg6[%c0_30, %c0_31] : memref<128x8xf32, #tpu.memory_space<vmem>>, vector<128x8xf32>
    %cst_32 = arith.constant dense<0.000000e+00> : vector<2x8xf32>
    %45 = tpu.matmul %43, %44, %cst_32 {dimension_numbers = #tpu.dot_dimension_numbers<[1], [0], [0], [1], [0, 0, 1, 1], [], []>} : vector<2x128xf32>, vector<128x8xf32>, vector<2x8xf32> -> vector<2x8xf32>
    %cst_33 = arith.constant 2.560000e+02 : f32
    %46 = vector.broadcast %cst_33 : f32 to vector<2x8xf32>
    %47 = arith.divf %45, %46 : vector<2x8xf32>
    %48 = vector.extract_strided_slice %47 {offsets = [0, 0], sizes = [1, 8], strides = [1, 1]} : vector<2x8xf32> to vector<1x8xf32>
    %49 = vector.extract_strided_slice %47 {offsets = [1, 0], sizes = [1, 8], strides = [1, 1]} : vector<2x8xf32> to vector<1x8xf32>
    %50 = arith.mulf %48, %48 : vector<1x8xf32>
    %51 = arith.subf %49, %50 : vector<1x8xf32>
    %cst_34 = arith.constant 9.99999974E-6 : f32
    %52 = vector.broadcast %cst_34 : f32 to vector<1x8xf32>
    %53 = arith.addf %51, %52 : vector<1x8xf32>
    %54 = math.rsqrt %53 : vector<1x8xf32>
    %55 = tpu.concatenate %48, %54 in 0 : vector<1x8xf32>, vector<1x8xf32> -> vector<2x8xf32>
    %c0_35 = arith.constant 0 : index
    %c0_36 = arith.constant 0 : index
    %56 = vector.load %arg7[%c0_35, %c0_36] : memref<8x128xf32, #tpu.memory_space<vmem>>, vector<8x128xf32>
    %cst_37 = arith.constant dense<0.000000e+00> : vector<2x128xf32>
    %57 = tpu.matmul %55, %56, %cst_37 {dimension_numbers = #tpu.dot_dimension_numbers<[1], [0], [0], [1], [0, 0, 1, 1], [], []>} : vector<2x8xf32>, vector<8x128xf32>, vector<2x128xf32> -> vector<2x128xf32>
    %58 = vector.extract_strided_slice %57 {offsets = [1, 0], sizes = [1, 128], strides = [1, 1]} : vector<2x128xf32> to vector<1x128xf32>
    %c0_38 = arith.constant 0 : index
    %c0_39 = arith.constant 0 : index
    %59 = vector.load %arg4[%c0_38, %c0_39] : memref<1x128xf32, #tpu.memory_space<vmem>>, vector<1x128xf32>
    %60 = arith.mulf %58, %59 : vector<1x128xf32>
    %61 = vector.extract_strided_slice %57 {offsets = [0, 0], sizes = [1, 128], strides = [1, 1]} : vector<2x128xf32> to vector<1x128xf32>
    %62 = arith.subf %24, %61 : vector<1x128xf32>
    %63 = arith.mulf %62, %60 : vector<1x128xf32>
    %c0_40 = arith.constant 0 : index
    %c0_41 = arith.constant 0 : index
    %64 = vector.load %arg5[%c0_40, %c0_41] : memref<1x128xf32, #tpu.memory_space<vmem>>, vector<1x128xf32>
    %65 = arith.addf %63, %64 : vector<1x128xf32>
    %66 = vector.broadcast %60 : vector<1x128xf32> to vector<20x128xf32>
    %67 = arith.mulf %22, %66 : vector<20x128xf32>
    %68 = vector.broadcast %65 : vector<1x128xf32> to vector<20x128xf32>
    %69 = arith.addf %67, %68 : vector<20x128xf32>
    %cst_42 = arith.constant 0.000000e+00 : f32
    %70 = vector.broadcast %cst_42 : f32 to vector<20x128xf32>
    %71 = arith.maximumf %69, %70 : vector<20x128xf32>
    %72 = arith.truncf %71 : vector<20x128xf32> to vector<20x128xbf16>
    %c0_43 = arith.constant 0 : index
    %c0_44 = arith.constant 0 : index
    %c0_45 = arith.constant 0 : index
    %73 = vector.load %arg9[%c0_43, %c0_44, %c0_45] : memref<1x20x128xbf16, #tpu.memory_space<vmem>>, vector<1x20x128xbf16>
    %74 = vector.shape_cast %73 : vector<1x20x128xbf16> to vector<20x128xbf16>
    %75 = vector.shape_cast %72 : vector<20x128xbf16> to vector<1x20x128xbf16>
    tpu.vector_store %arg9[%c0_43, %c0_44, %c0_45], %75 {strides = array<i32>} : memref<1x20x128xbf16, #tpu.memory_space<vmem>>, vector<1x20x128xbf16>,
    return
  }
  func.func @transform_0(%arg0: i32) -> (i32, i32, i32) {
    %c0_i32 = arith.constant 0 : i32
    %c0_i32_0 = arith.constant 0 : i32
    %c0_i32_1 = arith.constant 0 : i32
    return %arg0, %c0_i32, %c0_i32_0 : i32, i32, i32
  }
  func.func @transform_1(%arg0: i32) -> (i32, i32, i32) {
    %c0_i32 = arith.constant 0 : i32
    %c0_i32_0 = arith.constant 0 : i32
    %c0_i32_1 = arith.constant 0 : i32
    %c0_i32_2 = arith.constant 0 : i32
    return %c0_i32, %c0_i32_0, %c0_i32_1 : i32, i32, i32
  }
  func.func @transform_2(%arg0: i32) -> (i32, i32) {
    %c0_i32 = arith.constant 0 : i32
    %c0_i32_0 = arith.constant 0 : i32
    %c0_i32_1 = arith.constant 0 : i32
    return %c0_i32, %c0_i32_0 : i32, i32
  }
  func.func @transform_3(%arg0: i32) -> (i32, i32) {
    %c0_i32 = arith.constant 0 : i32
    %c0_i32_0 = arith.constant 0 : i32
    %c0_i32_1 = arith.constant 0 : i32
    return %c0_i32, %c0_i32_0 : i32, i32
  }
  func.func @transform_4(%arg0: i32) -> (i32, i32) {
    %c0_i32 = arith.constant 0 : i32
    %c0_i32_0 = arith.constant 0 : i32
    %c0_i32_1 = arith.constant 0 : i32
    return %c0_i32, %c0_i32_0 : i32, i32
  }
  func.func @transform_5(%arg0: i32) -> (i32, i32) {
    %c0_i32 = arith.constant 0 : i32
    %c0_i32_0 = arith.constant 0 : i32
    %c0_i32_1 = arith.constant 0 : i32
    return %c0_i32, %c0_i32_0 : i32, i32
  }
  func.func @transform_6(%arg0: i32) -> (i32, i32) {
    %c0_i32 = arith.constant 0 : i32
    %c0_i32_0 = arith.constant 0 : i32
    %c0_i32_1 = arith.constant 0 : i32
    return %c0_i32, %c0_i32_0 : i32, i32
  }
  func.func @transform_7(%arg0: i32) -> (i32, i32) {
    %c0_i32 = arith.constant 0 : i32
    %c0_i32_0 = arith.constant 0 : i32
    %c0_i32_1 = arith.constant 0 : i32
    return %c0_i32, %c0_i32_0 : i32, i32
  }
  func.func @transform_8(%arg0: i32) -> (i32, i32, i32) {
    %c0_i32 = arith.constant 0 : i32
    %c0_i32_0 = arith.constant 0 : i32
    %c0_i32_1 = arith.constant 0 : i32
    return %arg0, %c0_i32, %c0_i32_0 : i32, i32, i32
  }
}

module attributes {stable_mosaic.version = 11 : i64} {
  func.func @_conv_gn_relu_kernel(%arg0: i32, %arg1: memref<1x15x512xbf16, #tpu.memory_space<vmem>>, %arg2: memref<4x512x256xbf16, #tpu.memory_space<vmem>>, %arg3: memref<1x256xf32, #tpu.memory_space<vmem>>, %arg4: memref<1x256xf32, #tpu.memory_space<vmem>>, %arg5: memref<1x256xf32, #tpu.memory_space<vmem>>, %arg6: memref<256x16xf32, #tpu.memory_space<vmem>>, %arg7: memref<16x256xf32, #tpu.memory_space<vmem>>, %arg8: memref<6x1xf32, #tpu.memory_space<vmem>>, %arg9: memref<1x6x256xbf16, #tpu.memory_space<vmem>>) attributes {dimension_semantics = [#tpu.dimension_semantics<parallel>], iteration_bounds = array<i64: 2>, scalar_prefetch = 0 : i64, scratch_operands = 0 : i64, tpu.core_type = #tpu.core_type<tc>, window_params = [{transform_indices = @transform_0, window_bounds = array<i64: 1, 15, 512>}, {pipeline_mode = #tpu.pipeline_mode<synchronous>, transform_indices = @transform_1, window_bounds = array<i64: 4, 512, 256>}, {pipeline_mode = #tpu.pipeline_mode<synchronous>, transform_indices = @transform_2, window_bounds = array<i64: 1, 256>}, {pipeline_mode = #tpu.pipeline_mode<synchronous>, transform_indices = @transform_3, window_bounds = array<i64: 1, 256>}, {pipeline_mode = #tpu.pipeline_mode<synchronous>, transform_indices = @transform_4, window_bounds = array<i64: 1, 256>}, {pipeline_mode = #tpu.pipeline_mode<synchronous>, transform_indices = @transform_5, window_bounds = array<i64: 256, 16>}, {pipeline_mode = #tpu.pipeline_mode<synchronous>, transform_indices = @transform_6, window_bounds = array<i64: 16, 256>}, {pipeline_mode = #tpu.pipeline_mode<synchronous>, transform_indices = @transform_7, window_bounds = array<i64: 6, 1>}, {transform_indices = @transform_8, window_bounds = array<i64: 1, 6, 256>}]} {
    %c0 = arith.constant 0 : index
    %c0_0 = arith.constant 0 : index
    %c0_1 = arith.constant 0 : index
    %0 = vector.load %arg1[%c0, %c0_0, %c0_1] : memref<1x15x512xbf16, #tpu.memory_space<vmem>>, vector<1x6x512xbf16>
    %1 = vector.shape_cast %0 : vector<1x6x512xbf16> to vector<6x512xbf16>
    %c0_2 = arith.constant 0 : index
    %c0_3 = arith.constant 0 : index
    %c0_4 = arith.constant 0 : index
    %2 = vector.load %arg2[%c0_2, %c0_3, %c0_4] : memref<4x512x256xbf16, #tpu.memory_space<vmem>>, vector<1x512x256xbf16>
    %3 = vector.shape_cast %2 : vector<1x512x256xbf16> to vector<512x256xbf16>
    %cst = arith.constant dense<0.000000e+00> : vector<6x256xf32>
    %4 = tpu.matmul %1, %3, %cst {dimension_numbers = #tpu.dot_dimension_numbers<[1], [0], [0], [1], [0, 0, 1, 1], [], []>} : vector<6x512xbf16>, vector<512x256xbf16>, vector<6x256xf32> -> vector<6x256xf32>
    %c0_5 = arith.constant 0 : index
    %c1 = arith.constant 1 : index
    %c0_6 = arith.constant 0 : index
    %5 = vector.load %arg1[%c0_5, %c1, %c0_6] : memref<1x15x512xbf16, #tpu.memory_space<vmem>>, vector<1x6x512xbf16>
    %6 = vector.shape_cast %5 : vector<1x6x512xbf16> to vector<6x512xbf16>
    %c1_7 = arith.constant 1 : index
    %c0_8 = arith.constant 0 : index
    %c0_9 = arith.constant 0 : index
    %7 = vector.load %arg2[%c1_7, %c0_8, %c0_9] : memref<4x512x256xbf16, #tpu.memory_space<vmem>>, vector<1x512x256xbf16>
    %8 = vector.shape_cast %7 : vector<1x512x256xbf16> to vector<512x256xbf16>
    %cst_10 = arith.constant dense<0.000000e+00> : vector<6x256xf32>
    %9 = tpu.matmul %6, %8, %cst_10 {dimension_numbers = #tpu.dot_dimension_numbers<[1], [0], [0], [1], [0, 0, 1, 1], [], []>} : vector<6x512xbf16>, vector<512x256xbf16>, vector<6x256xf32> -> vector<6x256xf32>
    %10 = arith.addf %4, %9 : vector<6x256xf32>
    %c0_11 = arith.constant 0 : index
    %c3 = arith.constant 3 : index
    %c0_12 = arith.constant 0 : index
    %11 = vector.load %arg1[%c0_11, %c3, %c0_12] : memref<1x15x512xbf16, #tpu.memory_space<vmem>>, vector<1x6x512xbf16>
    %12 = vector.shape_cast %11 : vector<1x6x512xbf16> to vector<6x512xbf16>
    %c2 = arith.constant 2 : index
    %c0_13 = arith.constant 0 : index
    %c0_14 = arith.constant 0 : index
    %13 = vector.load %arg2[%c2, %c0_13, %c0_14] : memref<4x512x256xbf16, #tpu.memory_space<vmem>>, vector<1x512x256xbf16>
    %14 = vector.shape_cast %13 : vector<1x512x256xbf16> to vector<512x256xbf16>
    %cst_15 = arith.constant dense<0.000000e+00> : vector<6x256xf32>
    %15 = tpu.matmul %12, %14, %cst_15 {dimension_numbers = #tpu.dot_dimension_numbers<[1], [0], [0], [1], [0, 0, 1, 1], [], []>} : vector<6x512xbf16>, vector<512x256xbf16>, vector<6x256xf32> -> vector<6x256xf32>
    %16 = arith.addf %10, %15 : vector<6x256xf32>
    %c0_16 = arith.constant 0 : index
    %c4 = arith.constant 4 : index
    %c0_17 = arith.constant 0 : index
    %17 = vector.load %arg1[%c0_16, %c4, %c0_17] : memref<1x15x512xbf16, #tpu.memory_space<vmem>>, vector<1x6x512xbf16>
    %18 = vector.shape_cast %17 : vector<1x6x512xbf16> to vector<6x512xbf16>
    %c3_18 = arith.constant 3 : index
    %c0_19 = arith.constant 0 : index
    %c0_20 = arith.constant 0 : index
    %19 = vector.load %arg2[%c3_18, %c0_19, %c0_20] : memref<4x512x256xbf16, #tpu.memory_space<vmem>>, vector<1x512x256xbf16>
    %20 = vector.shape_cast %19 : vector<1x512x256xbf16> to vector<512x256xbf16>
    %cst_21 = arith.constant dense<0.000000e+00> : vector<6x256xf32>
    %21 = tpu.matmul %18, %20, %cst_21 {dimension_numbers = #tpu.dot_dimension_numbers<[1], [0], [0], [1], [0, 0, 1, 1], [], []>} : vector<6x512xbf16>, vector<512x256xbf16>, vector<6x256xf32> -> vector<6x256xf32>
    %22 = arith.addf %16, %21 : vector<6x256xf32>
    %c0_22 = arith.constant 0 : index
    %c0_23 = arith.constant 0 : index
    %23 = vector.load %arg8[%c0_22, %c0_23] : memref<6x1xf32, #tpu.memory_space<vmem>>, vector<6x1xf32>
    %c0_24 = arith.constant 0 : index
    %c0_25 = arith.constant 0 : index
    %24 = vector.load %arg3[%c0_24, %c0_25] : memref<1x256xf32, #tpu.memory_space<vmem>>, vector<1x256xf32>
    %25 = vector.broadcast %23 : vector<6x1xf32> to vector<6x256xf32>
    %26 = arith.mulf %22, %25 : vector<6x256xf32>
    %cst_26 = arith.constant dense<0.000000e+00> : vector<256xf32>
    %27 = vector.multi_reduction <add>, %26, %cst_26 [0] : vector<6x256xf32> to vector<256xf32>
    %28 = vector.shape_cast %27 : vector<256xf32> to vector<1x256xf32>
    %29 = arith.mulf %26, %22 : vector<6x256xf32>
    %cst_27 = arith.constant dense<0.000000e+00> : vector<256xf32>
    %30 = vector.multi_reduction <add>, %29, %cst_27 [0] : vector<6x256xf32> to vector<256xf32>
    %31 = vector.shape_cast %30 : vector<256xf32> to vector<1x256xf32>
    %cst_28 = arith.constant 4.000000e+00 : f32
    %32 = vector.broadcast %cst_28 : f32 to vector<1x256xf32>
    %33 = arith.mulf %32, %24 : vector<1x256xf32>
    %34 = arith.addf %28, %33 : vector<1x256xf32>
    %cst_29 = arith.constant 2.000000e+00 : f32
    %35 = vector.broadcast %cst_29 : f32 to vector<1x256xf32>
    %36 = arith.mulf %35, %24 : vector<1x256xf32>
    %37 = arith.mulf %36, %28 : vector<1x256xf32>
    %38 = arith.addf %31, %37 : vector<1x256xf32>
    %cst_30 = arith.constant 4.000000e+00 : f32
    %39 = vector.broadcast %cst_30 : f32 to vector<1x256xf32>
    %40 = arith.mulf %39, %24 : vector<1x256xf32>
    %41 = arith.mulf %40, %24 : vector<1x256xf32>
    %42 = arith.addf %38, %41 : vector<1x256xf32>
    %43 = tpu.concatenate %34, %42 in 0 : vector<1x256xf32>, vector<1x256xf32> -> vector<2x256xf32>
    %c0_31 = arith.constant 0 : index
    %c0_32 = arith.constant 0 : index
    %44 = vector.load %arg6[%c0_31, %c0_32] : memref<256x16xf32, #tpu.memory_space<vmem>>, vector<256x16xf32>
    %cst_33 = arith.constant dense<0.000000e+00> : vector<2x16xf32>
    %45 = tpu.matmul %43, %44, %cst_33 {dimension_numbers = #tpu.dot_dimension_numbers<[1], [0], [0], [1], [0, 0, 1, 1], [], []>} : vector<2x256xf32>, vector<256x16xf32>, vector<2x16xf32> -> vector<2x16xf32>
    %cst_34 = arith.constant 6.400000e+01 : f32
    %46 = vector.broadcast %cst_34 : f32 to vector<2x16xf32>
    %47 = arith.divf %45, %46 : vector<2x16xf32>
    %48 = vector.extract_strided_slice %47 {offsets = [0, 0], sizes = [1, 16], strides = [1, 1]} : vector<2x16xf32> to vector<1x16xf32>
    %49 = vector.extract_strided_slice %47 {offsets = [1, 0], sizes = [1, 16], strides = [1, 1]} : vector<2x16xf32> to vector<1x16xf32>
    %50 = arith.mulf %48, %48 : vector<1x16xf32>
    %51 = arith.subf %49, %50 : vector<1x16xf32>
    %cst_35 = arith.constant 9.99999974E-6 : f32
    %52 = vector.broadcast %cst_35 : f32 to vector<1x16xf32>
    %53 = arith.addf %51, %52 : vector<1x16xf32>
    %54 = math.rsqrt %53 : vector<1x16xf32>
    %55 = tpu.concatenate %48, %54 in 0 : vector<1x16xf32>, vector<1x16xf32> -> vector<2x16xf32>
    %c0_36 = arith.constant 0 : index
    %c0_37 = arith.constant 0 : index
    %56 = vector.load %arg7[%c0_36, %c0_37] : memref<16x256xf32, #tpu.memory_space<vmem>>, vector<16x256xf32>
    %cst_38 = arith.constant dense<0.000000e+00> : vector<2x256xf32>
    %57 = tpu.matmul %55, %56, %cst_38 {dimension_numbers = #tpu.dot_dimension_numbers<[1], [0], [0], [1], [0, 0, 1, 1], [], []>} : vector<2x16xf32>, vector<16x256xf32>, vector<2x256xf32> -> vector<2x256xf32>
    %58 = vector.extract_strided_slice %57 {offsets = [1, 0], sizes = [1, 256], strides = [1, 1]} : vector<2x256xf32> to vector<1x256xf32>
    %c0_39 = arith.constant 0 : index
    %c0_40 = arith.constant 0 : index
    %59 = vector.load %arg4[%c0_39, %c0_40] : memref<1x256xf32, #tpu.memory_space<vmem>>, vector<1x256xf32>
    %60 = arith.mulf %58, %59 : vector<1x256xf32>
    %61 = vector.extract_strided_slice %57 {offsets = [0, 0], sizes = [1, 256], strides = [1, 1]} : vector<2x256xf32> to vector<1x256xf32>
    %62 = arith.subf %24, %61 : vector<1x256xf32>
    %63 = arith.mulf %62, %60 : vector<1x256xf32>
    %c0_41 = arith.constant 0 : index
    %c0_42 = arith.constant 0 : index
    %64 = vector.load %arg5[%c0_41, %c0_42] : memref<1x256xf32, #tpu.memory_space<vmem>>, vector<1x256xf32>
    %65 = arith.addf %63, %64 : vector<1x256xf32>
    %66 = vector.broadcast %60 : vector<1x256xf32> to vector<6x256xf32>
    %67 = arith.mulf %22, %66 : vector<6x256xf32>
    %68 = vector.broadcast %65 : vector<1x256xf32> to vector<6x256xf32>
    %69 = arith.addf %67, %68 : vector<6x256xf32>
    %cst_43 = arith.constant 0.000000e+00 : f32
    %70 = vector.broadcast %cst_43 : f32 to vector<6x256xf32>
    %71 = arith.maximumf %69, %70 : vector<6x256xf32>
    %72 = arith.truncf %71 : vector<6x256xf32> to vector<6x256xbf16>
    %c0_44 = arith.constant 0 : index
    %c0_45 = arith.constant 0 : index
    %c0_46 = arith.constant 0 : index
    %73 = vector.load %arg9[%c0_44, %c0_45, %c0_46] : memref<1x6x256xbf16, #tpu.memory_space<vmem>>, vector<1x6x256xbf16>
    %74 = vector.shape_cast %73 : vector<1x6x256xbf16> to vector<6x256xbf16>
    %75 = vector.shape_cast %72 : vector<6x256xbf16> to vector<1x6x256xbf16>
    tpu.vector_store %arg9[%c0_44, %c0_45, %c0_46], %75 {strides = array<i32>} : memref<1x6x256xbf16, #tpu.memory_space<vmem>>, vector<1x6x256xbf16>,
    return
  }
  func.func @transform_0(%arg0: i32) -> (i32, i32, i32) {
    %c0_i32 = arith.constant 0 : i32
    %c0_i32_0 = arith.constant 0 : i32
    %c0_i32_1 = arith.constant 0 : i32
    return %arg0, %c0_i32, %c0_i32_0 : i32, i32, i32
  }
  func.func @transform_1(%arg0: i32) -> (i32, i32, i32) {
    %c0_i32 = arith.constant 0 : i32
    %c0_i32_0 = arith.constant 0 : i32
    %c0_i32_1 = arith.constant 0 : i32
    %c0_i32_2 = arith.constant 0 : i32
    return %c0_i32, %c0_i32_0, %c0_i32_1 : i32, i32, i32
  }
  func.func @transform_2(%arg0: i32) -> (i32, i32) {
    %c0_i32 = arith.constant 0 : i32
    %c0_i32_0 = arith.constant 0 : i32
    %c0_i32_1 = arith.constant 0 : i32
    return %c0_i32, %c0_i32_0 : i32, i32
  }
  func.func @transform_3(%arg0: i32) -> (i32, i32) {
    %c0_i32 = arith.constant 0 : i32
    %c0_i32_0 = arith.constant 0 : i32
    %c0_i32_1 = arith.constant 0 : i32
    return %c0_i32, %c0_i32_0 : i32, i32
  }
  func.func @transform_4(%arg0: i32) -> (i32, i32) {
    %c0_i32 = arith.constant 0 : i32
    %c0_i32_0 = arith.constant 0 : i32
    %c0_i32_1 = arith.constant 0 : i32
    return %c0_i32, %c0_i32_0 : i32, i32
  }
  func.func @transform_5(%arg0: i32) -> (i32, i32) {
    %c0_i32 = arith.constant 0 : i32
    %c0_i32_0 = arith.constant 0 : i32
    %c0_i32_1 = arith.constant 0 : i32
    return %c0_i32, %c0_i32_0 : i32, i32
  }
  func.func @transform_6(%arg0: i32) -> (i32, i32) {
    %c0_i32 = arith.constant 0 : i32
    %c0_i32_0 = arith.constant 0 : i32
    %c0_i32_1 = arith.constant 0 : i32
    return %c0_i32, %c0_i32_0 : i32, i32
  }
  func.func @transform_7(%arg0: i32) -> (i32, i32) {
    %c0_i32 = arith.constant 0 : i32
    %c0_i32_0 = arith.constant 0 : i32
    %c0_i32_1 = arith.constant 0 : i32
    return %c0_i32, %c0_i32_0 : i32, i32
  }
  func.func @transform_8(%arg0: i32) -> (i32, i32, i32) {
    %c0_i32 = arith.constant 0 : i32
    %c0_i32_0 = arith.constant 0 : i32
    %c0_i32_1 = arith.constant 0 : i32
    return %arg0, %c0_i32, %c0_i32_0 : i32, i32, i32
  }
}

module attributes {stable_mosaic.version = 11 : i64} {
  func.func @_matmul_bias_kernel(%arg0: i32, %arg1: memref<8x256xbf16, #tpu.memory_space<vmem>>, %arg2: memref<256x256xbf16, #tpu.memory_space<vmem>>, %arg3: memref<1x256xf32, #tpu.memory_space<vmem>>, %arg4: memref<8x256xf32, #tpu.memory_space<vmem>>) attributes {dimension_semantics = [#tpu.dimension_semantics<arbitrary>], iteration_bounds = array<i64: 1>, scalar_prefetch = 0 : i64, scratch_operands = 0 : i64, tpu.core_type = #tpu.core_type<tc>, window_params = [{pipeline_mode = #tpu.pipeline_mode<synchronous>, transform_indices = @transform_0, window_bounds = array<i64: 8, 256>}, {pipeline_mode = #tpu.pipeline_mode<synchronous>, transform_indices = @transform_1, window_bounds = array<i64: 256, 256>}, {pipeline_mode = #tpu.pipeline_mode<synchronous>, transform_indices = @transform_2, window_bounds = array<i64: 1, 256>}, {pipeline_mode = #tpu.pipeline_mode<synchronous>, transform_indices = @transform_3, window_bounds = array<i64: 8, 256>}]} {
    %c0 = arith.constant 0 : index
    %c0_0 = arith.constant 0 : index
    %0 = vector.load %arg1[%c0, %c0_0] : memref<8x256xbf16, #tpu.memory_space<vmem>>, vector<8x256xbf16>
    %c0_1 = arith.constant 0 : index
    %c0_2 = arith.constant 0 : index
    %1 = vector.load %arg2[%c0_1, %c0_2] : memref<256x256xbf16, #tpu.memory_space<vmem>>, vector<256x256xbf16>
    %cst = arith.constant dense<0.000000e+00> : vector<8x256xf32>
    %2 = tpu.matmul %0, %1, %cst {dimension_numbers = #tpu.dot_dimension_numbers<[1], [0], [0], [1], [0, 0, 1, 1], [], []>} : vector<8x256xbf16>, vector<256x256xbf16>, vector<8x256xf32> -> vector<8x256xf32>
    %c0_3 = arith.constant 0 : index
    %c0_4 = arith.constant 0 : index
    %3 = vector.load %arg3[%c0_3, %c0_4] : memref<1x256xf32, #tpu.memory_space<vmem>>, vector<1x256xf32>
    %4 = vector.broadcast %3 : vector<1x256xf32> to vector<8x256xf32>
    %5 = arith.addf %2, %4 : vector<8x256xf32>
    %c0_5 = arith.constant 0 : index
    %c0_6 = arith.constant 0 : index
    %6 = vector.load %arg4[%c0_5, %c0_6] : memref<8x256xf32, #tpu.memory_space<vmem>>, vector<8x256xf32>
    tpu.vector_store %arg4[%c0_5, %c0_6], %5 {strides = array<i32>} : memref<8x256xf32, #tpu.memory_space<vmem>>, vector<8x256xf32>,
    return
  }
  func.func @transform_0(%arg0: i32) -> (i32, i32) {
    %c0_i32 = arith.constant 0 : i32
    %c0_i32_0 = arith.constant 0 : i32
    %c0_i32_1 = arith.constant 0 : i32
    return %c0_i32, %c0_i32_0 : i32, i32
  }
  func.func @transform_1(%arg0: i32) -> (i32, i32) {
    %c0_i32 = arith.constant 0 : i32
    %c0_i32_0 = arith.constant 0 : i32
    %c0_i32_1 = arith.constant 0 : i32
    return %c0_i32, %c0_i32_0 : i32, i32
  }
  func.func @transform_2(%arg0: i32) -> (i32, i32) {
    %c0_i32 = arith.constant 0 : i32
    %c0_i32_0 = arith.constant 0 : i32
    %c0_i32_1 = arith.constant 0 : i32
    return %c0_i32, %c0_i32_0 : i32, i32
  }
  func.func @transform_3(%arg0: i32) -> (i32, i32) {
    %c0_i32 = arith.constant 0 : i32
    %c0_i32_0 = arith.constant 0 : i32
    %c0_i32_1 = arith.constant 0 : i32
    return %c0_i32, %c0_i32_0 : i32, i32
  }
}

</mosaic_0001>

<bundles_post_ra>
// kernel: _lambda_.5
= control target key start
LH: loop header
LB: loop body
LE: loop exit
PB: predicated region body
PF: predicated region fallthrough
CT: control target
= control target key end

     0   :  { %s3502_s27 = smov 0   ;;  %s4639_s0 = inlined_call_operand.vmem [shape: bf16[2,323,12], index: 0, kind: input, shape index: {}]   ;;  %s4640_s1 = inlined_call_operand.vmem [shape: bf16[4,12,32], index: 1, kind: input, shape index: {}]   ;;  %s4641_s2 = inlined_call_operand.vmem [shape: f32[1,32], index: 2, kind: input, shape index: {}]   ;;  %s4642_s3 = inlined_call_operand.vmem [shape: f32[1,32], index: 3, kind: input, shape index: {}]   ;;  %s4643_s4 = inlined_call_operand.vmem [shape: f32[1,32], index: 4, kind: input, shape index: {}]   ;;  %s4644_s5 = inlined_call_operand.vmem [shape: f32[32,2], index: 5, kind: input, shape index: {}]   ;;  %s4645_s6 = inlined_call_operand.vmem [shape: f32[2,32], index: 6, kind: input, shape index: {}]   ;;  %s4646_s7 = inlined_call_operand.vmem [shape: f32[272,1], index: 7, kind: input, shape index: {}]   ;;  %s4647_s8 = inlined_call_operand.vmem [shape: bf16[2,272,32], index: 8, kind: output, shape index: {}]  }
   0x1 LB: > { %s2815_s28 = sadd.s32 4294967295, %s3451_s27   ;;  %p2819_p0 = scmp.ge.s32.totalorder %s3451_s27, 1  ;;  %s3451_s27 = sphi %s3502_s27, %s18_s27  }
   0x2   : > { %p262_p1 = scmp.lt.s32.totalorder %s3451_s27, 3 }
   0x4   : > { %p263_p2 = pnand %p2819_p0, %p262_p1 }
   0x6   : > { %266 = sbr.rel (%p263_p2) target bundleno = 978 (0x3d2), region = 52 }
   0xb   : > { %vm633_vm0 = vcmask 1045504   ;;  %v3453_v0 = vmov 0.0   ;;  %v3402_v1 = vld [vmem:[%s4640_s1] sm:$0x3f]   ;;  %p296_p3 = scmp.lt.s32.totalorder %s2815_s28, 1  ;;  %vm3454_vm1 = vmmov 0  }
   0xc   : > { %3160 = vmatprep.subr.bf16.mxu1 %v3453_v0  ;;  %3090 = vmatprep.subr.bf16.mxu0 %v3453_v0  ;;  %v3403_v2 = vld [vmem:[%s4640_s1 + $0x8] sm:$0x3f]   ;;  %v846_v3 = vsel %vm633_vm0, %v3402_v1, 0  ;;  %v3407_v5 = vld [vmem:[%s4640_s1 + $0x18] sm:$0x3f]   ;;  %vm581_vm2 = vcmask 97280  }
   0xd   : > { %3162 = vmatprep.mubr.msk.bf16.mxu1 %vm3454_vm1, %v3453_v0  ;;  %3092 = vmatprep.mubr.msk.bf16.mxu0 %vm3454_vm1, %v3453_v0  ;;  %s4696_s28 = smov (!%p296_p3, %s2815_s28), 1  ;;  %v635_v4 = vsel %vm633_vm0, %v3403_v2, 0  ;;  %v1645_v7 = vsel %vm633_vm0, %v3407_v5, 0  ;;  %v3406_v12 = vld [vmem:[%s4640_s1 + $0x10] sm:$0x3f]   ;;  %vm1552_vm4 = vcmask 1046528  }
   0xe   : > { %3161 = vmatpush3.bf16.msra.mxu1 %v846_v3  ;;  %3091 = vmatpush3.bf16.msra.mxu0 %v635_v4  ;;  %s3386_s11 = smul.u32 164, %s4696_s28  ;;  %vm435_vm3 = vsmask.f32 7424  ;;  %v1340_v19 = vsel %vm633_vm0, %v3406_v12, 0  ;;  %vm2374_vm5 = vcmask 1041408   ;;  %vm2089_vm6 = vcmask 261120  }
   0xf   : > { %3300 = vmatprep.subr.bf16.mxu1 %v3453_v0  ;;  %3230 = vmatprep.subr.bf16.mxu0 %v3453_v0  ;;  %vm2280_vm7 = vcmask 1040384   ;;  %vm2370_vm8 = vcmask 15360   ;;  %vm2725_vm9 = vcmask 257024   ;;  %s3387_s26 = smul.u32 136, %s4696_s28 }
  0x10   : > { %s3535_s16 = scalar_lea.vmem %s4639_s0, %s3386_s11 }
  0x11   : > { %v3404_v6 = vld [vmem:[%s3535_s16] sm:$0xff]   ;;  %v3405_v8 = vld [vmem:[%s3535_s16 + $0x8] sm:$0xff]   ;;  %v3408_v13 = vld [vmem:[%s3535_s16 + $0x10] sm:$0xff]   ;;  %s4562_s30 = scalar_lea.vmem %s4647_s8, %s3387_s26 }
  0x12   : > { %3163 = vmatmul.mubr.msk.bf16.vlgmr.msra.gmra.mxu1 %vm581_vm2, %v3404_v6  ;;  %v437_v9 = vshrl.u32 %v3404_v6, 16  ;;  %v439_v10 = vshll.u32 %v3404_v6, 16  ;;  %v444_v11 = vshll.u32 %v3405_v8, 16  ;;  %v448_v17 = vshrl.u32 %v3405_v8, 16  ;;  %v3409_v23 = vld [vmem:[%s3535_s16 + $0x18] sm:$0xff]   ;;  %v3410_v29 = vld [vmem:[%s3535_s16 + $0x20] sm:$0xff]  }
  0x13   : > { %3301 = vmatpush3.bf16.msra.mxu1 %v1645_v7  ;;  %3166 = vmatprep.mubr.msk.bf16.mxu1 %vm3454_vm1, %v3453_v0  ;;  %v452_v18 = vshll.u32 %v3408_v13, 16  ;;  %v456_v25 = vshrl.u32 %v3408_v13, 16  ;;  %v460_v26 = vshll.u32 %v3409_v23, 16  ;;  %v464_v31 = vshrl.u32 %v3409_v23, 16  ;;  %v3411_v35 = vld [vmem:[%s3535_s16 + $0x28] sm:$0xff]   ;;  %v3412_v39 = vld [vmem:[%s3535_s16 + $0x30] sm:$0xff]  }
  0x14   : > { %v441_v14 = vrot.slane %v439_v10, 1  ;;  %3381 = vmatprep.subr.mxu1 %v3453_v0  ;;  %v446_v15 = vrot.slane %v444_v11, 1  ;;  %v468_v32 = vshll.u32 %v3410_v29, 16  ;;  %v472_v37 = vshrl.u32 %v3410_v29, 16  ;;  %v3413_v47 = vld [vmem:[%s3535_s16 + $0x38] sm:$0xff]   ;;  %v3414_v53 = vld [vmem:[%s3535_s16 + $0x40] sm:$0xff]  }
  0x15   : > { %v454_v22 = vrot.slane %v452_v18, 1  ;;  %v462_v28 = vrot.slane %v460_v26, 1  ;;  %v476_v38 = vshll.u32 %v3411_v35, 16  ;;  %v480_v42 = vshrl.u32 %v3411_v35, 16  ;;  %v3415_v59 = vld [vmem:[%s3535_s16 + $0x48] sm:$0xff]   ;;  %v3416_v2 = vld [vmem:[%s3535_s16 + $0x50] sm:$0xff]  }
  0x16   : > { %v442_v16 = vor.u32 %v441_v14, %v437_v9  ;;  %v450_v21 = vor.u32 %v448_v17, %v446_v15  ;;  %v470_v34 = vrot.slane %v468_v32, 1  ;;  %v484_v43 = vshll.u32 %v3412_v39, 16  ;;  %v3418_v14 = vld [vmem:[%s3535_s16 + $0x60] sm:$0xff]   ;;  %v3420_v32 = vld [vmem:[%s3535_s16 + $0x70] sm:$0xff]  }
  0x17   : > { %v458_v27 = vor.u32 %v456_v25, %v454_v22  ;;  %v466_v33 = vor.u32 %v464_v31, %v462_v28  ;;  %v478_v41 = vrot.slane %v476_v38, 1  ;;  %v488_v49 = vshrl.u32 %v3412_v39, 16  ;;  %v1857_v38 = vld [vmem:[%s4646_s7 + $0x38] sm:$0xff] }
  0x18   : > { %v447_v20 = vsel %vm435_vm3, %v442_v16, %v446_v15  ;;  %v455_v24 = vsel %vm435_vm3, %v450_v21, %v454_v22  ;;  %v474_v40 = vor.u32 %v472_v37, %v470_v34  ;;  %v486_v46 = vrot.slane %v484_v43, 1  ;;  %v3419_v22 = vld [vmem:[%s3535_s16 + $0x68] sm:$0xff]  }
  0x19   : > { %3093 = vmatmul.mubr.msk.bf16.vlgmr.msra.gmra.mxu0 %vm581_vm2, %v447_v20  ;;  %v463_v30 = vsel %vm435_vm3, %v458_v27, %v462_v28  ;;  %v471_v36 = vsel %vm435_vm3, %v466_v33, %v470_v34  ;;  %v482_v45 = vor.u32 %v480_v42, %v478_v41  ;;  %v492_v50 = vshll.u32 %v3413_v47, 16  ;;  %v1853_v28 = vld [vmem:[%s4646_s7 + $0x18] sm:$0xff]  ;;  %v1855_v33 = vld [vmem:[%s4646_s7 + $0x28] sm:$0xff]  ;;  %v1856_v34 = vld [vmem:[%s4646_s7 + $0x30] sm:$0xff] }
  0x1a   : > { %3231 = vmatpush3.bf16.msra.mxu0 %v1340_v19  ;;  %3167 = vmatmul.mubr.msk.bf16.gmra.mxu1 %vm581_vm2, %v3405_v8  ;;  %v479_v44 = vsel %vm435_vm3, %v474_v40, %v478_v41  ;;  %v490_v51 = vor.u32 %v488_v49, %v486_v46  ;;  %v496_v55 = vshrl.u32 %v3413_v47, 16  ;;  %v500_v56 = vshll.u32 %v3414_v53, 16  ;;  %v3417_v8 = vld [vmem:[%s3535_s16 + $0x58] sm:$0xff]   ;;  %v1850_v19 = vld [vmem:[%s4646_s7] sm:$0xff]  ;;  %v1859_v43 = vld [vmem:[%s4646_s7 + $0x48] sm:$0xff] }
  0x1b   : > { %3096 = vmatprep.mubr.msk.bf16.mxu0 %vm3454_vm1, %v3453_v0  ;;  %3170 = vmatprep.mubr.msk.bf16.mxu1 %vm3454_vm1, %v3453_v0  ;;  %v487_v48 = vsel %vm435_vm3, %v482_v45, %v486_v46  ;;  %v494_v52 = vrot.slane %v492_v50, 1  ;;  %v504_v61 = vshrl.u32 %v3414_v53, 16  ;;  %v508_v62 = vshll.u32 %v3415_v59, 16  ;;  %v3421_v42 = vld [vmem:[%s3535_s16 + $0x78] sm:$0xff]   ;;  %v1862_v49 = vld [vmem:[%s4646_s7 + $0x60] sm:$0xff] }
  0x1c   : > { %3370 = vmatprep.subr.mxu0 %v3453_v0  ;;  %v502_v58 = vrot.slane %v500_v56, 1  ;;  %v512_v4 = vshrl.u32 %v3415_v59, 16  ;;  %v516_v5 = vshll.u32 %v3416_v2, 16  ;;  %v520_v10 = vshrl.u32 %v3416_v2, 16 }
  0x1d   : > { %v495_v54 = vsel %vm435_vm3, %v490_v51, %v494_v52  ;;  %v498_v57 = vor.u32 %v496_v55, %v494_v52  ;;  %v510_v1 = vrot.slane %v508_v62, 1  ;;  %v524_v11 = vshll.u32 %v3417_v8, 16  ;;  %v3422_v52 = vld [vmem:[%s3535_s16 + $0x80] sm:$0xff]   ;;  %v3423_v62 = vld [vmem:[%s3535_s16 + $0x88] ss:$0 sps:$4 sm:$0x11]  }
  0x1e   : > { %v506_v63 = vor.u32 %v504_v61, %v502_v58  ;;  %v518_v7 = vrot.slane %v516_v5, 1  ;;  %v528_v16 = vshrl.u32 %v3417_v8, 16  ;;  %v532_v17 = vshll.u32 %v3418_v14, 16 }
  0x1f   : > { %v503_v60 = vsel %vm435_vm3, %v498_v57, %v502_v58  ;;  %v514_v6 = vor.u32 %v512_v4, %v510_v1  ;;  %v3455_v18 = vmov 0   ;;  %v536_v26 = vshrl.u32 %v3418_v14, 16  ;;  %v1865_v58 = vld [vmem:[%s4646_s7 + $0x78] sm:$0xff]  ;;  %v1868_v4 = vld [vmem:[%s4646_s7 + $0x90] sm:$0xff] }
  0x20   : > { %v511_v3 = vsel %vm435_vm3, %v506_v63, %v510_v1  ;;  %v522_v12 = vor.u32 %v520_v10, %v518_v7  ;;  %3400 = vset.pattern.permute.xlu0 %v3455_v18  ;;  %3401 = vset.pattern.permute.xlu1 %v3455_v18  ;;  %v534_v21 = vrot.slane %v532_v17, 1  ;;  %v540_v27 = vshll.u32 %v3419_v22, 16  ;;  %v1017_v63 = vld [vmem:[%s3535_s16 + $0x8] sm:$0xf]  ;;  %v1018_v1 = vld [vmem:[%s3535_s16 + $0xc] sm:$0xf] }
  0x21   : > { %3097 = vmatmul.mubr.msk.bf16.gmra.mxu0 %vm581_vm2, %v455_v24  ;;  %v519_v9 = vsel %vm435_vm3, %v514_v6, %v518_v7  ;;  %1887 = vperm.xlu0 %3400, %v1850_v19   ;;  %v1851_v24 = vld [vmem:[%s4646_s7 + $0x8] sm:$0xff]  ;;  %v548_v37 = vshll.u32 %v3420_v32, 16  ;;  %v552_v46 = vshrl.u32 %v3420_v32, 16  ;;  %v560_v56 = vshrl.u32 %v3421_v42, 16  ;;  %v1872_v19 = vld [vmem:[%s4646_s7 + $0xb0] sm:$0xff] }
  0x22   : > { %3171 = vmatmul.mubr.msk.bf16.gmra.mxu1 %vm581_vm2, %v3408_v13  ;;  %3100 = vmatprep.mubr.msk.bf16.mxu0 %vm3454_vm1, %v3453_v0  ;;  %v526_v13 = vrot.slane %v524_v11, 1  ;;  %v542_v31 = vrot.slane %v540_v27, 1  ;;  %v564_v57 = vshll.u32 %v3422_v52, 16  ;;  %v568_v6 = vshrl.u32 %v3422_v52, 16  ;;  %v1869_v11 = vld [vmem:[%s4646_s7 + $0x98] sm:$0xff]  ;;  %v1871_v18 = vld [vmem:[%s4646_s7 + $0xa8] sm:$0xff] }
  0x23   : > { %3174 = vmatprep.mubr.msk.bf16.mxu1 %vm3454_vm1, %v3453_v0  ;;  %v550_v41 = vrot.slane %v548_v37, 1  ;;  %v572_v7 = vshll.u32 %v3423_v62, 16  ;;  %v1874_v27 = vld [vmem:[%s4646_s7 + $0xc0] sm:$0xff] }
  0x24   : > { %v527_v15 = vsel %vm435_vm3, %v522_v12, %v526_v13  ;;  %v530_v20 = vor.u32 %v528_v16, %v526_v13  ;;  %v566_v61 = vrot.slane %v564_v57, 1  ;;  %v1870_v12 = vld [vmem:[%s4646_s7 + $0xa0] sm:$0xff] }
  0x25   : > { %1892 = vperm.xlu0 %3400, %v1851_v24   ;;  %v554_v50 = vor.u32 %v552_v46, %v550_v41  ;;  %v3428_v37 = vld [vmem:[%s3535_s16 + $0x20] sm:$0xff]  }
  0x26   : > { %v535_v25 = vsel %vm435_vm3, %v530_v20, %v534_v21  ;;  %v570_v13 = vor.u32 %v568_v6, %v566_v61  ;;  %v1171_v57 = vshrl.u32 %v3428_v37, 16 }
  0x29   : > { %3101 = vmatmul.mubr.msk.bf16.gmra.mxu0 %vm581_vm2, %v463_v30  ;;  %v538_v30 = vor.u32 %v536_v26, %v534_v21  ;;  %v1873_v26 = vld [vmem:[%s4646_s7 + $0xb8] sm:$0xff] }
  0x2a   : > { %3175 = vmatmul.mubr.msk.bf16.gmra.mxu1 %vm581_vm2, %v3409_v23  ;;  %3104 = vmatprep.mubr.msk.bf16.mxu0 %vm3454_vm1, %v3453_v0  ;;  %v1852_v23 = vld [vmem:[%s4646_s7 + $0x10] sm:$0xff] }
  0x2b   : > { %3178 = vmatprep.mubr.msk.bf16.mxu1 %vm3454_vm1, %v3453_v0  ;;  %1897 = vperm.xlu1 %3401, %v1852_v23  }
  0x2f   : > { %1902 = vperm.xlu1 %3401, %v1853_v28  }
  0x31   : > { %3105 = vmatmul.mubr.msk.bf16.gmra.mxu0 %vm581_vm2, %v471_v36  ;;  %v544_v36 = vshrl.u32 %v3419_v22, 16 }
  0x32   : > { %3179 = vmatmul.mubr.msk.bf16.gmra.mxu1 %vm581_vm2, %v3410_v29  ;;  %3108 = vmatprep.mubr.msk.bf16.mxu0 %vm3454_vm1, %v3453_v0  ;;  %v1854_v29 = vld [vmem:[%s4646_s7 + $0x20] sm:$0xff] }
  0x33   : > { %3182 = vmatprep.mubr.msk.bf16.mxu1 %vm3454_vm1, %v3453_v0  ;;  %1907 = vperm.xlu0 %3400, %v1854_v29   ;;  %v546_v40 = vor.u32 %v544_v36, %v542_v31 }
  0x34   : > { %1912 = vperm.xlu1 %3401, %v1855_v33  }
  0x35   : > { %v551_v45 = vsel %vm435_vm3, %v546_v40, %v550_v41 }
  0x37   : > { %1917 = vperm.xlu0 %3400, %v1856_v34  }
  0x38   : > { %1922 = vperm.xlu1 %3401, %v1857_v38   ;;  %v1877_v38 = vld [vmem:[%s4646_s7 + $0xd8] sm:$0xff] }
  0x39   : > { %3109 = vmatmul.mubr.msk.bf16.gmra.mxu0 %vm581_vm2, %v479_v44  ;;  %v1860_v44 = vld [vmem:[%s4646_s7 + $0x50] sm:$0xff] }
  0x3a   : > { %3183 = vmatmul.mubr.msk.bf16.gmra.mxu1 %vm581_vm2, %v3411_v35  ;;  %3112 = vmatprep.mubr.msk.bf16.mxu0 %vm3454_vm1, %v3453_v0  ;;  %v543_v35 = vsel %vm435_vm3, %v538_v30, %v542_v31  ;;  %v1875_v31 = vld [vmem:[%s4646_s7 + $0xc8] sm:$0xff] }
  0x3b   : > { %3186 = vmatprep.mubr.msk.bf16.mxu1 %vm3454_vm1, %v3453_v0 }
  0x3c   : > { %1932 = vperm.xlu1 %3401, %v1859_v43   ;;  %v1879_v43 = vld [vmem:[%s4646_s7 + $0xe8] sm:$0xff] }
  0x41   : > { %3113 = vmatmul.mubr.msk.bf16.gmra.mxu0 %vm581_vm2, %v487_v48  ;;  %v1861_v48 = vld [vmem:[%s4646_s7 + $0x58] sm:$0xff] }
  0x42   : > { %3187 = vmatmul.mubr.msk.bf16.gmra.mxu1 %vm581_vm2, %v3412_v39  ;;  %3116 = vmatprep.mubr.msk.bf16.mxu0 %vm3454_vm1, %v3453_v0  ;;  %v1858_v39 = vld [vmem:[%s4646_s7 + $0x40] sm:$0xff] }
  0x43   : > { %3190 = vmatprep.mubr.msk.bf16.mxu1 %vm3454_vm1, %v3453_v0  ;;  %1927 = vperm.xlu0 %3400, %v1858_v39   ;;  %v1878_v39 = vld [vmem:[%s4646_s7 + $0xe0] sm:$0xff] }
  0x44   : > { %1942 = vperm.xlu1 %3401, %v1861_v48  }
  0x47   : > { %1937 = vperm.xlu0 %3400, %v1860_v44   ;;  %v1880_v44 = vld [vmem:[%s4646_s7 + $0xf0] sm:$0xff] }
  0x49   : > { %3117 = vmatmul.mubr.msk.bf16.gmra.mxu0 %vm581_vm2, %v495_v54  ;;  %v1864_v54 = vld [vmem:[%s4646_s7 + $0x70] sm:$0xff] }
  0x4a   : > { %3191 = vmatmul.mubr.msk.bf16.gmra.mxu1 %vm581_vm2, %v3413_v47  ;;  %3120 = vmatprep.mubr.msk.bf16.mxu0 %vm3454_vm1, %v3453_v0  ;;  %v556_v47 = vshll.u32 %v3421_v42, 16 }
  0x4b   : > { %3194 = vmatprep.mubr.msk.bf16.mxu1 %vm3454_vm1, %v3453_v0  ;;  %1947 = vperm.xlu0 %3400, %v1862_v49   ;;  %v3429_v49 = vld [vmem:[%s3535_s16 + $0x28] sm:$0xff]  }
  0x4c   : > { %v558_v51 = vrot.slane %v556_v47, 1  ;;  %v1167_v47 = vshll.u32 %v3428_v37, 16 }
  0x4e   : > { %v559_v55 = vsel %vm435_vm3, %v554_v50, %v558_v51  ;;  %v1881_v50 = vld [vmem:[%s4646_s7 + $0xf8] sm:$0xff] }
  0x4f   : > { %1957 = vperm.xlu0 %3400, %v1864_v54   ;;  %v1560_v54 = vrot.slane %v3429_v49, 1 }
  0x51   : > { %3121 = vmatmul.mubr.msk.bf16.gmra.mxu0 %vm581_vm2, %v503_v60  ;;  %v562_v60 = vor.u32 %v560_v56, %v558_v51  ;;  %v1882_v51 = vld [vmem:[%s4646_s7 + $0x100] sm:$0xff] }
  0x52   : > { %3195 = vmatmul.mubr.msk.bf16.gmra.mxu1 %vm581_vm2, %v3414_v53  ;;  %3124 = vmatprep.mubr.msk.bf16.mxu0 %vm3454_vm1, %v3453_v0  ;;  %v1863_v53 = vld [vmem:[%s4646_s7 + $0x68] sm:$0xff] }
  0x53   : > { %3198 = vmatprep.mubr.msk.bf16.mxu1 %vm3454_vm1, %v3453_v0  ;;  %1952 = vperm.xlu1 %3401, %v1863_v53   ;;  %v567_v5 = vsel %vm435_vm3, %v562_v60, %v566_v61  ;;  %v1169_v53 = vrot.slane %v1167_v47, 1  ;;  %v3430_v60 = vld [vmem:[%s3535_s16 + $0x30] sm:$0xff]  }
  0x55   : > { %v1173_v61 = vor.u32 %v1171_v57, %v1169_v53 }
  0x57   : > { %1962 = vperm.xlu1 %3401, %v1865_v58   ;;  %v1175_v58 = vshll.u32 %v3429_v49, 16 }
  0x59   : > { %3125 = vmatmul.mubr.msk.bf16.gmra.mxu0 %vm581_vm2, %v511_v3  ;;  %v1867_v3 = vld [vmem:[%s4646_s7 + $0x88] sm:$0xff]  ;;  %v1177_v62 = vrot.slane %v1175_v58, 1  ;;  %v3436_v58 = vld [vmem:[%s3535_s16 + $0x60] sm:$0xff]  }
  0x5a   : > { %3199 = vmatmul.mubr.msk.bf16.gmra.mxu1 %vm581_vm2, %v3415_v59  ;;  %3128 = vmatprep.mubr.msk.bf16.mxu0 %vm3454_vm1, %v3453_v0  ;;  %v1866_v59 = vld [vmem:[%s4646_s7 + $0x80] sm:$0xff] }
  0x5b   : > { %3202 = vmatprep.mubr.msk.bf16.mxu1 %vm3454_vm1, %v3453_v0  ;;  %1967 = vperm.xlu0 %3400, %v1866_v59  }
  0x5c   : > { %1972 = vperm.xlu1 %3401, %v1867_v3   ;;  %v1183_v3 = vshll.u32 %v3430_v60, 16 }
  0x5f   : > { %1977 = vperm.xlu0 %3400, %v1868_v4  }
  0x60   : > { %1982 = vperm.xlu1 %3401, %v1869_v11  }
  0x61   : > { %3129 = vmatmul.mubr.msk.bf16.gmra.mxu0 %vm581_vm2, %v519_v9  ;;  %v3425_v9 = vld [vmem:[%s3535_s16 + $0x10] sm:$0xff]  }
  0x62   : > { %3203 = vmatmul.mubr.msk.bf16.gmra.mxu1 %vm581_vm2, %v3416_v2  ;;  %3132 = vmatprep.mubr.msk.bf16.mxu0 %vm3454_vm1, %v3453_v0  ;;  %v1545_v2 = vld [vmem:[%s3535_s16 + $0x8] sm:$0xe]  ;;  %v1554_v17 = vrot.slane %v3425_v9, 1  ;;  %v1151_v23 = vshll.u32 %v3425_v9, 16  ;;  %v1155_v34 = vshrl.u32 %v3425_v9, 16 }
  0x63   : > { %3206 = vmatprep.mubr.msk.bf16.mxu1 %vm3454_vm1, %v3453_v0  ;;  %v2918_v10 = vcombine.low %v1545_v2, %v1018_v1  ;;  %1987 = vperm.xlu0 %3400, %v1870_v12   ;;  %v1179_v2 = vshrl.u32 %v3429_v49, 16 }
  0x64   : > { %1992 = vperm.xlu1 %3401, %v1871_v18   ;;  %v1153_v29 = vrot.slane %v1151_v23, 1 }
  0x65   : > { %v1553_v16 = vrot.slane %v2918_v10, 1  ;;  %v1181_v6 = vor.u32 %v1179_v2, %v1177_v62  ;;  %v1187_v10 = vshrl.u32 %v3430_v60, 16 }
  0x66   : > { %v1157_v40 = vor.u32 %v1155_v34, %v1153_v29 }
  0x67   : > { %v1555_v24 = vsel %vm1552_vm4, %v1553_v16, %v1554_v17  ;;  %1997 = vperm.xlu0 %3400, %v1872_v19  }
  0x68   : > { %2002 = vperm.xlu1 %3401, %v1873_v26  }
  0x69   : > { %3133 = vmatmul.mubr.msk.bf16.gmra.mxu0 %vm581_vm2, %v527_v15 }
  0x6a   : > { %3207 = vmatmul.mubr.msk.bf16.gmra.mxu1 %vm581_vm2, %v3417_v8  ;;  %3136 = vmatprep.mubr.msk.bf16.mxu0 %vm3454_vm1, %v3453_v0  ;;  %v2880_v8 = vcombine.low %v1017_v63, %v1018_v1  ;;  %v1562_v63 = vrot.slane %v3430_v60, 1  ;;  %v1178_v1 = vsel %vm435_vm3, %v1173_v61, %v1177_v62 }
  0x6b   : > { %3210 = vmatprep.mubr.msk.bf16.mxu1 %vm3454_vm1, %v3453_v0  ;;  %2007 = vperm.xlu0 %3400, %v1874_v27  }
  0x6c   : > { %v1146_v15 = vshll.u32 %v2880_v8, 16  ;;  %v1144_v21 = vshrl.u32 %v2880_v8, 16  ;;  %2012 = vperm.xlu1 %3401, %v1875_v31   ;;  %v1563_v4 = vsel %vm1552_vm4, %v1560_v54, %v1562_v63 }
  0x70   : > { %2022 = vperm.xlu1 %3401, %v1877_v38  }
  0x71   : > { %3137 = vmatmul.mubr.msk.bf16.gmra.mxu0 %vm581_vm2, %v535_v25  ;;  %v3427_v25 = vld [vmem:[%s3535_s16 + $0x18] sm:$0xff]  }
  0x72   : > { %3211 = vmatmul.mubr.msk.bf16.gmra.mxu1 %vm581_vm2, %v3418_v14  ;;  %3140 = vmatprep.mubr.msk.bf16.mxu0 %vm3454_vm1, %v3453_v0  ;;  %v574_v14 = vrot.slane %v572_v7, 1  ;;  %v1556_v30 = vrot.slane %v3427_v25, 1  ;;  %v1163_v46 = vshrl.u32 %v3427_v25, 16  ;;  %v1185_v7 = vrot.slane %v1183_v3, 1 }
  0x73   : > { %3214 = vmatprep.mubr.msk.bf16.mxu1 %vm3454_vm1, %v3453_v0  ;;  %v1574_v3 = vrot.slane %v3436_v58, 1 }
  0x74   : > { %v575_v20 = vsel %vm435_vm3, %v570_v13, %v574_v14  ;;  %v1557_v36 = vsel %vm1552_vm4, %v1554_v17, %v1556_v30  ;;  %2032 = vperm.xlu1 %3401, %v1879_v43   ;;  %v1186_v9 = vsel %vm435_vm3, %v1181_v6, %v1185_v7  ;;  %v3432_v13 = vld [vmem:[%s3535_s16 + $0x40] sm:$0xff]   ;;  %v1189_v14 = vor.u32 %v1187_v10, %v1185_v7 }
  0x75   : > { %v1566_v16 = vrot.slane %v3432_v13, 1  ;;  %v1199_v19 = vshll.u32 %v3432_v13, 16  ;;  %v1203_v26 = vshrl.u32 %v3432_v13, 16  ;;  %v1231_v10 = vshll.u32 %v3436_v58, 16  ;;  %v3437_v13 = vld [vmem:[%s3535_s16 + $0x68] sm:$0xff]  }
  0x77   : > { %v1201_v23 = vrot.slane %v1199_v19, 1  ;;  %v1233_v19 = vrot.slane %v1231_v10, 1 }
  0x78   : > { %2042 = vperm.xlu1 %3401, %v1881_v50  }
  0x79   : > { %3141 = vmatmul.mubr.msk.bf16.gmra.mxu0 %vm581_vm2, %v543_v35  ;;  %v1159_v35 = vshll.u32 %v3427_v25, 16  ;;  %v1205_v31 = vor.u32 %v1203_v26, %v1201_v23 }
  0x7a   : > { %3215 = vmatmul.mubr.msk.bf16.gmra.mxu1 %vm581_vm2, %v3419_v22  ;;  %3144 = vmatprep.mubr.msk.bf16.mxu0 %vm3454_vm1, %v3453_v0  ;;  %v1148_v22 = vrot.slane %v1146_v15, 1 }
  0x7b   : > { %3218 = vmatprep.mubr.msk.bf16.mxu1 %vm3454_vm1, %v3453_v0  ;;  %v1161_v41 = vrot.slane %v1159_v35, 1 }
  0x7c   : > { %v1149_v28 = vor.u32 %v1148_v22, %v1144_v21  ;;  %v3433_v21 = vld [vmem:[%s3535_s16 + $0x48] sm:$0xff]  }
  0x7d   : > { %v1207_v27 = vshll.u32 %v3433_v21, 16 }
  0x7e   : > { %v1154_v33 = vsel %vm435_vm3, %v1149_v28, %v1153_v29  ;;  %v3434_v29 = vld [vmem:[%s3535_s16 + $0x50] sm:$0xff]  }
  0x7f   : > { %v1215_v38 = vshll.u32 %v3434_v29, 16 }
  0x81   : > { %3145 = vmatmul.mubr.msk.bf16.gmra.mxu0 %vm581_vm2, %v551_v45  ;;  %v1162_v45 = vsel %vm435_vm3, %v1157_v40, %v1161_v41  ;;  %v3435_v40 = vld [vmem:[%s3535_s16 + $0x58] sm:$0xff]  }
  0x82   : > { %3219 = vmatmul.mubr.msk.bf16.gmra.mxu1 %vm581_vm2, %v3420_v32  ;;  %3148 = vmatprep.mubr.msk.bf16.mxu0 %vm3454_vm1, %v3453_v0  ;;  %v1876_v32 = vld [vmem:[%s4646_s7 + $0xd0] sm:$0xff] }
  0x83   : > { %3222 = vmatprep.mubr.msk.bf16.mxu1 %vm3454_vm1, %v3453_v0  ;;  %2017 = vperm.xlu0 %3400, %v1876_v32   ;;  %v1209_v32 = vrot.slane %v1207_v27, 1  ;;  %v1235_v27 = vshrl.u32 %v3436_v58, 16 }
  0x87   : > { %2027 = vperm.xlu0 %3400, %v1878_v39  }
  0x89   : > { %3149 = vmatmul.mubr.msk.bf16.gmra.mxu0 %vm581_vm2, %v559_v55  ;;  %v1883_v55 = vld [vmem:[%s4646_s7 + $0x108] sm:$0xff] }
  0x8a   : > { %3223 = vmatmul.mubr.msk.bf16.gmra.mxu1 %vm581_vm2, %v3421_v42  ;;  %3152 = vmatprep.mubr.msk.bf16.mxu0 %vm3454_vm1, %v3453_v0  ;;  %v1558_v42 = vrot.slane %v3428_v37, 1  ;;  %v1211_v37 = vshrl.u32 %v3433_v21, 16 }
  0x8b   : > { %3226 = vmatprep.mubr.msk.bf16.mxu1 %vm3454_vm1, %v3453_v0  ;;  %2037 = vperm.xlu0 %3400, %v1880_v44  }
  0x8c   : > { %v1559_v48 = vsel %vm1552_vm4, %v1556_v30, %v1558_v42  ;;  %v1561_v59 = vsel %vm1552_vm4, %v1558_v42, %v1560_v54  ;;  %2052 = vperm.xlu1 %3401, %v1883_v55   ;;  %v1219_v54 = vshrl.u32 %v3434_v29, 16  ;;  %v1223_v55 = vshll.u32 %v3435_v40, 16 }
  0x8f   : > { %2047 = vperm.xlu0 %3400, %v1882_v51  }
  0x91   : > { %3153 = vmatmul.mubr.msk.bf16.gmra.mxu0 %vm581_vm2, %v567_v5  ;;  %v3431_v5 = vld [vmem:[%s3535_s16 + $0x38] sm:$0xff]  }
  0x92   : > { %3227 = vmatmul.mubr.msk.bf16.gmra.mxu1 %vm581_vm2, %v3422_v52  ;;  %3156 = vmatprep.mubr.msk.bf16.mxu0 %vm3454_vm1, %v3453_v0  ;;  %v1165_v52 = vor.u32 %v1163_v46, %v1161_v41  ;;  %v1564_v8 = vrot.slane %v3431_v5, 1  ;;  %v1191_v11 = vshll.u32 %v3431_v5, 16  ;;  %v1195_v18 = vshrl.u32 %v3431_v5, 16 }
  0x93   : > { %3302 = vmatprep.mubr.msk.bf16.mxu1 %vm3454_vm1, %v3453_v0  ;;  %v1217_v46 = vrot.slane %v1215_v38, 1 }
  0x94   : > { %v1170_v56 = vsel %vm435_vm3, %v1165_v52, %v1169_v53  ;;  %v1565_v12 = vsel %vm1552_vm4, %v1562_v63, %v1564_v8  ;;  %v1193_v15 = vrot.slane %v1191_v11, 1 }
  0x95   : > { %v1221_v63 = vor.u32 %v1219_v54, %v1217_v46 }
  0x96   : > { %v1194_v17 = vsel %vm435_vm3, %v1189_v14, %v1193_v15  ;;  %v1197_v22 = vor.u32 %v1195_v18, %v1193_v15 }
  0x98   : > { %v1202_v25 = vsel %vm435_vm3, %v1197_v22, %v1201_v23 }
  0x99   : > { %3157 = vmatmul.mubr.msk.bf16.gmra.mxu0 %vm581_vm2, %v575_v20  ;;  %v1567_v20 = vsel %vm1552_vm4, %v1564_v8, %v1566_v16 }
  0x9a   : > { %3303 = vmatmul.mubr.msk.bf16.vlgmr.msra.gmra.mxu1 %vm581_vm2, %v1555_v24  ;;  %3232 = vmatprep.mubr.msk.bf16.mxu0 %vm3454_vm1, %v3453_v0  ;;  %v1568_v24 = vrot.slane %v3433_v21, 1  ;;  %v1576_v21 = vrot.slane %v3437_v13, 1 }
  0x9b   : > { %3306 = vmatprep.mubr.msk.bf16.mxu1 %vm3454_vm1, %v3453_v0 }
  0x9c   : > { %v1569_v28 = vsel %vm1552_vm4, %v1566_v16, %v1568_v24 }
  0xa1   : > { %3233 = vmatmul.mubr.msk.bf16.vlgmr.msra.gmra.mxu0 %vm581_vm2, %v1154_v33  ;;  %v1570_v33 = vrot.slane %v3434_v29, 1 }
  0xa2   : > { %3307 = vmatmul.mubr.msk.bf16.gmra.mxu1 %vm581_vm2, %v1557_v36  ;;  %3236 = vmatprep.mubr.msk.bf16.mxu0 %vm3454_vm1, %v3453_v0  ;;  %v1210_v36 = vsel %vm435_vm3, %v1205_v31, %v1209_v32  ;;  %v3438_v31 = vld [vmem:[%s3535_s16 + $0x70] sm:$0xff]  }
  0xa3   : > { %3310 = vmatprep.mubr.msk.bf16.mxu1 %vm3454_vm1, %v3453_v0  ;;  %v1571_v39 = vsel %vm1552_vm4, %v1568_v24, %v1570_v33 }
  0xa9   : > { %3237 = vmatmul.mubr.msk.bf16.gmra.mxu0 %vm581_vm2, %v1162_v45  ;;  %v1213_v45 = vor.u32 %v1211_v37, %v1209_v32 }
  0xaa   : > { %3311 = vmatmul.mubr.msk.bf16.gmra.mxu1 %vm581_vm2, %v1559_v48  ;;  %3240 = vmatprep.mubr.msk.bf16.mxu0 %vm3454_vm1, %v3453_v0  ;;  %v1572_v48 = vrot.slane %v3435_v40, 1 }
  0xab   : > { %3314 = vmatprep.mubr.msk.bf16.mxu1 %vm3454_vm1, %v3453_v0  ;;  %v1218_v53 = vsel %vm435_vm3, %v1213_v45, %v1217_v46  ;;  %v1243_v46 = vshrl.u32 %v3437_v13, 16 }
  0xac   : > { %v1573_v57 = vsel %vm1552_vm4, %v1570_v33, %v1572_v48 }
  0xb1   : > { %3241 = vmatmul.mubr.msk.bf16.gmra.mxu0 %vm581_vm2, %v1170_v56 }
  0xb2   : > { %3315 = vmatmul.mubr.msk.bf16.gmra.mxu1 %vm581_vm2, %v1561_v59  ;;  %3244 = vmatprep.mubr.msk.bf16.mxu0 %vm3454_vm1, %v3453_v0 }
  0xb3   : > { %3318 = vmatprep.mubr.msk.bf16.mxu1 %vm3454_vm1, %v3453_v0 }
  0xb9   : > { %3245 = vmatmul.mubr.msk.bf16.gmra.mxu0 %vm581_vm2, %v1178_v1  ;;  %v1225_v1 = vrot.slane %v1223_v55, 1 }
  0xba   : > { %3319 = vmatmul.mubr.msk.bf16.gmra.mxu1 %vm581_vm2, %v1563_v4  ;;  %3248 = vmatprep.mubr.msk.bf16.mxu0 %vm3454_vm1, %v3453_v0 }
  0xbb   : > { %3322 = vmatprep.mubr.msk.bf16.mxu1 %vm3454_vm1, %v3453_v0  ;;  %v1226_v8 = vsel %vm435_vm3, %v1221_v63, %v1225_v1 }
  0xc1   : > { %3249 = vmatmul.mubr.msk.bf16.gmra.mxu0 %vm581_vm2, %v1186_v9  ;;  %v1227_v9 = vshrl.u32 %v3435_v40, 16 }
  0xc2   : > { %3323 = vmatmul.mubr.msk.bf16.gmra.mxu1 %vm581_vm2, %v1565_v12  ;;  %3252 = vmatprep.mubr.msk.bf16.mxu0 %vm3454_vm1, %v3453_v0  ;;  %v1575_v12 = vsel %vm1552_vm4, %v1572_v48, %v1574_v3 }
  0xc3   : > { %3326 = vmatprep.mubr.msk.bf16.mxu1 %vm3454_vm1, %v3453_v0  ;;  %v1229_v18 = vor.u32 %v1227_v9, %v1225_v1 }
  0xc5   : > { %v1234_v26 = vsel %vm435_vm3, %v1229_v18, %v1233_v19  ;;  %v2285_v18 = vld [vmem:[%s4644_s5 + $0x18] sm:$0xff] }
  0xc6   : > { %3371 = vmatpush3.msra.mxu0 %v2285_v18 }
  0xc7   : > { %3372 = vmatprep.subr.mxu0 %v3453_v0 }
  0xc9   : > { %3253 = vmatmul.mubr.msk.bf16.gmra.mxu0 %vm581_vm2, %v1194_v17 }
  0xca   : > { %3327 = vmatmul.mubr.msk.bf16.gmra.mxu1 %vm581_vm2, %v1567_v20  ;;  %3256 = vmatprep.mubr.msk.bf16.mxu0 %vm3454_vm1, %v3453_v0 }
  0xcb   : > { %3330 = vmatprep.mubr.msk.bf16.mxu1 %vm3454_vm1, %v3453_v0 }
  0xd1   : > { %3257 = vmatmul.mubr.msk.bf16.gmra.mxu0 %vm581_vm2, %v1202_v25 }
  0xd2   : > { %v882_v30 = vpop.f32.mrf.mxu1  ;;  %3331 = vmatmul.mubr.msk.bf16.gmra.mxu1 %vm581_vm2, %v1569_v28  ;;  %3260 = vmatprep.mubr.msk.bf16.mxu0 %vm3454_vm1, %v3453_v0  ;;  %v1239_v28 = vshll.u32 %v3437_v13, 16 }
  0xd3   : > { %3334 = vmatprep.mubr.msk.bf16.mxu1 %vm3454_vm1, %v3453_v0 }
  0xd4   : > { %v3164_v34 = vpop.f32.mrf.mxu1  ;;  %v1241_v37 = vrot.slane %v1239_v28, 1 }
  0xd6   : > { %v885_v35 = vpop.f32.mrf.mxu1 }
  0xd8   : > { %v3165_v41 = vpop.f32.mrf.mxu1 }
  0xd9   : > { %v671_v42 = vpop.f32.mrf.mxu0  ;;  %3261 = vmatmul.mubr.msk.bf16.gmra.mxu0 %vm581_vm2, %v1210_v36 }
  0xda   : > { %v3859_v43 = vadd.f32 %v882_v30, %v671_v42  ;;  %v890_v44 = vpop.f32.mrf.mxu1  ;;  %3335 = vmatmul.mubr.msk.bf16.gmra.mxu1 %vm581_vm2, %v1571_v39  ;;  %3264 = vmatprep.mubr.msk.bf16.mxu0 %vm3454_vm1, %v3453_v0  ;;  %v1577_v30 = vsel %vm1552_vm4, %v1574_v3, %v1576_v21  ;;  %v1578_v39 = vrot.slane %v3438_v31, 1  ;;  %v1251_v3 = vshrl.u32 %v3438_v31, 16 }
  0xdb   : > { %v3094_v47 = vpop.f32.mrf.mxu0  ;;  %3338 = vmatprep.mubr.msk.bf16.mxu1 %vm3454_vm1, %v3453_v0 }
  0xdc   : > { %v3168_v49 = vpop.f32.mrf.mxu1  ;;  %v1247_v47 = vshll.u32 %v3438_v31, 16 }
  0xdd   : > { %v674_v50 = vpop.f32.mrf.mxu0  ;;  %v1579_v49 = vsel %vm1552_vm4, %v1576_v21, %v1578_v39 }
  0xde   : > { %v3866_v51 = vadd.f32 %v885_v35, %v674_v50  ;;  %v893_v52 = vpop.f32.mrf.mxu1  ;;  %v1237_v35 = vor.u32 %v1235_v27, %v1233_v19  ;;  %v3439_v50 = vld [vmem:[%s3535_s16 + $0x78] sm:$0xff]  }
  0xdf   : > { %v3095_v56 = vpop.f32.mrf.mxu0 }
  0xe0   : > { %v3169_v59 = vpop.f32.mrf.mxu1  ;;  %v1242_v45 = vsel %vm435_vm3, %v1237_v35, %v1241_v37  ;;  %v1245_v56 = vor.u32 %v1243_v46, %v1241_v37 }
  0xe1   : > { %v679_v60 = vpop.f32.mrf.mxu0  ;;  %3265 = vmatmul.mubr.msk.bf16.gmra.mxu0 %vm581_vm2, %v1218_v53  ;;  %v1580_v59 = vrot.slane %v3439_v50, 1 }
  0xe2   : > { %v3872_v61 = vadd.f32 %v890_v44, %v679_v60  ;;  %v898_v62 = vpop.f32.mrf.mxu1  ;;  %3339 = vmatmul.mubr.msk.bf16.gmra.mxu1 %vm581_vm2, %v1573_v57  ;;  %3268 = vmatprep.mubr.msk.bf16.mxu0 %vm3454_vm1, %v3453_v0  ;;  %v1249_v57 = vrot.slane %v1247_v47, 1 }
  0xe3   : > { %v3098_v2 = vpop.f32.mrf.mxu0  ;;  %3342 = vmatprep.mubr.msk.bf16.mxu1 %vm3454_vm1, %v3453_v0 }
  0xe4   : > { %v3172_v4 = vpop.f32.mrf.mxu1  ;;  %v1250_v2 = vsel %vm435_vm3, %v1245_v56, %v1249_v57  ;;  %v1253_v13 = vor.u32 %v1251_v3, %v1249_v57 }
  0xe5   : > { %v682_v5 = vpop.f32.mrf.mxu0  ;;  %v1255_v4 = vshll.u32 %v3439_v50, 16 }
  0xe6   : > { %v3879_v6 = vadd.f32 %v893_v52, %v682_v5  ;;  %v901_v7 = vpop.f32.mrf.mxu1 }
  0xe7   : > { %v3099_v11 = vpop.f32.mrf.mxu0 }
  0xe8   : > { %v3173_v14 = vpop.f32.mrf.mxu1 }
  0xe9   : > { %v687_v15 = vpop.f32.mrf.mxu0  ;;  %3269 = vmatmul.mubr.msk.bf16.gmra.mxu0 %vm581_vm2, %v1226_v8  ;;  %v3440_v8 = vld [vmem:[%s3535_s16 + $0x80] sm:$0xff]   ;;  %v1257_v14 = vrot.slane %v1255_v4, 1 }
  0xea   : > { %v3885_v16 = vadd.f32 %v898_v62, %v687_v15  ;;  %v906_v17 = vpop.f32.mrf.mxu1  ;;  %3343 = vmatmul.mubr.msk.bf16.gmra.mxu1 %vm581_vm2, %v1575_v12  ;;  %3272 = vmatprep.mubr.msk.bf16.mxu0 %vm3454_vm1, %v3453_v0  ;;  %v1267_v46 = vshrl.u32 %v3440_v8, 16 }
  0xeb   : > { %v3102_v20 = vpop.f32.mrf.mxu0  ;;  %3346 = vmatprep.mubr.msk.bf16.mxu1 %vm3454_vm1, %v3453_v0 }
  0xec   : > { %v3176_v22 = vpop.f32.mrf.mxu1 }
  0xed   : > { %v690_v23 = vpop.f32.mrf.mxu0 }
  0xee   : > { %v3892_v24 = vadd.f32 %v901_v7, %v690_v23  ;;  %v909_v25 = vpop.f32.mrf.mxu1  ;;  %v1581_v7 = vsel %vm1552_vm4, %v1578_v39, %v1580_v59  ;;  %v1258_v23 = vsel %vm435_vm3, %v1253_v13, %v1257_v14 }
  0xef   : > { %v3103_v29 = vpop.f32.mrf.mxu0 }
  0xf0   : > { %v3177_v32 = vpop.f32.mrf.mxu1  ;;  %v3441_v29 = vld [vmem:[%s3535_s16 + $0x88] sm:$0xff]  }
  0xf1   : > { %v695_v33 = vpop.f32.mrf.mxu0  ;;  %3273 = vmatmul.mubr.msk.bf16.gmra.mxu0 %vm581_vm2, %v1234_v26  ;;  %v1263_v26 = vshll.u32 %v3440_v8, 16  ;;  %v1271_v47 = vshll.u32 %v3441_v29, 16 }
  0xf2   : > { %v3898_v34 = vadd.f32 %v906_v17, %v695_v33  ;;  %v914_v36 = vpop.f32.mrf.mxu1  ;;  %3347 = vmatmul.mubr.msk.bf16.gmra.mxu1 %vm581_vm2, %v1577_v30  ;;  %3276 = vmatprep.mubr.msk.bf16.mxu0 %vm3454_vm1, %v3453_v0  ;;  %v1582_v17 = vrot.slane %v3440_v8, 1 }
  0xf3   : > { %v3106_v38 = vpop.f32.mrf.mxu0  ;;  %3350 = vmatprep.mubr.msk.bf16.mxu1 %vm3454_vm1, %v3453_v0 }
  0xf4   : > { %v3180_v40 = vpop.f32.mrf.mxu1  ;;  %v1583_v28 = vsel %vm1552_vm4, %v1580_v59, %v1582_v17  ;;  %v1584_v38 = vrot.slane %v3441_v29, 1 }
  0xf5   : > { %v698_v41 = vpop.f32.mrf.mxu0 }
  0xf6   : > { %v3905_v42 = vadd.f32 %v909_v25, %v698_v41  ;;  %v917_v44 = vpop.f32.mrf.mxu1  ;;  %v1259_v25 = vshrl.u32 %v3439_v50, 16  ;;  %v3442_v50 = vld [vmem:[%s3535_s16 + $0x90] ss:$0 sps:$4 sm:$0x11]  }
  0xf7   : > { %v3107_v48 = vpop.f32.mrf.mxu0 }
  0xf8   : > { %v3181_v52 = vpop.f32.mrf.mxu1  ;;  %v1261_v35 = vor.u32 %v1259_v25, %v1257_v14 }
  0xf9   : > { %v703_v53 = vpop.f32.mrf.mxu0  ;;  %3277 = vmatmul.mubr.msk.bf16.gmra.mxu0 %vm581_vm2, %v1242_v45 }
  0xfa   : > { %v3911_v54 = vadd.f32 %v914_v36, %v703_v53  ;;  %v922_v55 = vpop.f32.mrf.mxu1  ;;  %3351 = vmatmul.mubr.msk.bf16.gmra.mxu1 %vm581_vm2, %v1579_v49  ;;  %3280 = vmatprep.mubr.msk.bf16.mxu0 %vm3454_vm1, %v3453_v0  ;;  %v1265_v36 = vrot.slane %v1263_v26, 1  ;;  %v1585_v49 = vsel %vm1552_vm4, %v1582_v17, %v1584_v38 }
  0xfb   : > { %v3110_v58 = vpop.f32.mrf.mxu0  ;;  %3354 = vmatprep.mubr.msk.bf16.mxu1 %vm3454_vm1, %v3453_v0 }
  0xfc   : > { %v3184_v60 = vpop.f32.mrf.mxu1  ;;  %v1266_v45 = vsel %vm435_vm3, %v1261_v35, %v1265_v36  ;;  %v1269_v57 = vor.u32 %v1267_v46, %v1265_v36  ;;  %v1273_v58 = vrot.slane %v1271_v47, 1 }
  0xfd   : > { %v706_v62 = vpop.f32.mrf.mxu0  ;;  %v1586_v60 = vrot.slane %v3442_v50, 1 }
  0xfe   : > { %v3918_v63 = vadd.f32 %v917_v44, %v706_v62  ;;  %v925_v1 = vpop.f32.mrf.mxu1  ;;  %v1274_v4 = vsel %vm435_vm3, %v1269_v57, %v1273_v58 }
  0xff   : > { %v3111_v5 = vpop.f32.mrf.mxu0 }
 0x100   : > { %v3185_v9 = vpop.f32.mrf.mxu1  ;;  %v1275_v5 = vshrl.u32 %v3441_v29, 16 }
 0x101   : > { %v711_v10 = vpop.f32.mrf.mxu0  ;;  %3281 = vmatmul.mubr.msk.bf16.gmra.mxu0 %vm581_vm2, %v1250_v2  ;;  %v1587_v9 = vsel %vm1552_vm4, %v1584_v38, %v1586_v60 }
 0x102   : > { %v3924_v11 = vadd.f32 %v922_v55, %v711_v10  ;;  %v930_v12 = vpop.f32.mrf.mxu1  ;;  %3355 = vmatmul.mubr.msk.bf16.gmra.mxu1 %vm581_vm2, %v1581_v7  ;;  %3284 = vmatprep.mubr.msk.bf16.mxu0 %vm3454_vm1, %v3453_v0  ;;  %v1279_v7 = vshll.u32 %v3442_v50, 16 }
 0x103   : > { %v3114_v15 = vpop.f32.mrf.mxu0  ;;  %3358 = vmatprep.mubr.msk.bf16.mxu1 %vm3454_vm1, %v3453_v0 }
 0x104   : > { %v3188_v19 = vpop.f32.mrf.mxu1  ;;  %v1277_v15 = vor.u32 %v1275_v5, %v1273_v58  ;;  %v1281_v17 = vrot.slane %v1279_v7, 1 }
 0x105   : > { %v714_v20 = vpop.f32.mrf.mxu0 }
 0x106   : > { %v3935_v21 = vadd.f32 %v925_v1, %v714_v20  ;;  %v933_v22 = vpop.f32.mrf.mxu1  ;;  %v1282_v25 = vsel %vm435_vm3, %v1277_v15, %v1281_v17 }
 0x107   : > { %v3115_v27 = vpop.f32.mrf.mxu0 }
 0x108   : > { %v3189_v30 = vpop.f32.mrf.mxu1 }
 0x109   : > { %v719_v31 = vpop.f32.mrf.mxu0  ;;  %3285 = vmatmul.mubr.msk.bf16.gmra.mxu0 %vm581_vm2, %v1258_v23 }
 0x10a   : > { %v3941_v32 = vadd.f32 %v930_v12, %v719_v31  ;;  %v938_v33 = vpop.f32.mrf.mxu1  ;;  %3359 = vmatmul.mubr.msk.bf16.gmra.mxu1 %vm581_vm2, %v1583_v28  ;;  %3288 = vmatprep.mubr.msk.bf16.mxu0 %vm3454_vm1, %v3453_v0 }
 0x10b   : > { %v3118_v37 = vpop.f32.mrf.mxu0  ;;  %3362 = vmatprep.mubr.msk.bf16.mxu1 %vm3454_vm1, %v3453_v0 }
 0x10c   : > { %v3192_v39 = vpop.f32.mrf.mxu1 }
 0x10d   : > { %v722_v40 = vpop.f32.mrf.mxu0  ;;  %v2284_v39 = vld [vmem:[%s4644_s5 + $0x10] sm:$0xff] }
 0x10e   : > { %v3948_v41 = vadd.f32 %v933_v22, %v722_v40  ;;  %v941_v44 = vpop.f32.mrf.mxu1  ;;  %3373 = vmatpush3.msra.mxu0 %v2284_v39 }
 0x10f   : > { %v3119_v48 = vpop.f32.mrf.mxu0  ;;  %3374 = vmatprep.subr.mxu0 %v3453_v0 }
 0x110   : > { %v3193_v52 = vpop.f32.mrf.mxu1 }
 0x111   : > { %v727_v53 = vpop.f32.mrf.mxu0  ;;  %3289 = vmatmul.mubr.msk.bf16.gmra.mxu0 %vm581_vm2, %v1266_v45 }
 0x112   : > { %v3954_v55 = vadd.f32 %v938_v33, %v727_v53  ;;  %v946_v56 = vpop.f32.mrf.mxu1  ;;  %3363 = vmatmul.mubr.msk.bf16.gmra.mxu1 %vm581_vm2, %v1585_v49  ;;  %3292 = vmatprep.mubr.msk.bf16.mxu0 %vm3454_vm1, %v3453_v0 }
 0x113   : > { %v3122_v59 = vpop.f32.mrf.mxu0  ;;  %3366 = vmatprep.mubr.msk.bf16.mxu1 %vm3454_vm1, %v3453_v0 }
 0x114   : > { %v3196_v62 = vpop.f32.mrf.mxu1 }
 0x115   : > { %v730_v1 = vpop.f32.mrf.mxu0 }
 0x116   : > { %v3961_v2 = vadd.f32 %v941_v44, %v730_v1  ;;  %v949_v3 = vpop.f32.mrf.mxu1 }
 0x117   : > { %v3123_v8 = vpop.f32.mrf.mxu0 }
 0x118   : > { %v3197_v10 = vpop.f32.mrf.mxu1 }
 0x119   : > { %v735_v12 = vpop.f32.mrf.mxu0  ;;  %3293 = vmatmul.mubr.msk.bf16.gmra.mxu0 %vm581_vm2, %v1274_v4 }
 0x11a   : > { %v3966_v13 = vadd.f32 %v946_v56, %v735_v12  ;;  %v954_v14 = vpop.f32.mrf.mxu1  ;;  %3367 = vmatmul.mubr.msk.bf16.gmra.mxu1 %vm581_vm2, %v1587_v9  ;;  %3296 = vmatprep.mubr.msk.bf16.mxu0 %vm3454_vm1, %v3453_v0 }
 0x11b   : > { %v3126_v18 = vpop.f32.mrf.mxu0  ;;  %3383 = vmatprep.mubr.msk.f32.mxu1 %vm3454_vm1, %v3453_v0 }
 0x11c   : > { %v3200_v19 = vpop.f32.mrf.mxu1 }
 0x11d   : > { %v738_v20 = vpop.f32.mrf.mxu0 }
 0x11e   : > { %v3973_v22 = vadd.f32 %v949_v3, %v738_v20  ;;  %v957_v23 = vpop.f32.mrf.mxu1 }
 0x11f   : > { %v3127_v26 = vpop.f32.mrf.mxu0 }
 0x120   : > { %v3201_v27 = vpop.f32.mrf.mxu1 }
 0x121   : > { %v743_v28 = vpop.f32.mrf.mxu0  ;;  %3297 = vmatmul.mubr.msk.bf16.gmra.mxu0 %vm581_vm2, %v1282_v25 }
 0x122   : > { %v3977_v29 = vadd.f32 %v954_v14, %v743_v28  ;;  %v962_v30 = vpop.f32.mrf.mxu1  ;;  %3378 = vmatprep.mubr.msk.f32.mxu0 %vm3454_vm1, %v3453_v0 }
 0x123   : > { %v3130_v31 = vpop.f32.mrf.mxu0 }
 0x124   : > { %4651 = vst [vmem:[#allocation2_spill] sm:$0xff] %v3977_v29  ;;  %v3204_v33 = vpop.f32.mrf.mxu1 }
 0x125   : > { %v746_v35 = vpop.f32.mrf.mxu0 }
 0x126   : > { %v3981_v36 = vadd.f32 %v957_v23, %v746_v35  ;;  %v965_v37 = vpop.f32.mrf.mxu1 }
 0x127   : > { %v3131_v38 = vpop.f32.mrf.mxu0 }
 0x128   : > { %4652 = vst [vmem:[#allocation3_spill] sm:$0xff] %v3981_v36  ;;  %v3205_v40 = vpop.f32.mrf.mxu1 }
 0x129   : > { %v751_v44 = vpop.f32.mrf.mxu0 }
 0x12a   : > { %v3987_v45 = vadd.f32 %v962_v30, %v751_v44  ;;  %v970_v46 = vpop.f32.mrf.mxu1 }
 0x12b   : > { %v3134_v47 = vpop.f32.mrf.mxu0 }
 0x12c   : > { %4653 = vst [vmem:[#allocation4_spill] sm:$0xff] %v3987_v45  ;;  %v3208_v48 = vpop.f32.mrf.mxu1 }
 0x12d   : > { %v754_v49 = vpop.f32.mrf.mxu0 }
 0x12e   : > { %v3989_v50 = vadd.f32 %v965_v37, %v754_v49  ;;  %v973_v52 = vpop.f32.mrf.mxu1  ;;  %v2283_v37 = vld [vmem:[%s4644_s5 + $0x8] sm:$0xff] }
 0x12f   : > { %v3135_v53 = vpop.f32.mrf.mxu0  ;;  %3375 = vmatpush3.msra.mxu0 %v2283_v37 }
 0x130   : > { %4654 = vst [vmem:[#allocation5_spill] sm:$0xff] %v3989_v50  ;;  %v3209_v56 = vpop.f32.mrf.mxu1  ;;  %3376 = vmatprep.subr.mxu0 %v3453_v0 }
 0x131   : > { %v759_v57 = vpop.f32.mrf.mxu0 }
 0x132   : > { %v3991_v58 = vadd.f32 %v970_v46, %v759_v57  ;;  %v978_v59 = vpop.f32.mrf.mxu1 }
 0x133   : > { %v3138_v60 = vpop.f32.mrf.mxu0 }
 0x134   : > { %4655 = vst [vmem:[#allocation6_spill] sm:$0xff] %v3991_v58  ;;  %v3212_v62 = vpop.f32.mrf.mxu1 }
 0x135   : > { %v762_v1 = vpop.f32.mrf.mxu0 }
 0x136   : > { %v3993_v3 = vadd.f32 %v973_v52, %v762_v1  ;;  %v981_v4 = vpop.f32.mrf.mxu1 }
 0x137   : > { %v3139_v5 = vpop.f32.mrf.mxu0 }
 0x138   : > { %4656 = vst [vmem:[#allocation7_spill] sm:$0xff] %v3993_v3  ;;  %v3213_v7 = vpop.f32.mrf.mxu1 }
 0x139   : > { %v767_v8 = vpop.f32.mrf.mxu0 }
 0x13a   : > { %v3995_v9 = vadd.f32 %v978_v59, %v767_v8  ;;  %v986_v10 = vpop.f32.mrf.mxu1 }
 0x13b   : > { %v3142_v12 = vpop.f32.mrf.mxu0 }
 0x13c   : > { %4657 = vst [vmem:[#allocation8_spill] sm:$0xff] %v3995_v9  ;;  %v3216_v14 = vpop.f32.mrf.mxu1 }
 0x13d   : > { %v770_v15 = vpop.f32.mrf.mxu0 }
 0x13e   : > { %v3997_v17 = vadd.f32 %v981_v4, %v770_v15  ;;  %v989_v18 = vpop.f32.mrf.mxu1 }
 0x13f   : > { %v3143_v19 = vpop.f32.mrf.mxu0 }
 0x140   : > { %4658 = vst [vmem:[#allocation9_spill] sm:$0xff] %v3997_v17  ;;  %v3217_v20 = vpop.f32.mrf.mxu1 }
 0x141   : > { %v775_v23 = vpop.f32.mrf.mxu0 }
 0x142   : > { %v3999_v25 = vadd.f32 %v986_v10, %v775_v23  ;;  %v994_v26 = vpop.f32.mrf.mxu1 }
 0x143   : > { %v3146_v27 = vpop.f32.mrf.mxu0 }
 0x144   : > { %4659 = vst [vmem:[#allocation10_spill] sm:$0xff] %v3999_v25  ;;  %v3220_v28 = vpop.f32.mrf.mxu1 }
 0x145   : > { %v778_v30 = vpop.f32.mrf.mxu0 }
 0x146   : > { %v4001_v31 = vadd.f32 %v989_v18, %v778_v30  ;;  %v997_v33 = vpop.f32.mrf.mxu1 }
 0x147   : > { %v3147_v35 = vpop.f32.mrf.mxu0 }
 0x148   : > { %4660 = vst [vmem:[#allocation11_spill] sm:$0xff] %v4001_v31  ;;  %v3221_v38 = vpop.f32.mrf.mxu1 }
 0x149   : > { %v783_v39 = vpop.f32.mrf.mxu0 }
 0x14a   : > { %v4007_v40 = vadd.f32 %v994_v26, %v783_v39  ;;  %v1002_v44 = vpop.f32.mrf.mxu1 }
 0x14b   : > { %v3150_v46 = vpop.f32.mrf.mxu0 }
 0x14c   : > { %4661 = vst [vmem:[#allocation12_spill] sm:$0xff] %v4007_v40  ;;  %v3224_v47 = vpop.f32.mrf.mxu1 }
 0x14d   : > { %v786_v48 = vpop.f32.mrf.mxu0 }
 0x14e   : > { %v4009_v49 = vadd.f32 %v997_v33, %v786_v48  ;;  %v1005_v52 = vpop.f32.mrf.mxu1 }
 0x14f   : > { %v3151_v53 = vpop.f32.mrf.mxu0 }
 0x150   : > { %4662 = vst [vmem:[#allocation13_spill] sm:$0xff] %v4009_v49  ;;  %v3225_v56 = vpop.f32.mrf.mxu1 }
 0x151   : > { %v791_v57 = vpop.f32.mrf.mxu0 }
 0x152   : > { %v4011_v59 = vadd.f32 %v1002_v44, %v791_v57  ;;  %v1010_v60 = vpop.f32.mrf.mxu1 }
 0x153   : > { %v3154_v62 = vpop.f32.mrf.mxu0 }
 0x154   : > { %4663 = vst [vmem:[#allocation14_spill] sm:$0xff] %v4011_v59  ;;  %v3228_v1 = vpop.f32.mrf.mxu1 }
 0x155   : > { %v794_v4 = vpop.f32.mrf.mxu0 }
 0x156   : > { %v4013_v5 = vadd.f32 %v1005_v52, %v794_v4  ;;  %v1013_v0 = vpop.f32.mrf.mxu1 }
 0x157   : > { %v3155_v7 = vpop.f32.mrf.mxu0 }
 0x158   : > { %4664 = vst [vmem:[#allocation15_spill] sm:$0xff] %v4013_v5  ;;  %v3229_v8 = vpop.f32.mrf.mxu1 }
 0x159   : > { %v799_v10 = vpop.f32.mrf.mxu0 }
 0x15a   : > { %v4015_v12 = vadd.f32 %v1010_v60, %v799_v10  ;;  %v1681_v14 = vpop.f32.mrf.mxu1 }
 0x15b   : > { %v3158_v15 = vpop.f32.mrf.mxu0 }
 0x15c   : > { %4665 = vst [vmem:[#allocation16_spill] sm:$0xff] %v4015_v12  ;;  %v3304_v18 = vpop.f32.mrf.mxu1 }
 0x15d   : > { %v802_v19 = vpop.f32.mrf.mxu0 }
 0x15e   : > { %v4017_v20 = vadd.f32 %v1013_v0, %v802_v19  ;;  %v1684_v23 = vpop.f32.mrf.mxu1 }
 0x15f   : > { %v3159_v26 = vpop.f32.mrf.mxu0 }
 0x160   : > { %4666 = vst [vmem:[#allocation17_spill] sm:$0xff] %v4017_v20  ;;  %v3305_v27 = vpop.f32.mrf.mxu1 }
 0x161   : > { %v1376_v28 = vpop.f32.mrf.mxu0 }
 0x162   : > { %v1511_v30 = vadd.f32 %v1376_v28, %v3859_v43  ;;  %v1689_v33 = vpop.f32.mrf.mxu1  ;;  %v2282_v43 = vld [vmem:[%s4644_s5] sm:$0xff] }
 0x163   : > { %v3234_v35 = vpop.f32.mrf.mxu0  ;;  %3377 = vmatpush3.msra.mxu0 %v2282_v43  ;;  %v2369_v43 = vld [vmem:[%s4645_s6] sm:$0x3] }
 0x164   : > { %v4020_v37 = vadd.f32 %v1681_v14, %v1511_v30  ;;  %v3308_v38 = vpop.f32.mrf.mxu1  ;;  %3382 = vmatpush3.msk.msra.mxu1 %vm2374_vm5, %v2369_v43 }
 0x165   : > { %v1379_v39 = vpop.f32.mrf.mxu0 }
 0x166   : > { %4667 = vst [vmem:[#allocation18_spill] sm:$0xff] %v4020_v37  ;;  %v1512_v44 = vadd.f32 %v1379_v39, %v3866_v51  ;;  %v1692_v46 = vpop.f32.mrf.mxu1 }
 0x167   : > { %v3235_v47 = vpop.f32.mrf.mxu0 }
 0x168   : > { %v4023_v48 = vadd.f32 %v1684_v23, %v1512_v44  ;;  %v3309_v52 = vpop.f32.mrf.mxu1 }
 0x169   : > { %v1384_v53 = vpop.f32.mrf.mxu0 }
 0x16a   : > { %4668 = vst [vmem:[#allocation19_spill] sm:$0xff] %v4023_v48  ;;  %v1513_v56 = vadd.f32 %v1384_v53, %v3872_v61  ;;  %v1697_v57 = vpop.f32.mrf.mxu1 }
 0x16b   : > { %v3238_v60 = vpop.f32.mrf.mxu0 }
 0x16c   : > { %v4029_v62 = vadd.f32 %v1689_v33, %v1513_v56  ;;  %v3312_v1 = vpop.f32.mrf.mxu1  ;;  %v1888_v56 = vpop.permute.xlu0 %1887 }
 0x16d   : > { %v1387_v4 = vpop.f32.mrf.mxu0 }
 0x16e   : > { %4669 = vst [vmem:[#allocation20_spill] sm:$0xff] %v4029_v62  ;;  %v1514_v51 = vadd.f32 %v1387_v4, %v3879_v6  ;;  %v1700_v0 = vpop.f32.mrf.mxu1 }
 0x16f   : > { %v3239_v7 = vpop.f32.mrf.mxu0 }
 0x170   : > { %v4032_v8 = vadd.f32 %v1692_v46, %v1514_v51  ;;  %v3313_v10 = vpop.f32.mrf.mxu1  ;;  %v1898_v51 = vpop.permute.xlu1 %1897 }
 0x171   : > { %v1392_v14 = vpop.f32.mrf.mxu0  ;;  %v1893_v10 = vpop.permute.xlu0 %1892 }
 0x172   : > { %v1515_v61 = vadd.f32 %v1392_v14, %v3885_v16  ;;  %v4035_v15 = vpop.f32.mrf.mxu1  ;;  %v2056_v3 = vmul.f32 %v1893_v10, %v4023_v48 }
 0x173   : > { %v3242_v18 = vpop.f32.mrf.mxu0 }
 0x174   : > { %v4037_v19 = vadd.f32 %v1697_v57, %v1515_v61  ;;  %v3316_v23 = vpop.f32.mrf.mxu1 }
 0x175   : > { %v1395_v26 = vpop.f32.mrf.mxu0 }
 0x176   : > { %v1516_v27 = vadd.f32 %v1395_v26, %v3892_v24  ;;  %v4040_v28 = vpop.f32.mrf.mxu1  ;;  %v1903_v26 = vpop.permute.xlu1 %1902 }
 0x177   : > { %v3243_v6 = vpop.f32.mrf.mxu0 }
 0x178   : > { %v4042_v30 = vadd.f32 %v1700_v0, %v1516_v27  ;;  %v3317_v33 = vpop.f32.mrf.mxu1 }
 0x179   : > { %v4044_v35 = vpop.f32.mrf.mxu0  ;;  %v1908_v33 = vpop.permute.xlu0 %1907 }
 0x17a   : > { %v4046_v38 = vpop.f32.mrf.mxu1 }
 0x17b   : > { %v3246_v16 = vpop.f32.mrf.mxu0 }
 0x17c   : > { %v3320_v39 = vpop.f32.mrf.mxu1 }
 0x17d   : > { %v4048_v44 = vpop.f32.mrf.mxu0 }
 0x17e   : > { %v4050_v46 = vpop.f32.mrf.mxu1 }
 0x17f   : > { %v3247_v47 = vpop.f32.mrf.mxu0 }
 0x180   : > { %v3321_v52 = vpop.f32.mrf.mxu1 }
 0x181   : > { %v4052_v53 = vpop.f32.mrf.mxu0 }
 0x182   : > { %v4054_v24 = vpop.f32.mrf.mxu1 }
 0x183   : > { %v3250_v57 = vpop.f32.mrf.mxu0 }
 0x184   : > { %v3324_v60 = vpop.f32.mrf.mxu1  ;;  %v1913_v57 = vpop.permute.xlu1 %1912 }
 0x185   : > { %v4059_v1 = vpop.f32.mrf.mxu0 }
 0x186   : > { %v4061_v4 = vpop.f32.mrf.mxu1 }
 0x187   : > { %v3251_v0 = vpop.f32.mrf.mxu0 }
 0x188   : > { %v3325_v7 = vpop.f32.mrf.mxu1  ;;  %v1918_v0 = vpop.permute.xlu0 %1917 }
 0x189   : > { %v4063_v14 = vpop.f32.mrf.mxu0  ;;  %v4079_v12 = vpop.permute.xlu1 %1922 }
 0x18a   : > { %v4065_v61 = vpop.f32.mrf.mxu1 }
 0x18b   : > { %v3254_v18 = vpop.f32.mrf.mxu0 }
 0x18c   : > { %v3328_v23 = vpop.f32.mrf.mxu1 }
 0x18d   : > { %v4067_v27 = vpop.f32.mrf.mxu0 }
 0x18e   : > { %v4069_v6 = vpop.f32.mrf.mxu1 }
 0x18f   : > { %v3255_v16 = vpop.f32.mrf.mxu0 }
 0x190   : > { %v3329_v39 = vpop.f32.mrf.mxu1 }
 0x191   : > { %v4071_v47 = vpop.f32.mrf.mxu0  ;;  %v4085_v39 = vpop.permute.xlu0 %1927 }
 0x192   : > { %v4073_v52 = vpop.f32.mrf.mxu1 }
 0x193   : > { %v3258_v60 = vpop.f32.mrf.mxu0 }
 0x194   : > { %v3332_v43 = vpop.f32.mrf.mxu1 }
 0x195   : > { %v4075_v7 = vpop.f32.mrf.mxu0  ;;  %v4091_v43 = vpop.permute.xlu1 %1932 }
 0x196   : > { %v4077_v18 = vpop.f32.mrf.mxu1 }
 0x197   : > { %v3259_v23 = vpop.f32.mrf.mxu0 }
 0x198   : > { %v3333_v20 = vpop.f32.mrf.mxu1  ;;  %v4093_v23 = vpop.permute.xlu0 %1937 }
 0x199   : > { %v4081_v5 = vpop.f32.mrf.mxu0  ;;  %v4102_v50 = vpop.permute.xlu1 %1942 }
 0x19a   : > { %v4083_v16 = vpop.f32.mrf.mxu1 }
 0x19b   : > { %v3262_v59 = vpop.f32.mrf.mxu0 }
 0x19c   : > { %v3336_v49 = vpop.f32.mrf.mxu1  ;;  %v2057_v59 = vmul.f32 %v1898_v51, %v4029_v62 }
 0x19d   : > { %v4087_v40 = vpop.f32.mrf.mxu0  ;;  %v2055_v49 = vmul.f32 %v1888_v56, %v4020_v37  ;;  %v1518_v56 = vadd.f32 %v4048_v44, %v3905_v42  ;;  %v2060_v44 = vmul.f32 %v1913_v57, %v4042_v30 }
 0x19e   : > { %v4089_v60 = vpop.f32.mrf.mxu1  ;;  %v2165_v36 = vmul.f32 %v2057_v59, %v4029_v62  ;;  %v1520_v62 = vadd.f32 %v4059_v1, %v3918_v63  ;;  %v1521_v63 = vadd.f32 %v4063_v14, %v3924_v11 }
 0x19f   : > { %4670 = vst [vmem:[#allocation21_spill] sm:$0xff] %v4089_v60  ;;  %v3263_v31 = vpop.f32.mrf.mxu0  ;;  %v4110_v60 = vpop.permute.xlu0 %1947  ;;  %v2163_v10 = vmul.f32 %v2055_v49, %v4020_v37  ;;  %v2090_v42 = vsel %vm2089_vm6, %v2055_v49, 0.0 }
 0x1a0   : > { %v3337_v25 = vpop.f32.mrf.mxu1  ;;  %v2200_v57 = vsel %vm2089_vm6, %v2165_v36, 0.0 }
 0x1a1   : > { %v4095_v20 = vpop.f32.mrf.mxu0  ;;  %v1517_v25 = vadd.f32 %v4044_v35, %v3898_v34  ;;  %v2091_v34 = vsel %vm2089_vm6, %v2056_v3, 0.0  ;;  %v2059_v35 = vmul.f32 %v1908_v33, %v4037_v19  ;;  %v2197_v49 = vsel %vm2089_vm6, %v2163_v10, 0.0 }
 0x1a2   : > { %v4097_v17 = vpop.f32.mrf.mxu1  ;;  %v2092_v37 = vadd.f32 %v2091_v34, %v2090_v42  ;;  %v2168_v42 = vmul.f32 %v2060_v44, %v4042_v30 }
 0x1a3   : > { %4671 = vst [vmem:[#allocation22_spill] sm:$0xff] %v4097_v17  ;;  %v3266_v9 = vpop.f32.mrf.mxu0 }
 0x1a4   : > { %v3340_v58 = vpop.f32.mrf.mxu1  ;;  %v2164_v9 = vmul.f32 %v2056_v3, %v4023_v48 }
 0x1a5   : > { %v4104_v45 = vpop.f32.mrf.mxu0  ;;  %v2058_v58 = vmul.f32 %v1903_v26, %v4032_v8  ;;  %v1519_v26 = vadd.f32 %v4052_v53, %v3911_v54  ;;  %v4139_v54 = vadd.f32 %v4040_v28, %v1518_v56 }
 0x1a6   : > { %v4108_v31 = vpop.f32.mrf.mxu1  ;;  %v2198_v33 = vsel %vm2089_vm6, %v2164_v9, 0.0  ;;  %v2167_v9 = vmul.f32 %v2059_v35, %v4037_v19 }
 0x1a7   : > { %v3267_v17 = vpop.f32.mrf.mxu0  ;;  %v4153_v56 = vadd.f32 %v4046_v38, %v1519_v26  ;;  %v2199_v34 = vadd.f32 %v2198_v33, %v2197_v49  ;;  %v1522_v38 = vadd.f32 %v4067_v27, %v3935_v21 }
 0x1a8   : > { %v3341_v51 = vpop.f32.mrf.mxu1  ;;  %v4123_v17 = vadd.f32 %v4035_v15, %v1517_v25  ;;  %v2093_v15 = vsel %vm2089_vm6, %v2057_v59, 0.0  ;;  %v2166_v25 = vmul.f32 %v2058_v58, %v4032_v8  ;;  %v2095_v59 = vsel %vm2089_vm6, %v2058_v58, 0.0 }
 0x1a9   : > { %v4118_v29 = vpop.f32.mrf.mxu0  ;;  %v4131_v51 = vpop.permute.xlu1 %1952  ;;  %v2094_v36 = vadd.f32 %v2093_v15, %v2092_v37  ;;  %v2097_v58 = vsel %vm2089_vm6, %v2059_v35, 0.0  ;;  %v4170_v15 = vadd.f32 %v4054_v24, %v1521_v63  ;;  %v2204_v35 = vsel %vm2089_vm6, %v2167_v9, 0.0 }
 0x1aa   : > { %v4127_v48 = vpop.f32.mrf.mxu1  ;;  %v2061_v28 = vmul.f32 %v1918_v0, %v4123_v17  ;;  %v2202_v14 = vsel %vm2089_vm6, %v2166_v25, 0.0  ;;  %v2062_v0 = vmul.f32 %v4079_v12, %v4139_v54  ;;  %v2099_v12 = vsel %vm2089_vm6, %v2060_v44, 0.0 }
 0x1ab   : > { %4672 = vst [vmem:[#allocation23_spill] sm:$0xff] %v4127_v48  ;;  %v3270_v3 = vpop.f32.mrf.mxu0  ;;  %v4143_v48 = vpop.permute.xlu0 %1957  ;;  %v2096_v33 = vadd.f32 %v2095_v59, %v2094_v36  ;;  %v2063_v21 = vmul.f32 %v4085_v39, %v4153_v56  ;;  %v2206_v24 = vsel %vm2089_vm6, %v2168_v42, 0.0  ;;  %v4191_v9 = vadd.f32 %v4061_v4, %v1522_v38 }
 0x1ac   : > { %v3344_v53 = vpop.f32.mrf.mxu1  ;;  %v4159_v3 = vadd.f32 %v4050_v46, %v1520_v62  ;;  %v1523_v62 = vadd.f32 %v4071_v47, %v3941_v32  ;;  %v2169_v25 = vmul.f32 %v2061_v28, %v4123_v17  ;;  %v2101_v59 = vsel %vm2089_vm6, %v2061_v28, 0.0 }
 0x1ad   : > { %v4147_v1 = vpop.f32.mrf.mxu0  ;;  %v2201_v53 = vadd.f32 %v2200_v57, %v2199_v34  ;;  %v4167_v37 = vpop.permute.xlu1 %1962  ;;  %v2098_v57 = vadd.f32 %v2097_v58, %v2096_v33  ;;  %v2170_v44 = vmul.f32 %v2062_v0, %v4139_v54  ;;  %v1524_v39 = vadd.f32 %v4075_v7, %v3948_v41 }
 0x1ae   : > { %v4155_v10 = vpop.f32.mrf.mxu1  ;;  %v2064_v32 = vmul.f32 %v4091_v43, %v4159_v3  ;;  %v2065_v42 = vmul.f32 %v4093_v23, %v4170_v15  ;;  %v2208_v28 = vsel %vm2089_vm6, %v2169_v25, 0.0  ;;  %v2103_v58 = vsel %vm2089_vm6, %v2062_v0, 0.0 }
 0x1af   : > { %v3271_v11 = vpop.f32.mrf.mxu0  ;;  %v2203_v49 = vadd.f32 %v2202_v14, %v2201_v53  ;;  %v4184_v63 = vpop.permute.xlu0 %1967  ;;  %v4198_v14 = vadd.f32 %v4065_v61, %v1523_v62  ;;  %v2171_v4 = vmul.f32 %v2063_v21, %v4153_v56  ;;  %v1525_v41 = vadd.f32 %v4081_v5, %v3954_v55 }
 0x1b0   : > { %v3345_v26 = vpop.f32.mrf.mxu1  ;;  %v2100_v11 = vadd.f32 %v2099_v12, %v2098_v57  ;;  %v2172_v23 = vmul.f32 %v2064_v32, %v4159_v3  ;;  %v1526_v61 = vadd.f32 %v4087_v40, %v3961_v2  ;;  %v2210_v62 = vsel %vm2089_vm6, %v2170_v44, 0.0 }
 0x1b1   : > { %v4174_v46 = vpop.f32.mrf.mxu0  ;;  %v2205_v36 = vadd.f32 %v2204_v35, %v2203_v49  ;;  %v4210_v53 = vpop.permute.xlu1 %1972  ;;  %v2105_v0 = vsel %vm2089_vm6, %v2063_v21, 0.0  ;;  %v2066_v35 = vmul.f32 %v4102_v50, %v4191_v9  ;;  %v4219_v55 = vadd.f32 %v4069_v6, %v1524_v39 }
 0x1b2   : > { %v4181_v27 = vpop.f32.mrf.mxu1  ;;  %v2102_v26 = vadd.f32 %v2101_v59, %v2100_v11  ;;  %v2173_v57 = vmul.f32 %v2065_v42, %v4170_v15  ;;  %v2067_v2 = vmul.f32 %v4110_v60, %v4198_v14  ;;  %v2212_v21 = vsel %vm2089_vm6, %v2171_v4, 0.0 }
 0x1b3   : > { %v3274_v47 = vpop.f32.mrf.mxu0  ;;  %v2207_v38 = vadd.f32 %v2206_v24, %v2205_v36  ;;  %v4221_v49 = vpop.permute.xlu0 %1977  ;;  %v2107_v24 = vsel %vm2089_vm6, %v2064_v32, 0.0  ;;  %v4231_v50 = vadd.f32 %v4073_v52, %v1525_v41  ;;  %v1527_v6 = vadd.f32 %v4095_v20, %v3966_v13 }
 0x1b4   : > { %v3348_v34 = vpop.f32.mrf.mxu1  ;;  %v2104_v25 = vadd.f32 %v2103_v58, %v2102_v26  ;;  %v2214_v39 = vsel %vm2089_vm6, %v2172_v23, 0.0  ;;  %v4239_v60 = vadd.f32 %v4077_v18, %v1526_v61  ;;  %v2109_v36 = vsel %vm2089_vm6, %v2065_v42, 0.0 }
 0x1b5   : > { %v4200_v43 = vpop.f32.mrf.mxu0  ;;  %v2209_v12 = vadd.f32 %v2208_v28, %v2207_v38  ;;  %v2174_v32 = vmul.f32 %v2066_v35, %v4191_v9  ;;  %v2068_v52 = vmul.f32 %v4131_v51, %v4219_v55  ;;  %v1528_v13 = vadd.f32 %v4104_v45, %v3973_v22  ;;  %v1983_v4 = vpop.permute.xlu1 %1982  ;;  %v4673_v51 = vld [vmem:[#allocation2_spill] sm:$0xff] }
 0x1b6   : > { %v4207_v7 = vpop.f32.mrf.mxu1  ;;  %v2106_v44 = vadd.f32 %v2105_v0, %v2104_v25  ;;  %v2216_v58 = vsel %vm2089_vm6, %v2173_v57, 0.0  ;;  %v2175_v18 = vmul.f32 %v2067_v2, %v4198_v14  ;;  %v2111_v38 = vsel %vm2089_vm6, %v2066_v35, 0.0  ;;  %v4674_v0 = vld [vmem:[#allocation3_spill] sm:$0xff]  ;;  %v4675_v25 = vld [vmem:[#allocation21_spill] sm:$0xff] }
 0x1b7   : > { %v3275_v33 = vpop.f32.mrf.mxu0  ;;  %v2211_v59 = vadd.f32 %v2210_v62, %v2209_v12  ;;  %v2069_v42 = vmul.f32 %v4143_v48, %v4231_v50  ;;  %v4253_v26 = vadd.f32 %v4083_v16, %v1527_v6  ;;  %v1529_v22 = vadd.f32 %v4118_v29, %v4673_v51 }
 0x1b8   : > { %v3349_v5 = vpop.f32.mrf.mxu1  ;;  %v2108_v28 = vadd.f32 %v2107_v24, %v2106_v44  ;;  %v1988_v33 = vpop.permute.xlu0 %1987  ;;  %v2070_v62 = vmul.f32 %v4167_v37, %v4239_v60  ;;  %v1530_v35 = vadd.f32 %v4147_v1, %v4674_v0  ;;  %v2218_v48 = vsel %vm2089_vm6, %v2174_v32, 0.0 }
 0x1b9   : > { %v4226_v40 = vpop.f32.mrf.mxu0  ;;  %v2213_v11 = vadd.f32 %v2212_v21, %v2211_v59  ;;  %v2113_v16 = vsel %vm2089_vm6, %v2067_v2, 0.0  ;;  %v2176_v12 = vmul.f32 %v2068_v52, %v4219_v55  ;;  %v4267_v29 = vadd.f32 %v4675_v25, %v1528_v13  ;;  %v4676_v59 = vld [vmem:[#allocation4_spill] sm:$0xff] }
 0x1ba   : > { %v4235_v47 = vpop.f32.mrf.mxu1  ;;  %v2110_v61 = vadd.f32 %v2109_v36, %v2108_v28  ;;  %v2220_v6 = vsel %vm2089_vm6, %v2175_v18, 0.0  ;;  %v1531_v37 = vadd.f32 %v4174_v46, %v4676_v59  ;;  %v2115_v1 = vsel %vm2089_vm6, %v2068_v52, 0.0 }
 0x1bb   : > { %v3278_v34 = vpop.f32.mrf.mxu0  ;;  %v2215_v23 = vadd.f32 %v2214_v39, %v2213_v11  ;;  %v2177_v39 = vmul.f32 %v2069_v42, %v4231_v50  ;;  %v2071_v2 = vmul.f32 %v4184_v63, %v4253_v26  ;;  %v2178_v28 = vmul.f32 %v2070_v62, %v4239_v60 }
 0x1bc   : > { %v3352_v20 = vpop.f32.mrf.mxu1  ;;  %v2112_v24 = vadd.f32 %v2111_v38, %v2110_v61  ;;  %v4677_v34 = vld [vmem:[#allocation22_spill] sm:$0xff]  ;;  %v4283_v46 = vadd.f32 %v4108_v31, %v1530_v35  ;;  %v2222_v52 = vsel %vm2089_vm6, %v2176_v12, 0.0  ;;  %v2117_v18 = vsel %vm2089_vm6, %v2069_v42, 0.0  ;;  %v4678_v38 = vld [vmem:[#allocation5_spill] sm:$0xff] }
 0x1bd   : > { %v1467_v41 = vpop.f32.mrf.mxu0  ;;  %v2217_v21 = vadd.f32 %v2216_v58, %v2215_v23  ;;  %v4277_v36 = vadd.f32 %v4677_v34, %v1529_v22  ;;  %v1993_v20 = vpop.permute.xlu1 %1992  ;;  %v2072_v63 = vmul.f32 %v4210_v53, %v4267_v29  ;;  %v1532_v51 = vadd.f32 %v4200_v43, %v4678_v38  ;;  %v4680_v31 = vld [vmem:[#allocation6_spill] sm:$0xff] }
 0x1be   : > { %v4257_v45 = vpop.f32.mrf.mxu1  ;;  %v2114_v11 = vadd.f32 %v2113_v16, %v2112_v24  ;;  %v1998_v23 = vpop.permute.xlu0 %1997  ;;  %v1533_v35 = vadd.f32 %v4226_v40, %v4680_v31  ;;  %v2224_v12 = vsel %vm2089_vm6, %v2177_v39, 0.0  ;;  %v2119_v42 = vsel %vm2089_vm6, %v2070_v62, 0.0 }
 0x1bf   : > { %v3279_v5 = vpop.f32.mrf.mxu0  ;;  %v2219_v13 = vadd.f32 %v2218_v48, %v2217_v21  ;;  %v2179_v53 = vmul.f32 %v2071_v2, %v4253_v26  ;;  %v2073_v43 = vmul.f32 %v4221_v49, %v4277_v36  ;;  %v2226_v24 = vsel %vm2089_vm6, %v2178_v28, 0.0 }
 0x1c0   : > { %v3353_v57 = vpop.f32.mrf.mxu1  ;;  %v2116_v0 = vadd.f32 %v2115_v1, %v2114_v11  ;;  %v4679_v5 = vld [vmem:[#allocation23_spill] sm:$0xff]  ;;  %v2121_v40 = vsel %vm2089_vm6, %v2071_v2, 0.0  ;;  %v4308_v62 = vadd.f32 %v4155_v10, %v1532_v51  ;;  %v4313_v28 = vadd.f32 %v4181_v27, %v1533_v35  ;;  %v4682_v10 = vld [vmem:[#allocation8_spill] sm:$0xff] }
 0x1c1   : > { %v1472_v44 = vpop.f32.mrf.mxu0  ;;  %v2221_v61 = vadd.f32 %v2220_v6, %v2219_v13  ;;  %v4292_v48 = vadd.f32 %v4679_v5, %v1531_v37  ;;  %v2074_v6 = vmul.f32 %v1983_v4, %v4283_v46  ;;  %v2180_v37 = vmul.f32 %v2072_v63, %v4267_v29  ;;  %v4681_v1 = vld [vmem:[#allocation7_spill] sm:$0xff]  ;;  %v2003_v49 = vpop.permute.xlu1 %2002  ;;  %v4683_v5 = vld [vmem:[#allocation9_spill] sm:$0xff] }
 0x1c2   : > { %v4279_v32 = vpop.f32.mrf.mxu1  ;;  %v2118_v21 = vadd.f32 %v2117_v18, %v2116_v0  ;;  %v1534_v39 = vadd.f32 %v1467_v41, %v4681_v1  ;;  %v2123_v2 = vsel %vm2089_vm6, %v2072_v63, 0.0  ;;  %v2181_v18 = vmul.f32 %v2073_v43, %v4277_v36  ;;  %v2008_v41 = vpop.permute.xlu0 %2007 }
 0x1c3   : > { %v3282_v58 = vpop.f32.mrf.mxu0  ;;  %v2223_v57 = vadd.f32 %v2222_v52, %v2221_v61  ;;  %v2228_v52 = vsel %vm2089_vm6, %v2179_v53, 0.0  ;;  %v1535_v38 = vadd.f32 %v1472_v44, %v4682_v10  ;;  %v2182_v0 = vmul.f32 %v2074_v6, %v4283_v46 }
 0x1c4   : > { %v3356_v22 = vpop.f32.mrf.mxu1  ;;  %v2120_v11 = vadd.f32 %v2119_v42, %v2118_v21  ;;  %v2075_v58 = vmul.f32 %v1988_v33, %v4292_v48  ;;  %v2230_v27 = vsel %vm2089_vm6, %v2180_v37, 0.0  ;;  %v2125_v35 = vsel %vm2089_vm6, %v2073_v43, 0.0  ;;  %v4684_v43 = vld [vmem:[#allocation10_spill] sm:$0xff] }
 0x1c5   : > { %v1475_v16 = vpop.f32.mrf.mxu0  ;;  %v2225_v13 = vadd.f32 %v2224_v12, %v2223_v57  ;;  %v2076_v12 = vmul.f32 %v1993_v20, %v4308_v62  ;;  %v4325_v63 = vadd.f32 %v4207_v7, %v1534_v39  ;;  %v2077_v21 = vmul.f32 %v1998_v23, %v4313_v28  ;;  %v2013_v7 = vpop.permute.xlu1 %2012 }
 0x1c6   : > { %v4301_v25 = vpop.f32.mrf.mxu1  ;;  %v2122_v61 = vadd.f32 %v2121_v40, %v2120_v11  ;;  %v1536_v33 = vadd.f32 %v1475_v16, %v4683_v5  ;;  %v2183_v57 = vmul.f32 %v2075_v58, %v4292_v48  ;;  %v2232_v16 = vsel %vm2089_vm6, %v2181_v18, 0.0 }
 0x1c7   : > { %v3283_v59 = vpop.f32.mrf.mxu0  ;;  %v2227_v22 = vadd.f32 %v2226_v24, %v2225_v13  ;;  %v4332_v40 = vadd.f32 %v4235_v47, %v1535_v38  ;;  %v2129_v11 = vsel %vm2089_vm6, %v2075_v58, 0.0  ;;  %v4685_v47 = vld [vmem:[#allocation11_spill] sm:$0xff] }
 0x1c8   : > { %v3357_v34 = vpop.f32.mrf.mxu1  ;;  %v2124_v53 = vadd.f32 %v2123_v2, %v2122_v61  ;;  %v2127_v59 = vsel %vm2089_vm6, %v2074_v6, 0.0  ;;  %v4337_v13 = vadd.f32 %v4257_v45, %v1536_v33  ;;  %v2078_v6 = vmul.f32 %v2003_v49, %v4325_v63  ;;  %v4686_v33 = vld [vmem:[#allocation12_spill] sm:$0xff] }
 0x1c9   : > { %v1480_v4 = vpop.f32.mrf.mxu0  ;;  %v2229_v44 = vadd.f32 %v2228_v52, %v2227_v22  ;;  %v2234_v34 = vsel %vm2089_vm6, %v2182_v0, 0.0  ;;  %v2184_v52 = vmul.f32 %v2076_v12, %v4308_v62  ;;  %v2236_v22 = vsel %vm2089_vm6, %v2183_v57, 0.0 }
 0x1ca   : > { %v1793_v51 = vpop.f32.mrf.mxu1  ;;  %v1537_v20 = vadd.f32 %v1480_v4, %v4684_v43  ;;  %v2126_v39 = vadd.f32 %v2125_v35, %v2124_v53  ;;  %v2018_v4 = vpop.permute.xlu0 %2017  ;;  %v2185_v61 = vmul.f32 %v2077_v21, %v4313_v28  ;;  %v2131_v45 = vsel %vm2089_vm6, %v2076_v12, 0.0 }
 0x1cb   : > { %v3286_v31 = vpop.f32.mrf.mxu0  ;;  %v2231_v1 = vadd.f32 %v2230_v27, %v2229_v44  ;;  %v2079_v5 = vmul.f32 %v2008_v41, %v4332_v40  ;;  %v2238_v53 = vsel %vm2089_vm6, %v2184_v52, 0.0  ;;  %v2133_v57 = vsel %vm2089_vm6, %v2077_v21, 0.0 }
 0x1cc   : > { %v3360_v42 = vpop.f32.mrf.mxu1  ;;  %v2128_v38 = vadd.f32 %v2127_v59, %v2126_v39  ;;  %v4348_v58 = vadd.f32 %v4279_v32, %v1537_v20  ;;  %v2023_v32 = vpop.permute.xlu1 %2022  ;;  %v2240_v43 = vsel %vm2089_vm6, %v2185_v61, 0.0 }
 0x1cd   : > { %v1483_v24 = vpop.f32.mrf.mxu0  ;;  %v2233_v10 = vadd.f32 %v2232_v16, %v2231_v1  ;;  %v2080_v42 = vmul.f32 %v2013_v7, %v4337_v13  ;;  %v2135_v7 = vsel %vm2089_vm6, %v2078_v6, 0.0  ;;  %v2187_v39 = vmul.f32 %v2079_v5, %v4332_v40 }
 0x1ce   : > { %v1796_v37 = vpop.f32.mrf.mxu1  ;;  %v1538_v2 = vadd.f32 %v1483_v24, %v4685_v47  ;;  %v2130_v35 = vadd.f32 %v2129_v11, %v2128_v38  ;;  %v2186_v24 = vmul.f32 %v2078_v6, %v4325_v63  ;;  %v2081_v21 = vmul.f32 %v2018_v4, %v4348_v58 }
 0x1cf   : > { %v3287_v23 = vpop.f32.mrf.mxu0  ;;  %v2235_v27 = vadd.f32 %v2234_v34, %v2233_v10  ;;  %v4687_v34 = vld [vmem:[#allocation13_spill] sm:$0xff] }
 0x1d0   : > { %v3361_v18 = vpop.f32.mrf.mxu1  ;;  %v4356_v12 = vadd.f32 %v4301_v25, %v1538_v2  ;;  %v2132_v59 = vadd.f32 %v2131_v45, %v2130_v35  ;;  %v2028_v25 = vpop.permute.xlu0 %2027  ;;  %v2188_v2 = vmul.f32 %v2080_v42, %v4337_v13  ;;  %v2242_v10 = vsel %vm2089_vm6, %v2186_v24, 0.0  ;;  %v4688_v35 = vld [vmem:[#allocation14_spill] sm:$0xff] }
 0x1d1   : > { %v1488_v0 = vpop.f32.mrf.mxu0  ;;  %v2237_v16 = vadd.f32 %v2236_v22, %v2235_v27  ;;  %v2189_v27 = vmul.f32 %v2081_v21, %v4348_v58 }
 0x1d2   : > { %v1539_v49 = vadd.f32 %v1488_v0, %v4686_v33  ;;  %v1801_v31 = vpop.f32.mrf.mxu1  ;;  %v2134_v47 = vadd.f32 %v2133_v57, %v2132_v59  ;;  %v2082_v38 = vmul.f32 %v2023_v32, %v4356_v12  ;;  %v2244_v33 = vsel %vm2089_vm6, %v2187_v39, 0.0 }
 0x1d3   : > { %v3290_v44 = vpop.f32.mrf.mxu0  ;;  %v2239_v52 = vadd.f32 %v2238_v53, %v2237_v16  ;;  %v2141_v32 = vsel %vm2089_vm6, %v2081_v21, 0.0  ;;  %v4689_v21 = vld [vmem:[#allocation15_spill] sm:$0xff] }
 0x1d4   : > { %v3364_v41 = vpop.f32.mrf.mxu1  ;;  %v4359_v20 = vadd.f32 %v1793_v51, %v1539_v49  ;;  %v2137_v51 = vsel %vm2089_vm6, %v2079_v5, 0.0  ;;  %v2136_v4 = vadd.f32 %v2135_v7, %v2134_v47  ;;  %v2139_v49 = vsel %vm2089_vm6, %v2080_v42, 0.0  ;;  %v2033_v5 = vpop.permute.xlu1 %2032 }
 0x1d5   : > { %v1491_v1 = vpop.f32.mrf.mxu0  ;;  %v2241_v61 = vadd.f32 %v2240_v43, %v2239_v52  ;;  %v2190_v16 = vmul.f32 %v2082_v38, %v4356_v12  ;;  %v2143_v52 = vsel %vm2089_vm6, %v2082_v38, 0.0 }
 0x1d6   : > { %v1540_v23 = vadd.f32 %v1491_v1, %v4687_v34  ;;  %v1804_v11 = vpop.f32.mrf.mxu1  ;;  %v2083_v0 = vmul.f32 %v2028_v25, %v4359_v20  ;;  %v2138_v24 = vadd.f32 %v2137_v51, %v2136_v4  ;;  %v2038_v1 = vpop.permute.xlu0 %2037  ;;  %v2248_v25 = vsel %vm2089_vm6, %v2189_v27, 0.0 }
 0x1d7   : > { %v3291_v18 = vpop.f32.mrf.mxu0  ;;  %v2243_v57 = vadd.f32 %v2242_v10, %v2241_v61 }
 0x1d8   : > { %v4369_v6 = vadd.f32 %v1796_v37, %v1540_v23  ;;  %v3365_v22 = vpop.f32.mrf.mxu1  ;;  %v2246_v37 = vsel %vm2089_vm6, %v2188_v2, 0.0  ;;  %v2140_v39 = vadd.f32 %v2139_v49, %v2138_v24  ;;  %v2191_v34 = vmul.f32 %v2083_v0, %v4359_v20  ;;  %v2043_v49 = vpop.permute.xlu1 %2042 }
 0x1d9   : > { %v1496_v45 = vpop.f32.mrf.mxu0  ;;  %v2245_v7 = vadd.f32 %v2244_v33, %v2243_v57  ;;  %v2250_v22 = vsel %vm2089_vm6, %v2190_v16, 0.0  ;;  %v2145_v61 = vsel %vm2089_vm6, %v2083_v0, 0.0 }
 0x1da   : > { %v1541_v44 = vadd.f32 %v1496_v45, %v4688_v35  ;;  %v1809_v53 = vpop.f32.mrf.mxu1  ;;  %v2084_v59 = vmul.f32 %v2033_v5, %v4369_v6  ;;  %v2142_v51 = vadd.f32 %v2141_v32, %v2140_v39  ;;  %v2252_v35 = vsel %vm2089_vm6, %v2191_v34, 0.0  ;;  %v2048_v39 = vpop.permute.xlu0 %2047 }
 0x1db   : > { %v3294_v41 = vpop.f32.mrf.mxu0  ;;  %v2247_v10 = vadd.f32 %v2246_v37, %v2245_v7  ;;  %v4690_v37 = vld [vmem:[#allocation16_spill] sm:$0xff] }
 0x1dc   : > { %v4380_v43 = vadd.f32 %v1801_v31, %v1541_v44  ;;  %v3368_v42 = vpop.f32.mrf.mxu1  ;;  %v2192_v4 = vmul.f32 %v2084_v59, %v4369_v6  ;;  %v2144_v38 = vadd.f32 %v2143_v52, %v2142_v51  ;;  %v2147_v5 = vsel %vm2089_vm6, %v2084_v59, 0.0 }
 0x1dd   : > { %v1499_v23 = vpop.f32.mrf.mxu0  ;;  %v2249_v27 = vadd.f32 %v2248_v25, %v2247_v10 }
 0x1de   : > { %v2085_v47 = vmul.f32 %v2038_v1, %v4380_v43  ;;  %v1542_v2 = vadd.f32 %v1499_v23, %v4689_v21  ;;  %v1812_v18 = vpop.f32.mrf.mxu1  ;;  %v2146_v32 = vadd.f32 %v2145_v61, %v2144_v38 }
 0x1df   : > { %v3295_v31 = vpop.f32.mrf.mxu0  ;;  %v2251_v0 = vadd.f32 %v2250_v22, %v2249_v27 }
 0x1e0   : > { %v4390_v45 = vadd.f32 %v1804_v11, %v1542_v2  ;;  %v3369_v33 = vpop.f32.mrf.mxu1  ;;  %v2193_v57 = vmul.f32 %v2085_v47, %v4380_v43  ;;  %v2254_v11 = vsel %vm2089_vm6, %v2192_v4, 0.0  ;;  %v2149_v42 = vsel %vm2089_vm6, %v2085_v47, 0.0  ;;  %v4691_v2 = vld [vmem:[#allocation17_spill] sm:$0xff] }
 0x1e1   : > { %v1504_v44 = vpop.f32.mrf.mxu0  ;;  %v2253_v34 = vadd.f32 %v2252_v35, %v2251_v0  ;;  %v2148_v59 = vadd.f32 %v2147_v5, %v2146_v32  ;;  %v2053_v33 = vpop.permute.xlu1 %2052 }
 0x1e2   : > { %v2086_v24 = vmul.f32 %v2043_v49, %v4390_v45  ;;  %v1543_v41 = vadd.f32 %v1504_v44, %v4690_v37  ;;  %v2256_v25 = vsel %vm2089_vm6, %v2193_v57, 0.0 }
 0x1e3   : > { %v3298_v16 = vpop.f32.mrf.mxu0  ;;  %v2255_v51 = vadd.f32 %v2254_v11, %v2253_v34  ;;  %v2150_v31 = vadd.f32 %v2149_v42, %v2148_v59 }
 0x1e4   : > { %v2194_v1 = vmul.f32 %v2086_v24, %v4390_v45  ;;  %v4400_v7 = vadd.f32 %v1809_v53, %v1543_v41  ;;  %v2151_v52 = vsel %vm2089_vm6, %v2086_v24, 0.0 }
 0x1e5   : > { %v1507_v23 = vpop.f32.mrf.mxu0  ;;  %v2257_v49 = vadd.f32 %v2256_v25, %v2255_v51  ;;  %v2152_v27 = vadd.f32 %v2151_v52, %v2150_v31 }
 0x1e6   : > { %v2087_v21 = vmul.f32 %v2048_v39, %v4400_v7  ;;  %v1544_v10 = vadd.f32 %v1507_v23, %v4691_v2  ;;  %v2258_v47 = vsel %vm2089_vm6, %v2194_v1, 0.0  ;;  %v1884_v39 = vld [vmem:[%s4641_s2] sm:$0x1] }
 0x1e7   : > { %v3299_v22 = vpop.f32.mrf.mxu0  ;;  %v2259_v44 = vadd.f32 %v2258_v47, %v2257_v49  ;;  %v2272_v52 = vmul.f32 2.0, %v1884_v39 }
 0x1e8   : > { %v2153_v53 = vsel %vm2089_vm6, %v2087_v21, 0.0  ;;  %v2195_v61 = vmul.f32 %v2087_v21, %v4400_v7  ;;  %v4409_v4 = vadd.f32 %v1812_v18, %v1544_v10  ;;  %v2270_v10 = vmul.f32 256.0, %v1884_v39 }
 0x1e9   : > { %v2154_v5 = vadd.f32 %v2153_v53, %v2152_v27 }
 0x1ea   : > { %v2260_v38 = vsel %vm2089_vm6, %v2195_v61, 0.0  ;;  %v2088_v35 = vmul.f32 %v2053_v33, %v4409_v4  ;;  %v2275_v22 = vmul.f32 %v2270_v10, %v1884_v39 }
 0x1eb   : > { %v2261_v37 = vadd.f32 %v2260_v38, %v2259_v44 }
 0x1ec   : > { %v2155_v57 = vsel %vm2089_vm6, %v2088_v35, 0.0  ;;  %v2196_v24 = vmul.f32 %v2088_v35, %v4409_v4 }
 0x1ed   : > { %v2156_v41 = vadd.f32 %v2155_v57, %v2154_v5 }
 0x1ee   : > { %v2262_v0 = vsel %vm2089_vm6, %v2196_v24, 0.0 }
 0x1ef   : > { %v2157_v32 = vrot.slane %v2156_v41, 4  ;;  %v2263_v18 = vadd.f32 %v2262_v0, %v2261_v37  ;;  %v3456_v0 = vmov 1966171168  }
 0x1f1   : > { %v2158_v16 = vadd.f32 %v2157_v32, %v2156_v41  ;;  %v2264_v11 = vrot.slane %v2263_v18, 4  ;;  %v2459_v32 = vunpack.c.l.s4 %v3456_v0 }
 0x1f3   : > { %v2159_v42 = vrot.slane %v2158_v16, 2  ;;  %v2265_v1 = vadd.f32 %v2264_v11, %v2263_v18  ;;  %v2461_v18 = vlaneseq }
 0x1f5   : > { %v2160_v34 = vadd.f32 %v2159_v42, %v2158_v16  ;;  %v2266_v59 = vrot.slane %v2265_v1, 2  ;;  %v2460_v16 = vunpack.c.0.s8 %v2459_v32  ;;  %v2462_v11 = vshrl.u32 %v2461_v18, 7  ;;  %v2940_v42 = vld [vmem:[%s4642_s3] ss:$0 sm:$0xff] }
 0x1f7   : > { %v2161_v23 = vrot.slane %v2160_v34, 1  ;;  %v2267_v25 = vadd.f32 %v2266_v59, %v2265_v1  ;;  %v2463_v1 = vsub.s32 %v2460_v16, %v2462_v11 }
 0x1f9   : > { %v2162_v21 = vadd.f32 %v2161_v23, %v2160_v34  ;;  %v2268_v2 = vrot.slane %v2267_v25, 1  ;;  %v2479_v34 = vsub.s32 1, %v2462_v11 }
 0x1fb   : > { %v2269_v51 = vadd.f32 %v2268_v2, %v2267_v25  ;;  %v2273_v31 = vmul.f32 %v2272_v52, %v2162_v21  ;;  %v2271_v61 = vadd.f32 %v2270_v10, %v2162_v21 }
 0x1fd   : > { %v2274_v47 = vadd.f32 %v2273_v31, %v2269_v51  ;;  %v4692_v51 = vld [vmem:[#allocation18_spill] sm:$0xff] }
 0x1ff   : > { %v2276_v53 = vadd.f32 %v2275_v22, %v2274_v47  ;;  %v4693_v22 = vld [vmem:[#allocation19_spill] sm:$0xff] }
 0x201   : > { %v2278_v33 = vrot.slane %v2276_v53, 7  ;;  %v2518_v53 = vsub.s32 0, %v2462_v11 }
 0x203   : > { %v2281_v49 = vsel %vm2280_vm7, %v2271_v61, %v2278_v33  ;;  %v4694_v33 = vld [vmem:[#allocation20_spill] sm:$0xff] }
 0x204   : > { %3379 = vmatmul.mubr.msk.f32.vlgmr.msra.gmra.mxu0 %vm2089_vm6, %v2281_v49 }
 0x2c4   : > { %v2355_v27 = vpop.f32.mrf.mxu0 }
 0x2c5   : > { %v2360_v38 = vmul.f32 0.00024414063, %v2355_v27 }
 0x2c6   : > { %v3380_v35 = vpop.f32.mrf.mxu0 }
 0x2c7   : > { %v2361_v44 = vmul.f32 %v2360_v38, %v2360_v38  ;;  %v2475_v35 = vld [vmem:[%s4643_s4] sm:$0x1] }
 0x2c9   : > { %v2363_v5 = vrot.slane %v2361_v44, 7 }
 0x2cb   : > { %v2365_v57 = vsub.f32 %v2360_v38, %v2363_v5 }
 0x2cd   : > { %v2366_v24 = vadd.f32 1e-05, %v2365_v57 }
 0x2cf   : > { %3443 = vrsqrt.f32 %v2366_v24 }
 0x2dc   : > { %v3444_v37 = vpop.eup %3443 }
 0x2dd   : > { %v2368_v41 = vsel %vm2280_vm7, %v2360_v38, %v3444_v37 }
 0x2de   : > { %3384 = vmatmul.mubr.msk.f32.vlgmr.msra.gmra.mxu1 %vm2370_vm8, %v2368_v41 }
 0x39e   : > { %v2444_v59 = vpop.f32.mrf.mxu1 }
 0x39f   : > { %v2455_v23 = vmul.f32 %v2940_v42, %v2444_v59  ;;  %v2456_v10 = vsub.f32 %v1884_v39, %v2444_v59 }
 0x3a0   : > { %v3385_v25 = vpop.f32.mrf.mxu1 }
 0x3a1   : > { %v2464_v52 = vrot.slane %v2455_v23, %v2463_v1  ;;  %v2480_v21 = vrot.slane %v2455_v23, %v2479_v34 }
 0x3a3   : > { %v2465_v2 = vcombine.high %v2464_v52, %v2464_v52  ;;  %v2481_v31 = vmul.f32 %v2480_v21, %v4692_v51  ;;  %v2482_v47 = vmul.f32 %v2480_v21, %v4693_v22  ;;  %v2483_v49 = vmul.f32 %v2480_v21, %v4694_v33 }
 0x3a4   : > { %v2484_v27 = vmul.f32 %v2480_v21, %v4032_v8  ;;  %v2485_v38 = vmul.f32 %v2480_v21, %v4037_v19  ;;  %v2486_v44 = vmul.f32 %v2480_v21, %v4042_v30  ;;  %v2487_v39 = vmul.f32 %v2480_v21, %v4123_v17 }
 0x3a5   : > { %v2472_v61 = vrot.slane %v2465_v2, %v2463_v1  ;;  %v2488_v5 = vmul.f32 %v2480_v21, %v4139_v54  ;;  %v2489_v57 = vmul.f32 %v2480_v21, %v4153_v56  ;;  %v2490_v37 = vmul.f32 %v2480_v21, %v4159_v3 }
 0x3a6   : > { %v2491_v41 = vmul.f32 %v2480_v21, %v4170_v15  ;;  %v2492_v8 = vmul.f32 %v2480_v21, %v4191_v9  ;;  %v2493_v19 = vmul.f32 %v2480_v21, %v4198_v14  ;;  %v2494_v0 = vmul.f32 %v2480_v21, %v4219_v55 }
 0x3a7   : > { %v2474_v24 = vmul.f32 %v2472_v61, %v2456_v10  ;;  %v2495_v32 = vmul.f32 %v2480_v21, %v4231_v50  ;;  %v2496_v30 = vmul.f32 %v2480_v21, %v4239_v60  ;;  %v2497_v54 = vmul.f32 %v2480_v21, %v4253_v26 }
 0x3a8   : > { %v2498_v56 = vmul.f32 %v2480_v21, %v4267_v29  ;;  %v2499_v18 = vmul.f32 %v2480_v21, %v4277_v36  ;;  %v2500_v3 = vmul.f32 %v2480_v21, %v4283_v46  ;;  %v2501_v15 = vmul.f32 %v2480_v21, %v4292_v48 }
 0x3a9   : > { %v2476_v17 = vadd.f32 %v2475_v35, %v2474_v24  ;;  %v2502_v9 = vmul.f32 %v2480_v21, %v4308_v62  ;;  %v2503_v14 = vmul.f32 %v2480_v21, %v4313_v28  ;;  %v2504_v55 = vmul.f32 %v2480_v21, %v4325_v63 }
 0x3aa   : > { %v2505_v50 = vmul.f32 %v2480_v21, %v4332_v40  ;;  %v2506_v60 = vmul.f32 %v2480_v21, %v4337_v13  ;;  %v2507_v26 = vmul.f32 %v2480_v21, %v4348_v58  ;;  %v2508_v29 = vmul.f32 %v2480_v21, %v4356_v12 }
 0x3ab   : > { %v2509_v36 = vmul.f32 %v2480_v21, %v4359_v20  ;;  %v2510_v46 = vmul.f32 %v2480_v21, %v4369_v6  ;;  %v2519_v16 = vrot.slane %v2476_v17, %v2518_v53  ;;  %v2511_v48 = vmul.f32 %v2480_v21, %v4380_v43 }
 0x3ac   : > { %v2512_v62 = vmul.f32 %v2480_v21, %v4390_v45  ;;  %v2513_v28 = vmul.f32 %v2480_v21, %v4400_v7  ;;  %v2514_v63 = vmul.f32 %v2480_v21, %v4409_v4 }
 0x3ad   : > { %v4460_v40 = vadd.f32 %v2519_v16, %v2481_v31  ;;  %v4462_v13 = vadd.f32 %v2519_v16, %v2482_v47  ;;  %v4464_v58 = vadd.f32 %v2519_v16, %v2483_v49  ;;  %v4466_v12 = vadd.f32 %v2519_v16, %v2484_v27 }
 0x3ae   : > { %v4468_v20 = vadd.f32 %v2519_v16, %v2485_v38  ;;  %v4470_v6 = vadd.f32 %v2519_v16, %v2486_v44  ;;  %v4472_v11 = vadd.f32 %v2519_v16, %v2487_v39  ;;  %v4474_v43 = vadd.f32 %v2519_v16, %v2488_v5 }
 0x3af   : > { %v4476_v45 = vadd.f32 %v2519_v16, %v2489_v57  ;;  %v4478_v7 = vadd.f32 %v2519_v16, %v2490_v37  ;;  %v4480_v4 = vadd.f32 %v2519_v16, %v2491_v41  ;;  %v4482_v42 = vadd.f32 %v2519_v16, %v2492_v8 }
 0x3b0   : > { %v4484_v1 = vadd.f32 %v2519_v16, %v2493_v19  ;;  %v4486_v34 = vadd.f32 %v2519_v16, %v2494_v0  ;;  %v4488_v59 = vadd.f32 %v2519_v16, %v2495_v32  ;;  %v4490_v23 = vadd.f32 %v2519_v16, %v2496_v30 }
 0x3b1   : > { %v4492_v25 = vadd.f32 %v2519_v16, %v2497_v54  ;;  %v4494_v52 = vadd.f32 %v2519_v16, %v2498_v56  ;;  %v4496_v21 = vadd.f32 %v2519_v16, %v2499_v18  ;;  %v4498_v2 = vadd.f32 %v2519_v16, %v2500_v3 }
 0x3b2   : > { %v4500_v10 = vadd.f32 %v2519_v16, %v2501_v15  ;;  %v4502_v51 = vadd.f32 %v2519_v16, %v2502_v9  ;;  %v4504_v31 = vadd.f32 %v2519_v16, %v2503_v14  ;;  %v4506_v22 = vadd.f32 %v2519_v16, %v2504_v55 }
 0x3b3   : > { %v4508_v47 = vadd.f32 %v2519_v16, %v2505_v50  ;;  %v4510_v53 = vadd.f32 %v2519_v16, %v2506_v60  ;;  %v4512_v61 = vadd.f32 %v2519_v16, %v2507_v26  ;;  %v4514_v33 = vadd.f32 %v2519_v16, %v2508_v29 }
 0x3b4   : > { %v4516_v49 = vadd.f32 %v2519_v16, %v2509_v36  ;;  %v4518_v27 = vadd.f32 %v2519_v16, %v2510_v46  ;;  %v4520_v38 = vadd.f32 %v2519_v16, %v2511_v48  ;;  %v4522_v35 = vadd.f32 %v2519_v16, %v2512_v62 }
 0x3b5   : > { %v4524_v44 = vadd.f32 %v2519_v16, %v2513_v28  ;;  %v4526_v39 = vadd.f32 %v2519_v16, %v2514_v63  ;;  %v2555_v5 = vmax.f32 %v4460_v40, 0.0  ;;  %v2556_v57 = vmax.f32 %v4462_v13, 0.0 }
 0x3b6   : > { %v2557_v24 = vmax.f32 %v4464_v58, 0.0  ;;  %v2558_v37 = vmax.f32 %v4466_v12, 0.0  ;;  %v2559_v41 = vmax.f32 %v4468_v20, 0.0  ;;  %v2560_v8 = vmax.f32 %v4470_v6, 0.0 }
 0x3b7   : > { %v2561_v19 = vmax.f32 %v4472_v11, 0.0  ;;  %v2562_v0 = vmax.f32 %v4474_v43, 0.0  ;;  %v2563_v32 = vmax.f32 %v4476_v45, 0.0  ;;  %v2564_v30 = vmax.f32 %v4478_v7, 0.0 }
 0x3b8   : > { %v2565_v17 = vmax.f32 %v4480_v4, 0.0  ;;  %v2566_v54 = vmax.f32 %v4482_v42, 0.0  ;;  %v2567_v56 = vmax.f32 %v4484_v1, 0.0  ;;  %v2568_v18 = vmax.f32 %v4486_v34, 0.0 }
 0x3b9   : > { %v2569_v3 = vmax.f32 %v4488_v59, 0.0  ;;  %v2570_v15 = vmax.f32 %v4490_v23, 0.0  ;;  %v2571_v9 = vmax.f32 %v4492_v25, 0.0  ;;  %v2572_v14 = vmax.f32 %v4494_v52, 0.0 }
 0x3ba   : > { %v2573_v55 = vmax.f32 %v4496_v21, 0.0  ;;  %v2574_v50 = vmax.f32 %v4498_v2, 0.0  ;;  %v2575_v60 = vmax.f32 %v4500_v10, 0.0  ;;  %v2576_v26 = vmax.f32 %v4502_v51, 0.0 }
 0x3bb   : > { %v2577_v29 = vmax.f32 %v4504_v31, 0.0  ;;  %v2578_v36 = vmax.f32 %v4506_v22, 0.0  ;;  %v2579_v46 = vmax.f32 %v4508_v47, 0.0  ;;  %v2580_v16 = vmax.f32 %v4510_v53, 0.0 }
 0x3bc   : > { %v2581_v48 = vmax.f32 %v4512_v61, 0.0  ;;  %v2582_v62 = vmax.f32 %v4514_v33, 0.0  ;;  %v2583_v28 = vmax.f32 %v4516_v49, 0.0  ;;  %v2584_v63 = vmax.f32 %v4518_v27, 0.0 }
 0x3bd   : > { %v2585_v40 = vmax.f32 %v4520_v38, 0.0  ;;  %v2586_v13 = vmax.f32 %v4522_v35, 0.0  ;;  %v2587_v58 = vmax.f32 %v4524_v44, 0.0  ;;  %v2588_v12 = vmax.f32 %v4526_v39, 0.0 }
 0x3be   : > { %v2977_v20 = vpack.c.bf16 %v2555_v5, %v2555_v5  ;;  %v2978_v6 = vpack.c.bf16 %v2556_v57, %v2556_v57  ;;  %v2979_v11 = vpack.c.bf16 %v2557_v24, %v2557_v24  ;;  %v2980_v43 = vpack.c.bf16 %v2558_v37, %v2558_v37 }
 0x3bf   : > { %v2981_v45 = vpack.c.bf16 %v2559_v41, %v2559_v41  ;;  %v2982_v7 = vpack.c.bf16 %v2560_v8, %v2560_v8  ;;  %v2983_v4 = vpack.c.bf16 %v2561_v19, %v2561_v19  ;;  %v2984_v42 = vpack.c.bf16 %v2562_v0, %v2562_v0 }
 0x3c0   : > { %v2985_v1 = vpack.c.bf16 %v2563_v32, %v2563_v32  ;;  %v2986_v34 = vpack.c.bf16 %v2564_v30, %v2564_v30  ;;  %v2987_v59 = vpack.c.bf16 %v2565_v17, %v2565_v17  ;;  %v2988_v23 = vpack.c.bf16 %v2566_v54, %v2566_v54  ;;  %2726 = vst.msk [vmem:[%s4562_s30] sm:$0xf] %vm2725_vm9, %v2977_v20 }
 0x3c1   : > { %2727 = vst.msk [vmem:[%s4562_s30 + $0x4] sm:$0xf] %vm2725_vm9, %v2978_v6  ;;  %2728 = vst.msk [vmem:[%s4562_s30 + $0x8] sm:$0xf] %vm2725_vm9, %v2979_v11  ;;  %v2989_v25 = vpack.c.bf16 %v2567_v56, %v2567_v56  ;;  %v2990_v52 = vpack.c.bf16 %v2568_v18, %v2568_v18  ;;  %v2991_v21 = vpack.c.bf16 %v2569_v3, %v2569_v3 }
 0x3c2   : > { %2729 = vst.msk [vmem:[%s4562_s30 + $0xc] sm:$0xf] %vm2725_vm9, %v2980_v43  ;;  %v2992_v2 = vpack.c.bf16 %v2570_v15, %v2570_v15  ;;  %2730 = vst.msk [vmem:[%s4562_s30 + $0x10] sm:$0xf] %vm2725_vm9, %v2981_v45  ;;  %v2993_v10 = vpack.c.bf16 %v2571_v9, %v2571_v9  ;;  %v2994_v51 = vpack.c.bf16 %v2572_v14, %v2572_v14 }
 0x3c3   : > { %2731 = vst.msk [vmem:[%s4562_s30 + $0x14] sm:$0xf] %vm2725_vm9, %v2982_v7  ;;  %2732 = vst.msk [vmem:[%s4562_s30 + $0x18] sm:$0xf] %vm2725_vm9, %v2983_v4  ;;  %v2995_v31 = vpack.c.bf16 %v2573_v55, %v2573_v55  ;;  %v2996_v22 = vpack.c.bf16 %v2574_v50, %v2574_v50  ;;  %v2997_v47 = vpack.c.bf16 %v2575_v60, %v2575_v60 }
 0x3c4   : > { %2733 = vst.msk [vmem:[%s4562_s30 + $0x1c] sm:$0xf] %vm2725_vm9, %v2984_v42  ;;  %2734 = vst.msk [vmem:[%s4562_s30 + $0x20] sm:$0xf] %vm2725_vm9, %v2985_v1  ;;  %v2998_v53 = vpack.c.bf16 %v2576_v26, %v2576_v26  ;;  %v2999_v61 = vpack.c.bf16 %v2577_v29, %v2577_v29  ;;  %v3000_v33 = vpack.c.bf16 %v2578_v36, %v2578_v36 }
 0x3c5   : > { %2735 = vst.msk [vmem:[%s4562_s30 + $0x24] sm:$0xf] %vm2725_vm9, %v2986_v34  ;;  %2736 = vst.msk [vmem:[%s4562_s30 + $0x28] sm:$0xf] %vm2725_vm9, %v2987_v59  ;;  %v3001_v49 = vpack.c.bf16 %v2579_v46, %v2579_v46  ;;  %v3002_v27 = vpack.c.bf16 %v2580_v16, %v2580_v16  ;;  %v3003_v38 = vpack.c.bf16 %v2581_v48, %v2581_v48 }
 0x3c6   : > { %2737 = vst.msk [vmem:[%s4562_s30 + $0x2c] sm:$0xf] %vm2725_vm9, %v2988_v23  ;;  %2738 = vst.msk [vmem:[%s4562_s30 + $0x30] sm:$0xf] %vm2725_vm9, %v2989_v25  ;;  %v3004_v35 = vpack.c.bf16 %v2582_v62, %v2582_v62  ;;  %v3005_v44 = vpack.c.bf16 %v2583_v28, %v2583_v28  ;;  %v3006_v39 = vpack.c.bf16 %v2584_v63, %v2584_v63 }
 0x3c7   : > { %2739 = vst.msk [vmem:[%s4562_s30 + $0x34] sm:$0xf] %vm2725_vm9, %v2990_v52  ;;  %2740 = vst.msk [vmem:[%s4562_s30 + $0x38] sm:$0xf] %vm2725_vm9, %v2991_v21  ;;  %v3007_v5 = vpack.c.bf16 %v2585_v40, %v2585_v40  ;;  %v3008_v57 = vpack.c.bf16 %v2586_v13, %v2586_v13  ;;  %v3009_v24 = vpack.c.bf16 %v2587_v58, %v2587_v58 }
 0x3c8   : > { %2741 = vst.msk [vmem:[%s4562_s30 + $0x3c] sm:$0xf] %vm2725_vm9, %v2992_v2  ;;  %2742 = vst.msk [vmem:[%s4562_s30 + $0x40] sm:$0xf] %vm2725_vm9, %v2993_v10  ;;  %v3010_v37 = vpack.c.bf16 %v2588_v12, %v2588_v12 }
 0x3c9   : > { %2743 = vst.msk [vmem:[%s4562_s30 + $0x44] sm:$0xf] %vm2725_vm9, %v2994_v51  ;;  %2744 = vst.msk [vmem:[%s4562_s30 + $0x48] sm:$0xf] %vm2725_vm9, %v2995_v31 }
 0x3ca   : > { %2745 = vst.msk [vmem:[%s4562_s30 + $0x4c] sm:$0xf] %vm2725_vm9, %v2996_v22  ;;  %2746 = vst.msk [vmem:[%s4562_s30 + $0x50] sm:$0xf] %vm2725_vm9, %v2997_v47 }
 0x3cb   : > { %2747 = vst.msk [vmem:[%s4562_s30 + $0x54] sm:$0xf] %vm2725_vm9, %v2998_v53  ;;  %2748 = vst.msk [vmem:[%s4562_s30 + $0x58] sm:$0xf] %vm2725_vm9, %v2999_v61 }
 0x3cc   : > { %2749 = vst.msk [vmem:[%s4562_s30 + $0x5c] sm:$0xf] %vm2725_vm9, %v3000_v33  ;;  %2750 = vst.msk [vmem:[%s4562_s30 + $0x60] sm:$0xf] %vm2725_vm9, %v3001_v49 }
 0x3cd   : > { %2751 = vst.msk [vmem:[%s4562_s30 + $0x64] sm:$0xf] %vm2725_vm9, %v3002_v27  ;;  %2752 = vst.msk [vmem:[%s4562_s30 + $0x68] sm:$0xf] %vm2725_vm9, %v3003_v38 }
 0x3ce   : > { %2753 = vst.msk [vmem:[%s4562_s30 + $0x6c] sm:$0xf] %vm2725_vm9, %v3004_v35  ;;  %2754 = vst.msk [vmem:[%s4562_s30 + $0x70] sm:$0xf] %vm2725_vm9, %v3005_v44 }
 0x3cf   : > { %2755 = vst.msk [vmem:[%s4562_s30 + $0x74] sm:$0xf] %vm2725_vm9, %v3006_v39  ;;  %2756 = vst.msk [vmem:[%s4562_s30 + $0x78] sm:$0xf] %vm2725_vm9, %v3007_v5 }
 0x3d0   : > { %2757 = vst.msk [vmem:[%s4562_s30 + $0x7c] sm:$0xf] %vm2725_vm9, %v3008_v57  ;;  %2758 = vst.msk [vmem:[%s4562_s30 + $0x80] sm:$0xf] %vm2725_vm9, %v3009_v24 }
 0x3d1   : > { %2759 = vst.msk [vmem:[%s4562_s30 + $0x84] sm:$0xf] %vm2725_vm9, %v3010_v37 }
 0x3d2 PF: > { %s18_s27 = sadd.s32 1, %s3451_s27  }
 0x3d3   : > { %p15_p4 = scmp.ge.s32.totalorder %s18_s27, 4  }
 0x3d5   :  { %17 = sbr.rel (!%p15_p4) target bundleno = 1 (0x1), region = 85 }

// kernel: _lambda_.6
= control target key start
LH: loop header
LB: loop body
LE: loop exit
PB: predicated region body
PF: predicated region fallthrough
CT: control target
= control target key end

     0   :  { %s1999_s27 = smov 0   ;;  %s2422_s0 = inlined_call_operand.vmem [shape: bf16[2,99,128], index: 0, kind: input, shape index: {}]   ;;  %s2423_s1 = inlined_call_operand.vmem [shape: bf16[4,128,64], index: 1, kind: input, shape index: {}]   ;;  %s2424_s2 = inlined_call_operand.vmem [shape: f32[1,64], index: 2, kind: input, shape index: {}]   ;;  %s2425_s3 = inlined_call_operand.vmem [shape: f32[1,64], index: 3, kind: input, shape index: {}]   ;;  %s2426_s4 = inlined_call_operand.vmem [shape: f32[1,64], index: 4, kind: input, shape index: {}]   ;;  %s2427_s5 = inlined_call_operand.vmem [shape: f32[64,4], index: 5, kind: input, shape index: {}]   ;;  %s2428_s6 = inlined_call_operand.vmem [shape: f32[4,64], index: 6, kind: input, shape index: {}]   ;;  %s2429_s7 = inlined_call_operand.vmem [shape: f32[72,1], index: 7, kind: input, shape index: {}]   ;;  %s2430_s8 = inlined_call_operand.vmem [shape: bf16[2,72,64], index: 8, kind: output, shape index: {}]  }
   0x1 LB: > { %s1526_s28 = sadd.s32 4294967295, %s1948_s27   ;;  %p1530_p0 = scmp.ge.s32.totalorder %s1948_s27, 1  ;;  %s1948_s27 = sphi %s1999_s27, %s18_s27  }
   0x2   : > { %p262_p1 = scmp.lt.s32.totalorder %s1948_s27, 3 }
   0x4   : > { %p263_p2 = pnand %p1530_p0, %p262_p1 }
   0x5   : > { %p296_p3 = scmp.lt.s32.totalorder (!%p263_p2), %s1526_s28, 1 }
   0x6   : > { %266 = sbr.rel (%p263_p2) target bundleno = 775 (0x307), region = 52 }
   0xb   : > { %v1896_v0 = vld [vmem:[%s2423_s1 + $0x78] sm:$0xff]   ;;  %v1950_v1 = vmov 0.0   ;;  %v1898_v3 = vld [vmem:[%s2423_s1 + $0x70] sm:$0xff]   ;;  %vm1951_vm0 = vmmov 0   ;;  %v1900_v5 = vld [vmem:[%s2423_s1 + $0x68] sm:$0xff]   ;;  %s2432_s28 = smov (!%p296_p3, %s1526_s28), 1 }
   0xc   : > { %1712 = vmatprep.subr.bf16.mxu0 %v1950_v1  ;;  %1748 = vmatprep.subr.bf16.mxu1 %v1950_v1  ;;  %v1897_v2 = vld [vmem:[%s2423_s1 + $0x38] sm:$0xff]   ;;  %v1899_v4 = vld [vmem:[%s2423_s1 + $0x30] sm:$0xff]   ;;  %v1952_v6 = vmov 0   ;;  %v1901_v7 = vld [vmem:[%s2423_s1 + $0x28] sm:$0xff]   ;;  %s1880_s21 = smul.u32 52, %s2432_s28  ;;  %vm912_vm2 = vcmask 1046528  }
   0xd   : > { %1713 = vmatpush3.bf16.msra.mxu0 %v1896_v0  ;;  %1728 = vmatprep.mubr.msk.bf16.mxu0 %vm1951_vm0, %v1950_v1  ;;  %v1902_v8 = vld [vmem:[%s2423_s1 + $0x60] sm:$0xff]   ;;  %v1904_v10 = vld [vmem:[%s2423_s1 + $0x58] sm:$0xff]   ;;  %v1906_v12 = vld [vmem:[%s2423_s1 + $0x50] sm:$0xff]   ;;  %vm375_vm1 = vsmask.f32 7424  ;;  %vm1284_vm3 = vcmask 1043456  }
   0xe   : > { %1749 = vmatpush3.bf16.msra.mxu1 %v1897_v2  ;;  %1714 = vmatprep.subr.bf16.mxu0 %v1950_v1  ;;  %v1903_v9 = vld [vmem:[%s2423_s1 + $0x20] sm:$0xff]   ;;  %s2052_s30 = scalar_lea.vmem %s2422_s0, %s1880_s21  ;;  %v1905_v11 = vld [vmem:[%s2423_s1 + $0x18] sm:$0xff]   ;;  %v1907_v15 = vld [vmem:[%s2423_s1 + $0x10] sm:$0xff]   ;;  %vm1120_vm4 = vcmask 523264   ;;  %vm1186_vm5 = vcmask 1040384   ;;  %vm1280_vm6 = vcmask 31744  }
   0xf   : > { %1750 = vmatprep.subr.bf16.mxu1 %v1950_v1  ;;  %1764 = vmatprep.mubr.msk.bf16.mxu1 %vm1951_vm0, %v1950_v1  ;;  %v1912_v13 = vld [vmem:[%s2052_s30] sm:$0xff]   ;;  %v1913_v14 = vld [vmem:[%s2052_s30 + $0x8] sm:$0xff]   ;;  %v2084_v26 = vld [vmem:[%s2052_s30 + $0x10] sm:$0xff]   ;;  %vm1461_vm7 = vcmask 519168   ;;  %s1881_s19 = smul.u32 36, %s2432_s28 }
  0x10   : > { %1894 = vset.pattern.permute.xlu0 %v1952_v6  ;;  %1895 = vset.pattern.permute.xlu1 %v1952_v6  ;;  %v379_v16 = vshll.u32 %v1912_v13, 16  ;;  %v1908_v17 = vld [vmem:[%s2423_s1 + $0x48] sm:$0xff]   ;;  %v377_v18 = vshrl.u32 %v1912_v13, 16  ;;  %v384_v20 = vshll.u32 %v1913_v14, 16  ;;  %v1910_v22 = vld [vmem:[%s2423_s1 + $0x40] sm:$0xff]   ;;  %v1914_v28 = vld [vmem:[%s2423_s1 + $0xb8] sm:$0xff]  }
  0x11   : > { %1715 = vmatpush3.bf16.msra.mxu0 %v1898_v3  ;;  %v1909_v21 = vld [vmem:[%s2423_s1 + $0x8] sm:$0xff]   ;;  %v1911_v23 = vld [vmem:[%s2423_s1] sm:$0xff]   ;;  %v388_v29 = vshrl.u32 %v1913_v14, 16  ;;  %v392_v30 = vshll.u32 %v2084_v26, 16  ;;  %v1915_v31 = vld [vmem:[%s2423_s1 + $0xf8] sm:$0xff]   ;;  %v396_v40 = vshrl.u32 %v2084_v26, 16  ;;  %s305_s21 = scalar_lea.vmem %s2430_s8, %s1881_s19 }
  0x12   : > { %1751 = vmatpush3.bf16.msra.mxu1 %v1899_v4  ;;  %1716 = vmatprep.subr.bf16.mxu0 %v1950_v1  ;;  %v381_v19 = vrot.slane %v379_v16, 1  ;;  %v386_v25 = vrot.slane %v384_v20, 1  ;;  %v1916_v32 = vld [vmem:[%s2423_s1 + $0xb0] sm:$0xff]   ;;  %v2102_v35 = vld [vmem:[%s2052_s30 + $0x18] sm:$0xff]   ;;  %v1919_v37 = vld [vmem:[%s2423_s1 + $0xa8] sm:$0xff]  }
  0x13   : > { %1752 = vmatprep.subr.bf16.mxu1 %v1950_v1  ;;  %v394_v34 = vrot.slane %v392_v30, 1  ;;  %v1918_v36 = vld [vmem:[%s2423_s1 + $0xf0] sm:$0xff]   ;;  %v1920_v38 = vld [vmem:[%s2423_s1 + $0xe8] sm:$0xff]   ;;  %v400_v41 = vshll.u32 %v2102_v35, 16  ;;  %v2123_v42 = vld [vmem:[%s2052_s30 + $0x20] sm:$0xf] }
  0x14   : > { %v382_v24 = vor.u32 %v381_v19, %v377_v18  ;;  %v390_v33 = vor.u32 %v388_v29, %v386_v25  ;;  %v332_v43 = vld [vmem:[%s2052_s30 + $0x24] sm:$0x1]  ;;  %v2138_v49 = vld [vmem:[%s2052_s30 + $0x1c] sm:$0xff]   ;;  %v1058_v53 = vld [vmem:[%s2429_s7 + $0x10] sm:$0xff]  ;;  %v404_v58 = vshrl.u32 %v2102_v35, 16 }
  0x15   : > { %1717 = vmatpush3.bf16.msra.mxu0 %v1900_v5  ;;  %v1922_v44 = vld [vmem:[%s2423_s1 + $0xa0] sm:$0xff]   ;;  %v398_v45 = vor.u32 %v396_v40, %v394_v34  ;;  %v402_v46 = vrot.slane %v400_v41, 1  ;;  %v2135_v48 = vcombine.low %v2123_v42, %v332_v43  ;;  %v742_v52 = vshll.u32 %v2138_v49, 16  ;;  %v1924_v57 = vld [vmem:[%s2423_s1 + $0x98] sm:$0xff]   ;;  %v1057_v61 = vld [vmem:[%s2429_s7 + $0x8] sm:$0xff]  ;;  %1078 = vperm.xlu1 %1895, %v1058_v53  }
  0x16   : > { %1753 = vmatpush3.bf16.msra.mxu1 %v1901_v7  ;;  %1718 = vmatprep.subr.bf16.mxu0 %v1950_v1  ;;  %v387_v27 = vsel %vm375_vm1, %v382_v24, %v386_v25  ;;  %v395_v39 = vsel %vm375_vm1, %v390_v33, %v394_v34  ;;  %v1923_v47 = vld [vmem:[%s2423_s1 + $0xe0] sm:$0xff]   ;;  %v746_v54 = vshrl.u32 %v2138_v49, 16  ;;  %v1925_v63 = vld [vmem:[%s2423_s1 + $0xd8] sm:$0xff]   ;;  %v1927_v4 = vld [vmem:[%s2423_s1 + $0x90] sm:$0xff]   ;;  %v1562_v24 = vcombine.low %v2123_v42, %v2123_v42 }
  0x17   : > { %1754 = vmatprep.subr.bf16.mxu1 %v1950_v1  ;;  %v2143_v50 = vld [vmem:[%s2052_s30 + $0x24] sm:$0x1f]   ;;  %v403_v56 = vsel %vm375_vm1, %v398_v45, %v402_v46  ;;  %v408_v59 = vshll.u32 %v2135_v48, 16  ;;  %v2164_v60 = vrot.slane %v742_v52, 1  ;;  %v406_v2 = vor.u32 %v404_v58, %v402_v46  ;;  %v1935_v16 = vld [vmem:[%s2052_s30 + $0xc] sm:$0xff]   ;;  %v1063_v30 = vld [vmem:[%s2429_s7 + $0x38] sm:$0xff] }
  0x18   : > { %v1056_v51 = vld [vmem:[%s2429_s7] sm:$0xff]  ;;  %v750_v55 = vshll.u32 %v2143_v50, 16  ;;  %v1062_v18 = vld [vmem:[%s2429_s7 + $0x30] sm:$0xff]  ;;  %v1061_v20 = vld [vmem:[%s2429_s7 + $0x28] sm:$0xff]  ;;  %v920_v52 = vrot.slane %v2143_v50, 1 }
  0x19   : > { %1719 = vmatpush3.bf16.msra.mxu0 %v1902_v8  ;;  %1068 = vperm.xlu0 %1894, %v1056_v51   ;;  %v748_v0 = vor.u32 %v746_v54, %v2164_v60  ;;  %v410_v3 = vrot.slane %v408_v59, 1  ;;  %v1060_v6 = vld [vmem:[%s2429_s7 + $0x20] sm:$0xff]  ;;  %v667_v8 = vld [vmem:[%s2052_s30 + $0x8] sm:$0xf]  ;;  %v1937_v33 = vld [vmem:[%s2052_s30 + $0x14] sm:$0xff]  }
  0x1a   : > { %1755 = vmatpush3.bf16.msra.mxu1 %v1903_v9  ;;  %1720 = vmatprep.subr.bf16.mxu0 %v1950_v1  ;;  %v2170_v62 = vrot.slane %v750_v55, 1  ;;  %v666_v7 = vld [vmem:[%s2052_s30 + $0x4] sm:$0xf]  ;;  %v1059_v9 = vld [vmem:[%s2429_s7 + $0x18] sm:$0xff]  ;;  %v916_v42 = vrot.slane %v1937_v33, 1  ;;  %v1194_v55 = vld [vmem:[%s2427_s5 + $0x30] sm:$0xff] }
  0x1b   : > { %1756 = vmatprep.subr.bf16.mxu1 %v1950_v1  ;;  %1083 = vperm.xlu1 %1895, %v1059_v9   ;;  %v1932_v19 = vld [vmem:[%s2423_s1 + $0x80] sm:$0xff]   ;;  %v1191_v58 = vld [vmem:[%s2427_s5 + $0x18] sm:$0xff]  ;;  %v1190_v59 = vld [vmem:[%s2427_s5 + $0x10] sm:$0xff] }
  0x1c   : > { %v2183_v5 = vsel %vm375_vm1, %v748_v0, %v2170_v62 }
  0x1d   : > { %1721 = vmatpush3.bf16.msra.mxu0 %v1904_v10  ;;  %1073 = vperm.xlu0 %1894, %v1057_v61   ;;  %v1928_v10 = vld [vmem:[%s2423_s1 + $0xd0] sm:$0xff]   ;;  %v1188_v61 = vld [vmem:[%s2427_s5] sm:$0xff] }
  0x1e   : > { %1757 = vmatpush3.bf16.msra.mxu1 %v1905_v11  ;;  %1722 = vmatprep.subr.bf16.mxu0 %v1950_v1  ;;  %v411_v11 = vsel %vm375_vm1, %v406_v2, %v410_v3 }
  0x1f   : > { %1758 = vmatprep.subr.bf16.mxu1 %v1950_v1  ;;  %1093 = vperm.xlu1 %1895, %v1061_v20  }
  0x21   : > { %1723 = vmatpush3.bf16.msra.mxu0 %v1906_v12  ;;  %1088 = vperm.xlu0 %1894, %v1060_v6   ;;  %v1587_v12 = vcombine.low %v666_v7, %v667_v8 }
  0x22   : > { %1759 = vmatpush3.bf16.msra.mxu1 %v1907_v15  ;;  %1724 = vmatprep.subr.bf16.mxu0 %v1950_v1  ;;  %v412_v15 = vshrl.u32 %v2135_v48, 16 }
  0x23   : > { %1760 = vmatprep.subr.bf16.mxu1 %v1950_v1  ;;  %v719_v25 = vshrl.u32 %v1587_v12, 16  ;;  %1103 = vperm.xlu1 %1895, %v1063_v30  }
  0x25   : > { %1725 = vmatpush3.bf16.msra.mxu0 %v1908_v17  ;;  %v721_v17 = vshll.u32 %v1587_v12, 16  ;;  %1098 = vperm.xlu0 %1894, %v1062_v18  }
  0x26   : > { %1761 = vmatpush3.bf16.msra.mxu1 %v1909_v21  ;;  %1726 = vmatprep.subr.bf16.mxu0 %v1950_v1  ;;  %v1933_v21 = vld [vmem:[%s2423_s1 + $0xc0] sm:$0xff]  }
  0x27   : > { %1762 = vmatprep.subr.bf16.mxu1 %v1950_v1 }
  0x29   : > { %1727 = vmatpush3.bf16.msra.mxu0 %v1910_v22  ;;  %v891_v22 = vld [vmem:[%s2052_s30 + $0x4] sm:$0xe] }
  0x2a   : > { %1763 = vmatpush3.bf16.msra.mxu1 %v1911_v23  ;;  %1784 = vmatprep.subr.bf16.mxu0 %v1950_v1  ;;  %v414_v23 = vor.u32 %v412_v15, %v410_v3  ;;  %v1616_v29 = vcombine.low %v891_v22, %v667_v8 }
  0x2b   : > { %1820 = vmatprep.subr.bf16.mxu1 %v1950_v1 }
  0x2c   : > { %1729 = vmatmul.mubr.bf16.vlgmr.msra.gmra.mxu0 %v387_v27  ;;  %v726_v27 = vshll.u32 %v1935_v16, 16  ;;  %v913_v34 = vrot.slane %v1616_v29, 1 }
  0x2d   : > { %1765 = vmatmul.mubr.bf16.vlgmr.msra.gmra.mxu1 %v1912_v13  ;;  %1785 = vmatpush3.bf16.msra.mxu0 %v1914_v28  ;;  %v1929_v13 = vld [vmem:[%s2423_s1 + $0x88] sm:$0xff]   ;;  %v1064_v28 = vld [vmem:[%s2429_s7 + $0x40] sm:$0xff] }
  0x2e   : > { %1821 = vmatpush3.bf16.msra.mxu1 %v1915_v31  ;;  %1786 = vmatprep.subr.bf16.mxu0 %v1950_v1 }
  0x2f   : > { %1732 = vmatprep.mubr.msk.bf16.mxu0 %vm1951_vm0, %v1950_v1  ;;  %1768 = vmatprep.mubr.msk.bf16.mxu1 %vm1951_vm0, %v1950_v1 }
  0x30   : > { %1822 = vmatprep.subr.bf16.mxu1 %v1950_v1  ;;  %1108 = vperm.xlu0 %1894, %v1064_v28  }
  0x31   : > { %1787 = vmatpush3.bf16.msra.mxu0 %v1916_v32  ;;  %v728_v32 = vrot.slane %v726_v27, 1 }
  0x32   : > { %1823 = vmatpush3.bf16.msra.mxu1 %v1918_v36  ;;  %1788 = vmatprep.subr.bf16.mxu0 %v1950_v1 }
  0x33   : > { %1824 = vmatprep.subr.bf16.mxu1 %v1950_v1 }
  0x34   : > { %1733 = vmatmul.mubr.bf16.gmra.mxu0 %v395_v39 }
  0x35   : > { %1769 = vmatmul.mubr.bf16.gmra.mxu1 %v1913_v14  ;;  %1789 = vmatpush3.bf16.msra.mxu0 %v1919_v37  ;;  %v1931_v14 = vld [vmem:[%s2423_s1 + $0xc8] sm:$0xff]   ;;  %v730_v37 = vshrl.u32 %v1935_v16, 16 }
  0x36   : > { %1825 = vmatpush3.bf16.msra.mxu1 %v1920_v38  ;;  %1736 = vmatprep.mubr.msk.bf16.mxu0 %vm1951_vm0, %v1950_v1  ;;  %v734_v38 = vshll.u32 %v1937_v33, 16 }
  0x37   : > { %1772 = vmatprep.mubr.msk.bf16.mxu1 %vm1951_vm0, %v1950_v1  ;;  %1790 = vmatprep.subr.bf16.mxu0 %v1950_v1  ;;  %v732_v40 = vor.u32 %v730_v37, %v728_v32 }
  0x38   : > { %1826 = vmatprep.subr.bf16.mxu1 %v1950_v1  ;;  %v736_v41 = vrot.slane %v734_v38, 1 }
  0x39   : > { %1791 = vmatpush3.bf16.msra.mxu0 %v1922_v44  ;;  %v738_v44 = vshrl.u32 %v1937_v33, 16 }
  0x3a   : > { %1827 = vmatpush3.bf16.msra.mxu1 %v1923_v47  ;;  %1792 = vmatprep.subr.bf16.mxu0 %v1950_v1  ;;  %v737_v43 = vsel %vm375_vm1, %v732_v40, %v736_v41  ;;  %v918_v47 = vrot.slane %v2138_v49, 1  ;;  %v754_v49 = vshrl.u32 %v2143_v50, 16  ;;  %v1195_v50 = vld [vmem:[%s2427_s5 + $0x38] sm:$0xff] }
  0x3b   : > { %1828 = vmatprep.subr.bf16.mxu1 %v1950_v1  ;;  %v740_v46 = vor.u32 %v738_v44, %v736_v41 }
  0x3c   : > { %1737 = vmatmul.mubr.bf16.gmra.mxu0 %v403_v56  ;;  %v919_v51 = vsel %vm912_vm2, %v916_v42, %v918_v47  ;;  %v921_v53 = vsel %vm912_vm2, %v918_v47, %v920_v52  ;;  %v756_v54 = vor.u32 %v754_v49, %v2170_v62  ;;  %v1193_v56 = vld [vmem:[%s2427_s5 + $0x28] sm:$0xff]  ;;  %v1279_v62 = vld [vmem:[%s2428_s6] sm:$0xf] }
  0x3d   : > { %1773 = vmatmul.mubr.bf16.gmra.mxu1 %v2084_v26  ;;  %1793 = vmatpush3.bf16.msra.mxu0 %v1924_v57  ;;  %v723_v26 = vrot.slane %v721_v17, 1  ;;  %v745_v48 = vsel %vm375_vm1, %v740_v46, %v2164_v60  ;;  %v1192_v57 = vld [vmem:[%s2427_s5 + $0x20] sm:$0xff]  ;;  %v1189_v60 = vld [vmem:[%s2427_s5 + $0x8] sm:$0xff] }
  0x3e   : > { %1740 = vmatprep.mubr.msk.bf16.mxu0 %vm1951_vm0, %v1950_v1  ;;  %1776 = vmatprep.mubr.msk.bf16.mxu1 %vm1951_vm0, %v1950_v1 }
  0x3f   : > { %1829 = vmatpush3.bf16.msra.mxu1 %v1925_v63  ;;  %1794 = vmatprep.subr.bf16.mxu0 %v1950_v1  ;;  %v724_v31 = vor.u32 %v723_v26, %v719_v25 }
  0x40   : > { %1830 = vmatprep.subr.bf16.mxu1 %v1950_v1 }
  0x41   : > { %1795 = vmatpush3.bf16.msra.mxu0 %v1927_v4  ;;  %v729_v36 = vsel %vm375_vm1, %v724_v31, %v728_v32 }
  0x42   : > { %1796 = vmatprep.subr.bf16.mxu0 %v1950_v1 }
  0x43   : > { %1831 = vmatpush3.bf16.msra.mxu1 %v1928_v10 }
  0x44   : > { %1741 = vmatmul.mubr.bf16.gmra.mxu0 %v411_v11  ;;  %1832 = vmatprep.subr.bf16.mxu1 %v1950_v1 }
  0x45   : > { %1777 = vmatmul.mubr.bf16.gmra.mxu1 %v2102_v35  ;;  %1744 = vmatprep.mubr.msk.bf16.mxu0 %vm1951_vm0, %v1950_v1  ;;  %v914_v35 = vrot.slane %v1935_v16, 1 }
  0x46   : > { %1780 = vmatprep.mubr.msk.bf16.mxu1 %vm1951_vm0, %v1950_v1  ;;  %1797 = vmatpush3.bf16.msra.mxu0 %v1929_v13 }
  0x47   : > { %1833 = vmatpush3.bf16.msra.mxu1 %v1931_v14  ;;  %1798 = vmatprep.subr.bf16.mxu0 %v1950_v1  ;;  %v915_v39 = vsel %vm912_vm2, %v913_v34, %v914_v35  ;;  %v917_v45 = vsel %vm912_vm2, %v914_v35, %v916_v42 }
  0x48   : > { %1834 = vmatprep.subr.bf16.mxu1 %v1950_v1 }
  0x4a   : > { %1799 = vmatpush3.bf16.msra.mxu0 %v1932_v19 }
  0x4b   : > { %1835 = vmatpush3.bf16.msra.mxu1 %v1933_v21  ;;  %1856 = vmatprep.subr.mxu0 %v1950_v1 }
  0x4c   : > { %1745 = vmatmul.mubr.bf16.gmra.mxu0 %v414_v23  ;;  %1875 = vmatprep.subr.mxu1 %v1950_v1 }
  0x4d   : > { %1781 = vmatmul.mubr.bf16.gmra.mxu1 %v1562_v24  ;;  %1800 = vmatprep.mubr.msk.bf16.mxu0 %vm1951_vm0, %v1950_v1 }
  0x4e   : > { %1836 = vmatprep.mubr.msk.bf16.mxu1 %vm1951_vm0, %v1950_v1 }
  0x54   : > { %1801 = vmatmul.mubr.bf16.vlgmr.msra.gmra.mxu0 %v729_v36 }
  0x55   : > { %1837 = vmatmul.mubr.bf16.vlgmr.msra.gmra.mxu1 %v915_v39  ;;  %1804 = vmatprep.mubr.msk.bf16.mxu0 %vm1951_vm0, %v1950_v1 }
  0x56   : > { %1840 = vmatprep.mubr.msk.bf16.mxu1 %vm1951_vm0, %v1950_v1  ;;  %1857 = vmatpush3.msra.mxu0 %v1195_v50 }
  0x57   : > { %1858 = vmatprep.subr.mxu0 %v1950_v1  ;;  %1876 = vmatpush3.msk.msra.mxu1 %vm1284_vm3, %v1279_v62 }
  0x58   : > { %1859 = vmatpush3.msra.mxu0 %v1194_v55 }
  0x59   : > { %1860 = vmatprep.subr.mxu0 %v1950_v1 }
  0x5a   : > { %1861 = vmatpush3.msra.mxu0 %v1193_v56 }
  0x5b   : > { %1862 = vmatprep.subr.mxu0 %v1950_v1 }
  0x5c   : > { %1805 = vmatmul.mubr.bf16.gmra.mxu0 %v737_v43 }
  0x5d   : > { %1841 = vmatmul.mubr.bf16.gmra.mxu1 %v917_v45  ;;  %1808 = vmatprep.mubr.msk.bf16.mxu0 %vm1951_vm0, %v1950_v1 }
  0x5e   : > { %1844 = vmatprep.mubr.msk.bf16.mxu1 %vm1951_vm0, %v1950_v1  ;;  %1863 = vmatpush3.msra.mxu0 %v1192_v57 }
  0x5f   : > { %1864 = vmatprep.subr.mxu0 %v1950_v1 }
  0x60   : > { %1865 = vmatpush3.msra.mxu0 %v1191_v58 }
  0x61   : > { %1866 = vmatprep.subr.mxu0 %v1950_v1 }
  0x62   : > { %1867 = vmatpush3.msra.mxu0 %v1190_v59 }
  0x63   : > { %1868 = vmatprep.subr.mxu0 %v1950_v1 }
  0x64   : > { %1809 = vmatmul.mubr.bf16.gmra.mxu0 %v745_v48 }
  0x65   : > { %1845 = vmatmul.mubr.bf16.gmra.mxu1 %v919_v51  ;;  %1812 = vmatprep.mubr.msk.bf16.mxu0 %vm1951_vm0, %v1950_v1 }
  0x66   : > { %1848 = vmatprep.mubr.msk.bf16.mxu1 %vm1951_vm0, %v1950_v1  ;;  %1869 = vmatpush3.msra.mxu0 %v1189_v60 }
  0x67   : > { %1870 = vmatprep.subr.mxu0 %v1950_v1 }
  0x68   : > { %1871 = vmatpush3.msra.mxu0 %v1188_v61 }
  0x6c   : > { %1813 = vmatmul.mubr.bf16.gmra.mxu0 %v2183_v5 }
  0x6d   : > { %1849 = vmatmul.mubr.bf16.gmra.mxu1 %v921_v53  ;;  %1816 = vmatprep.mubr.msk.bf16.mxu0 %vm1951_vm0, %v1950_v1 }
  0x6e   : > { %1852 = vmatprep.mubr.msk.bf16.mxu1 %vm1951_vm0, %v1950_v1 }
  0x74   : > { %1817 = vmatmul.mubr.bf16.gmra.mxu0 %v756_v54 }
  0x75   : > { %1853 = vmatmul.mubr.bf16.gmra.mxu1 %v920_v52  ;;  %1872 = vmatprep.mubr.msk.f32.mxu0 %vm1951_vm0, %v1950_v1 }
  0x76   : > { %1877 = vmatprep.mubr.msk.f32.mxu1 %vm1951_vm0, %v1950_v1 }
  0x90   : > { %v1079_v59 = vpop.permute.xlu1 %1078 }
  0x94   : > { %v1069_v50 = vpop.permute.xlu0 %1068 }
  0xec   : > { %v502_v63 = vpop.f32.mrf.mxu0 }
  0xed   : > { %v628_v0 = vpop.f32.mrf.mxu1 }
  0xee   : > { %v1730_v2 = vpop.f32.mrf.mxu0  ;;  %v629_v48 = vadd.f32 %v628_v0, %v502_v63 }
  0xef   : > { %v1766_v3 = vpop.f32.mrf.mxu1 }
  0xf0   : > { %v505_v4 = vpop.f32.mrf.mxu0 }
  0xf1   : > { %v631_v5 = vpop.f32.mrf.mxu1 }
  0xf2   : > { %v1731_v6 = vpop.f32.mrf.mxu0  ;;  %v632_v46 = vadd.f32 %v631_v5, %v505_v4 }
  0xf3   : > { %v1767_v7 = vpop.f32.mrf.mxu1  ;;  %v1074_v6 = vpop.permute.xlu0 %1073 }
  0xf4   : > { %v510_v8 = vpop.f32.mrf.mxu0 }
  0xf5   : > { %v636_v9 = vpop.f32.mrf.mxu1 }
  0xf6   : > { %v1734_v10 = vpop.f32.mrf.mxu0  ;;  %v637_v52 = vadd.f32 %v636_v9, %v510_v8 }
  0xf7   : > { %v1770_v11 = vpop.f32.mrf.mxu1 }
  0xf8   : > { %v513_v1 = vpop.f32.mrf.mxu0 }
  0xf9   : > { %v639_v12 = vpop.f32.mrf.mxu1 }
  0xfa   : > { %v1735_v13 = vpop.f32.mrf.mxu0  ;;  %v640_v56 = vadd.f32 %v639_v12, %v513_v1  ;;  %v1084_v12 = vpop.permute.xlu1 %1083 }
  0xfb   : > { %v1771_v14 = vpop.f32.mrf.mxu1 }
  0xfc   : > { %v518_v15 = vpop.f32.mrf.mxu0 }
  0xfd   : > { %v644_v16 = vpop.f32.mrf.mxu1 }
  0xfe   : > { %v1738_v17 = vpop.f32.mrf.mxu0  ;;  %v645_v63 = vadd.f32 %v644_v16, %v518_v15 }
  0xff   : > { %v1774_v18 = vpop.f32.mrf.mxu1 }
 0x100   : > { %v521_v19 = vpop.f32.mrf.mxu0 }
 0x101   : > { %v647_v20 = vpop.f32.mrf.mxu1 }
 0x102   : > { %v1739_v21 = vpop.f32.mrf.mxu0  ;;  %v648_v14 = vadd.f32 %v647_v20, %v521_v19 }
 0x103   : > { %v1775_v22 = vpop.f32.mrf.mxu1 }
 0x104   : > { %v2315_v23 = vpop.f32.mrf.mxu0 }
 0x105   : > { %v2317_v24 = vpop.f32.mrf.mxu1 }
 0x106   : > { %v1742_v25 = vpop.f32.mrf.mxu0 }
 0x107   : > { %v1778_v26 = vpop.f32.mrf.mxu1 }
 0x108   : > { %v2319_v27 = vpop.f32.mrf.mxu0 }
 0x109   : > { %v2321_v28 = vpop.f32.mrf.mxu1 }
 0x10a   : > { %v1743_v29 = vpop.f32.mrf.mxu0 }
 0x10b   : > { %v1779_v30 = vpop.f32.mrf.mxu1  ;;  %v653_v29 = vadd.f32 %v2317_v24, %v2315_v23 }
 0x10c   : > { %v2323_v31 = vpop.f32.mrf.mxu0 }
 0x10d   : > { %v2325_v32 = vpop.f32.mrf.mxu1 }
 0x10e   : > { %v1746_v33 = vpop.f32.mrf.mxu0 }
 0x10f   : > { %v1782_v34 = vpop.f32.mrf.mxu1  ;;  %v1089_v33 = vpop.permute.xlu0 %1088 }
 0x110   : > { %v537_v35 = vpop.f32.mrf.mxu0 }
 0x111   : > { %v663_v36 = vpop.f32.mrf.mxu1 }
 0x112   : > { %v1747_v37 = vpop.f32.mrf.mxu0 }
 0x113   : > { %v1783_v38 = vpop.f32.mrf.mxu1 }
 0x114   : > { %v844_v39 = vpop.f32.mrf.mxu0 }
 0x115   : > { %v1009_v40 = vpop.f32.mrf.mxu1  ;;  %v882_v54 = vadd.f32 %v844_v39, %v629_v48 }
 0x116   : > { %v1802_v41 = vpop.f32.mrf.mxu0 }
 0x117   : > { %v1838_v42 = vpop.f32.mrf.mxu1  ;;  %v2329_v3 = vadd.f32 %v1009_v40, %v882_v54  ;;  %v1094_v40 = vpop.permute.xlu1 %1093 }
 0x118   : > { %v847_v43 = vpop.f32.mrf.mxu0 }
 0x119   : > { %v1012_v44 = vpop.f32.mrf.mxu1  ;;  %v883_v53 = vadd.f32 %v847_v43, %v632_v46  ;;  %v1111_v1 = vmul.f32 %v1069_v50, %v2329_v3 }
 0x11a   : > { %v1803_v45 = vpop.f32.mrf.mxu0 }
 0x11b   : > { %v1839_v47 = vpop.f32.mrf.mxu1  ;;  %v2327_v61 = vadd.f32 %v1012_v44, %v883_v53  ;;  %v1144_v30 = vmul.f32 %v1111_v1, %v2329_v3  ;;  %v1121_v38 = vsel %vm1120_vm4, %v1111_v1, 0.0  ;;  %v656_v45 = vadd.f32 %v2321_v28, %v2319_v27 }
 0x11c   : > { %v852_v51 = vpop.f32.mrf.mxu0 }
 0x11d   : > { %v1017_v49 = vpop.f32.mrf.mxu1  ;;  %v884_v57 = vadd.f32 %v852_v51, %v637_v52  ;;  %v1112_v9 = vmul.f32 %v1074_v6, %v2327_v61  ;;  %v1153_v46 = vsel %vm1120_vm4, %v1144_v30, 0.0 }
 0x11e   : > { %v1806_v55 = vpop.f32.mrf.mxu0 }
 0x11f   : > { %v1842_v58 = vpop.f32.mrf.mxu1  ;;  %v2331_v0 = vadd.f32 %v1017_v49, %v884_v57  ;;  %v1145_v22 = vmul.f32 %v1112_v9, %v2327_v61  ;;  %v1122_v20 = vsel %vm1120_vm4, %v1112_v9, 0.0  ;;  %v1099_v57 = vpop.permute.xlu0 %1098 }
 0x120   : > { %v855_v60 = vpop.f32.mrf.mxu0  ;;  %v1123_v47 = vadd.f32 %v1122_v20, %v1121_v38 }
 0x121   : > { %v885_v62 = vadd.f32 %v855_v60, %v640_v56  ;;  %v1020_v2 = vpop.f32.mrf.mxu1  ;;  %v1113_v17 = vmul.f32 %v1079_v59, %v2331_v0  ;;  %v1154_v23 = vsel %vm1120_vm4, %v1145_v22, 0.0 }
 0x122   : > { %v1807_v4 = vpop.f32.mrf.mxu0  ;;  %v1155_v50 = vadd.f32 %v1154_v23, %v1153_v46 }
 0x123   : > { %v1843_v5 = vpop.f32.mrf.mxu1  ;;  %v2333_v7 = vadd.f32 %v1020_v2, %v885_v62  ;;  %v1146_v34 = vmul.f32 %v1113_v17, %v2331_v0  ;;  %v1124_v24 = vsel %vm1120_vm4, %v1113_v17, 0.0  ;;  %v661_v2 = vadd.f32 %v2325_v32, %v2323_v31  ;;  %v1109_v20 = vpop.permute.xlu0 %1108 }
 0x124   : > { %v860_v8 = vpop.f32.mrf.mxu0  ;;  %v1125_v55 = vadd.f32 %v1124_v24, %v1123_v47 }
 0x125   : > { %v886_v10 = vadd.f32 %v860_v8, %v645_v63  ;;  %v1025_v11 = vpop.f32.mrf.mxu1  ;;  %v1114_v16 = vmul.f32 %v1084_v12, %v2333_v7  ;;  %v1156_v51 = vsel %vm1120_vm4, %v1146_v34, 0.0 }
 0x126   : > { %v1810_v13 = vpop.f32.mrf.mxu0  ;;  %v1157_v4 = vadd.f32 %v1156_v51, %v1155_v50 }
 0x127   : > { %v2338_v18 = vadd.f32 %v1025_v11, %v886_v10  ;;  %v1846_v15 = vpop.f32.mrf.mxu1  ;;  %v1147_v39 = vmul.f32 %v1114_v16, %v2333_v7  ;;  %v1126_v52 = vsel %vm1120_vm4, %v1114_v16, 0.0  ;;  %v1104_v13 = vpop.permute.xlu1 %1103 }
 0x128   : > { %v863_v21 = vpop.f32.mrf.mxu0  ;;  %v1127_v63 = vadd.f32 %v1126_v52, %v1125_v55  ;;  %v1065_v55 = vld [vmem:[%s2424_s2] sm:$0x1] }
 0x129   : > { %v887_v25 = vadd.f32 %v863_v21, %v648_v14  ;;  %v1028_v26 = vpop.f32.mrf.mxu1  ;;  %v1115_v35 = vmul.f32 %v1089_v33, %v2338_v18  ;;  %v1158_v56 = vsel %vm1120_vm4, %v1147_v39, 0.0 }
 0x12a   : > { %v1811_v19 = vpop.f32.mrf.mxu0  ;;  %v1159_v1 = vadd.f32 %v1158_v56, %v1157_v4 }
 0x12b   : > { %v2348_v36 = vadd.f32 %v1028_v26, %v887_v25  ;;  %v1847_v37 = vpop.f32.mrf.mxu1  ;;  %v1148_v53 = vmul.f32 %v1115_v35, %v2338_v18  ;;  %v1128_v27 = vsel %vm1120_vm4, %v1115_v35, 0.0 }
 0x12c   : > { %v868_v41 = vpop.f32.mrf.mxu0  ;;  %v1129_v12 = vadd.f32 %v1128_v27, %v1127_v63 }
 0x12d   : > { %v1116_v42 = vmul.f32 %v1094_v40, %v2348_v36  ;;  %v888_v43 = vadd.f32 %v868_v41, %v653_v29  ;;  %v1033_v44 = vpop.f32.mrf.mxu1  ;;  %v1160_v6 = vsel %vm1120_vm4, %v1148_v53, 0.0 }
 0x12e   : > { %v1814_v48 = vpop.f32.mrf.mxu0  ;;  %v1161_v21 = vadd.f32 %v1160_v6, %v1159_v1 }
 0x12f   : > { %v2361_v49 = vadd.f32 %v1033_v44, %v888_v43  ;;  %v1850_v54 = vpop.f32.mrf.mxu1  ;;  %v1149_v28 = vmul.f32 %v1116_v42, %v2348_v36  ;;  %v1130_v8 = vsel %vm1120_vm4, %v1116_v42, 0.0 }
 0x130   : > { %v871_v58 = vpop.f32.mrf.mxu0  ;;  %v1131_v22 = vadd.f32 %v1130_v8, %v1129_v12 }
 0x131   : > { %v1117_v59 = vmul.f32 %v1099_v57, %v2361_v49  ;;  %v889_v60 = vadd.f32 %v871_v58, %v656_v45  ;;  %v1036_v62 = vpop.f32.mrf.mxu1  ;;  %v1162_v17 = vsel %vm1120_vm4, %v1149_v28, 0.0  ;;  %v1178_v28 = vmul.f32 2.0, %v1065_v55 }
 0x132   : > { %v1815_v5 = vpop.f32.mrf.mxu0  ;;  %v1163_v34 = vadd.f32 %v1162_v17, %v1161_v21  ;;  %v1953_v21 = vmov 1966171168  }
 0x133   : > { %v1150_v9 = vmul.f32 %v1117_v59, %v2361_v49  ;;  %v2372_v10 = vadd.f32 %v1036_v62, %v889_v60  ;;  %v1851_v11 = vpop.f32.mrf.mxu1  ;;  %v1132_v31 = vsel %vm1120_vm4, %v1117_v59, 0.0  ;;  %v1176_v62 = vmul.f32 64.0, %v1065_v55 }
 0x134   : > { %v876_v14 = vpop.f32.mrf.mxu0  ;;  %v1133_v35 = vadd.f32 %v1132_v31, %v1131_v22  ;;  %v1369_v22 = vunpack.c.l.s4 %v1953_v21 }
 0x135   : > { %v1118_v32 = vmul.f32 %v1104_v13, %v2372_v10  ;;  %v890_v15 = vadd.f32 %v876_v14, %v661_v2  ;;  %v1041_v16 = vpop.f32.mrf.mxu1  ;;  %v1164_v26 = vsel %vm1120_vm4, %v1150_v9, 0.0  ;;  %v1181_v63 = vmul.f32 %v1176_v62, %v1065_v55 }
 0x136   : > { %v1818_v25 = vpop.f32.mrf.mxu0  ;;  %v1165_v41 = vadd.f32 %v1164_v26, %v1163_v34  ;;  %v1370_v26 = vunpack.c.0.s8 %v1369_v22 }
 0x137   : > { %v1134_v29 = vsel %vm1120_vm4, %v1118_v32, 0.0  ;;  %v1151_v30 = vmul.f32 %v1118_v32, %v2372_v10  ;;  %v2380_v33 = vadd.f32 %v1041_v16, %v890_v15  ;;  %v1854_v19 = vpop.f32.mrf.mxu1  ;;  %v1371_v25 = vlaneseq }
 0x138   : > { %v879_v37 = vpop.f32.mrf.mxu0  ;;  %v1135_v23 = vadd.f32 %v1134_v29, %v1133_v35 }
 0x139   : > { %v1166_v38 = vsel %vm1120_vm4, %v1151_v30, 0.0  ;;  %v1119_v39 = vmul.f32 %v1109_v20, %v2380_v33  ;;  %v1044_v40 = vpop.f32.mrf.mxu1  ;;  %v1372_v29 = vshrl.u32 %v1371_v25, 7  ;;  %v1628_v30 = vld [vmem:[%s2425_s3] ss:$0 sm:$0xff] }
 0x13a   : > { %v1819_v24 = vpop.f32.mrf.mxu0  ;;  %v1167_v45 = vadd.f32 %v1166_v38, %v1165_v41 }
 0x13b   : > { %v1136_v42 = vsel %vm1120_vm4, %v1119_v39, 0.0  ;;  %v1152_v43 = vmul.f32 %v1119_v39, %v2380_v33  ;;  %v1855_v44 = vpop.f32.mrf.mxu1  ;;  %v1373_v19 = vsub.s32 %v1370_v26, %v1372_v29  ;;  %v1389_v38 = vsub.s32 1, %v1372_v29 }
 0x13c   : > { %v1137_v46 = vadd.f32 %v1136_v42, %v1135_v23  ;;  %v1385_v23 = vld [vmem:[%s2426_s4] sm:$0x1] }
 0x13d   : > { %v1168_v47 = vsel %vm1120_vm4, %v1152_v43, 0.0  ;;  %v1403_v43 = vsub.s32 0, %v1372_v29 }
 0x13e   : > { %v1138_v48 = vrot.slane %v1137_v46, 4  ;;  %v1169_v51 = vadd.f32 %v1168_v47, %v1167_v45 }
 0x140   : > { %v1139_v52 = vadd.f32 %v1138_v48, %v1137_v46  ;;  %v1170_v53 = vrot.slane %v1169_v51, 4 }
 0x142   : > { %v1140_v54 = vrot.slane %v1139_v52, 2  ;;  %v1171_v50 = vadd.f32 %v1170_v53, %v1169_v51 }
 0x144   : > { %v1141_v56 = vadd.f32 %v1140_v54, %v1139_v52  ;;  %v1172_v57 = vrot.slane %v1171_v50, 2 }
 0x146   : > { %v1142_v58 = vrot.slane %v1141_v56, 1  ;;  %v1173_v27 = vadd.f32 %v1172_v57, %v1171_v50 }
 0x148   : > { %v1143_v59 = vadd.f32 %v1142_v58, %v1141_v56  ;;  %v1174_v60 = vrot.slane %v1173_v27, 1 }
 0x14a   : > { %v1175_v2 = vadd.f32 %v1174_v60, %v1173_v27  ;;  %v1179_v4 = vmul.f32 %v1178_v28, %v1143_v59  ;;  %v1177_v8 = vadd.f32 %v1176_v62, %v1143_v59 }
 0x14c   : > { %v1180_v5 = vadd.f32 %v1179_v4, %v1175_v2 }
 0x14e   : > { %v1182_v6 = vadd.f32 %v1181_v63, %v1180_v5 }
 0x150   : > { %v1184_v9 = vrot.slane %v1182_v6, 7 }
 0x152   : > { %v1187_v11 = vsel %vm1186_vm5, %v1177_v8, %v1184_v9 }
 0x153   : > { %1873 = vmatmul.mubr.msk.f32.vlgmr.msra.gmra.mxu0 %vm1120_vm4, %v1187_v11 }
 0x213   : > { %v1265_v1 = vpop.f32.mrf.mxu0 }
 0x214   : > { %v1270_v12 = vmul.f32 0.0009765625, %v1265_v1 }
 0x215   : > { %v1874_v13 = vpop.f32.mrf.mxu0 }
 0x216   : > { %v1271_v14 = vmul.f32 %v1270_v12, %v1270_v12 }
 0x218   : > { %v1273_v17 = vrot.slane %v1271_v14, 7 }
 0x21a   : > { %v1275_v31 = vsub.f32 %v1270_v12, %v1273_v17 }
 0x21c   : > { %v1276_v32 = vadd.f32 1e-05, %v1275_v31 }
 0x21e   : > { %1940 = vrsqrt.f32 %v1276_v32 }
 0x22b   : > { %v1941_v15 = vpop.eup %1940 }
 0x22c   : > { %v1278_v16 = vsel %vm1186_vm5, %v1270_v12, %v1941_v15 }
 0x22d   : > { %1878 = vmatmul.mubr.msk.f32.vlgmr.msra.gmra.mxu1 %vm1280_vm6, %v1278_v16 }
 0x2ed   : > { %v1354_v20 = vpop.f32.mrf.mxu1 }
 0x2ee   : > { %v1365_v34 = vmul.f32 %v1628_v30, %v1354_v20  ;;  %v1366_v40 = vsub.f32 %v1065_v55, %v1354_v20 }
 0x2ef   : > { %v1879_v35 = vpop.f32.mrf.mxu1 }
 0x2f0   : > { %v1374_v37 = vrot.slane %v1365_v34, %v1373_v19  ;;  %v1390_v24 = vrot.slane %v1365_v34, %v1389_v38 }
 0x2f2   : > { %v1375_v39 = vcombine.high %v1374_v37, %v1374_v37  ;;  %v1391_v45 = vmul.f32 %v1390_v24, %v2329_v3  ;;  %v1392_v46 = vmul.f32 %v1390_v24, %v2327_v61  ;;  %v1393_v47 = vmul.f32 %v1390_v24, %v2331_v0 }
 0x2f3   : > { %v1394_v48 = vmul.f32 %v1390_v24, %v2333_v7  ;;  %v1395_v51 = vmul.f32 %v1390_v24, %v2338_v18  ;;  %v1396_v53 = vmul.f32 %v1390_v24, %v2348_v36  ;;  %v1397_v54 = vmul.f32 %v1390_v24, %v2361_v49 }
 0x2f4   : > { %v1382_v41 = vrot.slane %v1375_v39, %v1373_v19  ;;  %v1398_v50 = vmul.f32 %v1390_v24, %v2372_v10  ;;  %v1399_v55 = vmul.f32 %v1390_v24, %v2380_v33 }
 0x2f6   : > { %v1384_v42 = vmul.f32 %v1382_v41, %v1366_v40 }
 0x2f8   : > { %v1386_v44 = vadd.f32 %v1385_v23, %v1384_v42 }
 0x2fa   : > { %v1404_v52 = vrot.slane %v1386_v44, %v1403_v43 }
 0x2fc   : > { %v1406_v3 = vadd.f32 %v1404_v52, %v1391_v45  ;;  %v1407_v56 = vadd.f32 %v1404_v52, %v1392_v46  ;;  %v1408_v61 = vadd.f32 %v1404_v52, %v1393_v47  ;;  %v1409_v57 = vadd.f32 %v1404_v52, %v1394_v48 }
 0x2fd   : > { %v1410_v58 = vadd.f32 %v1404_v52, %v1395_v51  ;;  %v1411_v0 = vadd.f32 %v1404_v52, %v1396_v53  ;;  %v1412_v27 = vadd.f32 %v1404_v52, %v1397_v54  ;;  %v1413_v7 = vadd.f32 %v1404_v52, %v1398_v50 }
 0x2fe   : > { %v1414_v28 = vadd.f32 %v1404_v52, %v1399_v55  ;;  %v1415_v18 = vmax.f32 %v1406_v3, 0.0  ;;  %v1416_v59 = vmax.f32 %v1407_v56, 0.0  ;;  %v1417_v60 = vmax.f32 %v1408_v61, 0.0 }
 0x2ff   : > { %v1418_v36 = vmax.f32 %v1409_v57, 0.0  ;;  %v1419_v49 = vmax.f32 %v1410_v58, 0.0  ;;  %v1420_v10 = vmax.f32 %v1411_v0, 0.0  ;;  %v1421_v33 = vmax.f32 %v1412_v27, 0.0 }
 0x300   : > { %v1422_v62 = vmax.f32 %v1413_v7, 0.0  ;;  %v1423_v2 = vmax.f32 %v1414_v28, 0.0  ;;  %v1640_v4 = vpack.c.bf16 %v1415_v18, %v1415_v18  ;;  %v1641_v63 = vpack.c.bf16 %v1416_v59, %v1416_v59 }
 0x301   : > { %v1642_v5 = vpack.c.bf16 %v1417_v60, %v1417_v60  ;;  %v1643_v6 = vpack.c.bf16 %v1418_v36, %v1418_v36  ;;  %v1644_v8 = vpack.c.bf16 %v1419_v49, %v1419_v49  ;;  %v1645_v9 = vpack.c.bf16 %v1420_v10, %v1420_v10 }
 0x302   : > { %v1646_v11 = vpack.c.bf16 %v1421_v33, %v1421_v33  ;;  %v1647_v1 = vpack.c.bf16 %v1422_v62, %v1422_v62  ;;  %v1648_v12 = vpack.c.bf16 %v1423_v2, %v1423_v2  ;;  %1462 = vst.msk [vmem:[%s305_s21] sm:$0xf] %vm1461_vm7, %v1640_v4  ;;  %1463 = vst.msk [vmem:[%s305_s21 + $0x4] sm:$0xf] %vm1461_vm7, %v1641_v63 }
 0x303   : > { %1464 = vst.msk [vmem:[%s305_s21 + $0x8] sm:$0xf] %vm1461_vm7, %v1642_v5  ;;  %1465 = vst.msk [vmem:[%s305_s21 + $0xc] sm:$0xf] %vm1461_vm7, %v1643_v6 }
 0x304   : > { %1466 = vst.msk [vmem:[%s305_s21 + $0x10] sm:$0xf] %vm1461_vm7, %v1644_v8  ;;  %1467 = vst.msk [vmem:[%s305_s21 + $0x14] sm:$0xf] %vm1461_vm7, %v1645_v9 }
 0x305   : > { %1468 = vst.msk [vmem:[%s305_s21 + $0x18] sm:$0xf] %vm1461_vm7, %v1646_v11  ;;  %1469 = vst.msk [vmem:[%s305_s21 + $0x1c] sm:$0xf] %vm1461_vm7, %v1647_v1 }
 0x306   : > { %1470 = vst.msk [vmem:[%s305_s21 + $0x20] sm:$0xf] %vm1461_vm7, %v1648_v12 }
 0x307 PF: > { %s18_s27 = sadd.s32 1, %s1948_s27  }
 0x308   : > { %p15_p4 = scmp.ge.s32.totalorder %s18_s27, 4  }
 0x30a   :  { %17 = sbr.rel (!%p15_p4) target bundleno = 1 (0x1), region = 85 }

// kernel: _lambda_.9
= control target key start
LH: loop header
LB: loop body
LE: loop exit
PB: predicated region body
PF: predicated region fallthrough
CT: control target
= control target key end

     0   :  { %v49_v35 = vlaneseq  ;;  %s485_s1 = inlined_call_operand.vmem [shape: bf16[256,256], index: 1, kind: input, shape index: {}]   ;;  %s486_s0 = inlined_call_operand.vmem [shape: bf16[8,256], index: 0, kind: input, shape index: {}]   ;;  %s487_s2 = inlined_call_operand.vmem [shape: f32[1,256], index: 2, kind: input, shape index: {}]   ;;  %s488_s3 = inlined_call_operand.vmem [shape: f32[8,256], index: 3, kind: output, shape index: {}]  }
   0x1   :  { %v307_v0 = vld [vmem:[%s485_s1 + $0x74] ss:$8 sps:$4 sm:$0xff]   ;;  %v309_v1 = vld [vmem:[%s485_s1 + $0x70] ss:$8 sps:$4 sm:$0xff]   ;;  %v310_v2 = vld [vmem:[%s485_s1 + $0x64] ss:$8 sps:$4 sm:$0xff]  }
   0x2   :  { %226 = vmatprep.subr.bf16.mxu0 %v307_v0  ;;  %v312_v3 = vld [vmem:[%s485_s1 + $0x60] ss:$8 sps:$4 sm:$0xff]   ;;  %v313_v4 = vld [vmem:[%s485_s1 + $0x54] ss:$8 sps:$4 sm:$0xff]   ;;  %v315_v5 = vld [vmem:[%s485_s1 + $0x50] ss:$8 sps:$4 sm:$0xff]  }
   0x3   :  { %227 = vmatpush1.bf16.msra.mxu0 %v309_v1  ;;  %v316_v6 = vld [vmem:[%s485_s1 + $0x44] ss:$8 sps:$4 sm:$0xff]   ;;  %v318_v7 = vld [vmem:[%s485_s1 + $0x40] ss:$8 sps:$4 sm:$0xff]   ;;  %v319_v8 = vld [vmem:[%s485_s1 + $0x34] ss:$8 sps:$4 sm:$0xff]  }
   0x4   :  { %228 = vmatprep.subr.bf16.mxu0 %v310_v2  ;;  %v321_v9 = vld [vmem:[%s485_s1 + $0x30] ss:$8 sps:$4 sm:$0xff]   ;;  %v322_v10 = vld [vmem:[%s485_s1 + $0x24] ss:$8 sps:$4 sm:$0xff]   ;;  %v324_v11 = vld [vmem:[%s485_s1 + $0x20] ss:$8 sps:$4 sm:$0xff]  }
   0x5   :  { %v325_v12 = vld [vmem:[%s485_s1 + $0x14] ss:$8 sps:$4 sm:$0xff]   ;;  %v14_v13 = vld [vmem:[%s486_s0] sm:$0xff]  ;;  %v327_v15 = vld [vmem:[%s485_s1 + $0x10] ss:$8 sps:$4 sm:$0xff]   ;;  %v50_v36 = vshrl.u32 %v49_v35, 7 }
   0x6   :  { %v274_v14 = vcombine.high %v14_v13, %v14_v13  ;;  %v328_v16 = vld [vmem:[%s485_s1 + $0x4] ss:$8 sps:$4 sm:$0xff]   ;;  %v330_v17 = vld [vmem:[%s485_s1] ss:$8 sps:$4 sm:$0xff]   ;;  %v331_v18 = vld [vmem:[%s485_s1 + $0xf4] ss:$8 sps:$4 sm:$0xff]   ;;  %v273_v34 = vcombine.low %v14_v13, %v14_v13 }
   0x7   :  { %229 = vmatpush1.bf16.msra.mxu0 %v312_v3  ;;  %v333_v19 = vld [vmem:[%s485_s1 + $0xf0] ss:$8 sps:$4 sm:$0xff]   ;;  %v334_v20 = vld [vmem:[%s485_s1 + $0xe4] ss:$8 sps:$4 sm:$0xff]   ;;  %v336_v21 = vld [vmem:[%s485_s1 + $0xe0] ss:$8 sps:$4 sm:$0xff]  }
   0x8   :  { %230 = vmatprep.subr.bf16.mxu0 %v313_v4  ;;  %258 = vmatprep.mubr.bf16.mxu0 %v274_v14  ;;  %v337_v22 = vld [vmem:[%s485_s1 + $0xd4] ss:$8 sps:$4 sm:$0xff]   ;;  %v339_v23 = vld [vmem:[%s485_s1 + $0xd0] ss:$8 sps:$4 sm:$0xff]   ;;  %v340_v24 = vld [vmem:[%s485_s1 + $0xc4] ss:$8 sps:$4 sm:$0xff]  }
   0x9   :  { %v342_v25 = vld [vmem:[%s485_s1 + $0xc0] ss:$8 sps:$4 sm:$0xff]   ;;  %v343_v26 = vld [vmem:[%s485_s1 + $0xb4] ss:$8 sps:$4 sm:$0xff]   ;;  %v345_v27 = vld [vmem:[%s485_s1 + $0xb0] ss:$8 sps:$4 sm:$0xff]  }
   0xa   :  { %v346_v28 = vld [vmem:[%s485_s1 + $0xa4] ss:$8 sps:$4 sm:$0xff]   ;;  %v348_v29 = vld [vmem:[%s485_s1 + $0xa0] ss:$8 sps:$4 sm:$0xff]   ;;  %v349_v30 = vld [vmem:[%s485_s1 + $0x94] ss:$8 sps:$4 sm:$0xff]  }
   0xb   :  { %231 = vmatpush1.bf16.msra.mxu0 %v315_v5  ;;  %v351_v31 = vld [vmem:[%s485_s1 + $0x90] ss:$8 sps:$4 sm:$0xff]   ;;  %v352_v32 = vld [vmem:[%s485_s1 + $0x84] ss:$8 sps:$4 sm:$0xff]   ;;  %v354_v33 = vld [vmem:[%s485_s1 + $0x80] ss:$8 sps:$4 sm:$0xff]  }
   0xc   :  { %232 = vmatprep.subr.bf16.mxu0 %v316_v6  ;;  %v51_v37 = vsub.s32 0, %v50_v36  ;;  %v47_v38 = vld [vmem:[%s487_s2] sm:$0x3]  ;;  %v55_v39 = vsub.s32 1, %v50_v36 }
   0xe   :  { %v52_v40 = vrot.slane %v47_v38, %v51_v37  ;;  %v56_v41 = vrot.slane %v47_v38, %v55_v39 }
   0xf   :  { %233 = vmatpush1.bf16.msra.mxu0 %v318_v7 }
  0x10   :  { %234 = vmatprep.subr.bf16.mxu0 %v319_v8 }
  0x13   :  { %235 = vmatpush1.bf16.msra.mxu0 %v321_v9 }
  0x14   :  { %236 = vmatprep.subr.bf16.mxu0 %v322_v10 }
  0x17   :  { %237 = vmatpush1.bf16.msra.mxu0 %v324_v11 }
  0x18   :  { %238 = vmatprep.subr.bf16.mxu0 %v325_v12 }
  0x1b   :  { %239 = vmatpush1.bf16.msra.mxu0 %v327_v15 }
  0x1c   :  { %240 = vmatprep.subr.bf16.mxu0 %v328_v16 }
  0x1f   :  { %241 = vmatpush1.bf16.msra.mxu0 %v330_v17 }
  0x20   :  { %242 = vmatprep.subr.bf16.mxu0 %v331_v18 }
  0x23   :  { %243 = vmatpush2.bf16.msra.mxu0 %v333_v19 }
  0x24   :  { %244 = vmatprep.subr.bf16.mxu0 %v334_v20 }
  0x27   :  { %245 = vmatpush2.bf16.msra.mxu0 %v336_v21 }
  0x28   :  { %246 = vmatprep.subr.bf16.mxu0 %v337_v22 }
  0x2b   :  { %247 = vmatpush2.bf16.msra.mxu0 %v339_v23 }
  0x2c   :  { %248 = vmatprep.subr.bf16.mxu0 %v340_v24 }
  0x2f   :  { %249 = vmatpush2.bf16.msra.mxu0 %v342_v25 }
  0x30   :  { %250 = vmatprep.subr.bf16.mxu0 %v343_v26 }
  0x33   :  { %251 = vmatpush2.bf16.msra.mxu0 %v345_v27 }
  0x34   :  { %252 = vmatprep.subr.bf16.mxu0 %v346_v28 }
  0x37   :  { %253 = vmatpush2.bf16.msra.mxu0 %v348_v29 }
  0x38   :  { %254 = vmatprep.subr.bf16.mxu0 %v349_v30 }
  0x3b   :  { %255 = vmatpush2.bf16.msra.mxu0 %v351_v31 }
  0x3c   :  { %256 = vmatprep.subr.bf16.mxu0 %v352_v32 }
  0x3f   :  { %257 = vmatpush2.bf16.msra.mxu0 %v354_v33 }
  0x42   :  { %259 = vmatmul.mubr.bf16.vlgmr.msra.gmra.mxu0 %v273_v34 }
 0x102   :  { %v260_v42 = vpop.f32.mrf.mxu0 }
 0x103   :  { %v261_v43 = vadd.f32 %v260_v42, %v52_v40 }
 0x104   :  { %v262_v44 = vpop.f32.mrf.mxu0 }
 0x105   :  { %267 = vst [vmem:[%s488_s3] sm:$0xff] %v261_v43  ;;  %v263_v45 = vadd.f32 %v262_v44, %v56_v41 }
 0x106   :  { %v264_v46 = vpop.f32.mrf.mxu0 }
 0x107   :  { %268 = vst [vmem:[%s488_s3 + $0x8] sm:$0xff] %v263_v45 }
 0x108   :  { %v265_v47 = vpop.f32.mrf.mxu0 }

// kernel: _lambda_.7
= control target key start
LH: loop header
LB: loop body
LE: loop exit
PB: predicated region body
PF: predicated region fallthrough
CT: control target
= control target key end

     0   :  { %s2020_s27 = smov 0   ;;  %s2347_s0 = inlined_call_operand.vmem [shape: bf16[2,35,256], index: 0, kind: input, shape index: {}]   ;;  %s2348_s1 = inlined_call_operand.vmem [shape: bf16[4,256,128], index: 1, kind: input, shape index: {}]   ;;  %s2349_s2 = inlined_call_operand.vmem [shape: f32[1,128], index: 2, kind: input, shape index: {}]   ;;  %s2350_s3 = inlined_call_operand.vmem [shape: f32[1,128], index: 3, kind: input, shape index: {}]   ;;  %s2351_s4 = inlined_call_operand.vmem [shape: f32[1,128], index: 4, kind: input, shape index: {}]   ;;  %s2352_s5 = inlined_call_operand.vmem [shape: f32[128,8], index: 5, kind: input, shape index: {}]   ;;  %s2353_s6 = inlined_call_operand.vmem [shape: f32[8,128], index: 6, kind: input, shape index: {}]   ;;  %s2354_s7 = inlined_call_operand.vmem [shape: f32[20,1], index: 7, kind: input, shape index: {}]   ;;  %s2355_s8 = inlined_call_operand.vmem [shape: bf16[2,20,128], index: 8, kind: output, shape index: {}]  }
   0x1 LB: > { %s1503_s28 = sadd.s32 4294967295, %s1969_s27   ;;  %p1507_p0 = scmp.ge.s32.totalorder %s1969_s27, 1  ;;  %s1969_s27 = sphi %s2020_s27, %s18_s27  }
   0x2   : > { %p262_p1 = scmp.lt.s32.totalorder %s1969_s27, 3 }
   0x4   : > { %p263_p2 = pnand %p1507_p0, %p262_p1 }
   0x5   : > { %p296_p3 = scmp.lt.s32.totalorder (!%p263_p2), %s1503_s28, 1 }
   0x6   : > { %266 = sbr.rel (%p263_p2) target bundleno = 744 (0x2e8), region = 52 }
   0xb   : > { %v1884_v0 = vld [vmem:[%s2348_s1 + $0xf8] sm:$0xff]   ;;  %v1888_v4 = vld [vmem:[%s2348_s1 + $0xf0] sm:$0xff]   ;;  %v1971_v5 = vmov 0   ;;  %v1892_v9 = vld [vmem:[%s2348_s1 + $0xe8] sm:$0xff]   ;;  %s2357_s28 = smov (!%p296_p3, %s1503_s28), 1  ;;  %vm999_vm1 = vcmask 1044480  }
   0xc   : > { %v1885_v1 = vld [vmem:[%s2348_s1 + $0x78] sm:$0xff]   ;;  %1697 = vmatprep.subr.bf16.mxu0 %v1884_v0  ;;  %1882 = vset.pattern.permute.xlu0 %v1971_v5  ;;  %v1889_v6 = vld [vmem:[%s2348_s1 + $0x70] sm:$0xff]   ;;  %v1893_v10 = vld [vmem:[%s2348_s1 + $0x68] sm:$0xff]   ;;  %s1868_s19 = smul.u32 40, %s2357_s28  ;;  %vm389_vm0 = vsmask.f32 7424 }
   0xd   : > { %v1886_v2 = vld [vmem:[%s2348_s1 + $0xb8] sm:$0xff]   ;;  %1725 = vmatprep.subr.bf16.mxu1 %v1885_v1  ;;  %1883 = vset.pattern.permute.xlu1 %v1971_v5  ;;  %v1890_v7 = vld [vmem:[%s2348_s1 + $0xb0] sm:$0xff]   ;;  %v1894_v11 = vld [vmem:[%s2348_s1 + $0xa8] sm:$0xff]   ;;  %vm774_vm2 = vsmask.f32 5376  ;;  %vm1973_vm3 = vmmov 0  }
   0xe   : > { %v1887_v3 = vld [vmem:[%s2348_s1 + $0x38] sm:$0xff]   ;;  %1698 = vmatpush3.bf16.msra.mxu0 %v1886_v2  ;;  %v1891_v8 = vld [vmem:[%s2348_s1 + $0x30] sm:$0xff]   ;;  %v1895_v12 = vld [vmem:[%s2348_s1 + $0x28] sm:$0xff]   ;;  %s2128_s10 = scalar_lea.vmem %s2347_s0, %s1868_s19  ;;  %vm1180_vm4 = vcmask 1043456   ;;  %vm1211_vm5 = vcmask 1040384   ;;  %vm1310_vm6 = vcmask 64512  }
   0xf   : > { %1726 = vmatpush3.bf16.msra.mxu1 %v1887_v3  ;;  %1699 = vmatprep.subr.bf16.mxu0 %v1888_v4  ;;  %v1896_v13 = vld [vmem:[%s2348_s1 + $0xe0] sm:$0xff]   ;;  %v1900_v17 = vld [vmem:[%s2348_s1 + $0xd8] sm:$0xff]   ;;  %v1904_v21 = vld [vmem:[%s2348_s1 + $0xd0] sm:$0xff]  }
  0x10   : > { %1727 = vmatprep.subr.bf16.mxu1 %v1889_v6  ;;  %v1897_v14 = vld [vmem:[%s2348_s1 + $0x60] sm:$0xff]   ;;  %v1901_v18 = vld [vmem:[%s2348_s1 + $0x58] sm:$0xff]   ;;  %v1905_v22 = vld [vmem:[%s2348_s1 + $0x50] sm:$0xff]  }
  0x11   : > { %v1898_v15 = vld [vmem:[%s2348_s1 + $0xa0] sm:$0xff]   ;;  %v1902_v19 = vld [vmem:[%s2348_s1 + $0x98] sm:$0xff]   ;;  %v1906_v23 = vld [vmem:[%s2348_s1 + $0x90] sm:$0xff]  }
  0x12   : > { %1700 = vmatpush3.bf16.msra.mxu0 %v1890_v7  ;;  %v1899_v16 = vld [vmem:[%s2348_s1 + $0x20] sm:$0xff]   ;;  %v1903_v20 = vld [vmem:[%s2348_s1 + $0x18] sm:$0xff]   ;;  %v1907_v24 = vld [vmem:[%s2348_s1 + $0x10] sm:$0xff]  }
  0x13   : > { %1728 = vmatpush3.bf16.msra.mxu1 %v1891_v8  ;;  %1701 = vmatprep.subr.bf16.mxu0 %v1892_v9  ;;  %v1908_v25 = vld [vmem:[%s2348_s1 + $0xc8] sm:$0xff]   ;;  %v1912_v29 = vld [vmem:[%s2348_s1 + $0xc0] sm:$0xff]   ;;  %v342_v35 = vld [vmem:[%s2128_s10 + $0x10] sm:$0x77] }
  0x14   : > { %1729 = vmatprep.subr.bf16.mxu1 %v1893_v10  ;;  %v1909_v26 = vld [vmem:[%s2348_s1 + $0x48] sm:$0xff]   ;;  %v1913_v30 = vld [vmem:[%s2348_s1 + $0x40] sm:$0xff]   ;;  %v1545_v37 = vcombine.high %v342_v35, %v342_v35  ;;  %v1544_v39 = vcombine.low %v342_v35, %v342_v35  ;;  %v1920_v40 = vld [vmem:[%s2348_s1 + $0x178] sm:$0xff]  }
  0x15   : > { %v1910_v27 = vld [vmem:[%s2348_s1 + $0x88] sm:$0xff]   ;;  %v1914_v31 = vld [vmem:[%s2348_s1 + $0x80] sm:$0xff]   ;;  %v1921_v41 = vld [vmem:[%s2348_s1 + $0x1f8] sm:$0xff]  }
  0x16   : > { %1702 = vmatpush3.bf16.msra.mxu0 %v1894_v11  ;;  %v1911_v28 = vld [vmem:[%s2348_s1 + $0x8] sm:$0xff]   ;;  %v1915_v32 = vld [vmem:[%s2348_s1] sm:$0xff]   ;;  %v410_v44 = vshll.u32 %v1545_v37, 16  ;;  %v398_v47 = vshll.u32 %v1544_v39, 16  ;;  %v1923_v48 = vld [vmem:[%s2348_s1 + $0x1b8] sm:$0xff]   ;;  %v417_v55 = vshrl.u32 %v1545_v37, 16 }
  0x17   : > { %1730 = vmatpush3.bf16.msra.mxu1 %v1895_v12  ;;  %1703 = vmatprep.subr.bf16.mxu0 %v1896_v13  ;;  %v307_v33 = vld [vmem:[%s2128_s10] sm:$0xff]  ;;  %v2138_v34 = vld [vmem:[%s2128_s10 + $0x8] sm:$0xff]  ;;  %v1922_v54 = vld [vmem:[%s2348_s1 + $0x138] sm:$0xff]   ;;  %v414_v0 = vshrl.u32 %v1544_v39, 16 }
  0x18   : > { %1731 = vmatprep.subr.bf16.mxu1 %v1897_v14  ;;  %v1543_v36 = vcombine.high %v307_v33, %v2138_v34  ;;  %v1542_v38 = vcombine.low %v307_v33, %v2138_v34  ;;  %v412_v50 = vrot.slane %v410_v44, 1  ;;  %v400_v52 = vrot.slane %v398_v47, 1  ;;  %v1925_v57 = vld [vmem:[%s2348_s1 + $0x1f0] sm:$0xff]   ;;  %v1929_v1 = vld [vmem:[%s2348_s1 + $0x1e8] sm:$0xff]   ;;  %v1933_v6 = vld [vmem:[%s2348_s1 + $0x1e0] sm:$0xff]  }
  0x19   : > { %v1924_v59 = vld [vmem:[%s2348_s1 + $0x170] sm:$0xff]   ;;  %v1928_v2 = vld [vmem:[%s2348_s1 + $0x168] sm:$0xff]   ;;  %v1932_v7 = vld [vmem:[%s2348_s1 + $0x160] sm:$0xff]  }
  0x1a   : > { %1704 = vmatpush3.bf16.msra.mxu0 %v1898_v15  ;;  %v403_v42 = vshrl.u32 %v1543_v36, 16  ;;  %v405_v43 = vshll.u32 %v1543_v36, 16  ;;  %705 = vmatprep.mubr.bf16.mxu1 %v1543_v36  ;;  %v391_v45 = vshrl.u32 %v1542_v38, 16  ;;  %v393_v46 = vshll.u32 %v1542_v38, 16  ;;  %v1927_v62 = vld [vmem:[%s2348_s1 + $0x1b0] sm:$0xff]   ;;  %v1931_v3 = vld [vmem:[%s2348_s1 + $0x1a8] sm:$0xff]  }
  0x1b   : > { %1732 = vmatpush3.bf16.msra.mxu1 %v1899_v16  ;;  %1705 = vmatprep.subr.bf16.mxu0 %v1900_v17  ;;  %v419_v60 = vor.u32 %v417_v55, %v412_v50  ;;  %v1926_v63 = vld [vmem:[%s2348_s1 + $0x130] sm:$0xff]   ;;  %v1930_v4 = vld [vmem:[%s2348_s1 + $0x128] sm:$0xff]   ;;  %v416_v5 = vor.u32 %v414_v0, %v400_v52  ;;  %v1935_v8 = vld [vmem:[%s2348_s1 + $0x1a0] sm:$0xff]  }
  0x1c   : > { %1733 = vmatprep.subr.bf16.mxu1 %v1901_v18  ;;  %v407_v49 = vrot.slane %v405_v43, 1  ;;  %v395_v51 = vrot.slane %v393_v46, 1  ;;  %v1934_v9 = vld [vmem:[%s2348_s1 + $0x120] sm:$0xff]   ;;  %v1937_v10 = vld [vmem:[%s2348_s1 + $0x1d8] sm:$0xff]   ;;  %v309_v13 = vld [vmem:[%s2128_s10 + $0x10] sm:$0x33] }
  0x1d   : > { %v1936_v11 = vld [vmem:[%s2348_s1 + $0x158] sm:$0xff]   ;;  %v1563_v15 = vcombine.high %v309_v13, %v309_v13  ;;  %v1562_v16 = vcombine.low %v309_v13, %v309_v13  ;;  %v1943_v17 = vld [vmem:[%s2348_s1 + $0x1d0] sm:$0xff]   ;;  %v1157_v35 = vld [vmem:[%s2354_s7] sm:$0xff] }
  0x1e   : > { %1706 = vmatpush3.bf16.msra.mxu0 %v1902_v19  ;;  %v408_v53 = vor.u32 %v407_v49, %v403_v42  ;;  %v396_v56 = vor.u32 %v395_v51, %v391_v45  ;;  %v1939_v12 = vld [vmem:[%s2348_s1 + $0x198] sm:$0xff]   ;;  %v1942_v18 = vld [vmem:[%s2348_s1 + $0x150] sm:$0xff]   ;;  %1163 = vperm.xlu0 %1882, %v1157_v35   ;;  %v1158_v45 = vld [vmem:[%s2354_s7 + $0x8] sm:$0xff] }
  0x1f   : > { %1734 = vmatpush3.bf16.msra.mxu1 %v1903_v20  ;;  %1707 = vmatprep.subr.bf16.mxu0 %v1904_v21  ;;  %v1938_v14 = vld [vmem:[%s2348_s1 + $0x118] sm:$0xff]   ;;  %v1945_v19 = vld [vmem:[%s2348_s1 + $0x190] sm:$0xff]   ;;  %v1947_v21 = vld [vmem:[%s2348_s1 + $0x1c8] sm:$0xff]  }
  0x20   : > { %1735 = vmatprep.subr.bf16.mxu1 %v1905_v22  ;;  %v413_v58 = vsel %vm389_vm0, %v408_v53, %v412_v50  ;;  %v401_v61 = vsel %vm389_vm0, %v396_v56, %v400_v52  ;;  %v1944_v20 = vld [vmem:[%s2348_s1 + $0x110] sm:$0xff]   ;;  %v1946_v22 = vld [vmem:[%s2348_s1 + $0x148] sm:$0xff]   ;;  %v1220_v13 = vld [vmem:[%s2352_s5 + $0x38] sm:$0xff] }
  0x21   : > { %552 = vmatprep.mubr.bf16.mxu0 %v413_v58  ;;  %v1958_v33 = vld [vmem:[%s2128_s10 + $0x14] ss:$8 sps:$4 sm:$0x1f]   ;;  %v1159_v46 = vld [vmem:[%s2354_s7 + $0x10] sm:$0xf] }
  0x22   : > { %1708 = vmatpush3.bf16.msra.mxu0 %v1906_v23  ;;  %v1949_v23 = vld [vmem:[%s2348_s1 + $0x188] sm:$0xff]   ;;  %v804_v42 = vshll.u32 %v1958_v33, 16  ;;  %v1004_v49 = vrot.slane %v1958_v33, 3  ;;  %1173 = vperm.xlu1 %1883, %v1159_v46  }
  0x23   : > { %1736 = vmatpush3.bf16.msra.mxu1 %v1907_v24  ;;  %1709 = vmatprep.subr.bf16.mxu0 %v1908_v25  ;;  %v1948_v24 = vld [vmem:[%s2348_s1 + $0x108] sm:$0xff]   ;;  %v1951_v25 = vld [vmem:[%s2348_s1 + $0x1c0] sm:$0xff]  }
  0x24   : > { %1737 = vmatprep.subr.bf16.mxu1 %v1909_v26  ;;  %v1950_v26 = vld [vmem:[%s2348_s1 + $0x140] sm:$0xff]   ;;  %v806_v52 = vrot.slane %v804_v42, 3  ;;  %1168 = vperm.xlu0 %1882, %v1158_v45  }
  0x26   : > { %1710 = vmatpush3.bf16.msra.mxu0 %v1910_v27  ;;  %v1952_v27 = vld [vmem:[%s2348_s1 + $0x100] sm:$0xff]  }
  0x27   : > { %1738 = vmatpush3.bf16.msra.mxu1 %v1911_v28  ;;  %1711 = vmatprep.subr.bf16.mxu0 %v1912_v29  ;;  %v1953_v28 = vld [vmem:[%s2348_s1 + $0x180] sm:$0xff]  }
  0x28   : > { %1739 = vmatprep.subr.bf16.mxu1 %v1913_v30  ;;  %v721_v29 = vld [vmem:[%s2128_s10] sm:$0xcc] }
  0x29   : > { %v1612_v30 = vcombine.low %v721_v29, %v2138_v34 }
  0x2a   : > { %1712 = vmatpush3.bf16.msra.mxu0 %v1914_v31  ;;  %v1613_v31 = vcombine.high %v721_v29, %v2138_v34 }
  0x2b   : > { %1740 = vmatpush3.bf16.msra.mxu1 %v1915_v32  ;;  %1753 = vmatprep.subr.bf16.mxu0 %v1920_v40  ;;  %v1956_v32 = vld [vmem:[%s2128_s10 + $0x10] ss:$8 sps:$4 sm:$0x1f]   ;;  %v776_v39 = vshrl.u32 %v1612_v30, 16  ;;  %v779_v40 = vshll.u32 %v1612_v30, 16 }
  0x2c   : > { %1781 = vmatprep.subr.bf16.mxu1 %v1921_v41  ;;  %v793_v36 = vshrl.u32 %v1613_v31, 16  ;;  %v796_v37 = vshll.u32 %v1613_v31, 16  ;;  %v801_v41 = vshrl.u32 %v1958_v33, 16  ;;  %v784_v56 = vshrl.u32 %v1956_v32, 16 }
  0x2d   : > { %553 = vmatmul.mubr.bf16.vlgmr.msra.gmra.mxu0 %v401_v61  ;;  %v778_v50 = vrot.slane %v776_v39, 2 }
  0x2e   : > { %706 = vmatmul.mubr.bf16.vlgmr.msra.gmra.mxu1 %v1542_v38  ;;  %1754 = vmatpush3.bf16.msra.mxu0 %v1922_v54  ;;  %v960_v38 = vld [vmem:[%s2128_s10] sm:$0x88]  ;;  %v795_v47 = vrot.slane %v793_v36, 2  ;;  %v803_v51 = vrot.slane %v801_v41, 2  ;;  %s1869_s10 = smul.u32 12, %s2357_s28 }
  0x2f   : > { %1782 = vmatpush3.bf16.msra.mxu1 %v1923_v48  ;;  %1755 = vmatprep.subr.bf16.mxu0 %v1924_v59  ;;  %v1664_v43 = vcombine.low %v960_v38, %v2138_v34  ;;  %v1665_v44 = vcombine.high %v960_v38, %v2138_v34  ;;  %v798_v48 = vrot.slane %v796_v37, 3  ;;  %v781_v34 = vrot.slane %v779_v40, 3 }
  0x30   : > { %1783 = vmatprep.subr.bf16.mxu1 %v1925_v57  ;;  %560 = vmatprep.mubr.bf16.mxu0 %v419_v60  ;;  %v787_v57 = vshll.u32 %v1956_v32, 16  ;;  %v807_v58 = vor.u32 %v806_v52, %v803_v51  ;;  %v1001_v60 = vrot.slane %v1956_v32, 3  ;;  %s305_s11 = scalar_lea.vmem %s2355_s8, %s1869_s10 }
  0x31   : > { %713 = vmatprep.mubr.bf16.mxu1 %v1563_v15  ;;  %v1000_v53 = vrot.slane %v1664_v43, 3  ;;  %v1003_v54 = vrot.slane %v1665_v44, 3  ;;  %v799_v55 = vor.u32 %v798_v48, %v795_v47  ;;  %v782_v61 = vor.u32 %v781_v34, %v778_v50  ;;  %v1218_v15 = vld [vmem:[%s2352_s5 + $0x28] sm:$0xff] }
  0x32   : > { %1756 = vmatpush3.bf16.msra.mxu0 %v1926_v63  ;;  %v789_v63 = vrot.slane %v787_v57, 3 }
  0x33   : > { %1784 = vmatpush3.bf16.msra.mxu1 %v1927_v62  ;;  %1757 = vmatprep.subr.bf16.mxu0 %v1928_v2  ;;  %v1005_v59 = vsel %vm999_vm1, %v1003_v54, %v1004_v49  ;;  %v786_v62 = vrot.slane %v784_v56, 2  ;;  %v808_v0 = vsel %vm774_vm2, %v799_v55, %v807_v58 }
  0x34   : > { %1785 = vmatprep.subr.bf16.mxu1 %v1929_v1  ;;  %v1002_v1 = vsel %vm999_vm1, %v1000_v53, %v1001_v60 }
  0x35   : > { %561 = vmatmul.mubr.bf16.gmra.mxu0 %v416_v5  ;;  %v790_v2 = vor.u32 %v789_v63, %v786_v62  ;;  %v1228_v5 = vld [vmem:[%s2352_s5 + $0x78] sm:$0xff] }
  0x36   : > { %1758 = vmatpush3.bf16.msra.mxu0 %v1930_v4  ;;  %714 = vmatmul.mubr.bf16.gmra.mxu1 %v1562_v16  ;;  %v1972_v4 = vmov 0.0   ;;  %v1217_v16 = vld [vmem:[%s2352_s5 + $0x20] sm:$0xff] }
  0x37   : > { %1786 = vmatpush3.bf16.msra.mxu1 %v1931_v3  ;;  %1759 = vmatprep.subr.bf16.mxu0 %v1932_v7  ;;  %v791_v3 = vsel %vm774_vm2, %v782_v61, %v790_v2  ;;  %v1226_v7 = vld [vmem:[%s2352_s5 + $0x68] sm:$0xff] }
  0x38   : > { %1787 = vmatprep.subr.bf16.mxu1 %v1933_v6  ;;  %1138 = vmatprep.mubr.bf16.mxu1 %v1005_v59  ;;  %v1227_v6 = vld [vmem:[%s2352_s5 + $0x70] sm:$0xff] }
  0x39   : > { %941 = vmatprep.mubr.bf16.mxu0 %v808_v0 }
  0x3a   : > { %1760 = vmatpush3.bf16.msra.mxu0 %v1934_v9  ;;  %v1224_v9 = vld [vmem:[%s2352_s5 + $0x58] sm:$0xff] }
  0x3b   : > { %1788 = vmatpush3.bf16.msra.mxu1 %v1935_v8  ;;  %1761 = vmatprep.subr.bf16.mxu0 %v1936_v11  ;;  %v1225_v8 = vld [vmem:[%s2352_s5 + $0x60] sm:$0xff]  ;;  %v1222_v11 = vld [vmem:[%s2352_s5 + $0x48] sm:$0xff] }
  0x3c   : > { %1789 = vmatprep.subr.bf16.mxu1 %v1937_v10  ;;  %v1223_v10 = vld [vmem:[%s2352_s5 + $0x50] sm:$0xff] }
  0x3e   : > { %1762 = vmatpush3.bf16.msra.mxu0 %v1938_v14  ;;  %v1219_v14 = vld [vmem:[%s2352_s5 + $0x30] sm:$0xff] }
  0x3f   : > { %1790 = vmatpush3.bf16.msra.mxu1 %v1939_v12  ;;  %1763 = vmatprep.subr.bf16.mxu0 %v1942_v18  ;;  %v1221_v12 = vld [vmem:[%s2352_s5 + $0x40] sm:$0xff]  ;;  %v1215_v18 = vld [vmem:[%s2352_s5 + $0x10] sm:$0xff] }
  0x40   : > { %1791 = vmatprep.subr.bf16.mxu1 %v1943_v17  ;;  %v1216_v17 = vld [vmem:[%s2352_s5 + $0x18] sm:$0xff] }
  0x42   : > { %1764 = vmatpush3.bf16.msra.mxu0 %v1944_v20  ;;  %v1213_v20 = vld [vmem:[%s2352_s5] sm:$0xff] }
  0x43   : > { %1792 = vmatpush3.bf16.msra.mxu1 %v1945_v19  ;;  %1765 = vmatprep.subr.bf16.mxu0 %v1946_v22  ;;  %v1214_v19 = vld [vmem:[%s2352_s5 + $0x8] sm:$0xff] }
  0x44   : > { %1793 = vmatprep.subr.bf16.mxu1 %v1947_v21 }
  0x46   : > { %1766 = vmatpush3.bf16.msra.mxu0 %v1948_v24 }
  0x47   : > { %1794 = vmatpush3.bf16.msra.mxu1 %v1949_v23  ;;  %1767 = vmatprep.subr.bf16.mxu0 %v1950_v26 }
  0x48   : > { %1795 = vmatprep.subr.bf16.mxu1 %v1951_v25 }
  0x4a   : > { %1768 = vmatpush3.bf16.msra.mxu0 %v1952_v27 }
  0x4b   : > { %1796 = vmatpush3.bf16.msra.mxu1 %v1953_v28  ;;  %1828 = vmatprep.subr.mxu0 %v1972_v4 }
  0x4c   : > { %1863 = vmatprep.subr.mxu1 %v1972_v4 }
  0x4d   : > { %942 = vmatmul.mubr.bf16.vlgmr.msra.gmra.mxu0 %v791_v3 }
  0x4e   : > { %1139 = vmatmul.mubr.bf16.vlgmr.msra.gmra.mxu1 %v1002_v1  ;;  %949 = vmatprep.mubr.bf16.mxu0 %v807_v58 }
  0x4f   : > { %1146 = vmatprep.mubr.bf16.mxu1 %v1004_v49  ;;  %1829 = vmatpush3.msra.mxu0 %v1228_v5 }
  0x50   : > { %1830 = vmatprep.subr.mxu0 %v1972_v4 }
  0x51   : > { %1831 = vmatpush3.msra.mxu0 %v1227_v6 }
  0x52   : > { %1832 = vmatprep.subr.mxu0 %v1972_v4 }
  0x53   : > { %1833 = vmatpush3.msra.mxu0 %v1226_v7 }
  0x54   : > { %1834 = vmatprep.subr.mxu0 %v1972_v4 }
  0x55   : > { %950 = vmatmul.mubr.bf16.gmra.mxu0 %v790_v2 }
  0x56   : > { %1147 = vmatmul.mubr.bf16.gmra.mxu1 %v1001_v60  ;;  %1835 = vmatpush3.msra.mxu0 %v1225_v8 }
  0x57   : > { %1836 = vmatprep.subr.mxu0 %v1972_v4  ;;  %1860 = vmatprep.mubr.msk.f32.mxu0 %vm1973_vm3, %v1972_v4 }
  0x58   : > { %1837 = vmatpush3.msra.mxu0 %v1224_v9  ;;  %1865 = vmatprep.mubr.msk.f32.mxu1 %vm1973_vm3, %v1972_v4 }
  0x59   : > { %1838 = vmatprep.subr.mxu0 %v1972_v4 }
  0x5a   : > { %1839 = vmatpush3.msra.mxu0 %v1223_v10 }
  0x5b   : > { %1840 = vmatprep.subr.mxu0 %v1972_v4 }
  0x5c   : > { %1841 = vmatpush3.msra.mxu0 %v1222_v11 }
  0x5d   : > { %1842 = vmatprep.subr.mxu0 %v1972_v4 }
  0x5e   : > { %1843 = vmatpush3.msra.mxu0 %v1221_v12 }
  0x5f   : > { %1844 = vmatprep.subr.mxu0 %v1972_v4 }
  0x60   : > { %1845 = vmatpush3.msra.mxu0 %v1220_v13 }
  0x61   : > { %1846 = vmatprep.subr.mxu0 %v1972_v4 }
  0x62   : > { %1847 = vmatpush3.msra.mxu0 %v1219_v14 }
  0x63   : > { %1848 = vmatprep.subr.mxu0 %v1972_v4 }
  0x64   : > { %1849 = vmatpush3.msra.mxu0 %v1218_v15 }
  0x65   : > { %1850 = vmatprep.subr.mxu0 %v1972_v4 }
  0x66   : > { %1851 = vmatpush3.msra.mxu0 %v1217_v16 }
  0x67   : > { %1852 = vmatprep.subr.mxu0 %v1972_v4 }
  0x68   : > { %1853 = vmatpush3.msra.mxu0 %v1216_v17 }
  0x69   : > { %1854 = vmatprep.subr.mxu0 %v1972_v4 }
  0x6a   : > { %1855 = vmatpush3.msra.mxu0 %v1215_v18 }
  0x6b   : > { %1856 = vmatprep.subr.mxu0 %v1972_v4 }
  0x6c   : > { %1857 = vmatpush3.msra.mxu0 %v1214_v19 }
  0x6d   : > { %1858 = vmatprep.subr.mxu0 %v1972_v4 }
  0x6e   : > { %1859 = vmatpush3.msra.mxu0 %v1213_v20 }
  0x99   : > { %v1164_v51 = vpop.permute.xlu0 %1163 }
  0x9d   : > { %v1174_v13 = vpop.permute.xlu1 %1173 }
  0x9f   : > { %v1169_v2 = vpop.permute.xlu0 %1168 }
  0xed   : > { %v1713_v21 = vpop.f32.mrf.mxu0 }
  0xee   : > { %v1741_v22 = vpop.f32.mrf.mxu1 }
  0xef   : > { %v1714_v23 = vpop.f32.mrf.mxu0 }
  0xf0   : > { %v1742_v25 = vpop.f32.mrf.mxu1  ;;  %v1715_v40 = vadd.f32 %v1714_v23, %v1713_v21 }
  0xf1   : > { %v1716_v24 = vpop.f32.mrf.mxu0  ;;  %v1743_v41 = vadd.f32 %v1742_v25, %v1741_v22 }
  0xf2   : > { %v1744_v28 = vpop.f32.mrf.mxu1 }
  0xf3   : > { %v1717_v26 = vpop.f32.mrf.mxu0  ;;  %v708_v49 = vadd.f32 %v1743_v41, %v1715_v40 }
  0xf4   : > { %v1745_v31 = vpop.f32.mrf.mxu1  ;;  %v1718_v45 = vadd.f32 %v1717_v26, %v1716_v24 }
  0xf5   : > { %v1719_v27 = vpop.f32.mrf.mxu0  ;;  %v1746_v46 = vadd.f32 %v1745_v31, %v1744_v28 }
  0xf6   : > { %v1747_v33 = vpop.f32.mrf.mxu1 }
  0xf7   : > { %v1720_v29 = vpop.f32.mrf.mxu0  ;;  %v711_v55 = vadd.f32 %v1746_v46, %v1718_v45 }
  0xf8   : > { %v1748_v35 = vpop.f32.mrf.mxu1  ;;  %v1721_v34 = vadd.f32 %v1720_v29, %v1719_v27 }
  0xf9   : > { %v1722_v30 = vpop.f32.mrf.mxu0  ;;  %v1749_v56 = vadd.f32 %v1748_v35, %v1747_v33 }
  0xfa   : > { %v1750_v36 = vpop.f32.mrf.mxu1  ;;  %v1160_v30 = vld [vmem:[%s2349_s2] sm:$0x1] }
  0xfb   : > { %v1723_v32 = vpop.f32.mrf.mxu0  ;;  %v716_v3 = vadd.f32 %v1749_v56, %v1721_v34  ;;  %v1203_v33 = vmul.f32 2.0, %v1160_v30 }
  0xfc   : > { %v1751_v37 = vpop.f32.mrf.mxu1 }
 0x10d   : > { %v1769_v42 = vpop.f32.mrf.mxu0 }
 0x10e   : > { %v1797_v38 = vpop.f32.mrf.mxu1 }
 0x10f   : > { %v1770_v44 = vpop.f32.mrf.mxu0 }
 0x110   : > { %v1798_v39 = vpop.f32.mrf.mxu1  ;;  %v1771_v47 = vadd.f32 %v1770_v44, %v1769_v42 }
 0x111   : > { %v1772_v50 = vpop.f32.mrf.mxu0  ;;  %v1799_v59 = vadd.f32 %v1798_v39, %v1797_v38  ;;  %v1201_v39 = vmul.f32 16.0, %v1160_v30 }
 0x112   : > { %v1800_v43 = vpop.f32.mrf.mxu1  ;;  %v957_v53 = vadd.f32 %v1771_v47, %v708_v49 }
 0x113   : > { %v1773_v54 = vpop.f32.mrf.mxu0  ;;  %v1206_v42 = vmul.f32 %v1201_v39, %v1160_v30 }
 0x114   : > { %v1801_v48 = vpop.f32.mrf.mxu1  ;;  %v1774_v57 = vadd.f32 %v1773_v54, %v1772_v50  ;;  %v2311_v0 = vadd.f32 %v1799_v59, %v957_v53  ;;  %v1397_v59 = vlaneseq }
 0x115   : > { %v1775_v60 = vpop.f32.mrf.mxu0  ;;  %v1802_v62 = vadd.f32 %v1801_v48, %v1800_v43  ;;  %v1309_v48 = vld [vmem:[%s2353_s6] sm:$0xff] }
 0x116   : > { %v1803_v52 = vpop.f32.mrf.mxu1  ;;  %v958_v61 = vadd.f32 %v1774_v57, %v711_v55  ;;  %v1176_v11 = vmul.f32 %v1164_v51, %v2311_v0  ;;  %1864 = vmatpush3.msra.mxu1 %v1309_v48  ;;  %v1974_v57 = vmov 1966171168  }
 0x117   : > { %v1776_v1 = vpop.f32.mrf.mxu0 }
 0x118   : > { %v1804_v58 = vpop.f32.mrf.mxu1  ;;  %v2313_v4 = vadd.f32 %v1802_v62, %v958_v61  ;;  %v1777_v5 = vadd.f32 %v1776_v1, %v1775_v60  ;;  %v1189_v17 = vmul.f32 %v1176_v11, %v2311_v0  ;;  %v1398_v61 = vshrl.u32 %v1397_v59, 7  ;;  %v1683_v62 = vld [vmem:[%s2350_s3] ss:$0 sm:$0xff] }
 0x119   : > { %v1778_v7 = vpop.f32.mrf.mxu0  ;;  %v1805_v9 = vadd.f32 %v1804_v58, %v1803_v52  ;;  %v1395_v58 = vunpack.c.l.s4 %v1974_v57 }
 0x11a   : > { %v1806_v63 = vpop.f32.mrf.mxu1  ;;  %v959_v8 = vadd.f32 %v1777_v5, %v716_v3  ;;  %v1177_v10 = vmul.f32 %v1169_v2, %v2313_v4  ;;  %v1415_v7 = vsub.s32 1, %v1398_v61 }
 0x11b   : > { %v1779_v12 = vpop.f32.mrf.mxu0  ;;  %v1396_v60 = vunpack.c.0.s8 %v1395_v58 }
 0x11c   : > { %v1807_v6 = vpop.f32.mrf.mxu1  ;;  %v2317_v14 = vadd.f32 %v1805_v9, %v959_v8  ;;  %v1190_v15 = vmul.f32 %v1177_v10, %v2313_v4  ;;  %v1179_v18 = vadd.f32 %v1177_v10, %v1176_v11  ;;  %v1411_v10 = vld [vmem:[%s2351_s4] sm:$0x1] }
 0x11d   : > { %v1399_v63 = vsub.s32 %v1396_v60, %v1398_v61 }
 0x11e   : > { %v1178_v16 = vmul.f32 %v1174_v13, %v2317_v14  ;;  %v1192_v21 = vadd.f32 %v1190_v15, %v1189_v17  ;;  %v1423_v13 = vsub.s32 0, %v1398_v61 }
 0x120   : > { %v1181_v19 = vsel %vm1180_vm4, %v1178_v16, 0.0  ;;  %v1191_v20 = vmul.f32 %v1178_v16, %v2317_v14 }
 0x121   : > { %v1182_v22 = vadd.f32 %v1181_v19, %v1179_v18 }
 0x122   : > { %v1193_v23 = vsel %vm1180_vm4, %v1191_v20, 0.0 }
 0x123   : > { %v1183_v24 = vrot.slane %v1182_v22, 4  ;;  %v1194_v25 = vadd.f32 %v1193_v23, %v1192_v21 }
 0x125   : > { %v1184_v26 = vadd.f32 %v1183_v24, %v1182_v22  ;;  %v1195_v27 = vrot.slane %v1194_v25, 4 }
 0x127   : > { %v1185_v28 = vrot.slane %v1184_v26, 2  ;;  %v1196_v29 = vadd.f32 %v1195_v27, %v1194_v25 }
 0x129   : > { %v1186_v31 = vadd.f32 %v1185_v28, %v1184_v26  ;;  %v1197_v32 = vrot.slane %v1196_v29, 2 }
 0x12b   : > { %v1187_v35 = vrot.slane %v1186_v31, 1  ;;  %v1198_v36 = vadd.f32 %v1197_v32, %v1196_v29 }
 0x12d   : > { %v1188_v37 = vadd.f32 %v1187_v35, %v1186_v31  ;;  %v1199_v38 = vrot.slane %v1198_v36, 1 }
 0x12f   : > { %v1200_v40 = vadd.f32 %v1199_v38, %v1198_v36  ;;  %v1204_v41 = vmul.f32 %v1203_v33, %v1188_v37  ;;  %v1202_v45 = vadd.f32 %v1201_v39, %v1188_v37 }
 0x131   : > { %v1205_v43 = vadd.f32 %v1204_v41, %v1200_v40 }
 0x133   : > { %v1207_v44 = vadd.f32 %v1206_v42, %v1205_v43 }
 0x135   : > { %v1209_v46 = vrot.slane %v1207_v44, 7 }
 0x137   : > { %v1212_v47 = vsel %vm1211_vm5, %v1202_v45, %v1209_v46 }
 0x138   : > { %1861 = vmatmul.mubr.f32.vlgmr.msra.gmra.mxu0 %v1212_v47 }
 0x1f8   : > { %v1295_v49 = vpop.f32.mrf.mxu0 }
 0x1f9   : > { %v1300_v50 = vmul.f32 0.00390625, %v1295_v49 }
 0x1fa   : > { %v1862_v51 = vpop.f32.mrf.mxu0 }
 0x1fb   : > { %v1301_v52 = vmul.f32 %v1300_v50, %v1300_v50 }
 0x1fd   : > { %v1303_v53 = vrot.slane %v1301_v52, 7 }
 0x1ff   : > { %v1305_v54 = vsub.f32 %v1300_v50, %v1303_v53 }
 0x201   : > { %v1306_v55 = vadd.f32 1e-05, %v1305_v54 }
 0x203   : > { %1961 = vrsqrt.f32 %v1306_v55 }
 0x210   : > { %v1962_v34 = vpop.eup %1961 }
 0x211   : > { %v1308_v56 = vsel %vm1211_vm5, %v1300_v50, %v1962_v34 }
 0x212   : > { %1866 = vmatmul.mubr.msk.f32.vlgmr.msra.gmra.mxu1 %vm1310_vm6, %v1308_v56 }
 0x2d2   : > { %v1380_v1 = vpop.f32.mrf.mxu1 }
 0x2d3   : > { %v1391_v2 = vmul.f32 %v1683_v62, %v1380_v1  ;;  %v1392_v8 = vsub.f32 %v1160_v30, %v1380_v1 }
 0x2d4   : > { %v1867_v3 = vpop.f32.mrf.mxu1 }
 0x2d5   : > { %v1400_v5 = vrot.slane %v1391_v2, %v1399_v63  ;;  %v1416_v12 = vrot.slane %v1391_v2, %v1415_v7 }
 0x2d7   : > { %v1401_v6 = vcombine.high %v1400_v5, %v1400_v5  ;;  %v1417_v16 = vmul.f32 %v1416_v12, %v2311_v0  ;;  %v1418_v17 = vmul.f32 %v1416_v12, %v2313_v4  ;;  %v1419_v18 = vmul.f32 %v1416_v12, %v2317_v14 }
 0x2d9   : > { %v1408_v9 = vrot.slane %v1401_v6, %v1399_v63 }
 0x2db   : > { %v1410_v11 = vmul.f32 %v1408_v9, %v1392_v8 }
 0x2dd   : > { %v1412_v15 = vadd.f32 %v1411_v10, %v1410_v11 }
 0x2df   : > { %v1424_v19 = vrot.slane %v1412_v15, %v1423_v13 }
 0x2e1   : > { %v1426_v20 = vadd.f32 %v1424_v19, %v1417_v16  ;;  %v1427_v21 = vadd.f32 %v1424_v19, %v1418_v17  ;;  %v1428_v22 = vadd.f32 %v1424_v19, %v1419_v18 }
 0x2e3   : > { %v1429_v23 = vmax.f32 %v1426_v20, 0.0  ;;  %v1430_v24 = vmax.f32 %v1427_v21, 0.0  ;;  %v1431_v25 = vmax.f32 %v1428_v22, 0.0 }
 0x2e5   : > { %v1691_v26 = vpack.c.bf16 %v1431_v25, %v1431_v25  ;;  %v1695_v27 = vpack.c.bf16 %v1430_v24, %v1429_v23 }
 0x2e7   : > { %1696 = vst [vmem:[%s305_s11] sm:$0xff] %v1695_v27   ;;  %1447 = vst [vmem:[%s305_s11 + $0x8] sm:$0x3] %v1691_v26 }
 0x2e8 PF: > { %s18_s27 = sadd.s32 1, %s1969_s27  }
 0x2e9   : > { %p15_p4 = scmp.ge.s32.totalorder %s18_s27, 4  }
 0x2eb   :  { %17 = sbr.rel (!%p15_p4) target bundleno = 1 (0x1), region = 85 }

// kernel: _lambda_.8
= control target key start
LH: loop header
LB: loop body
LE: loop exit
PB: predicated region body
PF: predicated region fallthrough
CT: control target
= control target key end

     0   :  { %s3743_s27 = smov 0   ;;  %s4761_s0 = inlined_call_operand.vmem [shape: bf16[2,15,512], index: 0, kind: input, shape index: {}]   ;;  %s4762_s1 = inlined_call_operand.vmem [shape: bf16[4,512,256], index: 1, kind: input, shape index: {}]   ;;  %s4763_s2 = inlined_call_operand.vmem [shape: f32[1,256], index: 2, kind: input, shape index: {}]   ;;  %s4764_s3 = inlined_call_operand.vmem [shape: f32[1,256], index: 3, kind: input, shape index: {}]   ;;  %s4765_s4 = inlined_call_operand.vmem [shape: f32[1,256], index: 4, kind: input, shape index: {}]   ;;  %s4766_s5 = inlined_call_operand.vmem [shape: f32[256,16], index: 5, kind: input, shape index: {}]   ;;  %s4767_s6 = inlined_call_operand.vmem [shape: f32[16,256], index: 6, kind: input, shape index: {}]   ;;  %s4768_s7 = inlined_call_operand.vmem [shape: f32[6,1], index: 7, kind: input, shape index: {}]   ;;  %s4769_s8 = inlined_call_operand.vmem [shape: bf16[2,6,256], index: 8, kind: output, shape index: {}]  }
   0x1 LB: > { %s2758_s28 = sadd.s32 4294967295, %s3693_s27   ;;  %p2762_p0 = scmp.ge.s32.totalorder %s3693_s27, 1  ;;  %s3693_s27 = sphi %s3743_s27, %s18_s27  }
   0x2   : > { %p262_p1 = scmp.lt.s32.totalorder %s3693_s27, 3 }
   0x4   : > { %p263_p2 = pnand %p2762_p0, %p262_p1 }
   0x5   : > { %p296_p3 = scmp.lt.s32.totalorder (!%p263_p2), %s2758_s28, 1 }
   0x6   : > { %266 = sbr.rel (%p263_p2) target bundleno = 941 (0x3ad), region = 52 }
   0xb   : > { %v3285_v0 = vld [vmem:[%s4762_s1 + $0x274] ss:$8 sps:$4 sm:$0xff]   ;;  %v3289_v2 = vld [vmem:[%s4762_s1 + $0x270] ss:$8 sps:$4 sm:$0xff]   ;;  %v3291_v4 = vld [vmem:[%s4762_s1 + $0x264] ss:$8 sps:$4 sm:$0xff]  }
   0xc   : > { %v3287_v1 = vld [vmem:[%s4762_s1 + $0x374] ss:$8 sps:$4 sm:$0xff]   ;;  %801 = vmatprep.subr.bf16.mxu0 %v3285_v0  ;;  %v3290_v3 = vld [vmem:[%s4762_s1 + $0x370] ss:$8 sps:$4 sm:$0xff]   ;;  %v3293_v5 = vld [vmem:[%s4762_s1 + $0x364] ss:$8 sps:$4 sm:$0xff]  }
   0xd   : > { %842 = vmatprep.subr.bf16.mxu1 %v3287_v1  ;;  %802 = vmatpush1.bf16.msra.mxu0 %v3289_v2  ;;  %v3295_v6 = vld [vmem:[%s4762_s1 + $0x260] ss:$8 sps:$4 sm:$0xff]   ;;  %v3297_v8 = vld [vmem:[%s4762_s1 + $0x254] ss:$8 sps:$4 sm:$0xff]   ;;  %v3301_v10 = vld [vmem:[%s4762_s1 + $0x250] ss:$8 sps:$4 sm:$0xff]  }
   0xe   : > { %843 = vmatpush1.bf16.msra.mxu1 %v3290_v3  ;;  %803 = vmatprep.subr.bf16.mxu0 %v3291_v4  ;;  %v3296_v7 = vld [vmem:[%s4762_s1 + $0x360] ss:$8 sps:$4 sm:$0xff]   ;;  %v3299_v9 = vld [vmem:[%s4762_s1 + $0x354] ss:$8 sps:$4 sm:$0xff]   ;;  %v3302_v11 = vld [vmem:[%s4762_s1 + $0x350] ss:$8 sps:$4 sm:$0xff]  }
   0xf   : > { %844 = vmatprep.subr.bf16.mxu1 %v3293_v5  ;;  %v3303_v12 = vld [vmem:[%s4762_s1 + $0x244] ss:$8 sps:$4 sm:$0xff]   ;;  %v3307_v14 = vld [vmem:[%s4762_s1 + $0x240] ss:$8 sps:$4 sm:$0xff]   ;;  %v3309_v16 = vld [vmem:[%s4762_s1 + $0x234] ss:$8 sps:$4 sm:$0xff]  }
  0x10   : > { %v3305_v13 = vld [vmem:[%s4762_s1 + $0x344] ss:$8 sps:$4 sm:$0xff]   ;;  %v3308_v15 = vld [vmem:[%s4762_s1 + $0x340] ss:$8 sps:$4 sm:$0xff]   ;;  %v3311_v17 = vld [vmem:[%s4762_s1 + $0x334] ss:$8 sps:$4 sm:$0xff]  }
  0x11   : > { %804 = vmatpush1.bf16.msra.mxu0 %v3295_v6  ;;  %v3313_v18 = vld [vmem:[%s4762_s1 + $0x230] ss:$8 sps:$4 sm:$0xff]   ;;  %v3315_v20 = vld [vmem:[%s4762_s1 + $0x224] ss:$8 sps:$4 sm:$0xff]   ;;  %v3319_v22 = vld [vmem:[%s4762_s1 + $0x220] ss:$8 sps:$4 sm:$0xff]  }
  0x12   : > { %845 = vmatpush1.bf16.msra.mxu1 %v3296_v7  ;;  %805 = vmatprep.subr.bf16.mxu0 %v3297_v8  ;;  %v3314_v19 = vld [vmem:[%s4762_s1 + $0x330] ss:$8 sps:$4 sm:$0xff]   ;;  %v3317_v21 = vld [vmem:[%s4762_s1 + $0x324] ss:$8 sps:$4 sm:$0xff]   ;;  %v3320_v23 = vld [vmem:[%s4762_s1 + $0x320] ss:$8 sps:$4 sm:$0xff]  }
  0x13   : > { %846 = vmatprep.subr.bf16.mxu1 %v3299_v9  ;;  %v3321_v24 = vld [vmem:[%s4762_s1 + $0x214] ss:$8 sps:$4 sm:$0xff]   ;;  %v3325_v26 = vld [vmem:[%s4762_s1 + $0x210] ss:$8 sps:$4 sm:$0xff]   ;;  %v3327_v28 = vld [vmem:[%s4762_s1 + $0x204] ss:$8 sps:$4 sm:$0xff]  }
  0x14   : > { %v3323_v25 = vld [vmem:[%s4762_s1 + $0x314] ss:$8 sps:$4 sm:$0xff]   ;;  %v3326_v27 = vld [vmem:[%s4762_s1 + $0x310] ss:$8 sps:$4 sm:$0xff]   ;;  %v3329_v29 = vld [vmem:[%s4762_s1 + $0x304] ss:$8 sps:$4 sm:$0xff]  }
  0x15   : > { %806 = vmatpush1.bf16.msra.mxu0 %v3301_v10  ;;  %v3331_v30 = vld [vmem:[%s4762_s1 + $0x200] ss:$8 sps:$4 sm:$0xff]   ;;  %v3333_v32 = vld [vmem:[%s4762_s1 + $0x2f4] ss:$8 sps:$4 sm:$0xff]   ;;  %v3337_v34 = vld [vmem:[%s4762_s1 + $0x2f0] ss:$8 sps:$4 sm:$0xff]  }
  0x16   : > { %847 = vmatpush1.bf16.msra.mxu1 %v3302_v11  ;;  %807 = vmatprep.subr.bf16.mxu0 %v3303_v12  ;;  %v3332_v31 = vld [vmem:[%s4762_s1 + $0x300] ss:$8 sps:$4 sm:$0xff]   ;;  %v3335_v33 = vld [vmem:[%s4762_s1 + $0x3f4] ss:$8 sps:$4 sm:$0xff]   ;;  %v3338_v35 = vld [vmem:[%s4762_s1 + $0x3f0] ss:$8 sps:$4 sm:$0xff]  }
  0x17   : > { %848 = vmatprep.subr.bf16.mxu1 %v3305_v13  ;;  %v3339_v36 = vld [vmem:[%s4762_s1 + $0x2e4] ss:$8 sps:$4 sm:$0xff]   ;;  %s4771_s28 = smov (!%p296_p3, %s2758_s28), 1  ;;  %v3343_v38 = vld [vmem:[%s4762_s1 + $0x2e0] ss:$8 sps:$4 sm:$0xff]   ;;  %vm2322_vm0 = vcmask 1045504  }
  0x18   : > { %v3341_v37 = vld [vmem:[%s4762_s1 + $0x3e4] ss:$8 sps:$4 sm:$0xff]   ;;  %v3344_v39 = vld [vmem:[%s4762_s1 + $0x3e0] ss:$8 sps:$4 sm:$0xff]   ;;  %v3345_v40 = vld [vmem:[%s4762_s1 + $0x2d4] ss:$8 sps:$4 sm:$0xff]  }
  0x19   : > { %808 = vmatpush1.bf16.msra.mxu0 %v3307_v14  ;;  %s3235_s9 = sshll.u32 %s4771_s28, 5  ;;  %v3347_v41 = vld [vmem:[%s4762_s1 + $0x3d4] ss:$8 sps:$4 sm:$0xff]   ;;  %v3349_v42 = vld [vmem:[%s4762_s1 + $0x2d0] ss:$8 sps:$4 sm:$0xff]   ;;  %vm2420_vm1 = vcmask 1040384  }
  0x1a   : > { %849 = vmatpush1.bf16.msra.mxu1 %v3308_v15  ;;  %809 = vmatprep.subr.bf16.mxu0 %v3309_v16  ;;  %v3350_v43 = vld [vmem:[%s4762_s1 + $0x3d0] ss:$8 sps:$4 sm:$0xff]   ;;  %s3893_s18 = scalar_lea.vmem %s4761_s0, %s3235_s9  ;;  %v3351_v44 = vld [vmem:[%s4762_s1 + $0x2c4] ss:$8 sps:$4 sm:$0xff]   ;;  %v3355_v46 = vld [vmem:[%s4762_s1 + $0x2c0] ss:$8 sps:$4 sm:$0xff]  }
  0x1b   : > { %850 = vmatprep.subr.bf16.mxu1 %v3311_v17  ;;  %v3353_v45 = vld [vmem:[%s4762_s1 + $0x3c4] ss:$8 sps:$4 sm:$0xff]   ;;  %v3356_v50 = vld [vmem:[%s4762_s1 + $0x3c0] ss:$8 sps:$4 sm:$0xff]   ;;  %v3357_v51 = vld [vmem:[%s4762_s1 + $0x2b4] ss:$8 sps:$4 sm:$0xff]  }
  0x1c   : > { %v372_v47 = vld [vmem:[%s3893_s18] sm:$0xff]  ;;  %v373_v49 = vld [vmem:[%s3893_s18 + $0x8] sm:$0xff]  ;;  %v3359_v53 = vld [vmem:[%s4762_s1 + $0x3b4] ss:$8 sps:$4 sm:$0xff]   ;;  %vm2539_vm2 = vcmask 130048   ;;  %s3236_s17 = sshll.u32 %s4771_s28, 3 }
  0x1d   : > { %810 = vmatpush1.bf16.msra.mxu0 %v3313_v18  ;;  %v2832_v48 = vcombine.high %v372_v47, %v372_v47  ;;  %v2834_v52 = vcombine.high %v373_v49, %v373_v49  ;;  %v3361_v59 = vld [vmem:[%s4762_s1 + $0x2b0] ss:$8 sps:$4 sm:$0xff]   ;;  %v3363_v62 = vld [vmem:[%s4762_s1 + $0x2a4] ss:$8 sps:$4 sm:$0xff]   ;;  %v2831_v2 = vcombine.low %v372_v47, %v372_v47  ;;  %v2833_v3 = vcombine.low %v373_v49, %v373_v49  ;;  %v3367_v4 = vld [vmem:[%s4762_s1 + $0x2a0] ss:$8 sps:$4 sm:$0xff]   ;;  %s305_s21 = scalar_lea.vmem %s4769_s8, %s3236_s17 }
  0x1e   : > { %851 = vmatpush1.bf16.msra.mxu1 %v3314_v19  ;;  %811 = vmatprep.subr.bf16.mxu0 %v3315_v20  ;;  %v3362_v60 = vld [vmem:[%s4762_s1 + $0x3b0] ss:$8 sps:$4 sm:$0xff]   ;;  %v3365_v63 = vld [vmem:[%s4762_s1 + $0x3a4] ss:$8 sps:$4 sm:$0xff]   ;;  %v3368_v5 = vld [vmem:[%s4762_s1 + $0x3a0] ss:$8 sps:$4 sm:$0xff]  }
  0x1f   : > { %852 = vmatprep.subr.bf16.mxu1 %v3317_v21  ;;  %v457_v54 = vshrl.u32 %v2832_v48, 16  ;;  %v459_v55 = vshll.u32 %v2832_v48, 16  ;;  %v471_v56 = vshrl.u32 %v2834_v52, 16  ;;  %v473_v57 = vshll.u32 %v2834_v52, 16  ;;  %v3369_v6 = vld [vmem:[%s4762_s1 + $0x294] ss:$8 sps:$4 sm:$0xff]  }
  0x20   : > { %v3371_v7 = vld [vmem:[%s4762_s1 + $0x394] ss:$8 sps:$4 sm:$0xff]   ;;  %v452_v8 = vshll.u32 %v2831_v2, 16  ;;  %v466_v9 = vshll.u32 %v2833_v3, 16  ;;  %v3373_v10 = vld [vmem:[%s4762_s1 + $0x290] ss:$8 sps:$4 sm:$0xff]  }
  0x21   : > { %812 = vmatpush1.bf16.msra.mxu0 %v3319_v22  ;;  %v461_v58 = vrot.slane %v459_v55, 1  ;;  %v475_v61 = vrot.slane %v473_v57, 1  ;;  %v3374_v11 = vld [vmem:[%s4762_s1 + $0x390] ss:$8 sps:$4 sm:$0xff]   ;;  %v3375_v12 = vld [vmem:[%s4762_s1 + $0x284] ss:$8 sps:$4 sm:$0xff]  }
  0x22   : > { %853 = vmatpush1.bf16.msra.mxu1 %v3320_v23  ;;  %813 = vmatprep.subr.bf16.mxu0 %v3321_v24  ;;  %v3377_v13 = vld [vmem:[%s4762_s1 + $0x384] ss:$8 sps:$4 sm:$0xff]   ;;  %v450_v14 = vshrl.u32 %v2831_v2, 16  ;;  %v454_v15 = vrot.slane %v452_v8, 1  ;;  %v464_v16 = vshrl.u32 %v2833_v3, 16  ;;  %v468_v17 = vrot.slane %v466_v9, 1 }
  0x23   : > { %854 = vmatprep.subr.bf16.mxu1 %v3323_v25  ;;  %v462_v0 = vor.u32 %v461_v58, %v457_v54  ;;  %v476_v1 = vor.u32 %v475_v61, %v471_v56  ;;  %v3379_v18 = vld [vmem:[%s4762_s1 + $0x280] ss:$8 sps:$4 sm:$0xff]   ;;  %v3387_v20 = vld [vmem:[%s4762_s1 + $0x74] ss:$8 sps:$4 sm:$0xff]   ;;  %v3385_v24 = vld [vmem:[%s4762_s1 + $0x70] ss:$8 sps:$4 sm:$0xff]  }
  0x24   : > { %v3380_v19 = vld [vmem:[%s4762_s1 + $0x380] ss:$8 sps:$4 sm:$0xff]   ;;  %v3390_v21 = vld [vmem:[%s4762_s1 + $0x174] ss:$8 sps:$4 sm:$0xff]   ;;  %v455_v22 = vor.u32 %v454_v15, %v450_v14  ;;  %v469_v23 = vor.u32 %v468_v17, %v464_v16  ;;  %v3388_v25 = vld [vmem:[%s4762_s1 + $0x170] ss:$8 sps:$4 sm:$0xff]  }
  0x25   : > { %814 = vmatpush1.bf16.msra.mxu0 %v3325_v26  ;;  %833 = vmatprep.mubr.bf16.mxu0 %v462_v0  ;;  %v3393_v26 = vld [vmem:[%s4762_s1 + $0x64] ss:$8 sps:$4 sm:$0xff]   ;;  %v3426_v47 = vld [vmem:[%s4762_s1 + $0x114] ss:$8 sps:$4 sm:$0xff]   ;;  %v3421_v48 = vld [vmem:[%s4762_s1 + $0x10] ss:$8 sps:$4 sm:$0xff]  }
  0x26   : > { %855 = vmatpush1.bf16.msra.mxu1 %v3326_v27  ;;  %815 = vmatprep.subr.bf16.mxu0 %v3327_v28  ;;  %v3396_v27 = vld [vmem:[%s4762_s1 + $0x164] ss:$8 sps:$4 sm:$0xff]   ;;  %v3391_v28 = vld [vmem:[%s4762_s1 + $0x60] ss:$8 sps:$4 sm:$0xff]   ;;  %v3424_v49 = vld [vmem:[%s4762_s1 + $0x110] ss:$8 sps:$4 sm:$0xff]  }
  0x27   : > { %856 = vmatprep.subr.bf16.mxu1 %v3329_v29  ;;  %874 = vmatprep.mubr.bf16.mxu1 %v476_v1  ;;  %v3394_v29 = vld [vmem:[%s4762_s1 + $0x160] ss:$8 sps:$4 sm:$0xff]   ;;  %v3429_v52 = vld [vmem:[%s4762_s1 + $0x4] ss:$8 sps:$4 sm:$0xff]   ;;  %v3435_v58 = vld [vmem:[%s4762_s1 + $0xf4] ss:$8 sps:$4 sm:$0xff]  }
  0x28   : > { %v3432_v54 = vld [vmem:[%s4762_s1 + $0x104] ss:$8 sps:$4 sm:$0xff]   ;;  %v3427_v56 = vld [vmem:[%s4762_s1] ss:$8 sps:$4 sm:$0xff]   ;;  %v3436_v61 = vld [vmem:[%s4762_s1 + $0x1f0] ss:$8 sps:$4 sm:$0xff]  }
  0x29   : > { %816 = vmatpush1.bf16.msra.mxu0 %v3331_v30  ;;  %v3399_v30 = vld [vmem:[%s4762_s1 + $0x54] ss:$8 sps:$4 sm:$0xff]   ;;  %v3430_v57 = vld [vmem:[%s4762_s1 + $0x100] ss:$8 sps:$4 sm:$0xff]   ;;  %v3465_v14 = vld [vmem:[%s4762_s1 + $0xa4] ss:$8 sps:$4 sm:$0xff]  }
  0x2a   : > { %857 = vmatpush1.bf16.msra.mxu1 %v3332_v31  ;;  %817 = vmatprep.subr.bf16.mxu0 %v3333_v32  ;;  %v3402_v31 = vld [vmem:[%s4762_s1 + $0x154] ss:$8 sps:$4 sm:$0xff]   ;;  %v3397_v32 = vld [vmem:[%s4762_s1 + $0x50] ss:$8 sps:$4 sm:$0xff]   ;;  %v3439_v0 = vld [vmem:[%s4762_s1 + $0xe0] ss:$8 sps:$4 sm:$0xff]  }
  0x2b   : > { %858 = vmatprep.subr.bf16.mxu1 %v3335_v33  ;;  %v3400_v33 = vld [vmem:[%s4762_s1 + $0x150] ss:$8 sps:$4 sm:$0xff]   ;;  %v3442_v1 = vld [vmem:[%s4762_s1 + $0x1e0] ss:$8 sps:$4 sm:$0xff]   ;;  %v3447_v2 = vld [vmem:[%s4762_s1 + $0xd4] ss:$8 sps:$4 sm:$0xff]  }
  0x2c   : > { %v3450_v3 = vld [vmem:[%s4762_s1 + $0x1d4] ss:$8 sps:$4 sm:$0xff]   ;;  %v3451_v8 = vld [vmem:[%s4762_s1 + $0xc0] ss:$8 sps:$4 sm:$0xff]   ;;  %v3468_v15 = vld [vmem:[%s4762_s1 + $0x1a4] ss:$8 sps:$4 sm:$0xff]  }
  0x2d   : > { %818 = vmatpush2.bf16.msra.mxu0 %v3337_v34  ;;  %v3405_v34 = vld [vmem:[%s4762_s1 + $0x44] ss:$8 sps:$4 sm:$0xff]   ;;  %v3454_v9 = vld [vmem:[%s4762_s1 + $0x1c0] ss:$8 sps:$4 sm:$0xff]  }
  0x2e   : > { %859 = vmatpush2.bf16.msra.mxu1 %v3338_v35  ;;  %819 = vmatprep.subr.bf16.mxu0 %v3339_v36  ;;  %v3408_v35 = vld [vmem:[%s4762_s1 + $0x144] ss:$8 sps:$4 sm:$0xff]   ;;  %v3403_v36 = vld [vmem:[%s4762_s1 + $0x40] ss:$8 sps:$4 sm:$0xff]  }
  0x2f   : > { %860 = vmatprep.subr.bf16.mxu1 %v3341_v37  ;;  %v3406_v37 = vld [vmem:[%s4762_s1 + $0x140] ss:$8 sps:$4 sm:$0xff]  }
  0x30   : > { %v3463_v16 = vld [vmem:[%s4762_s1 + $0xa0] ss:$8 sps:$4 sm:$0xff]  }
  0x31   : > { %820 = vmatpush2.bf16.msra.mxu0 %v3343_v38  ;;  %v3411_v38 = vld [vmem:[%s4762_s1 + $0x34] ss:$8 sps:$4 sm:$0xff]   ;;  %v3466_v17 = vld [vmem:[%s4762_s1 + $0x1a0] ss:$8 sps:$4 sm:$0xff]  }
  0x32   : > { %861 = vmatpush2.bf16.msra.mxu1 %v3344_v39  ;;  %821 = vmatprep.subr.bf16.mxu0 %v3345_v40  ;;  %v3414_v39 = vld [vmem:[%s4762_s1 + $0x134] ss:$8 sps:$4 sm:$0xff]   ;;  %v3409_v40 = vld [vmem:[%s4762_s1 + $0x30] ss:$8 sps:$4 sm:$0xff]  }
  0x33   : > { %862 = vmatprep.subr.bf16.mxu1 %v3347_v41  ;;  %v3412_v41 = vld [vmem:[%s4762_s1 + $0x130] ss:$8 sps:$4 sm:$0xff]  }
  0x35   : > { %822 = vmatpush2.bf16.msra.mxu0 %v3349_v42  ;;  %v3417_v42 = vld [vmem:[%s4762_s1 + $0x24] ss:$8 sps:$4 sm:$0xff]  }
  0x36   : > { %863 = vmatpush2.bf16.msra.mxu1 %v3350_v43  ;;  %823 = vmatprep.subr.bf16.mxu0 %v3351_v44  ;;  %v3420_v43 = vld [vmem:[%s4762_s1 + $0x124] ss:$8 sps:$4 sm:$0xff]   ;;  %v3415_v44 = vld [vmem:[%s4762_s1 + $0x20] ss:$8 sps:$4 sm:$0xff]  }
  0x37   : > { %864 = vmatprep.subr.bf16.mxu1 %v3353_v45  ;;  %v3418_v45 = vld [vmem:[%s4762_s1 + $0x120] ss:$8 sps:$4 sm:$0xff]  }
  0x39   : > { %824 = vmatpush2.bf16.msra.mxu0 %v3355_v46  ;;  %v3423_v46 = vld [vmem:[%s4762_s1 + $0x14] ss:$8 sps:$4 sm:$0xff]  }
  0x3a   : > { %865 = vmatpush2.bf16.msra.mxu1 %v3356_v50  ;;  %825 = vmatprep.subr.bf16.mxu0 %v3357_v51  ;;  %v4042_v50 = vld [vmem:[%s3893_s18] sm:$0x77]  ;;  %v4045_v51 = vld [vmem:[%s3893_s18 + $0x8] sm:$0x77] }
  0x3b   : > { %866 = vmatprep.subr.bf16.mxu1 %v3359_v53  ;;  %v2900_v53 = vcombine.high %v4042_v50, %v4042_v50  ;;  %v2902_v55 = vcombine.high %v4045_v51, %v4045_v51 }
  0x3d   : > { %826 = vmatpush2.bf16.msra.mxu0 %v3361_v59  ;;  %v3438_v59 = vld [vmem:[%s4762_s1 + $0x1f4] ss:$8 sps:$4 sm:$0xff]  }
  0x3e   : > { %867 = vmatpush2.bf16.msra.mxu1 %v3362_v60  ;;  %827 = vmatprep.subr.bf16.mxu0 %v3363_v62  ;;  %v3433_v60 = vld [vmem:[%s4762_s1 + $0xf0] ss:$8 sps:$4 sm:$0xff]   ;;  %v3441_v62 = vld [vmem:[%s4762_s1 + $0xe4] ss:$8 sps:$4 sm:$0xff]  }
  0x3f   : > { %868 = vmatprep.subr.bf16.mxu1 %v3365_v63  ;;  %v3444_v63 = vld [vmem:[%s4762_s1 + $0x1e4] ss:$8 sps:$4 sm:$0xff]  }
  0x41   : > { %828 = vmatpush2.bf16.msra.mxu0 %v3367_v4  ;;  %v3445_v4 = vld [vmem:[%s4762_s1 + $0xd0] ss:$8 sps:$4 sm:$0xff]  }
  0x42   : > { %869 = vmatpush2.bf16.msra.mxu1 %v3368_v5  ;;  %829 = vmatprep.subr.bf16.mxu0 %v3369_v6  ;;  %v3448_v5 = vld [vmem:[%s4762_s1 + $0x1d0] ss:$8 sps:$4 sm:$0xff]   ;;  %v3453_v6 = vld [vmem:[%s4762_s1 + $0xc4] ss:$8 sps:$4 sm:$0xff]  }
  0x43   : > { %870 = vmatprep.subr.bf16.mxu1 %v3371_v7  ;;  %v3456_v7 = vld [vmem:[%s4762_s1 + $0x1c4] ss:$8 sps:$4 sm:$0xff]  }
  0x45   : > { %830 = vmatpush2.bf16.msra.mxu0 %v3373_v10  ;;  %v3459_v10 = vld [vmem:[%s4762_s1 + $0xb4] ss:$8 sps:$4 sm:$0xff]  }
  0x46   : > { %871 = vmatpush2.bf16.msra.mxu1 %v3374_v11  ;;  %831 = vmatprep.subr.bf16.mxu0 %v3375_v12  ;;  %v3462_v11 = vld [vmem:[%s4762_s1 + $0x1b4] ss:$8 sps:$4 sm:$0xff]   ;;  %v3457_v12 = vld [vmem:[%s4762_s1 + $0xb0] ss:$8 sps:$4 sm:$0xff]  }
  0x47   : > { %872 = vmatprep.subr.bf16.mxu1 %v3377_v13  ;;  %v3460_v13 = vld [vmem:[%s4762_s1 + $0x1b0] ss:$8 sps:$4 sm:$0xff]  }
  0x49   : > { %832 = vmatpush2.bf16.msra.mxu0 %v3379_v18  ;;  %v3471_v18 = vld [vmem:[%s4762_s1 + $0x94] ss:$8 sps:$4 sm:$0xff]  }
  0x4a   : > { %873 = vmatpush2.bf16.msra.mxu1 %v3380_v19  ;;  %1217 = vmatprep.subr.bf16.mxu0 %v3387_v20  ;;  %v3474_v19 = vld [vmem:[%s4762_s1 + $0x194] ss:$8 sps:$4 sm:$0xff]   ;;  %v3469_v20 = vld [vmem:[%s4762_s1 + $0x90] ss:$8 sps:$4 sm:$0xff]  }
  0x4b   : > { %1258 = vmatprep.subr.bf16.mxu1 %v3390_v21  ;;  %v3472_v21 = vld [vmem:[%s4762_s1 + $0x190] ss:$8 sps:$4 sm:$0xff]  }
  0x4c   : > { %834 = vmatmul.mubr.bf16.vlgmr.msra.gmra.mxu0 %v455_v22  ;;  %v3477_v22 = vld [vmem:[%s4762_s1 + $0x84] ss:$8 sps:$4 sm:$0xff]  }
  0x4d   : > { %875 = vmatmul.mubr.bf16.vlgmr.msra.gmra.mxu1 %v469_v23  ;;  %1218 = vmatpush1.bf16.msra.mxu0 %v3385_v24  ;;  %v3480_v23 = vld [vmem:[%s4762_s1 + $0x184] ss:$8 sps:$4 sm:$0xff]   ;;  %v3475_v24 = vld [vmem:[%s4762_s1 + $0x80] ss:$8 sps:$4 sm:$0xff]  }
  0x4e   : > { %1259 = vmatpush1.bf16.msra.mxu1 %v3388_v25  ;;  %1219 = vmatprep.subr.bf16.mxu0 %v3393_v26  ;;  %v3478_v25 = vld [vmem:[%s4762_s1 + $0x180] ss:$8 sps:$4 sm:$0xff]   ;;  %v3487_v26 = vld [vmem:[%s4762_s1 + $0x474] ss:$8 sps:$4 sm:$0xff]  }
  0x4f   : > { %1260 = vmatprep.subr.bf16.mxu1 %v3396_v27  ;;  %1249 = vmatprep.mubr.bf16.mxu0 %v2900_v53  ;;  %v3490_v27 = vld [vmem:[%s4762_s1 + $0x574] ss:$8 sps:$4 sm:$0xff]   ;;  %v3508_v53 = vld [vmem:[%s4762_s1 + $0x544] ss:$8 sps:$4 sm:$0xff]  }
  0x50   : > { %1290 = vmatprep.mubr.bf16.mxu1 %v2902_v55 }
  0x51   : > { %1220 = vmatpush1.bf16.msra.mxu0 %v3391_v28  ;;  %v2899_v28 = vcombine.low %v4042_v50, %v4042_v50 }
  0x52   : > { %1261 = vmatpush1.bf16.msra.mxu1 %v3394_v29  ;;  %1221 = vmatprep.subr.bf16.mxu0 %v3399_v30  ;;  %v2901_v29 = vcombine.low %v4045_v51, %v4045_v51  ;;  %v3485_v30 = vld [vmem:[%s4762_s1 + $0x470] ss:$8 sps:$4 sm:$0xff]  }
  0x53   : > { %1262 = vmatprep.subr.bf16.mxu1 %v3402_v31  ;;  %v3488_v31 = vld [vmem:[%s4762_s1 + $0x570] ss:$8 sps:$4 sm:$0xff]  }
  0x55   : > { %1222 = vmatpush1.bf16.msra.mxu0 %v3397_v32  ;;  %v3493_v32 = vld [vmem:[%s4762_s1 + $0x464] ss:$8 sps:$4 sm:$0xff]  }
  0x56   : > { %1263 = vmatpush1.bf16.msra.mxu1 %v3400_v33  ;;  %1223 = vmatprep.subr.bf16.mxu0 %v3405_v34  ;;  %v3496_v33 = vld [vmem:[%s4762_s1 + $0x564] ss:$8 sps:$4 sm:$0xff]   ;;  %v3491_v34 = vld [vmem:[%s4762_s1 + $0x460] ss:$8 sps:$4 sm:$0xff]  }
  0x57   : > { %1264 = vmatprep.subr.bf16.mxu1 %v3408_v35  ;;  %v3494_v35 = vld [vmem:[%s4762_s1 + $0x560] ss:$8 sps:$4 sm:$0xff]  }
  0x59   : > { %1224 = vmatpush1.bf16.msra.mxu0 %v3403_v36  ;;  %v4188_v36 = vld [vmem:[%s3893_s18] sm:$0xee] }
  0x5a   : > { %1265 = vmatpush1.bf16.msra.mxu1 %v3406_v37  ;;  %1225 = vmatprep.subr.bf16.mxu0 %v3411_v38  ;;  %v4191_v37 = vld [vmem:[%s3893_s18 + $0x10] sm:$0x11]  ;;  %v4194_v38 = vld [vmem:[%s3893_s18 + $0x8] sm:$0xee] }
  0x5b   : > { %1266 = vmatprep.subr.bf16.mxu1 %v3414_v39  ;;  %v4197_v39 = vld [vmem:[%s3893_s18 + $0x18] sm:$0x11] }
  0x5d   : > { %1226 = vmatpush1.bf16.msra.mxu0 %v3409_v40  ;;  %v3499_v40 = vld [vmem:[%s4762_s1 + $0x454] ss:$8 sps:$4 sm:$0xff]  }
  0x5e   : > { %1267 = vmatpush1.bf16.msra.mxu1 %v3412_v41  ;;  %1227 = vmatprep.subr.bf16.mxu0 %v3417_v42  ;;  %v3032_v41 = vcombine.high %v4188_v36, %v4191_v37  ;;  %v3502_v42 = vld [vmem:[%s4762_s1 + $0x554] ss:$8 sps:$4 sm:$0xff]  }
  0x5f   : > { %1268 = vmatprep.subr.bf16.mxu1 %v3420_v43  ;;  %v3034_v43 = vcombine.high %v4194_v38, %v4197_v39 }
  0x61   : > { %1228 = vmatpush1.bf16.msra.mxu0 %v3415_v44  ;;  %v1393_v44 = vshrl.u32 %v3032_v41, 16 }
  0x62   : > { %1269 = vmatpush1.bf16.msra.mxu1 %v3418_v45  ;;  %1229 = vmatprep.subr.bf16.mxu0 %v3423_v46  ;;  %v1396_v45 = vshll.u32 %v3032_v41, 16  ;;  %v3497_v46 = vld [vmem:[%s4762_s1 + $0x450] ss:$8 sps:$4 sm:$0xff]   ;;  %v3566_v41 = vld [vmem:[%s4762_s1 + $0x5a0] ss:$8 sps:$4 sm:$0xff]  }
  0x63   : > { %1270 = vmatprep.subr.bf16.mxu1 %v3426_v47  ;;  %v1409_v47 = vshrl.u32 %v3034_v43, 16  ;;  %v1395_v50 = vrot.slane %v1393_v44, 1 }
  0x64   : > { %v1398_v51 = vrot.slane %v1396_v45, 2 }
  0x65   : > { %1230 = vmatpush1.bf16.msra.mxu0 %v3421_v48  ;;  %v1412_v48 = vshll.u32 %v3034_v43, 16 }
  0x66   : > { %1271 = vmatpush1.bf16.msra.mxu1 %v3424_v49  ;;  %1231 = vmatprep.subr.bf16.mxu0 %v3429_v52  ;;  %v3500_v49 = vld [vmem:[%s4762_s1 + $0x550] ss:$8 sps:$4 sm:$0xff]   ;;  %v3505_v52 = vld [vmem:[%s4762_s1 + $0x444] ss:$8 sps:$4 sm:$0xff]  }
  0x67   : > { %1272 = vmatprep.subr.bf16.mxu1 %v3432_v54  ;;  %v1411_v54 = vrot.slane %v1409_v47, 1  ;;  %v1414_v55 = vrot.slane %v1412_v48, 2  ;;  %v3572_v47 = vld [vmem:[%s4762_s1 + $0x590] ss:$8 sps:$4 sm:$0xff]   ;;  %v3577_v48 = vld [vmem:[%s4762_s1 + $0x484] ss:$8 sps:$4 sm:$0xff]  }
  0x69   : > { %1232 = vmatpush1.bf16.msra.mxu0 %v3427_v56  ;;  %v1399_v56 = vor.u32 %v1398_v51, %v1395_v50 }
  0x6a   : > { %1273 = vmatpush1.bf16.msra.mxu1 %v3430_v57  ;;  %1233 = vmatprep.subr.bf16.mxu0 %v3435_v58  ;;  %v3503_v57 = vld [vmem:[%s4762_s1 + $0x440] ss:$8 sps:$4 sm:$0xff]   ;;  %v1415_v58 = vor.u32 %v1414_v55, %v1411_v54 }
  0x6b   : > { %1274 = vmatprep.subr.bf16.mxu1 %v3438_v59  ;;  %v3506_v59 = vld [vmem:[%s4762_s1 + $0x540] ss:$8 sps:$4 sm:$0xff]  }
  0x6c   : > { %v4370_v54 = vld [vmem:[%s3893_s18] sm:$0xcc]  ;;  %v4373_v55 = vld [vmem:[%s3893_s18 + $0x8] sm:$0xcc] }
  0x6d   : > { %1234 = vmatpush2.bf16.msra.mxu0 %v3433_v60  ;;  %v3511_v60 = vld [vmem:[%s4762_s1 + $0x434] ss:$8 sps:$4 sm:$0xff]  }
  0x6e   : > { %1275 = vmatpush2.bf16.msra.mxu1 %v3436_v61  ;;  %1235 = vmatprep.subr.bf16.mxu0 %v3441_v62  ;;  %v3514_v61 = vld [vmem:[%s4762_s1 + $0x534] ss:$8 sps:$4 sm:$0xff]   ;;  %v3509_v62 = vld [vmem:[%s4762_s1 + $0x430] ss:$8 sps:$4 sm:$0xff]  }
  0x6f   : > { %1276 = vmatprep.subr.bf16.mxu1 %v3444_v63  ;;  %v3512_v63 = vld [vmem:[%s4762_s1 + $0x530] ss:$8 sps:$4 sm:$0xff]  }
  0x71   : > { %1236 = vmatpush2.bf16.msra.mxu0 %v3439_v0  ;;  %v3517_v0 = vld [vmem:[%s4762_s1 + $0x424] ss:$8 sps:$4 sm:$0xff]  }
  0x72   : > { %1277 = vmatpush2.bf16.msra.mxu1 %v3442_v1  ;;  %1237 = vmatprep.subr.bf16.mxu0 %v3447_v2  ;;  %v3520_v1 = vld [vmem:[%s4762_s1 + $0x524] ss:$8 sps:$4 sm:$0xff]   ;;  %v3515_v2 = vld [vmem:[%s4762_s1 + $0x420] ss:$8 sps:$4 sm:$0xff]  }
  0x73   : > { %1278 = vmatprep.subr.bf16.mxu1 %v3450_v3  ;;  %v3518_v3 = vld [vmem:[%s4762_s1 + $0x520] ss:$8 sps:$4 sm:$0xff]  }
  0x75   : > { %1238 = vmatpush2.bf16.msra.mxu0 %v3445_v4  ;;  %v3523_v4 = vld [vmem:[%s4762_s1 + $0x414] ss:$8 sps:$4 sm:$0xff]  }
  0x76   : > { %1279 = vmatpush2.bf16.msra.mxu1 %v3448_v5  ;;  %1239 = vmatprep.subr.bf16.mxu0 %v3453_v6  ;;  %v3526_v5 = vld [vmem:[%s4762_s1 + $0x514] ss:$8 sps:$4 sm:$0xff]   ;;  %v3521_v6 = vld [vmem:[%s4762_s1 + $0x410] ss:$8 sps:$4 sm:$0xff]  }
  0x77   : > { %1280 = vmatprep.subr.bf16.mxu1 %v3456_v7  ;;  %v3524_v7 = vld [vmem:[%s4762_s1 + $0x510] ss:$8 sps:$4 sm:$0xff]  }
  0x79   : > { %1240 = vmatpush2.bf16.msra.mxu0 %v3451_v8  ;;  %v3529_v8 = vld [vmem:[%s4762_s1 + $0x404] ss:$8 sps:$4 sm:$0xff]  }
  0x7a   : > { %1281 = vmatpush2.bf16.msra.mxu1 %v3454_v9  ;;  %1241 = vmatprep.subr.bf16.mxu0 %v3459_v10  ;;  %v3532_v9 = vld [vmem:[%s4762_s1 + $0x504] ss:$8 sps:$4 sm:$0xff]   ;;  %v3527_v10 = vld [vmem:[%s4762_s1 + $0x400] ss:$8 sps:$4 sm:$0xff]  }
  0x7b   : > { %1282 = vmatprep.subr.bf16.mxu1 %v3462_v11  ;;  %v3530_v11 = vld [vmem:[%s4762_s1 + $0x500] ss:$8 sps:$4 sm:$0xff]  }
  0x7d   : > { %1242 = vmatpush2.bf16.msra.mxu0 %v3457_v12  ;;  %v3535_v12 = vld [vmem:[%s4762_s1 + $0x4f4] ss:$8 sps:$4 sm:$0xff]  }
  0x7e   : > { %1283 = vmatpush2.bf16.msra.mxu1 %v3460_v13  ;;  %1243 = vmatprep.subr.bf16.mxu0 %v3465_v14  ;;  %v3538_v13 = vld [vmem:[%s4762_s1 + $0x5f4] ss:$8 sps:$4 sm:$0xff]   ;;  %v3533_v14 = vld [vmem:[%s4762_s1 + $0x4f0] ss:$8 sps:$4 sm:$0xff]  }
  0x7f   : > { %1284 = vmatprep.subr.bf16.mxu1 %v3468_v15  ;;  %v3536_v15 = vld [vmem:[%s4762_s1 + $0x5f0] ss:$8 sps:$4 sm:$0xff]  }
  0x81   : > { %1244 = vmatpush2.bf16.msra.mxu0 %v3463_v16  ;;  %v3541_v16 = vld [vmem:[%s4762_s1 + $0x4e4] ss:$8 sps:$4 sm:$0xff]  }
  0x82   : > { %1285 = vmatpush2.bf16.msra.mxu1 %v3466_v17  ;;  %1245 = vmatprep.subr.bf16.mxu0 %v3471_v18  ;;  %v3544_v17 = vld [vmem:[%s4762_s1 + $0x5e4] ss:$8 sps:$4 sm:$0xff]   ;;  %v3539_v18 = vld [vmem:[%s4762_s1 + $0x4e0] ss:$8 sps:$4 sm:$0xff]  }
  0x83   : > { %1286 = vmatprep.subr.bf16.mxu1 %v3474_v19  ;;  %v3542_v19 = vld [vmem:[%s4762_s1 + $0x5e0] ss:$8 sps:$4 sm:$0xff]  }
  0x85   : > { %1246 = vmatpush2.bf16.msra.mxu0 %v3469_v20  ;;  %v3547_v20 = vld [vmem:[%s4762_s1 + $0x4d4] ss:$8 sps:$4 sm:$0xff]  }
  0x86   : > { %1287 = vmatpush2.bf16.msra.mxu1 %v3472_v21  ;;  %1247 = vmatprep.subr.bf16.mxu0 %v3477_v22  ;;  %v3550_v21 = vld [vmem:[%s4762_s1 + $0x5d4] ss:$8 sps:$4 sm:$0xff]   ;;  %v3545_v22 = vld [vmem:[%s4762_s1 + $0x4d0] ss:$8 sps:$4 sm:$0xff]  }
  0x87   : > { %1288 = vmatprep.subr.bf16.mxu1 %v3480_v23  ;;  %v3548_v23 = vld [vmem:[%s4762_s1 + $0x5d0] ss:$8 sps:$4 sm:$0xff]  }
  0x89   : > { %1248 = vmatpush2.bf16.msra.mxu0 %v3475_v24  ;;  %v3553_v24 = vld [vmem:[%s4762_s1 + $0x4c4] ss:$8 sps:$4 sm:$0xff]  }
  0x8a   : > { %1289 = vmatpush2.bf16.msra.mxu1 %v3478_v25  ;;  %1740 = vmatprep.subr.bf16.mxu0 %v3487_v26  ;;  %v3556_v25 = vld [vmem:[%s4762_s1 + $0x5c4] ss:$8 sps:$4 sm:$0xff]   ;;  %v3551_v26 = vld [vmem:[%s4762_s1 + $0x4c0] ss:$8 sps:$4 sm:$0xff]  }
  0x8b   : > { %1781 = vmatprep.subr.bf16.mxu1 %v3490_v27  ;;  %v3554_v27 = vld [vmem:[%s4762_s1 + $0x5c0] ss:$8 sps:$4 sm:$0xff]  }
  0x8c   : > { %1250 = vmatmul.mubr.bf16.vlgmr.msra.gmra.mxu0 %v2899_v28  ;;  %v3559_v28 = vld [vmem:[%s4762_s1 + $0x4b4] ss:$8 sps:$4 sm:$0xff]  }
  0x8d   : > { %1291 = vmatmul.mubr.bf16.vlgmr.msra.gmra.mxu1 %v2901_v29  ;;  %1741 = vmatpush1.bf16.msra.mxu0 %v3485_v30  ;;  %v3562_v29 = vld [vmem:[%s4762_s1 + $0x5b4] ss:$8 sps:$4 sm:$0xff]   ;;  %v3557_v30 = vld [vmem:[%s4762_s1 + $0x4b0] ss:$8 sps:$4 sm:$0xff]  }
  0x8e   : > { %1782 = vmatpush1.bf16.msra.mxu1 %v3488_v31  ;;  %1742 = vmatprep.subr.bf16.mxu0 %v3493_v32  ;;  %v3560_v31 = vld [vmem:[%s4762_s1 + $0x5b0] ss:$8 sps:$4 sm:$0xff]   ;;  %v3565_v32 = vld [vmem:[%s4762_s1 + $0x4a4] ss:$8 sps:$4 sm:$0xff]  }
  0x8f   : > { %1783 = vmatprep.subr.bf16.mxu1 %v3496_v33  ;;  %1772 = vmatprep.mubr.bf16.mxu0 %v1399_v56  ;;  %v3568_v33 = vld [vmem:[%s4762_s1 + $0x5a4] ss:$8 sps:$4 sm:$0xff]   ;;  %v3575_v56 = vld [vmem:[%s4762_s1 + $0x480] ss:$8 sps:$4 sm:$0xff]  }
  0x90   : > { %1813 = vmatprep.mubr.bf16.mxu1 %v1415_v58  ;;  %v3587_v58 = vld [vmem:[%s4762_s1 + $0x674] ss:$8 sps:$4 sm:$0xff]  }
  0x91   : > { %1743 = vmatpush1.bf16.msra.mxu0 %v3491_v34  ;;  %v3031_v34 = vcombine.low %v4188_v36, %v4191_v37  ;;  %v3574_v36 = vld [vmem:[%s4762_s1 + $0x594] ss:$8 sps:$4 sm:$0xff]  }
  0x92   : > { %1784 = vmatpush1.bf16.msra.mxu1 %v3494_v35  ;;  %1744 = vmatprep.subr.bf16.mxu0 %v3499_v40  ;;  %v3033_v35 = vcombine.low %v4194_v38, %v4197_v39  ;;  %v3563_v40 = vld [vmem:[%s4762_s1 + $0x4a0] ss:$8 sps:$4 sm:$0xff]  }
  0x93   : > { %1785 = vmatprep.subr.bf16.mxu1 %v3502_v42  ;;  %v3571_v42 = vld [vmem:[%s4762_s1 + $0x494] ss:$8 sps:$4 sm:$0xff]   ;;  %v1385_v38 = vshrl.u32 %v3031_v34, 16  ;;  %v1388_v43 = vshll.u32 %v3031_v34, 16 }
  0x94   : > { %v1401_v44 = vshrl.u32 %v3033_v35, 16  ;;  %v1404_v45 = vshll.u32 %v3033_v35, 16  ;;  %v3635_v34 = vld [vmem:[%s4762_s1 + $0x6f4] ss:$8 sps:$4 sm:$0xff]  }
  0x95   : > { %1745 = vmatpush1.bf16.msra.mxu0 %v3497_v46  ;;  %v3569_v46 = vld [vmem:[%s4762_s1 + $0x490] ss:$8 sps:$4 sm:$0xff]   ;;  %v1387_v50 = vrot.slane %v1385_v38, 1  ;;  %v1390_v51 = vrot.slane %v1388_v43, 2  ;;  %v3638_v35 = vld [vmem:[%s4762_s1 + $0x7f4] ss:$8 sps:$4 sm:$0xff]  }
  0x96   : > { %1786 = vmatpush1.bf16.msra.mxu1 %v3500_v49  ;;  %1746 = vmatprep.subr.bf16.mxu0 %v3505_v52  ;;  %v3580_v49 = vld [vmem:[%s4762_s1 + $0x584] ss:$8 sps:$4 sm:$0xff]   ;;  %v1403_v52 = vrot.slane %v1401_v44, 1  ;;  %v3639_v38 = vld [vmem:[%s4762_s1 + $0x6e0] ss:$8 sps:$4 sm:$0xff]  }
  0x97   : > { %1787 = vmatprep.subr.bf16.mxu1 %v3508_v53  ;;  %v1406_v53 = vrot.slane %v1404_v45, 2  ;;  %v3642_v43 = vld [vmem:[%s4762_s1 + $0x7e0] ss:$8 sps:$4 sm:$0xff]   ;;  %v3647_v44 = vld [vmem:[%s4762_s1 + $0x6d4] ss:$8 sps:$4 sm:$0xff]  }
  0x98   : > { %v3650_v45 = vld [vmem:[%s4762_s1 + $0x7d4] ss:$8 sps:$4 sm:$0xff]  }
  0x99   : > { %1747 = vmatpush1.bf16.msra.mxu0 %v3503_v57  ;;  %v3578_v57 = vld [vmem:[%s4762_s1 + $0x580] ss:$8 sps:$4 sm:$0xff]  }
  0x9a   : > { %1788 = vmatpush1.bf16.msra.mxu1 %v3506_v59  ;;  %1748 = vmatprep.subr.bf16.mxu0 %v3511_v60  ;;  %v3590_v59 = vld [vmem:[%s4762_s1 + $0x774] ss:$8 sps:$4 sm:$0xff]   ;;  %v3164_v60 = vcombine.high %v4370_v54, %v4191_v37 }
  0x9b   : > { %1789 = vmatprep.subr.bf16.mxu1 %v3514_v61  ;;  %v3166_v61 = vcombine.high %v4373_v55, %v4197_v39 }
  0x9d   : > { %1749 = vmatpush1.bf16.msra.mxu0 %v3509_v62  ;;  %v1391_v62 = vor.u32 %v1390_v51, %v1387_v50  ;;  %v3651_v50 = vld [vmem:[%s4762_s1 + $0x6c0] ss:$8 sps:$4 sm:$0xff]  }
  0x9e   : > { %1790 = vmatpush1.bf16.msra.mxu1 %v3512_v63  ;;  %1750 = vmatprep.subr.bf16.mxu0 %v3517_v0  ;;  %v1407_v63 = vor.u32 %v1406_v53, %v1403_v52  ;;  %v3585_v0 = vld [vmem:[%s4762_s1 + $0x670] ss:$8 sps:$4 sm:$0xff]   ;;  %v3654_v51 = vld [vmem:[%s4762_s1 + $0x7c0] ss:$8 sps:$4 sm:$0xff]   ;;  %v3659_v52 = vld [vmem:[%s4762_s1 + $0x6b4] ss:$8 sps:$4 sm:$0xff]  }
  0x9f   : > { %1791 = vmatprep.subr.bf16.mxu1 %v3520_v1  ;;  %v3588_v1 = vld [vmem:[%s4762_s1 + $0x770] ss:$8 sps:$4 sm:$0xff]   ;;  %v3662_v53 = vld [vmem:[%s4762_s1 + $0x7b4] ss:$8 sps:$4 sm:$0xff]  }
  0xa1   : > { %1751 = vmatpush1.bf16.msra.mxu0 %v3515_v2  ;;  %v3593_v2 = vld [vmem:[%s4762_s1 + $0x664] ss:$8 sps:$4 sm:$0xff]  }
  0xa2   : > { %1792 = vmatpush1.bf16.msra.mxu1 %v3518_v3  ;;  %1752 = vmatprep.subr.bf16.mxu0 %v3523_v4  ;;  %v3596_v3 = vld [vmem:[%s4762_s1 + $0x764] ss:$8 sps:$4 sm:$0xff]   ;;  %v1902_v4 = vrot.slane %v3164_v60, 2  ;;  %v3663_v60 = vld [vmem:[%s4762_s1 + $0x6a0] ss:$8 sps:$4 sm:$0xff]  }
  0xa3   : > { %1793 = vmatprep.subr.bf16.mxu1 %v3526_v5  ;;  %v1904_v5 = vrot.slane %v3166_v61, 2  ;;  %v3666_v61 = vld [vmem:[%s4762_s1 + $0x7a0] ss:$8 sps:$4 sm:$0xff]  }
  0xa5   : > { %1753 = vmatpush1.bf16.msra.mxu0 %v3521_v6  ;;  %v3591_v6 = vld [vmem:[%s4762_s1 + $0x660] ss:$8 sps:$4 sm:$0xff]  }
  0xa6   : > { %1794 = vmatpush1.bf16.msra.mxu1 %v3524_v7  ;;  %1754 = vmatprep.subr.bf16.mxu0 %v3529_v8  ;;  %v3594_v7 = vld [vmem:[%s4762_s1 + $0x760] ss:$8 sps:$4 sm:$0xff]   ;;  %v3599_v8 = vld [vmem:[%s4762_s1 + $0x654] ss:$8 sps:$4 sm:$0xff]  }
  0xa7   : > { %1795 = vmatprep.subr.bf16.mxu1 %v3532_v9  ;;  %v3602_v9 = vld [vmem:[%s4762_s1 + $0x754] ss:$8 sps:$4 sm:$0xff]  }
  0xa9   : > { %1755 = vmatpush1.bf16.msra.mxu0 %v3527_v10  ;;  %v3597_v10 = vld [vmem:[%s4762_s1 + $0x650] ss:$8 sps:$4 sm:$0xff]  }
  0xaa   : > { %1796 = vmatpush1.bf16.msra.mxu1 %v3530_v11  ;;  %1756 = vmatprep.subr.bf16.mxu0 %v3535_v12  ;;  %v3600_v11 = vld [vmem:[%s4762_s1 + $0x750] ss:$8 sps:$4 sm:$0xff]   ;;  %v3605_v12 = vld [vmem:[%s4762_s1 + $0x644] ss:$8 sps:$4 sm:$0xff]  }
  0xab   : > { %1797 = vmatprep.subr.bf16.mxu1 %v3538_v13  ;;  %v3608_v13 = vld [vmem:[%s4762_s1 + $0x744] ss:$8 sps:$4 sm:$0xff]  }
  0xad   : > { %1757 = vmatpush2.bf16.msra.mxu0 %v3533_v14  ;;  %v2313_v14 = vld [vmem:[%s4768_s7] sm:$0x3f] }
  0xae   : > { %1798 = vmatpush2.bf16.msra.mxu1 %v3536_v15  ;;  %1758 = vmatprep.subr.bf16.mxu0 %v3541_v16  ;;  %v3695_v15 = vmov 0   ;;  %v3603_v16 = vld [vmem:[%s4762_s1 + $0x640] ss:$8 sps:$4 sm:$0xff]  }
  0xaf   : > { %1799 = vmatprep.subr.bf16.mxu1 %v3544_v17  ;;  %3284 = vset.pattern.permute.xlu0 %v3695_v15  ;;  %v3606_v17 = vld [vmem:[%s4762_s1 + $0x740] ss:$8 sps:$4 sm:$0xff]  }
  0xb0   : > { %2317 = vperm.xlu0 %3284, %v2313_v14  }
  0xb1   : > { %1759 = vmatpush2.bf16.msra.mxu0 %v3539_v18  ;;  %v3611_v18 = vld [vmem:[%s4762_s1 + $0x634] ss:$8 sps:$4 sm:$0xff]  }
  0xb2   : > { %1800 = vmatpush2.bf16.msra.mxu1 %v3542_v19  ;;  %1760 = vmatprep.subr.bf16.mxu0 %v3547_v20  ;;  %v3614_v19 = vld [vmem:[%s4762_s1 + $0x734] ss:$8 sps:$4 sm:$0xff]   ;;  %v3609_v20 = vld [vmem:[%s4762_s1 + $0x630] ss:$8 sps:$4 sm:$0xff]  }
  0xb3   : > { %1801 = vmatprep.subr.bf16.mxu1 %v3550_v21  ;;  %v3612_v21 = vld [vmem:[%s4762_s1 + $0x730] ss:$8 sps:$4 sm:$0xff]  }
  0xb5   : > { %1761 = vmatpush2.bf16.msra.mxu0 %v3545_v22  ;;  %v3617_v22 = vld [vmem:[%s4762_s1 + $0x624] ss:$8 sps:$4 sm:$0xff]  }
  0xb6   : > { %1802 = vmatpush2.bf16.msra.mxu1 %v3548_v23  ;;  %1762 = vmatprep.subr.bf16.mxu0 %v3553_v24  ;;  %v3620_v23 = vld [vmem:[%s4762_s1 + $0x724] ss:$8 sps:$4 sm:$0xff]   ;;  %v3615_v24 = vld [vmem:[%s4762_s1 + $0x620] ss:$8 sps:$4 sm:$0xff]  }
  0xb7   : > { %1803 = vmatprep.subr.bf16.mxu1 %v3556_v25  ;;  %v3618_v25 = vld [vmem:[%s4762_s1 + $0x720] ss:$8 sps:$4 sm:$0xff]  }
  0xb9   : > { %1763 = vmatpush2.bf16.msra.mxu0 %v3551_v26  ;;  %v3623_v26 = vld [vmem:[%s4762_s1 + $0x614] ss:$8 sps:$4 sm:$0xff]  }
  0xba   : > { %1804 = vmatpush2.bf16.msra.mxu1 %v3554_v27  ;;  %1764 = vmatprep.subr.bf16.mxu0 %v3559_v28  ;;  %v3626_v27 = vld [vmem:[%s4762_s1 + $0x714] ss:$8 sps:$4 sm:$0xff]   ;;  %v3621_v28 = vld [vmem:[%s4762_s1 + $0x610] ss:$8 sps:$4 sm:$0xff]  }
  0xbb   : > { %1805 = vmatprep.subr.bf16.mxu1 %v3562_v29  ;;  %v3624_v29 = vld [vmem:[%s4762_s1 + $0x710] ss:$8 sps:$4 sm:$0xff]  }
  0xbd   : > { %1765 = vmatpush2.bf16.msra.mxu0 %v3557_v30  ;;  %v3629_v30 = vld [vmem:[%s4762_s1 + $0x604] ss:$8 sps:$4 sm:$0xff]  }
  0xbe   : > { %1806 = vmatpush2.bf16.msra.mxu1 %v3560_v31  ;;  %1766 = vmatprep.subr.bf16.mxu0 %v3565_v32  ;;  %v3632_v31 = vld [vmem:[%s4762_s1 + $0x704] ss:$8 sps:$4 sm:$0xff]   ;;  %v3627_v32 = vld [vmem:[%s4762_s1 + $0x600] ss:$8 sps:$4 sm:$0xff]  }
  0xbf   : > { %1807 = vmatprep.subr.bf16.mxu1 %v3568_v33  ;;  %v3630_v33 = vld [vmem:[%s4762_s1 + $0x700] ss:$8 sps:$4 sm:$0xff]  }
  0xc1   : > { %1767 = vmatpush2.bf16.msra.mxu0 %v3563_v40  ;;  %v3633_v40 = vld [vmem:[%s4762_s1 + $0x6f0] ss:$8 sps:$4 sm:$0xff]  }
  0xc2   : > { %1808 = vmatpush2.bf16.msra.mxu1 %v3566_v41  ;;  %1768 = vmatprep.subr.bf16.mxu0 %v3571_v42  ;;  %v3636_v41 = vld [vmem:[%s4762_s1 + $0x7f0] ss:$8 sps:$4 sm:$0xff]   ;;  %v3641_v42 = vld [vmem:[%s4762_s1 + $0x6e4] ss:$8 sps:$4 sm:$0xff]  }
  0xc3   : > { %1809 = vmatprep.subr.bf16.mxu1 %v3574_v36  ;;  %v3644_v36 = vld [vmem:[%s4762_s1 + $0x7e4] ss:$8 sps:$4 sm:$0xff]  }
  0xc5   : > { %1769 = vmatpush2.bf16.msra.mxu0 %v3569_v46  ;;  %v3645_v46 = vld [vmem:[%s4762_s1 + $0x6d0] ss:$8 sps:$4 sm:$0xff]  }
  0xc6   : > { %1810 = vmatpush2.bf16.msra.mxu1 %v3572_v47  ;;  %1770 = vmatprep.subr.bf16.mxu0 %v3577_v48  ;;  %v3648_v47 = vld [vmem:[%s4762_s1 + $0x7d0] ss:$8 sps:$4 sm:$0xff]   ;;  %v3653_v48 = vld [vmem:[%s4762_s1 + $0x6c4] ss:$8 sps:$4 sm:$0xff]  }
  0xc7   : > { %1811 = vmatprep.subr.bf16.mxu1 %v3580_v49  ;;  %v3656_v49 = vld [vmem:[%s4762_s1 + $0x7c4] ss:$8 sps:$4 sm:$0xff]  }
  0xc9   : > { %1771 = vmatpush2.bf16.msra.mxu0 %v3575_v56  ;;  %v3657_v56 = vld [vmem:[%s4762_s1 + $0x6b0] ss:$8 sps:$4 sm:$0xff]  }
  0xca   : > { %1812 = vmatpush2.bf16.msra.mxu1 %v3578_v57  ;;  %2229 = vmatprep.subr.bf16.mxu0 %v3587_v58  ;;  %v3660_v57 = vld [vmem:[%s4762_s1 + $0x7b0] ss:$8 sps:$4 sm:$0xff]   ;;  %v3665_v58 = vld [vmem:[%s4762_s1 + $0x6a4] ss:$8 sps:$4 sm:$0xff]  }
  0xcb   : > { %2270 = vmatprep.subr.bf16.mxu1 %v3590_v59  ;;  %v3668_v59 = vld [vmem:[%s4762_s1 + $0x7a4] ss:$8 sps:$4 sm:$0xff]  }
  0xcc   : > { %1773 = vmatmul.mubr.bf16.vlgmr.msra.gmra.mxu0 %v1391_v62  ;;  %v3671_v62 = vld [vmem:[%s4762_s1 + $0x694] ss:$8 sps:$4 sm:$0xff]  }
  0xcd   : > { %1814 = vmatmul.mubr.bf16.vlgmr.msra.gmra.mxu1 %v1407_v63  ;;  %2230 = vmatpush1.bf16.msra.mxu0 %v3585_v0  ;;  %v3674_v63 = vld [vmem:[%s4762_s1 + $0x794] ss:$8 sps:$4 sm:$0xff]   ;;  %v3669_v0 = vld [vmem:[%s4762_s1 + $0x690] ss:$8 sps:$4 sm:$0xff]  }
  0xce   : > { %2271 = vmatpush1.bf16.msra.mxu1 %v3588_v1  ;;  %2231 = vmatprep.subr.bf16.mxu0 %v3593_v2  ;;  %v3672_v1 = vld [vmem:[%s4762_s1 + $0x790] ss:$8 sps:$4 sm:$0xff]   ;;  %v3677_v2 = vld [vmem:[%s4762_s1 + $0x684] ss:$8 sps:$4 sm:$0xff]  }
  0xcf   : > { %2272 = vmatprep.subr.bf16.mxu1 %v3596_v3  ;;  %2261 = vmatprep.mubr.bf16.mxu0 %v1902_v4  ;;  %v3680_v3 = vld [vmem:[%s4762_s1 + $0x784] ss:$8 sps:$4 sm:$0xff]   ;;  %v3163_v4 = vcombine.low %v4370_v54, %v4191_v37 }
  0xd0   : > { %2302 = vmatprep.mubr.bf16.mxu1 %v1904_v5  ;;  %v3165_v5 = vcombine.low %v4373_v55, %v4197_v39 }
  0xd1   : > { %2232 = vmatpush1.bf16.msra.mxu0 %v3591_v6  ;;  %v3675_v6 = vld [vmem:[%s4762_s1 + $0x680] ss:$8 sps:$4 sm:$0xff]  }
  0xd2   : > { %2273 = vmatpush1.bf16.msra.mxu1 %v3594_v7  ;;  %2233 = vmatprep.subr.bf16.mxu0 %v3599_v8  ;;  %v3678_v7 = vld [vmem:[%s4762_s1 + $0x780] ss:$8 sps:$4 sm:$0xff]   ;;  %v1901_v8 = vrot.slane %v3163_v4, 2 }
  0xd3   : > { %2274 = vmatprep.subr.bf16.mxu1 %v3602_v9  ;;  %v1903_v9 = vrot.slane %v3165_v5, 2 }
  0xd5   : > { %2234 = vmatpush1.bf16.msra.mxu0 %v3597_v10 }
  0xd6   : > { %2275 = vmatpush1.bf16.msra.mxu1 %v3600_v11  ;;  %2235 = vmatprep.subr.bf16.mxu0 %v3605_v12 }
  0xd7   : > { %2276 = vmatprep.subr.bf16.mxu1 %v3608_v13 }
  0xd9   : > { %2236 = vmatpush1.bf16.msra.mxu0 %v3603_v16 }
  0xda   : > { %2277 = vmatpush1.bf16.msra.mxu1 %v3606_v17  ;;  %2237 = vmatprep.subr.bf16.mxu0 %v3611_v18 }
  0xdb   : > { %2278 = vmatprep.subr.bf16.mxu1 %v3614_v19 }
  0xdd   : > { %2238 = vmatpush1.bf16.msra.mxu0 %v3609_v20 }
  0xde   : > { %2279 = vmatpush1.bf16.msra.mxu1 %v3612_v21  ;;  %2239 = vmatprep.subr.bf16.mxu0 %v3617_v22 }
  0xdf   : > { %2280 = vmatprep.subr.bf16.mxu1 %v3620_v23 }
  0xe1   : > { %2240 = vmatpush1.bf16.msra.mxu0 %v3615_v24 }
  0xe2   : > { %2281 = vmatpush1.bf16.msra.mxu1 %v3618_v25  ;;  %2241 = vmatprep.subr.bf16.mxu0 %v3623_v26 }
  0xe3   : > { %2282 = vmatprep.subr.bf16.mxu1 %v3626_v27 }
  0xe5   : > { %2242 = vmatpush1.bf16.msra.mxu0 %v3621_v28  ;;  %v2454_v28 = vld [vmem:[%s4766_s5 + $0xf8] sm:$0xff] }
  0xe6   : > { %2283 = vmatpush1.bf16.msra.mxu1 %v3624_v29  ;;  %2243 = vmatprep.subr.bf16.mxu0 %v3629_v30  ;;  %v2438_v29 = vld [vmem:[%s4766_s5 + $0x78] sm:$0xff]  ;;  %v2453_v30 = vld [vmem:[%s4766_s5 + $0xf0] sm:$0xff] }
  0xe7   : > { %2284 = vmatprep.subr.bf16.mxu1 %v3632_v31  ;;  %v2437_v31 = vld [vmem:[%s4766_s5 + $0x70] sm:$0xff] }
  0xe9   : > { %2244 = vmatpush1.bf16.msra.mxu0 %v3627_v32  ;;  %v2452_v32 = vld [vmem:[%s4766_s5 + $0xe8] sm:$0xff] }
  0xea   : > { %2285 = vmatpush1.bf16.msra.mxu1 %v3630_v33  ;;  %2245 = vmatprep.subr.bf16.mxu0 %v3635_v34  ;;  %v2436_v33 = vld [vmem:[%s4766_s5 + $0x68] sm:$0xff]  ;;  %v2451_v34 = vld [vmem:[%s4766_s5 + $0xe0] sm:$0xff] }
  0xeb   : > { %2286 = vmatprep.subr.bf16.mxu1 %v3638_v35  ;;  %v2435_v35 = vld [vmem:[%s4766_s5 + $0x60] sm:$0xff] }
  0xed   : > { %2246 = vmatpush2.bf16.msra.mxu0 %v3633_v40  ;;  %v2450_v40 = vld [vmem:[%s4766_s5 + $0xd8] sm:$0xff] }
  0xee   : > { %2287 = vmatpush2.bf16.msra.mxu1 %v3636_v41  ;;  %2247 = vmatprep.subr.bf16.mxu0 %v3641_v42  ;;  %v2434_v41 = vld [vmem:[%s4766_s5 + $0x58] sm:$0xff]  ;;  %v2449_v42 = vld [vmem:[%s4766_s5 + $0xd0] sm:$0xff] }
  0xef   : > { %2288 = vmatprep.subr.bf16.mxu1 %v3644_v36  ;;  %v2433_v36 = vld [vmem:[%s4766_s5 + $0x50] sm:$0xff] }
  0xf1   : > { %2248 = vmatpush2.bf16.msra.mxu0 %v3639_v38  ;;  %v2448_v38 = vld [vmem:[%s4766_s5 + $0xc8] sm:$0xff] }
  0xf2   : > { %2289 = vmatpush2.bf16.msra.mxu1 %v3642_v43  ;;  %2249 = vmatprep.subr.bf16.mxu0 %v3647_v44  ;;  %v2432_v43 = vld [vmem:[%s4766_s5 + $0x48] sm:$0xff]  ;;  %v2447_v44 = vld [vmem:[%s4766_s5 + $0xc0] sm:$0xff] }
  0xf3   : > { %2290 = vmatprep.subr.bf16.mxu1 %v3650_v45  ;;  %v2431_v45 = vld [vmem:[%s4766_s5 + $0x40] sm:$0xff] }
  0xf5   : > { %2250 = vmatpush2.bf16.msra.mxu0 %v3645_v46  ;;  %v2446_v46 = vld [vmem:[%s4766_s5 + $0xb8] sm:$0xff] }
  0xf6   : > { %2291 = vmatpush2.bf16.msra.mxu1 %v3648_v47  ;;  %2251 = vmatprep.subr.bf16.mxu0 %v3653_v48  ;;  %v2430_v47 = vld [vmem:[%s4766_s5 + $0x38] sm:$0xff]  ;;  %v2445_v48 = vld [vmem:[%s4766_s5 + $0xb0] sm:$0xff] }
  0xf7   : > { %2292 = vmatprep.subr.bf16.mxu1 %v3656_v49  ;;  %v2429_v49 = vld [vmem:[%s4766_s5 + $0x30] sm:$0xff] }
  0xf9   : > { %2252 = vmatpush2.bf16.msra.mxu0 %v3651_v50  ;;  %v2444_v50 = vld [vmem:[%s4766_s5 + $0xa8] sm:$0xff] }
  0xfa   : > { %2293 = vmatpush2.bf16.msra.mxu1 %v3654_v51  ;;  %2253 = vmatprep.subr.bf16.mxu0 %v3659_v52  ;;  %v2428_v51 = vld [vmem:[%s4766_s5 + $0x28] sm:$0xff]  ;;  %v2443_v52 = vld [vmem:[%s4766_s5 + $0xa0] sm:$0xff] }
  0xfb   : > { %2294 = vmatprep.subr.bf16.mxu1 %v3662_v53  ;;  %v2427_v53 = vld [vmem:[%s4766_s5 + $0x20] sm:$0xff] }
  0xfd   : > { %2254 = vmatpush2.bf16.msra.mxu0 %v3657_v56  ;;  %v2442_v56 = vld [vmem:[%s4766_s5 + $0x98] sm:$0xff] }
  0xfe   : > { %2295 = vmatpush2.bf16.msra.mxu1 %v3660_v57  ;;  %2255 = vmatprep.subr.bf16.mxu0 %v3665_v58  ;;  %v2426_v57 = vld [vmem:[%s4766_s5 + $0x18] sm:$0xff]  ;;  %v2441_v58 = vld [vmem:[%s4766_s5 + $0x90] sm:$0xff] }
  0xff   : > { %2296 = vmatprep.subr.bf16.mxu1 %v3668_v59  ;;  %v2425_v59 = vld [vmem:[%s4766_s5 + $0x10] sm:$0xff] }
 0x101   : > { %2256 = vmatpush2.bf16.msra.mxu0 %v3663_v60  ;;  %v2440_v60 = vld [vmem:[%s4766_s5 + $0x88] sm:$0xff] }
 0x102   : > { %2297 = vmatpush2.bf16.msra.mxu1 %v3666_v61  ;;  %2257 = vmatprep.subr.bf16.mxu0 %v3671_v62  ;;  %v2424_v61 = vld [vmem:[%s4766_s5 + $0x8] sm:$0xff]  ;;  %v2439_v62 = vld [vmem:[%s4766_s5 + $0x80] sm:$0xff] }
 0x103   : > { %2298 = vmatprep.subr.bf16.mxu1 %v3674_v63  ;;  %v2423_v63 = vld [vmem:[%s4766_s5] sm:$0xff] }
 0x105   : > { %2258 = vmatpush2.bf16.msra.mxu0 %v3669_v0 }
 0x106   : > { %2299 = vmatpush2.bf16.msra.mxu1 %v3672_v1  ;;  %2259 = vmatprep.subr.bf16.mxu0 %v3677_v2 }
 0x107   : > { %2300 = vmatprep.subr.bf16.mxu1 %v3680_v3 }
 0x109   : > { %2260 = vmatpush2.bf16.msra.mxu0 %v3675_v6 }
 0x10a   : > { %2301 = vmatpush2.bf16.msra.mxu1 %v3678_v7  ;;  %3238 = vmatprep.subr.mxu0 %v2454_v28 }
 0x10c   : > { %v835_v37 = vpop.f32.mrf.mxu0  ;;  %2262 = vmatmul.mubr.bf16.vlgmr.msra.gmra.mxu0 %v1901_v8 }
 0x10d   : > { %v876_v54 = vpop.f32.mrf.mxu1  ;;  %2303 = vmatmul.mubr.bf16.vlgmr.msra.gmra.mxu1 %v1903_v9  ;;  %3239 = vmatpush3.msra.mxu0 %v2438_v29 }
 0x10e   : > { %v877_v39 = vadd.f32 %v876_v54, %v835_v37  ;;  %v837_v55 = vpop.f32.mrf.mxu0  ;;  %3240 = vmatprep.subr.mxu0 %v2453_v30 }
 0x10f   : > { %v878_v10 = vpop.f32.mrf.mxu1  ;;  %3241 = vmatpush3.msra.mxu0 %v2437_v31 }
 0x110   : > { %v879_v11 = vadd.f32 %v878_v10, %v837_v55  ;;  %v839_v12 = vpop.f32.mrf.mxu0  ;;  %3242 = vmatprep.subr.mxu0 %v2452_v32 }
 0x111   : > { %v880_v13 = vpop.f32.mrf.mxu1  ;;  %3243 = vmatpush3.msra.mxu0 %v2436_v33  ;;  %v3696_v33 = vmov 1966171168  }
 0x112   : > { %v840_v14 = vpop.f32.mrf.mxu0  ;;  %3244 = vmatprep.subr.mxu0 %v2451_v34  ;;  %v2372_v34 = vunpack.c.l.s4 %v3696_v33 }
 0x113   : > { %v881_v15 = vpop.f32.mrf.mxu1  ;;  %3245 = vmatpush3.msra.mxu0 %v2435_v35 }
 0x114   : > { %3246 = vmatprep.subr.mxu0 %v2450_v40 }
 0x115   : > { %3247 = vmatpush3.msra.mxu0 %v2434_v41 }
 0x116   : > { %3248 = vmatprep.subr.mxu0 %v2449_v42  ;;  %v2355_v42 = vlaneseq }
 0x117   : > { %3249 = vmatpush3.msra.mxu0 %v2433_v36 }
 0x118   : > { %3250 = vmatprep.subr.mxu0 %v2448_v38 }
 0x119   : > { %3251 = vmatpush3.msra.mxu0 %v2432_v43 }
 0x11a   : > { %3252 = vmatprep.subr.mxu0 %v2447_v44 }
 0x11b   : > { %3253 = vmatpush3.msra.mxu0 %v2431_v45  ;;  %v2373_v45 = vunpack.c.0.s8 %v2372_v34 }
 0x11c   : > { %3254 = vmatprep.subr.mxu0 %v2446_v46 }
 0x11d   : > { %3255 = vmatpush3.msra.mxu0 %v2430_v47 }
 0x11e   : > { %3256 = vmatprep.subr.mxu0 %v2445_v48  ;;  %v2356_v48 = vshrl.u32 %v2355_v42, 7  ;;  %v2614_v42 = vld [vmem:[%s4764_s3] sm:$0x3] }
 0x11f   : > { %3257 = vmatpush3.msra.mxu0 %v2429_v49 }
 0x120   : > { %3258 = vmatprep.subr.mxu0 %v2444_v50 }
 0x121   : > { %3259 = vmatpush3.msra.mxu0 %v2428_v51 }
 0x122   : > { %3260 = vmatprep.subr.mxu0 %v2443_v52  ;;  %v4698_v52 = vsub.s32 %v2373_v45, %v2356_v48 }
 0x123   : > { %3261 = vmatpush3.msra.mxu0 %v2427_v53 }
 0x124   : > { %3262 = vmatprep.subr.mxu0 %v2442_v56 }
 0x125   : > { %3263 = vmatpush3.msra.mxu0 %v2426_v57  ;;  %v4703_v57 = vld [vmem:[%s4763_s2] sm:$0x3] }
 0x126   : > { %3264 = vmatprep.subr.mxu0 %v2441_v58 }
 0x127   : > { %3265 = vmatpush3.msra.mxu0 %v2425_v59 }
 0x128   : > { %3266 = vmatprep.subr.mxu0 %v2440_v60 }
 0x129   : > { %3267 = vmatpush3.msra.mxu0 %v2424_v61  ;;  %v2353_v61 = vmul.f32 4.0, %v4703_v57 }
 0x12a   : > { %3268 = vmatprep.subr.mxu0 %v2439_v62 }
 0x12b   : > { %3269 = vmatpush3.msra.mxu0 %v2423_v63  ;;  %v2318_v10 = vpop.permute.xlu0 %2317  ;;  %v2367_v63 = vmul.f32 2.0, %v4703_v57 }
 0x14c   : > { %v1251_v16 = vpop.f32.mrf.mxu0 }
 0x14d   : > { %v1292_v17 = vpop.f32.mrf.mxu1  ;;  %v1252_v18 = vadd.f32 %v1251_v16, %v877_v39 }
 0x14e   : > { %v1253_v19 = vpop.f32.mrf.mxu0 }
 0x14f   : > { %v1294_v20 = vpop.f32.mrf.mxu1  ;;  %v4584_v21 = vadd.f32 %v1292_v17, %v1252_v18  ;;  %v1254_v22 = vadd.f32 %v1253_v19, %v879_v11 }
 0x150   : > { %v1255_v23 = vpop.f32.mrf.mxu0 }
 0x151   : > { %v1296_v24 = vpop.f32.mrf.mxu1  ;;  %v4586_v25 = vadd.f32 %v1294_v20, %v1254_v22 }
 0x152   : > { %v1256_v26 = vpop.f32.mrf.mxu0 }
 0x153   : > { %v1297_v27 = vpop.f32.mrf.mxu1 }
 0x18c   : > { %v1774_v0 = vpop.f32.mrf.mxu0 }
 0x18d   : > { %v1815_v1 = vpop.f32.mrf.mxu1 }
 0x18e   : > { %v1816_v2 = vadd.f32 %v1815_v1, %v1774_v0  ;;  %v1776_v3 = vpop.f32.mrf.mxu0  ;;  %v2400_v0 = vmul.f32 %v2353_v61, %v4703_v57 }
 0x18f   : > { %v1817_v4 = vpop.f32.mrf.mxu1 }
 0x190   : > { %v1822_v5 = vadd.f32 %v1816_v2, %v4584_v21  ;;  %v1778_v6 = vpop.f32.mrf.mxu0  ;;  %v1818_v37 = vadd.f32 %v1817_v4, %v1776_v3  ;;  %v4710_v4 = vsub.s32 1, %v2356_v48 }
 0x191   : > { %v1819_v7 = vpop.f32.mrf.mxu1 }
 0x192   : > { %v1779_v8 = vpop.f32.mrf.mxu0  ;;  %v1823_v13 = vadd.f32 %v1818_v37, %v4586_v25  ;;  %v2409_v7 = vrot.slane %v2400_v0, %v4710_v4 }
 0x193   : > { %v1820_v9 = vpop.f32.mrf.mxu1 }
 0x1cc   : > { %v2263_v54 = vpop.f32.mrf.mxu0 }
 0x1cd   : > { %v2304_v39 = vpop.f32.mrf.mxu1 }
 0x1ce   : > { %v2305_v55 = vadd.f32 %v2304_v39, %v2263_v54  ;;  %v2265_v11 = vpop.f32.mrf.mxu0 }
 0x1cf   : > { %v2306_v12 = vpop.f32.mrf.mxu1 }
 0x1d0   : > { %v4686_v14 = vadd.f32 %v2305_v55, %v1822_v5  ;;  %v2307_v15 = vadd.f32 %v2306_v12, %v2265_v11  ;;  %v2267_v16 = vpop.f32.mrf.mxu0  ;;  %v4712_v5 = vsub.s32 0, %v2356_v48  ;;  %v2362_v55 = vrot.slane %v2353_v61, %v4710_v4 }
 0x1d1   : > { %v2308_v17 = vpop.f32.mrf.mxu1 }
 0x1d2   : > { %v4688_v18 = vadd.f32 %v2307_v15, %v1823_v13  ;;  %v2320_v19 = vmul.f32 %v2318_v10, %v4686_v14  ;;  %v2268_v20 = vpop.f32.mrf.mxu0  ;;  %v2405_v8 = vrot.slane %v2400_v0, %v4712_v5  ;;  %v2358_v11 = vrot.slane %v2353_v61, %v4712_v5 }
 0x1d3   : > { %v2309_v21 = vpop.f32.mrf.mxu1 }
 0x1d4   : > { %v2321_v22 = vmul.f32 %v2318_v10, %v4688_v18  ;;  %v2323_v23 = vsel %vm2322_vm0, %v2320_v19, 0.0  ;;  %v2337_v24 = vmul.f32 %v2320_v19, %v4686_v14 }
 0x1d5   : > { %v2324_v26 = vrot.slane %v2323_v23, 4 }
 0x1d6   : > { %v2330_v25 = vsel %vm2322_vm0, %v2321_v22, 0.0  ;;  %v2338_v27 = vmul.f32 %v2321_v22, %v4688_v18  ;;  %v2339_v28 = vsel %vm2322_vm0, %v2337_v24, 0.0  ;;  %v2537_v24 = vld [vmem:[%s4767_s6 + $0x10] sm:$0xff] }
 0x1d7   : > { %v2325_v29 = vadd.f32 %v2324_v26, %v2323_v23  ;;  %v2331_v30 = vrot.slane %v2330_v25, 4  ;;  %v2340_v31 = vrot.slane %v2339_v28, 4  ;;  %v2538_v23 = vld [vmem:[%s4767_s6 + $0x18] sm:$0xff]  ;;  %v2536_v26 = vld [vmem:[%s4767_s6 + $0x8] sm:$0xff] }
 0x1d8   : > { %v2346_v32 = vsel %vm2322_vm0, %v2338_v27, 0.0  ;;  %2571 = vmatprep.subr.mxu1 %v2538_v23  ;;  %v3697_v27 = vmov 0.0  }
 0x1d9   : > { %v2326_v35 = vrot.slane %v2325_v29, 2  ;;  %v2332_v40 = vadd.f32 %v2331_v30, %v2330_v25  ;;  %v2347_v41 = vrot.slane %v2346_v32, 4  ;;  %v2341_v43 = vadd.f32 %v2340_v31, %v2339_v28  ;;  %2572 = vmatpush1.msra.mxu1 %v2537_v24  ;;  %v2535_v25 = vld [vmem:[%s4767_s6] sm:$0xff]  ;;  %2607 = vmatprep.mubr.f32.mxu1 %v3697_v27 }
 0x1da   : > { %2573 = vmatprep.subr.mxu1 %v2536_v26 }
 0x1db   : > { %v2327_v36 = vadd.f32 %v2326_v35, %v2325_v29  ;;  %v2333_v38 = vrot.slane %v2332_v40, 2  ;;  %v2348_v44 = vadd.f32 %v2347_v41, %v2346_v32  ;;  %v2342_v50 = vrot.slane %v2341_v43, 2  ;;  %2574 = vmatpush1.msra.mxu1 %v2535_v25 }
 0x1dd   : > { %v2328_v46 = vrot.slane %v2327_v36, 1  ;;  %v2334_v47 = vadd.f32 %v2333_v38, %v2332_v40  ;;  %v2349_v51 = vrot.slane %v2348_v44, 2  ;;  %v2343_v58 = vadd.f32 %v2342_v50, %v2341_v43 }
 0x1de   : > { %v2623_v38 = vrot.slane %v2614_v42, %v4710_v4 }
 0x1df   : > { %v2335_v49 = vrot.slane %v2334_v47, 1  ;;  %v2329_v53 = vadd.f32 %v2328_v46, %v2327_v36  ;;  %v2350_v59 = vadd.f32 %v2349_v51, %v2348_v44  ;;  %v2344_v1 = vrot.slane %v2343_v58, 1 }
 0x1e0   : > { %v2619_v36 = vrot.slane %v2614_v42, %v4712_v5 }
 0x1e1   : > { %v2336_v56 = vadd.f32 %v2335_v49, %v2334_v47  ;;  %v2351_v2 = vrot.slane %v2350_v59, 1  ;;  %v2345_v9 = vadd.f32 %v2344_v1, %v2343_v58  ;;  %v2365_v19 = vadd.f32 %v2358_v11, %v2329_v53 }
 0x1e3   : > { %v2370_v60 = vcombine.low %v2329_v53, %v2336_v56  ;;  %v2352_v37 = vadd.f32 %v2351_v2, %v2350_v59  ;;  %v2366_v16 = vadd.f32 %v2362_v55, %v2336_v56  ;;  %v2667_v59 = vld [vmem:[%s4765_s4] sm:$0x3] }
 0x1e5   : > { %v2377_v62 = vrot.slane %v2370_v60, %v4698_v52 }
 0x1e7   : > { %v2384_v3 = vrot.slane %v2377_v62, %v4698_v52 }
 0x1e9   : > { %v2386_v6 = vmul.f32 %v2384_v3, %v2367_v63 }
 0x1eb   : > { %v2395_v54 = vrot.slane %v2386_v6, %v4710_v4  ;;  %v2391_v39 = vrot.slane %v2386_v6, %v4712_v5 }
 0x1ed   : > { %v2399_v10 = vadd.f32 %v2395_v54, %v2352_v37  ;;  %v2398_v12 = vadd.f32 %v2391_v39, %v2345_v9 }
 0x1ef   : > { %v2413_v13 = vadd.f32 %v2409_v7, %v2399_v10  ;;  %v2412_v15 = vadd.f32 %v2405_v8, %v2398_v12 }
 0x1f1   : > { %v2417_v17 = vrot.slane %v2413_v13, 7  ;;  %v2416_v20 = vrot.slane %v2412_v15, 7 }
 0x1f3   : > { %v2422_v21 = vsel %vm2420_vm1, %v2366_v16, %v2417_v17  ;;  %v2421_v22 = vsel %vm2420_vm1, %v2365_v19, %v2416_v20 }
 0x1f4   : > { %2519 = vmatprep.mubr.f32.mxu0 %v2422_v21 }
 0x1f5   : > { %2520 = vmatmul.mubr.f32.vlgmr.msra.gmra.mxu0 %v2421_v22 }
 0x2b5   : > { %v3270_v28 = vpop.f32.mrf.mxu0 }
 0x2b7   : > { %v3271_v29 = vpop.f32.mrf.mxu0 }
 0x2b8   : > { %v3272_v30 = vadd.f32 %v3271_v29, %v3270_v28 }
 0x2ba   : > { %v2526_v31 = vmul.f32 0.015625, %v3272_v30 }
 0x2bc   : > { %v2527_v32 = vmul.f32 %v2526_v31, %v2526_v31 }
 0x2be   : > { %v2529_v33 = vrot.slane %v2527_v32, 7 }
 0x2c0   : > { %v2531_v34 = vsub.f32 %v2526_v31, %v2529_v33 }
 0x2c2   : > { %v2532_v35 = vadd.f32 1e-05, %v2531_v34 }
 0x2c4   : > { %3685 = vrsqrt.f32 %v2532_v35 }
 0x2d1   : > { %v3686_v40 = vpop.eup %3685 }
 0x2d2   : > { %v2534_v41 = vsel %vm2420_vm1, %v2526_v31, %v3686_v40 }
 0x2d3   : > { %3231 = vmatmul.mubr.msk.f32.vlgmr.msra.gmra.mxu1 %vm2539_vm2, %v2534_v41 }
 0x393   : > { %v2609_v43 = vpop.f32.mrf.mxu1 }
 0x394   : > { %v2626_v45 = vmul.f32 %v2619_v36, %v2609_v43 }
 0x395   : > { %v2611_v44 = vpop.f32.mrf.mxu1 }
 0x396   : > { %v2627_v46 = vmul.f32 %v2623_v38, %v2611_v44  ;;  %v2630_v47 = vcombine.low %v2609_v43, %v2611_v44  ;;  %v2672_v60 = vrot.slane %v2626_v45, %v4710_v4 }
 0x398   : > { %v2637_v48 = vrot.slane %v2630_v47, %v4698_v52  ;;  %v2649_v49 = vcombine.low %v2626_v45, %v2627_v46  ;;  %v2676_v62 = vrot.slane %v2627_v46, %v4710_v4  ;;  %v2677_v0 = vmul.f32 %v2672_v60, %v4686_v14 }
 0x39a   : > { %v2644_v50 = vrot.slane %v2637_v48, %v4698_v52  ;;  %v2656_v51 = vrot.slane %v2649_v49, %v4698_v52  ;;  %v2678_v1 = vmul.f32 %v2676_v62, %v4688_v18 }
 0x39c   : > { %v2657_v53 = vcombine.high %v2656_v51, %v2656_v51  ;;  %v2646_v56 = vsub.f32 %v4703_v57, %v2644_v50 }
 0x39e   : > { %v2664_v58 = vrot.slane %v2657_v53, %v4698_v52 }
 0x3a0   : > { %v2666_v61 = vmul.f32 %v2664_v58, %v2646_v56 }
 0x3a2   : > { %v2668_v63 = vadd.f32 %v2667_v59, %v2666_v61 }
 0x3a4   : > { %v2683_v2 = vrot.slane %v2668_v63, %v4712_v5  ;;  %v2687_v57 = vrot.slane %v2668_v63, %v4710_v4 }
 0x3a6   : > { %v2690_v52 = vadd.f32 %v2683_v2, %v2677_v0  ;;  %v2691_v3 = vadd.f32 %v2687_v57, %v2678_v1 }
 0x3a8   : > { %v2692_v6 = vmax.f32 %v2690_v52, 0.0  ;;  %v2693_v7 = vmax.f32 %v2691_v3, 0.0 }
 0x3aa   : > { %v3237_v8 = vpack.c.bf16 %v2693_v7, %v2692_v6 }
 0x3ac   : > { %2702 = vst [vmem:[%s305_s21] sm:$0x77] %v3237_v8 }
 0x3ad PF: > { %s18_s27 = sadd.s32 1, %s3693_s27  }
 0x3ae   : > { %p15_p4 = scmp.ge.s32.totalorder %s18_s27, 4  }
 0x3b0   :  { %17 = sbr.rel (!%p15_p4) target bundleno = 1 (0x1), region = 85 }

</bundles_post_ra>
